<compile_context>
chip_gen: v5e
topology: v5e:2x2
jax: 0.10.0
libtpu: 0.0.40
codegen_flags: <defaults>
</compile_context>

<pallas_src>
import functools

import jax
import jax.numpy as jnp
from jax import lax
from jax.experimental import pallas as pl
from jax.experimental.pallas import tpu as pltpu

LANE = 128      # lane width (last-dim alignment)
SUBLANE = 8     # f32 sublane group


def _round_up(x, m):
    return (x + m - 1) // m * m


# ----------------------------------------------------------------------------
# Fused kernel: 2 LSTM layers + FC head, full sequence, single invocation.
# ----------------------------------------------------------------------------
def _fused_rnn_kernel(x_ref,
                      wih0_ref, whh0_ref, b0_ref,
                      wih1_ref, whh1_ref, b1_ref,
                      wfc_ref, bfc_ref,
                      h0_ref, c0_ref,
                      logits_ref, hT_ref, cT_ref,
                      gx_ref, hseq_ref,
                      *, seq_len, n_pad, hp):
    """x_ref: (T*Np, Ip) bf16, time-major rows (t*Np + n).
    gx_ref:   (T*Np, 4Hp) f32 scratch — batched input-projection pre-activations
              (+ bias) of the layer currently being run.
    hseq_ref: (T*Np, Hp)  f32 scratch — the current layer's per-step hidden
              states (written during its recurrence, read by the next stage)."""

    def sigmoid(x):
        # 0.5*tanh(0.5*x)+0.5 == sigmoid(x): one EUP tanh + VPU fma on the
        # serial path instead of exp + reciprocal.
        return 0.5 * jnp.tanh(0.5 * x) + 0.5

    def batched_input_proj(x2d_bf16, w_ref, b_ref):
        # (T*Np, K) @ (K, 4Hp) in bf16 on the MXU, f32 accumulation, + bias.
        gx = jnp.dot(x2d_bf16, w_ref[...], preferred_element_type=jnp.float32)
        gx_ref[...] = gx + b_ref[...]

    def recurrence(whh_ref, h_init, c_init):
        # Serial part: only h @ W_hh + gates + c/h update per timestep.
        def step(t, carry):
            h, c = carry
            row = pl.multiple_of(t * n_pad, n_pad)
            gates = (gx_ref[pl.ds(row, n_pad), :]
                     + jnp.dot(h.astype(whh_ref.dtype), whh_ref[...],
                               preferred_element_type=jnp.float32))
            # PyTorch gate order i, f, g, o; each gate is a full 128-lane slab
            # so these slices are free.
            i_g = sigmoid(gates[:, 0 * hp:1 * hp])
            f_g = sigmoid(gates[:, 1 * hp:2 * hp])
            g_g = jnp.tanh(gates[:, 2 * hp:3 * hp])
            o_g = sigmoid(gates[:, 3 * hp:4 * hp])
            c_new = f_g * c + i_g * g_g
            h_new = o_g * jnp.tanh(c_new)
            hseq_ref[pl.ds(row, n_pad), :] = h_new
            return (h_new, c_new)
        return lax.fori_loop(0, seq_len, step, (h_init, c_init), unroll=True)

    # ---- layer 0 ------------------------------------------------------------
    batched_input_proj(x_ref[...], wih0_ref, b0_ref)
    h0f, c0f = recurrence(whh0_ref, h0_ref[0], c0_ref[0])
    hT_ref[0] = h0f
    cT_ref[0] = c0f

    # ---- layer 1 (input = layer-0 hidden sequence from scratch) --------------
    batched_input_proj(hseq_ref[...].astype(wih1_ref.dtype), wih1_ref, b1_ref)
    h1f, c1f = recurrence(whh1_ref, h0_ref[1], c0_ref[1])
    hT_ref[1] = h1f
    cT_ref[1] = c1f

    # ---- FC head: one big lane-dense matmul over all timesteps ---------------
    logits = jnp.dot(hseq_ref[...].astype(wfc_ref.dtype), wfc_ref[...],
                     preferred_element_type=jnp.float32)
    logits_ref[...] = logits + bfc_ref[...]


def _fused_forward_padded(x_p2d, p0, p1, pfc, h0_p, c0_p, seq_len, n_pad):
    """All arguments already padded/lane-aligned; single grid-less pallas_call."""
    TN, Ip = x_p2d.shape
    L, _, Hp = h0_p.shape
    Vp = pfc["w_t"].shape[1]

    def full(shape):
        zeros = (0,) * len(shape)
        return pl.BlockSpec(shape, lambda: zeros)

    kernel = functools.partial(_fused_rnn_kernel,
                               seq_len=seq_len, n_pad=n_pad, hp=Hp)
    return pl.pallas_call(
        kernel,
        out_shape=(
            jax.ShapeDtypeStruct((TN, Vp), jnp.float32),      # per-step logits
            jax.ShapeDtypeStruct((L, n_pad, Hp), jnp.float32),  # final h
            jax.ShapeDtypeStruct((L, n_pad, Hp), jnp.float32),  # final c
        ),
        in_specs=[
            full((TN, Ip)),
            full(p0["w_ih_t"].shape), full(p0["w_hh_t"].shape), full(p0["bias"].shape),
            full(p1["w_ih_t"].shape), full(p1["w_hh_t"].shape), full(p1["bias"].shape),
            full(pfc["w_t"].shape), full(pfc["b"].shape),
            full((L, n_pad, Hp)), full((L, n_pad, Hp)),
        ],
        out_specs=(
            full((TN, Vp)),
            full((L, n_pad, Hp)),
            full((L, n_pad, Hp)),
        ),
        scratch_shapes=[
            pltpu.VMEM((TN, 4 * Hp), jnp.float32),   # batched gate pre-activations
            pltpu.VMEM((TN, Hp), jnp.float32),       # per-step hidden-state sequence
        ],
    )(x_p2d, p0["w_ih_t"], p0["w_hh_t"], p0["bias"],
      p1["w_ih_t"], p1["w_hh_t"], p1["bias"],
      pfc["w_t"], pfc["b"], h0_p, c0_p)


# ----------------------------------------------------------------------------
# Full module forward (inference), with padding/layout glue around the kernel.
# ----------------------------------------------------------------------------
def recurrent_nn_forward(params, x, hidden_val):
    """x: (N, T, V) batch_first input.  hidden_val = (h0, c0), each
    (num_layers, N, H).  Returns (logits (N*T, V), (hT, cT)) — same semantics
    as the PyTorch module in eval mode."""
    h0_all, c0_all = hidden_val
    assert len(params["lstm"]) == 2, "kernel is specialized for 2 LSTM layers"

    N, T, V = x.shape
    L, _, H = h0_all.shape
    Hp = _round_up(H, LANE)
    Vp = _round_up(V, LANE)
    Ip = _round_up(V, LANE)
    Np = _round_up(N, SUBLANE)

    # --- pad parameters so every gate is its own 128-lane-aligned block;
    #     MXU operands stored as bf16, biases stay f32 -----------------------
    def pad_lstm(p, in_dim, in_pad):
        w_ih = p["w_ih_t"].reshape(in_dim, 4, H)
        w_ih = jnp.pad(w_ih, ((0, in_pad - in_dim), (0, 0), (0, Hp - H)))
        w_hh = p["w_hh_t"].reshape(H, 4, H)
        w_hh = jnp.pad(w_hh, ((0, Hp - H), (0, 0), (0, Hp - H)))
        b = jnp.pad(p["bias"].reshape(4, H), ((0, 0), (0, Hp - H)))
        return {"w_ih_t": w_ih.reshape(in_pad, 4 * Hp).astype(jnp.bfloat16),
                "w_hh_t": w_hh.reshape(Hp, 4 * Hp).astype(jnp.bfloat16),
                "bias": b.reshape(1, 4 * Hp)}

    p0 = pad_lstm(params["lstm"][0], V, Ip)
    p1 = pad_lstm(params["lstm"][1], H, Hp)
    pfc = {"w_t": jnp.pad(params["fc"]["w_t"],
                          ((0, Hp - H), (0, Vp - V))).astype(jnp.bfloat16),
           "b": jnp.pad(params["fc"]["b"], ((0, 0), (0, Vp - V)))}

    # --- activations: time-major, full-sublane batch, lane-dense input,
    #     flattened to 2-D so every in-kernel matmul is a plain 2-D dot -------
    x_p = jnp.pad(jnp.transpose(x, (1, 0, 2)),
                  ((0, 0), (0, Np - N), (0, Ip - V))).astype(jnp.bfloat16)
    x_p2d = x_p.reshape(T * Np, Ip)
    h0_p = jnp.pad(h0_all, ((0, 0), (0, Np - N), (0, Hp - H)))
    c0_p = jnp.pad(c0_all, ((0, 0), (0, Np - N), (0, Hp - H)))

    logits_p, hT_p, cT_p = _fused_forward_padded(x_p2d, p0, p1, pfc,
                                                 h0_p, c0_p, T, Np)

    # (T*Np, Vp) -> batch_first flat (N*T, V), matching
    # .contiguous().view(-1, H) followed by fc in the PyTorch module.
    logits = jnp.transpose(logits_p.reshape(T, Np, Vp)[:, :N, :V],
                           (1, 0, 2)).reshape(N * T, V)
    return logits, (hT_p[:, :N, :H], cT_p[:, :N, :H])


# ----------------------------------------------------------------------------
# Pure-JAX f32 reference (for sanity checking)
# ----------------------------------------------------------------------------
def reference_forward(params, x, hidden_val):
    h0_all, c0_all = hidden_val
    layer_in = x  # (N, T, F)
    hTs, cTs = [], []
    for l, p in enumerate(params["lstm"]):
        H = p["w_hh_t"].shape[0]
        h, c = h0_all[l], c0_all[l]
        ys = []
        for t in range(layer_in.shape[1]):
            g = layer_in[:, t] @ p["w_ih_t"] + h @ p["w_hh_t"] + p["bias"]
            i = jax.nn.sigmoid(g[:, 0:H])
            f = jax.nn.sigmoid(g[:, H:2 * H])
            gg = jnp.tanh(g[:, 2 * H:3 * H])
            o = jax.nn.sigmoid(g[:, 3 * H:4 * H])
            c = f * c + i * gg
            h = o * jnp.tanh(c)
            ys.append(h)
        layer_in = jnp.stack(ys, axis=1)
        hTs.append(h)
        cTs.append(c)
    flat = layer_in.reshape(-1, layer_in.shape[-1])
    logits = flat @ params["fc"]["w_t"] + params["fc"]["b"]
    return logits, (jnp.stack(hTs, 0), jnp.stack(cTs, 0))


# ----------------------------------------------------------------------------
# Deterministic parameter init (mirrors nn.LSTM / nn.Linear shapes)
# ----------------------------------------------------------------------------
def init_params(key, vocab, hidden, num_layers):
    params = {"lstm": [], "fc": {}}
    scale = 1.0 / jnp.sqrt(hidden)
    for l in range(num_layers):
        in_sz = vocab if l == 0 else hidden
        key, k1, k2, k3, k4 = jax.random.split(key, 5)
        w_ih = jax.random.uniform(k1, (4 * hidden, in_sz), jnp.float32, -scale, scale)
        w_hh = jax.random.uniform(k2, (4 * hidden, hidden), jnp.float32, -scale, scale)
        b_ih = jax.random.uniform(k3, (4 * hidden,), jnp.float32, -scale, scale)
        b_hh = jax.random.uniform(k4, (4 * hidden,), jnp.float32, -scale, scale)
        params["lstm"].append({
            "w_ih_t": w_ih.T,                       # (in, 4H)
            "w_hh_t": w_hh.T,                       # (H, 4H)
            "bias": (b_ih + b_hh)[None, :],         # (1, 4H)
        })
    key, k1, k2 = jax.random.split(key, 3)
    w_fc = jax.random.uniform(k1, (vocab, hidden), jnp.float32, -scale, scale)
    b_fc = jax.random.uniform(k2, (vocab,), jnp.float32, -scale, scale)
    params["fc"]["w_t"] = w_fc.T                    # (H, vocab)
    params["fc"]["b"] = b_fc[None, :]               # (1, vocab)
    return params


if __name__ == "__main__":
    VOCAB = 16        # len(characterSet)
    HIDDEN = 32       # hiddenStates
    LAYERS = 2        # hiddenLayers
    N, T = 2, 8       # batch (numSequences), sequence length

    key = jax.random.PRNGKey(0)
    key, kp, kx = jax.random.split(key, 3)
    params = init_params(kp, VOCAB, HIDDEN, LAYERS)

    # one-hot character input, batch_first (N, T, VOCAB)
    ids = jax.random.randint(kx, (N, T), 0, VOCAB)
    x = jax.nn.one_hot(ids, VOCAB, dtype=jnp.float32)

    # init_hidden: zeros of shape (layers, N, hidden)
    h0 = jnp.zeros((LAYERS, N, HIDDEN), jnp.float32)
    c0 = jnp.zeros((LAYERS, N, HIDDEN), jnp.float32)

    fwd = jax.jit(recurrent_nn_forward)
    logits, (hT, cT) = fwd(params, x, (h0, c0))
    logits, hT, cT = jax.block_until_ready((logits, hT, cT))

    # sanity check against pure-JAX f32 reference (kernel uses bf16 MXU
    # operands with f32 accumulation, so tolerance is bf16-level).
    ref_logits, (ref_hT, ref_cT) = reference_forward(params, x, (h0, c0))
    assert logits.shape == (N * T, VOCAB)
    assert hT.shape == (LAYERS, N, HIDDEN) and cT.shape == (LAYERS, N, HIDDEN)
    assert jnp.allclose(logits, ref_logits, atol=2e-2, rtol=2e-2)
    assert jnp.allclose(hT, ref_hT, atol=2e-2, rtol=2e-2)
    assert jnp.allclose(cT, ref_cT, atol=2e-2, rtol=2e-2)

    print("KERNEL_OK")
</pallas_src>

<mosaic_0001>
module attributes {stable_mosaic.version = 11 : i64} {
  func.func @_fused_rnn_kernel(%arg0: memref<64x128xbf16, #tpu.memory_space<vmem>>, %arg1: memref<128x512xbf16, #tpu.memory_space<vmem>>, %arg2: memref<128x512xbf16, #tpu.memory_space<vmem>>, %arg3: memref<1x512xf32, #tpu.memory_space<vmem>>, %arg4: memref<128x512xbf16, #tpu.memory_space<vmem>>, %arg5: memref<128x512xbf16, #tpu.memory_space<vmem>>, %arg6: memref<1x512xf32, #tpu.memory_space<vmem>>, %arg7: memref<128x128xbf16, #tpu.memory_space<vmem>>, %arg8: memref<1x128xf32, #tpu.memory_space<vmem>>, %arg9: memref<2x8x128xf32, #tpu.memory_space<vmem>>, %arg10: memref<2x8x128xf32, #tpu.memory_space<vmem>>, %arg11: memref<64x128xf32, #tpu.memory_space<vmem>>, %arg12: memref<2x8x128xf32, #tpu.memory_space<vmem>>, %arg13: memref<2x8x128xf32, #tpu.memory_space<vmem>>, %arg14: memref<64x512xf32, #tpu.memory_space<vmem>>, %arg15: memref<64x128xf32, #tpu.memory_space<vmem>>) attributes {dimension_semantics = [], scalar_prefetch = 0 : i64, scratch_operands = 2 : i64, tpu.core_type = #tpu.core_type<tc>} {
    %c0 = arith.constant 0 : index
    %c0_0 = arith.constant 0 : index
    %0 = vector.load %arg0[%c0, %c0_0] : memref<64x128xbf16, #tpu.memory_space<vmem>>, vector<64x128xbf16>
    %c0_1 = arith.constant 0 : index
    %c0_2 = arith.constant 0 : index
    %1 = vector.load %arg1[%c0_1, %c0_2] : memref<128x512xbf16, #tpu.memory_space<vmem>>, vector<128x512xbf16>
    %cst = arith.constant dense<0.000000e+00> : vector<64x512xf32>
    %2 = tpu.matmul %0, %1, %cst {dimension_numbers = #tpu.dot_dimension_numbers<[1], [0], [0], [1], [0, 0, 1, 1], [], []>} : vector<64x128xbf16>, vector<128x512xbf16>, vector<64x512xf32> -> vector<64x512xf32>
    %c0_3 = arith.constant 0 : index
    %c0_4 = arith.constant 0 : index
    %3 = vector.load %arg3[%c0_3, %c0_4] : memref<1x512xf32, #tpu.memory_space<vmem>>, vector<1x512xf32>
    %4 = vector.broadcast %3 : vector<1x512xf32> to vector<64x512xf32>
    %5 = arith.addf %2, %4 : vector<64x512xf32>
    %c0_5 = arith.constant 0 : index
    %c0_6 = arith.constant 0 : index
    %6 = vector.load %arg14[%c0_5, %c0_6] : memref<64x512xf32, #tpu.memory_space<vmem>>, vector<64x512xf32>
    tpu.vector_store %arg14[%c0_5, %c0_6], %5 {strides = array<i32>} : memref<64x512xf32, #tpu.memory_space<vmem>>, vector<64x512xf32>,
    %c0_7 = arith.constant 0 : index
    %c0_8 = arith.constant 0 : index
    %c0_9 = arith.constant 0 : index
    %7 = vector.load %arg9[%c0_7, %c0_8, %c0_9] : memref<2x8x128xf32, #tpu.memory_space<vmem>>, vector<1x8x128xf32>
    %8 = vector.shape_cast %7 : vector<1x8x128xf32> to vector<8x128xf32>
    %c0_10 = arith.constant 0 : index
    %c0_11 = arith.constant 0 : index
    %c0_12 = arith.constant 0 : index
    %9 = vector.load %arg10[%c0_10, %c0_11, %c0_12] : memref<2x8x128xf32, #tpu.memory_space<vmem>>, vector<1x8x128xf32>
    %10 = vector.shape_cast %9 : vector<1x8x128xf32> to vector<8x128xf32>
    %c0_i32 = arith.constant 0 : i32
    %c8_i32 = arith.constant 8 : i32
    %11 = arith.muli %c0_i32, %c8_i32 : i32
    %12 = tpu.assume_multiple %11, 8 : i32
    %13 = arith.index_cast %12 : i32 to index
    %c0_13 = arith.constant 0 : index
    %14 = vector.load %arg14[%13, %c0_13] : memref<64x512xf32, #tpu.memory_space<vmem>>, vector<8x512xf32>
    %15 = arith.truncf %8 : vector<8x128xf32> to vector<8x128xbf16>
    %c0_14 = arith.constant 0 : index
    %c0_15 = arith.constant 0 : index
    %16 = vector.load %arg2[%c0_14, %c0_15] : memref<128x512xbf16, #tpu.memory_space<vmem>>, vector<128x512xbf16>
    %cst_16 = arith.constant dense<0.000000e+00> : vector<8x512xf32>
    %17 = tpu.matmul %15, %16, %cst_16 {dimension_numbers = #tpu.dot_dimension_numbers<[1], [0], [0], [1], [0, 0, 1, 1], [], []>} : vector<8x128xbf16>, vector<128x512xbf16>, vector<8x512xf32> -> vector<8x512xf32>
    %18 = arith.addf %14, %17 : vector<8x512xf32>
    %19 = vector.extract_strided_slice %18 {offsets = [0, 0], sizes = [8, 128], strides = [1, 1]} : vector<8x512xf32> to vector<8x128xf32>
    %cst_17 = arith.constant 5.000000e-01 : f32
    %20 = vector.broadcast %cst_17 : f32 to vector<8x128xf32>
    %21 = arith.mulf %20, %19 : vector<8x128xf32>
    %22 = math.tanh %21 : vector<8x128xf32>
    %cst_18 = arith.constant 5.000000e-01 : f32
    %23 = vector.broadcast %cst_18 : f32 to vector<8x128xf32>
    %24 = arith.mulf %23, %22 : vector<8x128xf32>
    %cst_19 = arith.constant 5.000000e-01 : f32
    %25 = vector.broadcast %cst_19 : f32 to vector<8x128xf32>
    %26 = arith.addf %24, %25 : vector<8x128xf32>
    %27 = vector.extract_strided_slice %18 {offsets = [0, 128], sizes = [8, 128], strides = [1, 1]} : vector<8x512xf32> to vector<8x128xf32>
    %cst_20 = arith.constant 5.000000e-01 : f32
    %28 = vector.broadcast %cst_20 : f32 to vector<8x128xf32>
    %29 = arith.mulf %28, %27 : vector<8x128xf32>
    %30 = math.tanh %29 : vector<8x128xf32>
    %cst_21 = arith.constant 5.000000e-01 : f32
    %31 = vector.broadcast %cst_21 : f32 to vector<8x128xf32>
    %32 = arith.mulf %31, %30 : vector<8x128xf32>
    %cst_22 = arith.constant 5.000000e-01 : f32
    %33 = vector.broadcast %cst_22 : f32 to vector<8x128xf32>
    %34 = arith.addf %32, %33 : vector<8x128xf32>
    %35 = vector.extract_strided_slice %18 {offsets = [0, 256], sizes = [8, 128], strides = [1, 1]} : vector<8x512xf32> to vector<8x128xf32>
    %36 = math.tanh %35 : vector<8x128xf32>
    %37 = vector.extract_strided_slice %18 {offsets = [0, 384], sizes = [8, 128], strides = [1, 1]} : vector<8x512xf32> to vector<8x128xf32>
    %cst_23 = arith.constant 5.000000e-01 : f32
    %38 = vector.broadcast %cst_23 : f32 to vector<8x128xf32>
    %39 = arith.mulf %38, %37 : vector<8x128xf32>
    %40 = math.tanh %39 : vector<8x128xf32>
    %cst_24 = arith.constant 5.000000e-01 : f32
    %41 = vector.broadcast %cst_24 : f32 to vector<8x128xf32>
    %42 = arith.mulf %41, %40 : vector<8x128xf32>
    %cst_25 = arith.constant 5.000000e-01 : f32
    %43 = vector.broadcast %cst_25 : f32 to vector<8x128xf32>
    %44 = arith.addf %42, %43 : vector<8x128xf32>
    %45 = arith.mulf %34, %10 : vector<8x128xf32>
    %46 = arith.mulf %26, %36 : vector<8x128xf32>
    %47 = arith.addf %45, %46 : vector<8x128xf32>
    %48 = math.tanh %47 : vector<8x128xf32>
    %49 = arith.mulf %44, %48 : vector<8x128xf32>
    %50 = arith.index_cast %12 : i32 to index
    %c0_26 = arith.constant 0 : index
    %51 = vector.load %arg15[%50, %c0_26] : memref<64x128xf32, #tpu.memory_space<vmem>>, vector<8x128xf32>
    tpu.vector_store %arg15[%50, %c0_26], %49 {strides = array<i32>} : memref<64x128xf32, #tpu.memory_space<vmem>>, vector<8x128xf32>,
    %c1_i32 = arith.constant 1 : i32
    %c8_i32_27 = arith.constant 8 : i32
    %52 = arith.muli %c1_i32, %c8_i32_27 : i32
    %53 = tpu.assume_multiple %52, 8 : i32
    %54 = arith.index_cast %53 : i32 to index
    %c0_28 = arith.constant 0 : index
    %55 = vector.load %arg14[%54, %c0_28] : memref<64x512xf32, #tpu.memory_space<vmem>>, vector<8x512xf32>
    %56 = arith.truncf %49 : vector<8x128xf32> to vector<8x128xbf16>
    %c0_29 = arith.constant 0 : index
    %c0_30 = arith.constant 0 : index
    %57 = vector.load %arg2[%c0_29, %c0_30] : memref<128x512xbf16, #tpu.memory_space<vmem>>, vector<128x512xbf16>
    %cst_31 = arith.constant dense<0.000000e+00> : vector<8x512xf32>
    %58 = tpu.matmul %56, %57, %cst_31 {dimension_numbers = #tpu.dot_dimension_numbers<[1], [0], [0], [1], [0, 0, 1, 1], [], []>} : vector<8x128xbf16>, vector<128x512xbf16>, vector<8x512xf32> -> vector<8x512xf32>
    %59 = arith.addf %55, %58 : vector<8x512xf32>
    %60 = vector.extract_strided_slice %59 {offsets = [0, 0], sizes = [8, 128], strides = [1, 1]} : vector<8x512xf32> to vector<8x128xf32>
    %cst_32 = arith.constant 5.000000e-01 : f32
    %61 = vector.broadcast %cst_32 : f32 to vector<8x128xf32>
    %62 = arith.mulf %61, %60 : vector<8x128xf32>
    %63 = math.tanh %62 : vector<8x128xf32>
    %cst_33 = arith.constant 5.000000e-01 : f32
    %64 = vector.broadcast %cst_33 : f32 to vector<8x128xf32>
    %65 = arith.mulf %64, %63 : vector<8x128xf32>
    %cst_34 = arith.constant 5.000000e-01 : f32
    %66 = vector.broadcast %cst_34 : f32 to vector<8x128xf32>
    %67 = arith.addf %65, %66 : vector<8x128xf32>
    %68 = vector.extract_strided_slice %59 {offsets = [0, 128], sizes = [8, 128], strides = [1, 1]} : vector<8x512xf32> to vector<8x128xf32>
    %cst_35 = arith.constant 5.000000e-01 : f32
    %69 = vector.broadcast %cst_35 : f32 to vector<8x128xf32>
    %70 = arith.mulf %69, %68 : vector<8x128xf32>
    %71 = math.tanh %70 : vector<8x128xf32>
    %cst_36 = arith.constant 5.000000e-01 : f32
    %72 = vector.broadcast %cst_36 : f32 to vector<8x128xf32>
    %73 = arith.mulf %72, %71 : vector<8x128xf32>
    %cst_37 = arith.constant 5.000000e-01 : f32
    %74 = vector.broadcast %cst_37 : f32 to vector<8x128xf32>
    %75 = arith.addf %73, %74 : vector<8x128xf32>
    %76 = vector.extract_strided_slice %59 {offsets = [0, 256], sizes = [8, 128], strides = [1, 1]} : vector<8x512xf32> to vector<8x128xf32>
    %77 = math.tanh %76 : vector<8x128xf32>
    %78 = vector.extract_strided_slice %59 {offsets = [0, 384], sizes = [8, 128], strides = [1, 1]} : vector<8x512xf32> to vector<8x128xf32>
    %cst_38 = arith.constant 5.000000e-01 : f32
    %79 = vector.broadcast %cst_38 : f32 to vector<8x128xf32>
    %80 = arith.mulf %79, %78 : vector<8x128xf32>
    %81 = math.tanh %80 : vector<8x128xf32>
    %cst_39 = arith.constant 5.000000e-01 : f32
    %82 = vector.broadcast %cst_39 : f32 to vector<8x128xf32>
    %83 = arith.mulf %82, %81 : vector<8x128xf32>
    %cst_40 = arith.constant 5.000000e-01 : f32
    %84 = vector.broadcast %cst_40 : f32 to vector<8x128xf32>
    %85 = arith.addf %83, %84 : vector<8x128xf32>
    %86 = arith.mulf %75, %47 : vector<8x128xf32>
    %87 = arith.mulf %67, %77 : vector<8x128xf32>
    %88 = arith.addf %86, %87 : vector<8x128xf32>
    %89 = math.tanh %88 : vector<8x128xf32>
    %90 = arith.mulf %85, %89 : vector<8x128xf32>
    %91 = arith.index_cast %53 : i32 to index
    %c0_41 = arith.constant 0 : index
    %92 = vector.load %arg15[%91, %c0_41] : memref<64x128xf32, #tpu.memory_space<vmem>>, vector<8x128xf32>
    tpu.vector_store %arg15[%91, %c0_41], %90 {strides = array<i32>} : memref<64x128xf32, #tpu.memory_space<vmem>>, vector<8x128xf32>,
    %c2_i32 = arith.constant 2 : i32
    %c8_i32_42 = arith.constant 8 : i32
    %93 = arith.muli %c2_i32, %c8_i32_42 : i32
    %94 = tpu.assume_multiple %93, 8 : i32
    %95 = arith.index_cast %94 : i32 to index
    %c0_43 = arith.constant 0 : index
    %96 = vector.load %arg14[%95, %c0_43] : memref<64x512xf32, #tpu.memory_space<vmem>>, vector<8x512xf32>
    %97 = arith.truncf %90 : vector<8x128xf32> to vector<8x128xbf16>
    %c0_44 = arith.constant 0 : index
    %c0_45 = arith.constant 0 : index
    %98 = vector.load %arg2[%c0_44, %c0_45] : memref<128x512xbf16, #tpu.memory_space<vmem>>, vector<128x512xbf16>
    %cst_46 = arith.constant dense<0.000000e+00> : vector<8x512xf32>
    %99 = tpu.matmul %97, %98, %cst_46 {dimension_numbers = #tpu.dot_dimension_numbers<[1], [0], [0], [1], [0, 0, 1, 1], [], []>} : vector<8x128xbf16>, vector<128x512xbf16>, vector<8x512xf32> -> vector<8x512xf32>
    %100 = arith.addf %96, %99 : vector<8x512xf32>
    %101 = vector.extract_strided_slice %100 {offsets = [0, 0], sizes = [8, 128], strides = [1, 1]} : vector<8x512xf32> to vector<8x128xf32>
    %cst_47 = arith.constant 5.000000e-01 : f32
    %102 = vector.broadcast %cst_47 : f32 to vector<8x128xf32>
    %103 = arith.mulf %102, %101 : vector<8x128xf32>
    %104 = math.tanh %103 : vector<8x128xf32>
    %cst_48 = arith.constant 5.000000e-01 : f32
    %105 = vector.broadcast %cst_48 : f32 to vector<8x128xf32>
    %106 = arith.mulf %105, %104 : vector<8x128xf32>
    %cst_49 = arith.constant 5.000000e-01 : f32
    %107 = vector.broadcast %cst_49 : f32 to vector<8x128xf32>
    %108 = arith.addf %106, %107 : vector<8x128xf32>
    %109 = vector.extract_strided_slice %100 {offsets = [0, 128], sizes = [8, 128], strides = [1, 1]} : vector<8x512xf32> to vector<8x128xf32>
    %cst_50 = arith.constant 5.000000e-01 : f32
    %110 = vector.broadcast %cst_50 : f32 to vector<8x128xf32>
    %111 = arith.mulf %110, %109 : vector<8x128xf32>
    %112 = math.tanh %111 : vector<8x128xf32>
    %cst_51 = arith.constant 5.000000e-01 : f32
    %113 = vector.broadcast %cst_51 : f32 to vector<8x128xf32>
    %114 = arith.mulf %113, %112 : vector<8x128xf32>
    %cst_52 = arith.constant 5.000000e-01 : f32
    %115 = vector.broadcast %cst_52 : f32 to vector<8x128xf32>
    %116 = arith.addf %114, %115 : vector<8x128xf32>
    %117 = vector.extract_strided_slice %100 {offsets = [0, 256], sizes = [8, 128], strides = [1, 1]} : vector<8x512xf32> to vector<8x128xf32>
    %118 = math.tanh %117 : vector<8x128xf32>
    %119 = vector.extract_strided_slice %100 {offsets = [0, 384], sizes = [8, 128], strides = [1, 1]} : vector<8x512xf32> to vector<8x128xf32>
    %cst_53 = arith.constant 5.000000e-01 : f32
    %120 = vector.broadcast %cst_53 : f32 to vector<8x128xf32>
    %121 = arith.mulf %120, %119 : vector<8x128xf32>
    %122 = math.tanh %121 : vector<8x128xf32>
    %cst_54 = arith.constant 5.000000e-01 : f32
    %123 = vector.broadcast %cst_54 : f32 to vector<8x128xf32>
    %124 = arith.mulf %123, %122 : vector<8x128xf32>
    %cst_55 = arith.constant 5.000000e-01 : f32
    %125 = vector.broadcast %cst_55 : f32 to vector<8x128xf32>
    %126 = arith.addf %124, %125 : vector<8x128xf32>
    %127 = arith.mulf %116, %88 : vector<8x128xf32>
    %128 = arith.mulf %108, %118 : vector<8x128xf32>
    %129 = arith.addf %127, %128 : vector<8x128xf32>
    %130 = math.tanh %129 : vector<8x128xf32>
    %131 = arith.mulf %126, %130 : vector<8x128xf32>
    %132 = arith.index_cast %94 : i32 to index
    %c0_56 = arith.constant 0 : index
    %133 = vector.load %arg15[%132, %c0_56] : memref<64x128xf32, #tpu.memory_space<vmem>>, vector<8x128xf32>
    tpu.vector_store %arg15[%132, %c0_56], %131 {strides = array<i32>} : memref<64x128xf32, #tpu.memory_space<vmem>>, vector<8x128xf32>,
    %c3_i32 = arith.constant 3 : i32
    %c8_i32_57 = arith.constant 8 : i32
    %134 = arith.muli %c3_i32, %c8_i32_57 : i32
    %135 = tpu.assume_multiple %134, 8 : i32
    %136 = arith.index_cast %135 : i32 to index
    %c0_58 = arith.constant 0 : index
    %137 = vector.load %arg14[%136, %c0_58] : memref<64x512xf32, #tpu.memory_space<vmem>>, vector<8x512xf32>
    %138 = arith.truncf %131 : vector<8x128xf32> to vector<8x128xbf16>
    %c0_59 = arith.constant 0 : index
    %c0_60 = arith.constant 0 : index
    %139 = vector.load %arg2[%c0_59, %c0_60] : memref<128x512xbf16, #tpu.memory_space<vmem>>, vector<128x512xbf16>
    %cst_61 = arith.constant dense<0.000000e+00> : vector<8x512xf32>
    %140 = tpu.matmul %138, %139, %cst_61 {dimension_numbers = #tpu.dot_dimension_numbers<[1], [0], [0], [1], [0, 0, 1, 1], [], []>} : vector<8x128xbf16>, vector<128x512xbf16>, vector<8x512xf32> -> vector<8x512xf32>
    %141 = arith.addf %137, %140 : vector<8x512xf32>
    %142 = vector.extract_strided_slice %141 {offsets = [0, 0], sizes = [8, 128], strides = [1, 1]} : vector<8x512xf32> to vector<8x128xf32>
    %cst_62 = arith.constant 5.000000e-01 : f32
    %143 = vector.broadcast %cst_62 : f32 to vector<8x128xf32>
    %144 = arith.mulf %143, %142 : vector<8x128xf32>
    %145 = math.tanh %144 : vector<8x128xf32>
    %cst_63 = arith.constant 5.000000e-01 : f32
    %146 = vector.broadcast %cst_63 : f32 to vector<8x128xf32>
    %147 = arith.mulf %146, %145 : vector<8x128xf32>
    %cst_64 = arith.constant 5.000000e-01 : f32
    %148 = vector.broadcast %cst_64 : f32 to vector<8x128xf32>
    %149 = arith.addf %147, %148 : vector<8x128xf32>
    %150 = vector.extract_strided_slice %141 {offsets = [0, 128], sizes = [8, 128], strides = [1, 1]} : vector<8x512xf32> to vector<8x128xf32>
    %cst_65 = arith.constant 5.000000e-01 : f32
    %151 = vector.broadcast %cst_65 : f32 to vector<8x128xf32>
    %152 = arith.mulf %151, %150 : vector<8x128xf32>
    %153 = math.tanh %152 : vector<8x128xf32>
    %cst_66 = arith.constant 5.000000e-01 : f32
    %154 = vector.broadcast %cst_66 : f32 to vector<8x128xf32>
    %155 = arith.mulf %154, %153 : vector<8x128xf32>
    %cst_67 = arith.constant 5.000000e-01 : f32
    %156 = vector.broadcast %cst_67 : f32 to vector<8x128xf32>
    %157 = arith.addf %155, %156 : vector<8x128xf32>
    %158 = vector.extract_strided_slice %141 {offsets = [0, 256], sizes = [8, 128], strides = [1, 1]} : vector<8x512xf32> to vector<8x128xf32>
    %159 = math.tanh %158 : vector<8x128xf32>
    %160 = vector.extract_strided_slice %141 {offsets = [0, 384], sizes = [8, 128], strides = [1, 1]} : vector<8x512xf32> to vector<8x128xf32>
    %cst_68 = arith.constant 5.000000e-01 : f32
    %161 = vector.broadcast %cst_68 : f32 to vector<8x128xf32>
    %162 = arith.mulf %161, %160 : vector<8x128xf32>
    %163 = math.tanh %162 : vector<8x128xf32>
    %cst_69 = arith.constant 5.000000e-01 : f32
    %164 = vector.broadcast %cst_69 : f32 to vector<8x128xf32>
    %165 = arith.mulf %164, %163 : vector<8x128xf32>
    %cst_70 = arith.constant 5.000000e-01 : f32
    %166 = vector.broadcast %cst_70 : f32 to vector<8x128xf32>
    %167 = arith.addf %165, %166 : vector<8x128xf32>
    %168 = arith.mulf %157, %129 : vector<8x128xf32>
    %169 = arith.mulf %149, %159 : vector<8x128xf32>
    %170 = arith.addf %168, %169 : vector<8x128xf32>
    %171 = math.tanh %170 : vector<8x128xf32>
    %172 = arith.mulf %167, %171 : vector<8x128xf32>
    %173 = arith.index_cast %135 : i32 to index
    %c0_71 = arith.constant 0 : index
    %174 = vector.load %arg15[%173, %c0_71] : memref<64x128xf32, #tpu.memory_space<vmem>>, vector<8x128xf32>
    tpu.vector_store %arg15[%173, %c0_71], %172 {strides = array<i32>} : memref<64x128xf32, #tpu.memory_space<vmem>>, vector<8x128xf32>,
    %c4_i32 = arith.constant 4 : i32
    %c8_i32_72 = arith.constant 8 : i32
    %175 = arith.muli %c4_i32, %c8_i32_72 : i32
    %176 = tpu.assume_multiple %175, 8 : i32
    %177 = arith.index_cast %176 : i32 to index
    %c0_73 = arith.constant 0 : index
    %178 = vector.load %arg14[%177, %c0_73] : memref<64x512xf32, #tpu.memory_space<vmem>>, vector<8x512xf32>
    %179 = arith.truncf %172 : vector<8x128xf32> to vector<8x128xbf16>
    %c0_74 = arith.constant 0 : index
    %c0_75 = arith.constant 0 : index
    %180 = vector.load %arg2[%c0_74, %c0_75] : memref<128x512xbf16, #tpu.memory_space<vmem>>, vector<128x512xbf16>
    %cst_76 = arith.constant dense<0.000000e+00> : vector<8x512xf32>
    %181 = tpu.matmul %179, %180, %cst_76 {dimension_numbers = #tpu.dot_dimension_numbers<[1], [0], [0], [1], [0, 0, 1, 1], [], []>} : vector<8x128xbf16>, vector<128x512xbf16>, vector<8x512xf32> -> vector<8x512xf32>
    %182 = arith.addf %178, %181 : vector<8x512xf32>
    %183 = vector.extract_strided_slice %182 {offsets = [0, 0], sizes = [8, 128], strides = [1, 1]} : vector<8x512xf32> to vector<8x128xf32>
    %cst_77 = arith.constant 5.000000e-01 : f32
    %184 = vector.broadcast %cst_77 : f32 to vector<8x128xf32>
    %185 = arith.mulf %184, %183 : vector<8x128xf32>
    %186 = math.tanh %185 : vector<8x128xf32>
    %cst_78 = arith.constant 5.000000e-01 : f32
    %187 = vector.broadcast %cst_78 : f32 to vector<8x128xf32>
    %188 = arith.mulf %187, %186 : vector<8x128xf32>
    %cst_79 = arith.constant 5.000000e-01 : f32
    %189 = vector.broadcast %cst_79 : f32 to vector<8x128xf32>
    %190 = arith.addf %188, %189 : vector<8x128xf32>
    %191 = vector.extract_strided_slice %182 {offsets = [0, 128], sizes = [8, 128], strides = [1, 1]} : vector<8x512xf32> to vector<8x128xf32>
    %cst_80 = arith.constant 5.000000e-01 : f32
    %192 = vector.broadcast %cst_80 : f32 to vector<8x128xf32>
    %193 = arith.mulf %192, %191 : vector<8x128xf32>
    %194 = math.tanh %193 : vector<8x128xf32>
    %cst_81 = arith.constant 5.000000e-01 : f32
    %195 = vector.broadcast %cst_81 : f32 to vector<8x128xf32>
    %196 = arith.mulf %195, %194 : vector<8x128xf32>
    %cst_82 = arith.constant 5.000000e-01 : f32
    %197 = vector.broadcast %cst_82 : f32 to vector<8x128xf32>
    %198 = arith.addf %196, %197 : vector<8x128xf32>
    %199 = vector.extract_strided_slice %182 {offsets = [0, 256], sizes = [8, 128], strides = [1, 1]} : vector<8x512xf32> to vector<8x128xf32>
    %200 = math.tanh %199 : vector<8x128xf32>
    %201 = vector.extract_strided_slice %182 {offsets = [0, 384], sizes = [8, 128], strides = [1, 1]} : vector<8x512xf32> to vector<8x128xf32>
    %cst_83 = arith.constant 5.000000e-01 : f32
    %202 = vector.broadcast %cst_83 : f32 to vector<8x128xf32>
    %203 = arith.mulf %202, %201 : vector<8x128xf32>
    %204 = math.tanh %203 : vector<8x128xf32>
    %cst_84 = arith.constant 5.000000e-01 : f32
    %205 = vector.broadcast %cst_84 : f32 to vector<8x128xf32>
    %206 = arith.mulf %205, %204 : vector<8x128xf32>
    %cst_85 = arith.constant 5.000000e-01 : f32
    %207 = vector.broadcast %cst_85 : f32 to vector<8x128xf32>
    %208 = arith.addf %206, %207 : vector<8x128xf32>
    %209 = arith.mulf %198, %170 : vector<8x128xf32>
    %210 = arith.mulf %190, %200 : vector<8x128xf32>
    %211 = arith.addf %209, %210 : vector<8x128xf32>
    %212 = math.tanh %211 : vector<8x128xf32>
    %213 = arith.mulf %208, %212 : vector<8x128xf32>
    %214 = arith.index_cast %176 : i32 to index
    %c0_86 = arith.constant 0 : index
    %215 = vector.load %arg15[%214, %c0_86] : memref<64x128xf32, #tpu.memory_space<vmem>>, vector<8x128xf32>
    tpu.vector_store %arg15[%214, %c0_86], %213 {strides = array<i32>} : memref<64x128xf32, #tpu.memory_space<vmem>>, vector<8x128xf32>,
    %c5_i32 = arith.constant 5 : i32
    %c8_i32_87 = arith.constant 8 : i32
    %216 = arith.muli %c5_i32, %c8_i32_87 : i32
    %217 = tpu.assume_multiple %216, 8 : i32
    %218 = arith.index_cast %217 : i32 to index
    %c0_88 = arith.constant 0 : index
    %219 = vector.load %arg14[%218, %c0_88] : memref<64x512xf32, #tpu.memory_space<vmem>>, vector<8x512xf32>
    %220 = arith.truncf %213 : vector<8x128xf32> to vector<8x128xbf16>
    %c0_89 = arith.constant 0 : index
    %c0_90 = arith.constant 0 : index
    %221 = vector.load %arg2[%c0_89, %c0_90] : memref<128x512xbf16, #tpu.memory_space<vmem>>, vector<128x512xbf16>
    %cst_91 = arith.constant dense<0.000000e+00> : vector<8x512xf32>
    %222 = tpu.matmul %220, %221, %cst_91 {dimension_numbers = #tpu.dot_dimension_numbers<[1], [0], [0], [1], [0, 0, 1, 1], [], []>} : vector<8x128xbf16>, vector<128x512xbf16>, vector<8x512xf32> -> vector<8x512xf32>
    %223 = arith.addf %219, %222 : vector<8x512xf32>
    %224 = vector.extract_strided_slice %223 {offsets = [0, 0], sizes = [8, 128], strides = [1, 1]} : vector<8x512xf32> to vector<8x128xf32>
    %cst_92 = arith.constant 5.000000e-01 : f32
    %225 = vector.broadcast %cst_92 : f32 to vector<8x128xf32>
    %226 = arith.mulf %225, %224 : vector<8x128xf32>
    %227 = math.tanh %226 : vector<8x128xf32>
    %cst_93 = arith.constant 5.000000e-01 : f32
    %228 = vector.broadcast %cst_93 : f32 to vector<8x128xf32>
    %229 = arith.mulf %228, %227 : vector<8x128xf32>
    %cst_94 = arith.constant 5.000000e-01 : f32
    %230 = vector.broadcast %cst_94 : f32 to vector<8x128xf32>
    %231 = arith.addf %229, %230 : vector<8x128xf32>
    %232 = vector.extract_strided_slice %223 {offsets = [0, 128], sizes = [8, 128], strides = [1, 1]} : vector<8x512xf32> to vector<8x128xf32>
    %cst_95 = arith.constant 5.000000e-01 : f32
    %233 = vector.broadcast %cst_95 : f32 to vector<8x128xf32>
    %234 = arith.mulf %233, %232 : vector<8x128xf32>
    %235 = math.tanh %234 : vector<8x128xf32>
    %cst_96 = arith.constant 5.000000e-01 : f32
    %236 = vector.broadcast %cst_96 : f32 to vector<8x128xf32>
    %237 = arith.mulf %236, %235 : vector<8x128xf32>
    %cst_97 = arith.constant 5.000000e-01 : f32
    %238 = vector.broadcast %cst_97 : f32 to vector<8x128xf32>
    %239 = arith.addf %237, %238 : vector<8x128xf32>
    %240 = vector.extract_strided_slice %223 {offsets = [0, 256], sizes = [8, 128], strides = [1, 1]} : vector<8x512xf32> to vector<8x128xf32>
    %241 = math.tanh %240 : vector<8x128xf32>
    %242 = vector.extract_strided_slice %223 {offsets = [0, 384], sizes = [8, 128], strides = [1, 1]} : vector<8x512xf32> to vector<8x128xf32>
    %cst_98 = arith.constant 5.000000e-01 : f32
    %243 = vector.broadcast %cst_98 : f32 to vector<8x128xf32>
    %244 = arith.mulf %243, %242 : vector<8x128xf32>
    %245 = math.tanh %244 : vector<8x128xf32>
    %cst_99 = arith.constant 5.000000e-01 : f32
    %246 = vector.broadcast %cst_99 : f32 to vector<8x128xf32>
    %247 = arith.mulf %246, %245 : vector<8x128xf32>
    %cst_100 = arith.constant 5.000000e-01 : f32
    %248 = vector.broadcast %cst_100 : f32 to vector<8x128xf32>
    %249 = arith.addf %247, %248 : vector<8x128xf32>
    %250 = arith.mulf %239, %211 : vector<8x128xf32>
    %251 = arith.mulf %231, %241 : vector<8x128xf32>
    %252 = arith.addf %250, %251 : vector<8x128xf32>
    %253 = math.tanh %252 : vector<8x128xf32>
    %254 = arith.mulf %249, %253 : vector<8x128xf32>
    %255 = arith.index_cast %217 : i32 to index
    %c0_101 = arith.constant 0 : index
    %256 = vector.load %arg15[%255, %c0_101] : memref<64x128xf32, #tpu.memory_space<vmem>>, vector<8x128xf32>
    tpu.vector_store %arg15[%255, %c0_101], %254 {strides = array<i32>} : memref<64x128xf32, #tpu.memory_space<vmem>>, vector<8x128xf32>,
    %c6_i32 = arith.constant 6 : i32
    %c8_i32_102 = arith.constant 8 : i32
    %257 = arith.muli %c6_i32, %c8_i32_102 : i32
    %258 = tpu.assume_multiple %257, 8 : i32
    %259 = arith.index_cast %258 : i32 to index
    %c0_103 = arith.constant 0 : index
    %260 = vector.load %arg14[%259, %c0_103] : memref<64x512xf32, #tpu.memory_space<vmem>>, vector<8x512xf32>
    %261 = arith.truncf %254 : vector<8x128xf32> to vector<8x128xbf16>
    %c0_104 = arith.constant 0 : index
    %c0_105 = arith.constant 0 : index
    %262 = vector.load %arg2[%c0_104, %c0_105] : memref<128x512xbf16, #tpu.memory_space<vmem>>, vector<128x512xbf16>
    %cst_106 = arith.constant dense<0.000000e+00> : vector<8x512xf32>
    %263 = tpu.matmul %261, %262, %cst_106 {dimension_numbers = #tpu.dot_dimension_numbers<[1], [0], [0], [1], [0, 0, 1, 1], [], []>} : vector<8x128xbf16>, vector<128x512xbf16>, vector<8x512xf32> -> vector<8x512xf32>
    %264 = arith.addf %260, %263 : vector<8x512xf32>
    %265 = vector.extract_strided_slice %264 {offsets = [0, 0], sizes = [8, 128], strides = [1, 1]} : vector<8x512xf32> to vector<8x128xf32>
    %cst_107 = arith.constant 5.000000e-01 : f32
    %266 = vector.broadcast %cst_107 : f32 to vector<8x128xf32>
    %267 = arith.mulf %266, %265 : vector<8x128xf32>
    %268 = math.tanh %267 : vector<8x128xf32>
    %cst_108 = arith.constant 5.000000e-01 : f32
    %269 = vector.broadcast %cst_108 : f32 to vector<8x128xf32>
    %270 = arith.mulf %269, %268 : vector<8x128xf32>
    %cst_109 = arith.constant 5.000000e-01 : f32
    %271 = vector.broadcast %cst_109 : f32 to vector<8x128xf32>
    %272 = arith.addf %270, %271 : vector<8x128xf32>
    %273 = vector.extract_strided_slice %264 {offsets = [0, 128], sizes = [8, 128], strides = [1, 1]} : vector<8x512xf32> to vector<8x128xf32>
    %cst_110 = arith.constant 5.000000e-01 : f32
    %274 = vector.broadcast %cst_110 : f32 to vector<8x128xf32>
    %275 = arith.mulf %274, %273 : vector<8x128xf32>
    %276 = math.tanh %275 : vector<8x128xf32>
    %cst_111 = arith.constant 5.000000e-01 : f32
    %277 = vector.broadcast %cst_111 : f32 to vector<8x128xf32>
    %278 = arith.mulf %277, %276 : vector<8x128xf32>
    %cst_112 = arith.constant 5.000000e-01 : f32
    %279 = vector.broadcast %cst_112 : f32 to vector<8x128xf32>
    %280 = arith.addf %278, %279 : vector<8x128xf32>
    %281 = vector.extract_strided_slice %264 {offsets = [0, 256], sizes = [8, 128], strides = [1, 1]} : vector<8x512xf32> to vector<8x128xf32>
    %282 = math.tanh %281 : vector<8x128xf32>
    %283 = vector.extract_strided_slice %264 {offsets = [0, 384], sizes = [8, 128], strides = [1, 1]} : vector<8x512xf32> to vector<8x128xf32>
    %cst_113 = arith.constant 5.000000e-01 : f32
    %284 = vector.broadcast %cst_113 : f32 to vector<8x128xf32>
    %285 = arith.mulf %284, %283 : vector<8x128xf32>
    %286 = math.tanh %285 : vector<8x128xf32>
    %cst_114 = arith.constant 5.000000e-01 : f32
    %287 = vector.broadcast %cst_114 : f32 to vector<8x128xf32>
    %288 = arith.mulf %287, %286 : vector<8x128xf32>
    %cst_115 = arith.constant 5.000000e-01 : f32
    %289 = vector.broadcast %cst_115 : f32 to vector<8x128xf32>
    %290 = arith.addf %288, %289 : vector<8x128xf32>
    %291 = arith.mulf %280, %252 : vector<8x128xf32>
    %292 = arith.mulf %272, %282 : vector<8x128xf32>
    %293 = arith.addf %291, %292 : vector<8x128xf32>
    %294 = math.tanh %293 : vector<8x128xf32>
    %295 = arith.mulf %290, %294 : vector<8x128xf32>
    %296 = arith.index_cast %258 : i32 to index
    %c0_116 = arith.constant 0 : index
    %297 = vector.load %arg15[%296, %c0_116] : memref<64x128xf32, #tpu.memory_space<vmem>>, vector<8x128xf32>
    tpu.vector_store %arg15[%296, %c0_116], %295 {strides = array<i32>} : memref<64x128xf32, #tpu.memory_space<vmem>>, vector<8x128xf32>,
    %c7_i32 = arith.constant 7 : i32
    %c8_i32_117 = arith.constant 8 : i32
    %298 = arith.muli %c7_i32, %c8_i32_117 : i32
    %299 = tpu.assume_multiple %298, 8 : i32
    %300 = arith.index_cast %299 : i32 to index
    %c0_118 = arith.constant 0 : index
    %301 = vector.load %arg14[%300, %c0_118] : memref<64x512xf32, #tpu.memory_space<vmem>>, vector<8x512xf32>
    %302 = arith.truncf %295 : vector<8x128xf32> to vector<8x128xbf16>
    %c0_119 = arith.constant 0 : index
    %c0_120 = arith.constant 0 : index
    %303 = vector.load %arg2[%c0_119, %c0_120] : memref<128x512xbf16, #tpu.memory_space<vmem>>, vector<128x512xbf16>
    %cst_121 = arith.constant dense<0.000000e+00> : vector<8x512xf32>
    %304 = tpu.matmul %302, %303, %cst_121 {dimension_numbers = #tpu.dot_dimension_numbers<[1], [0], [0], [1], [0, 0, 1, 1], [], []>} : vector<8x128xbf16>, vector<128x512xbf16>, vector<8x512xf32> -> vector<8x512xf32>
    %305 = arith.addf %301, %304 : vector<8x512xf32>
    %306 = vector.extract_strided_slice %305 {offsets = [0, 0], sizes = [8, 128], strides = [1, 1]} : vector<8x512xf32> to vector<8x128xf32>
    %cst_122 = arith.constant 5.000000e-01 : f32
    %307 = vector.broadcast %cst_122 : f32 to vector<8x128xf32>
    %308 = arith.mulf %307, %306 : vector<8x128xf32>
    %309 = math.tanh %308 : vector<8x128xf32>
    %cst_123 = arith.constant 5.000000e-01 : f32
    %310 = vector.broadcast %cst_123 : f32 to vector<8x128xf32>
    %311 = arith.mulf %310, %309 : vector<8x128xf32>
    %cst_124 = arith.constant 5.000000e-01 : f32
    %312 = vector.broadcast %cst_124 : f32 to vector<8x128xf32>
    %313 = arith.addf %311, %312 : vector<8x128xf32>
    %314 = vector.extract_strided_slice %305 {offsets = [0, 128], sizes = [8, 128], strides = [1, 1]} : vector<8x512xf32> to vector<8x128xf32>
    %cst_125 = arith.constant 5.000000e-01 : f32
    %315 = vector.broadcast %cst_125 : f32 to vector<8x128xf32>
    %316 = arith.mulf %315, %314 : vector<8x128xf32>
    %317 = math.tanh %316 : vector<8x128xf32>
    %cst_126 = arith.constant 5.000000e-01 : f32
    %318 = vector.broadcast %cst_126 : f32 to vector<8x128xf32>
    %319 = arith.mulf %318, %317 : vector<8x128xf32>
    %cst_127 = arith.constant 5.000000e-01 : f32
    %320 = vector.broadcast %cst_127 : f32 to vector<8x128xf32>
    %321 = arith.addf %319, %320 : vector<8x128xf32>
    %322 = vector.extract_strided_slice %305 {offsets = [0, 256], sizes = [8, 128], strides = [1, 1]} : vector<8x512xf32> to vector<8x128xf32>
    %323 = math.tanh %322 : vector<8x128xf32>
    %324 = vector.extract_strided_slice %305 {offsets = [0, 384], sizes = [8, 128], strides = [1, 1]} : vector<8x512xf32> to vector<8x128xf32>
    %cst_128 = arith.constant 5.000000e-01 : f32
    %325 = vector.broadcast %cst_128 : f32 to vector<8x128xf32>
    %326 = arith.mulf %325, %324 : vector<8x128xf32>
    %327 = math.tanh %326 : vector<8x128xf32>
    %cst_129 = arith.constant 5.000000e-01 : f32
    %328 = vector.broadcast %cst_129 : f32 to vector<8x128xf32>
    %329 = arith.mulf %328, %327 : vector<8x128xf32>
    %cst_130 = arith.constant 5.000000e-01 : f32
    %330 = vector.broadcast %cst_130 : f32 to vector<8x128xf32>
    %331 = arith.addf %329, %330 : vector<8x128xf32>
    %332 = arith.mulf %321, %293 : vector<8x128xf32>
    %333 = arith.mulf %313, %323 : vector<8x128xf32>
    %334 = arith.addf %332, %333 : vector<8x128xf32>
    %335 = math.tanh %334 : vector<8x128xf32>
    %336 = arith.mulf %331, %335 : vector<8x128xf32>
    %337 = arith.index_cast %299 : i32 to index
    %c0_131 = arith.constant 0 : index
    %338 = vector.load %arg15[%337, %c0_131] : memref<64x128xf32, #tpu.memory_space<vmem>>, vector<8x128xf32>
    tpu.vector_store %arg15[%337, %c0_131], %336 {strides = array<i32>} : memref<64x128xf32, #tpu.memory_space<vmem>>, vector<8x128xf32>,
    %c8_i32_132 = arith.constant 8 : i32
    %c0_133 = arith.constant 0 : index
    %c0_134 = arith.constant 0 : index
    %c0_135 = arith.constant 0 : index
    %339 = vector.load %arg12[%c0_133, %c0_134, %c0_135] : memref<2x8x128xf32, #tpu.memory_space<vmem>>, vector<1x8x128xf32>
    %340 = vector.shape_cast %339 : vector<1x8x128xf32> to vector<8x128xf32>
    %341 = vector.shape_cast %336 : vector<8x128xf32> to vector<1x8x128xf32>
    tpu.vector_store %arg12[%c0_133, %c0_134, %c0_135], %341 {strides = array<i32>} : memref<2x8x128xf32, #tpu.memory_space<vmem>>, vector<1x8x128xf32>,
    %c0_136 = arith.constant 0 : index
    %c0_137 = arith.constant 0 : index
    %c0_138 = arith.constant 0 : index
    %342 = vector.load %arg13[%c0_136, %c0_137, %c0_138] : memref<2x8x128xf32, #tpu.memory_space<vmem>>, vector<1x8x128xf32>
    %343 = vector.shape_cast %342 : vector<1x8x128xf32> to vector<8x128xf32>
    %344 = vector.shape_cast %334 : vector<8x128xf32> to vector<1x8x128xf32>
    tpu.vector_store %arg13[%c0_136, %c0_137, %c0_138], %344 {strides = array<i32>} : memref<2x8x128xf32, #tpu.memory_space<vmem>>, vector<1x8x128xf32>,
    %c0_139 = arith.constant 0 : index
    %c0_140 = arith.constant 0 : index
    %345 = vector.load %arg15[%c0_139, %c0_140] : memref<64x128xf32, #tpu.memory_space<vmem>>, vector<64x128xf32>
    %346 = arith.truncf %345 : vector<64x128xf32> to vector<64x128xbf16>
    %c0_141 = arith.constant 0 : index
    %c0_142 = arith.constant 0 : index
    %347 = vector.load %arg4[%c0_141, %c0_142] : memref<128x512xbf16, #tpu.memory_space<vmem>>, vector<128x512xbf16>
    %cst_143 = arith.constant dense<0.000000e+00> : vector<64x512xf32>
    %348 = tpu.matmul %346, %347, %cst_143 {dimension_numbers = #tpu.dot_dimension_numbers<[1], [0], [0], [1], [0, 0, 1, 1], [], []>} : vector<64x128xbf16>, vector<128x512xbf16>, vector<64x512xf32> -> vector<64x512xf32>
    %c0_144 = arith.constant 0 : index
    %c0_145 = arith.constant 0 : index
    %349 = vector.load %arg6[%c0_144, %c0_145] : memref<1x512xf32, #tpu.memory_space<vmem>>, vector<1x512xf32>
    %350 = vector.broadcast %349 : vector<1x512xf32> to vector<64x512xf32>
    %351 = arith.addf %348, %350 : vector<64x512xf32>
    %c0_146 = arith.constant 0 : index
    %c0_147 = arith.constant 0 : index
    %352 = vector.load %arg14[%c0_146, %c0_147] : memref<64x512xf32, #tpu.memory_space<vmem>>, vector<64x512xf32>
    tpu.vector_store %arg14[%c0_146, %c0_147], %351 {strides = array<i32>} : memref<64x512xf32, #tpu.memory_space<vmem>>, vector<64x512xf32>,
    %c1 = arith.constant 1 : index
    %c0_148 = arith.constant 0 : index
    %c0_149 = arith.constant 0 : index
    %353 = vector.load %arg9[%c1, %c0_148, %c0_149] : memref<2x8x128xf32, #tpu.memory_space<vmem>>, vector<1x8x128xf32>
    %354 = vector.shape_cast %353 : vector<1x8x128xf32> to vector<8x128xf32>
    %c1_150 = arith.constant 1 : index
    %c0_151 = arith.constant 0 : index
    %c0_152 = arith.constant 0 : index
    %355 = vector.load %arg10[%c1_150, %c0_151, %c0_152] : memref<2x8x128xf32, #tpu.memory_space<vmem>>, vector<1x8x128xf32>
    %356 = vector.shape_cast %355 : vector<1x8x128xf32> to vector<8x128xf32>
    %c0_i32_153 = arith.constant 0 : i32
    %c8_i32_154 = arith.constant 8 : i32
    %357 = arith.muli %c0_i32_153, %c8_i32_154 : i32
    %358 = tpu.assume_multiple %357, 8 : i32
    %359 = arith.index_cast %358 : i32 to index
    %c0_155 = arith.constant 0 : index
    %360 = vector.load %arg14[%359, %c0_155] : memref<64x512xf32, #tpu.memory_space<vmem>>, vector<8x512xf32>
    %361 = arith.truncf %354 : vector<8x128xf32> to vector<8x128xbf16>
    %c0_156 = arith.constant 0 : index
    %c0_157 = arith.constant 0 : index
    %362 = vector.load %arg5[%c0_156, %c0_157] : memref<128x512xbf16, #tpu.memory_space<vmem>>, vector<128x512xbf16>
    %cst_158 = arith.constant dense<0.000000e+00> : vector<8x512xf32>
    %363 = tpu.matmul %361, %362, %cst_158 {dimension_numbers = #tpu.dot_dimension_numbers<[1], [0], [0], [1], [0, 0, 1, 1], [], []>} : vector<8x128xbf16>, vector<128x512xbf16>, vector<8x512xf32> -> vector<8x512xf32>
    %364 = arith.addf %360, %363 : vector<8x512xf32>
    %365 = vector.extract_strided_slice %364 {offsets = [0, 0], sizes = [8, 128], strides = [1, 1]} : vector<8x512xf32> to vector<8x128xf32>
    %cst_159 = arith.constant 5.000000e-01 : f32
    %366 = vector.broadcast %cst_159 : f32 to vector<8x128xf32>
    %367 = arith.mulf %366, %365 : vector<8x128xf32>
    %368 = math.tanh %367 : vector<8x128xf32>
    %cst_160 = arith.constant 5.000000e-01 : f32
    %369 = vector.broadcast %cst_160 : f32 to vector<8x128xf32>
    %370 = arith.mulf %369, %368 : vector<8x128xf32>
    %cst_161 = arith.constant 5.000000e-01 : f32
    %371 = vector.broadcast %cst_161 : f32 to vector<8x128xf32>
    %372 = arith.addf %370, %371 : vector<8x128xf32>
    %373 = vector.extract_strided_slice %364 {offsets = [0, 128], sizes = [8, 128], strides = [1, 1]} : vector<8x512xf32> to vector<8x128xf32>
    %cst_162 = arith.constant 5.000000e-01 : f32
    %374 = vector.broadcast %cst_162 : f32 to vector<8x128xf32>
    %375 = arith.mulf %374, %373 : vector<8x128xf32>
    %376 = math.tanh %375 : vector<8x128xf32>
    %cst_163 = arith.constant 5.000000e-01 : f32
    %377 = vector.broadcast %cst_163 : f32 to vector<8x128xf32>
    %378 = arith.mulf %377, %376 : vector<8x128xf32>
    %cst_164 = arith.constant 5.000000e-01 : f32
    %379 = vector.broadcast %cst_164 : f32 to vector<8x128xf32>
    %380 = arith.addf %378, %379 : vector<8x128xf32>
    %381 = vector.extract_strided_slice %364 {offsets = [0, 256], sizes = [8, 128], strides = [1, 1]} : vector<8x512xf32> to vector<8x128xf32>
    %382 = math.tanh %381 : vector<8x128xf32>
    %383 = vector.extract_strided_slice %364 {offsets = [0, 384], sizes = [8, 128], strides = [1, 1]} : vector<8x512xf32> to vector<8x128xf32>
    %cst_165 = arith.constant 5.000000e-01 : f32
    %384 = vector.broadcast %cst_165 : f32 to vector<8x128xf32>
    %385 = arith.mulf %384, %383 : vector<8x128xf32>
    %386 = math.tanh %385 : vector<8x128xf32>
    %cst_166 = arith.constant 5.000000e-01 : f32
    %387 = vector.broadcast %cst_166 : f32 to vector<8x128xf32>
    %388 = arith.mulf %387, %386 : vector<8x128xf32>
    %cst_167 = arith.constant 5.000000e-01 : f32
    %389 = vector.broadcast %cst_167 : f32 to vector<8x128xf32>
    %390 = arith.addf %388, %389 : vector<8x128xf32>
    %391 = arith.mulf %380, %356 : vector<8x128xf32>
    %392 = arith.mulf %372, %382 : vector<8x128xf32>
    %393 = arith.addf %391, %392 : vector<8x128xf32>
    %394 = math.tanh %393 : vector<8x128xf32>
    %395 = arith.mulf %390, %394 : vector<8x128xf32>
    %396 = arith.index_cast %358 : i32 to index
    %c0_168 = arith.constant 0 : index
    %397 = vector.load %arg15[%396, %c0_168] : memref<64x128xf32, #tpu.memory_space<vmem>>, vector<8x128xf32>
    tpu.vector_store %arg15[%396, %c0_168], %395 {strides = array<i32>} : memref<64x128xf32, #tpu.memory_space<vmem>>, vector<8x128xf32>,
    %c1_i32_169 = arith.constant 1 : i32
    %c8_i32_170 = arith.constant 8 : i32
    %398 = arith.muli %c1_i32_169, %c8_i32_170 : i32
    %399 = tpu.assume_multiple %398, 8 : i32
    %400 = arith.index_cast %399 : i32 to index
    %c0_171 = arith.constant 0 : index
    %401 = vector.load %arg14[%400, %c0_171] : memref<64x512xf32, #tpu.memory_space<vmem>>, vector<8x512xf32>
    %402 = arith.truncf %395 : vector<8x128xf32> to vector<8x128xbf16>
    %c0_172 = arith.constant 0 : index
    %c0_173 = arith.constant 0 : index
    %403 = vector.load %arg5[%c0_172, %c0_173] : memref<128x512xbf16, #tpu.memory_space<vmem>>, vector<128x512xbf16>
    %cst_174 = arith.constant dense<0.000000e+00> : vector<8x512xf32>
    %404 = tpu.matmul %402, %403, %cst_174 {dimension_numbers = #tpu.dot_dimension_numbers<[1], [0], [0], [1], [0, 0, 1, 1], [], []>} : vector<8x128xbf16>, vector<128x512xbf16>, vector<8x512xf32> -> vector<8x512xf32>
    %405 = arith.addf %401, %404 : vector<8x512xf32>
    %406 = vector.extract_strided_slice %405 {offsets = [0, 0], sizes = [8, 128], strides = [1, 1]} : vector<8x512xf32> to vector<8x128xf32>
    %cst_175 = arith.constant 5.000000e-01 : f32
    %407 = vector.broadcast %cst_175 : f32 to vector<8x128xf32>
    %408 = arith.mulf %407, %406 : vector<8x128xf32>
    %409 = math.tanh %408 : vector<8x128xf32>
    %cst_176 = arith.constant 5.000000e-01 : f32
    %410 = vector.broadcast %cst_176 : f32 to vector<8x128xf32>
    %411 = arith.mulf %410, %409 : vector<8x128xf32>
    %cst_177 = arith.constant 5.000000e-01 : f32
    %412 = vector.broadcast %cst_177 : f32 to vector<8x128xf32>
    %413 = arith.addf %411, %412 : vector<8x128xf32>
    %414 = vector.extract_strided_slice %405 {offsets = [0, 128], sizes = [8, 128], strides = [1, 1]} : vector<8x512xf32> to vector<8x128xf32>
    %cst_178 = arith.constant 5.000000e-01 : f32
    %415 = vector.broadcast %cst_178 : f32 to vector<8x128xf32>
    %416 = arith.mulf %415, %414 : vector<8x128xf32>
    %417 = math.tanh %416 : vector<8x128xf32>
    %cst_179 = arith.constant 5.000000e-01 : f32
    %418 = vector.broadcast %cst_179 : f32 to vector<8x128xf32>
    %419 = arith.mulf %418, %417 : vector<8x128xf32>
    %cst_180 = arith.constant 5.000000e-01 : f32
    %420 = vector.broadcast %cst_180 : f32 to vector<8x128xf32>
    %421 = arith.addf %419, %420 : vector<8x128xf32>
    %422 = vector.extract_strided_slice %405 {offsets = [0, 256], sizes = [8, 128], strides = [1, 1]} : vector<8x512xf32> to vector<8x128xf32>
    %423 = math.tanh %422 : vector<8x128xf32>
    %424 = vector.extract_strided_slice %405 {offsets = [0, 384], sizes = [8, 128], strides = [1, 1]} : vector<8x512xf32> to vector<8x128xf32>
    %cst_181 = arith.constant 5.000000e-01 : f32
    %425 = vector.broadcast %cst_181 : f32 to vector<8x128xf32>
    %426 = arith.mulf %425, %424 : vector<8x128xf32>
    %427 = math.tanh %426 : vector<8x128xf32>
    %cst_182 = arith.constant 5.000000e-01 : f32
    %428 = vector.broadcast %cst_182 : f32 to vector<8x128xf32>
    %429 = arith.mulf %428, %427 : vector<8x128xf32>
    %cst_183 = arith.constant 5.000000e-01 : f32
    %430 = vector.broadcast %cst_183 : f32 to vector<8x128xf32>
    %431 = arith.addf %429, %430 : vector<8x128xf32>
    %432 = arith.mulf %421, %393 : vector<8x128xf32>
    %433 = arith.mulf %413, %423 : vector<8x128xf32>
    %434 = arith.addf %432, %433 : vector<8x128xf32>
    %435 = math.tanh %434 : vector<8x128xf32>
    %436 = arith.mulf %431, %435 : vector<8x128xf32>
    %437 = arith.index_cast %399 : i32 to index
    %c0_184 = arith.constant 0 : index
    %438 = vector.load %arg15[%437, %c0_184] : memref<64x128xf32, #tpu.memory_space<vmem>>, vector<8x128xf32>
    tpu.vector_store %arg15[%437, %c0_184], %436 {strides = array<i32>} : memref<64x128xf32, #tpu.memory_space<vmem>>, vector<8x128xf32>,
    %c2_i32_185 = arith.constant 2 : i32
    %c8_i32_186 = arith.constant 8 : i32
    %439 = arith.muli %c2_i32_185, %c8_i32_186 : i32
    %440 = tpu.assume_multiple %439, 8 : i32
    %441 = arith.index_cast %440 : i32 to index
    %c0_187 = arith.constant 0 : index
    %442 = vector.load %arg14[%441, %c0_187] : memref<64x512xf32, #tpu.memory_space<vmem>>, vector<8x512xf32>
    %443 = arith.truncf %436 : vector<8x128xf32> to vector<8x128xbf16>
    %c0_188 = arith.constant 0 : index
    %c0_189 = arith.constant 0 : index
    %444 = vector.load %arg5[%c0_188, %c0_189] : memref<128x512xbf16, #tpu.memory_space<vmem>>, vector<128x512xbf16>
    %cst_190 = arith.constant dense<0.000000e+00> : vector<8x512xf32>
    %445 = tpu.matmul %443, %444, %cst_190 {dimension_numbers = #tpu.dot_dimension_numbers<[1], [0], [0], [1], [0, 0, 1, 1], [], []>} : vector<8x128xbf16>, vector<128x512xbf16>, vector<8x512xf32> -> vector<8x512xf32>
    %446 = arith.addf %442, %445 : vector<8x512xf32>
    %447 = vector.extract_strided_slice %446 {offsets = [0, 0], sizes = [8, 128], strides = [1, 1]} : vector<8x512xf32> to vector<8x128xf32>
    %cst_191 = arith.constant 5.000000e-01 : f32
    %448 = vector.broadcast %cst_191 : f32 to vector<8x128xf32>
    %449 = arith.mulf %448, %447 : vector<8x128xf32>
    %450 = math.tanh %449 : vector<8x128xf32>
    %cst_192 = arith.constant 5.000000e-01 : f32
    %451 = vector.broadcast %cst_192 : f32 to vector<8x128xf32>
    %452 = arith.mulf %451, %450 : vector<8x128xf32>
    %cst_193 = arith.constant 5.000000e-01 : f32
    %453 = vector.broadcast %cst_193 : f32 to vector<8x128xf32>
    %454 = arith.addf %452, %453 : vector<8x128xf32>
    %455 = vector.extract_strided_slice %446 {offsets = [0, 128], sizes = [8, 128], strides = [1, 1]} : vector<8x512xf32> to vector<8x128xf32>
    %cst_194 = arith.constant 5.000000e-01 : f32
    %456 = vector.broadcast %cst_194 : f32 to vector<8x128xf32>
    %457 = arith.mulf %456, %455 : vector<8x128xf32>
    %458 = math.tanh %457 : vector<8x128xf32>
    %cst_195 = arith.constant 5.000000e-01 : f32
    %459 = vector.broadcast %cst_195 : f32 to vector<8x128xf32>
    %460 = arith.mulf %459, %458 : vector<8x128xf32>
    %cst_196 = arith.constant 5.000000e-01 : f32
    %461 = vector.broadcast %cst_196 : f32 to vector<8x128xf32>
    %462 = arith.addf %460, %461 : vector<8x128xf32>
    %463 = vector.extract_strided_slice %446 {offsets = [0, 256], sizes = [8, 128], strides = [1, 1]} : vector<8x512xf32> to vector<8x128xf32>
    %464 = math.tanh %463 : vector<8x128xf32>
    %465 = vector.extract_strided_slice %446 {offsets = [0, 384], sizes = [8, 128], strides = [1, 1]} : vector<8x512xf32> to vector<8x128xf32>
    %cst_197 = arith.constant 5.000000e-01 : f32
    %466 = vector.broadcast %cst_197 : f32 to vector<8x128xf32>
    %467 = arith.mulf %466, %465 : vector<8x128xf32>
    %468 = math.tanh %467 : vector<8x128xf32>
    %cst_198 = arith.constant 5.000000e-01 : f32
    %469 = vector.broadcast %cst_198 : f32 to vector<8x128xf32>
    %470 = arith.mulf %469, %468 : vector<8x128xf32>
    %cst_199 = arith.constant 5.000000e-01 : f32
    %471 = vector.broadcast %cst_199 : f32 to vector<8x128xf32>
    %472 = arith.addf %470, %471 : vector<8x128xf32>
    %473 = arith.mulf %462, %434 : vector<8x128xf32>
    %474 = arith.mulf %454, %464 : vector<8x128xf32>
    %475 = arith.addf %473, %474 : vector<8x128xf32>
    %476 = math.tanh %475 : vector<8x128xf32>
    %477 = arith.mulf %472, %476 : vector<8x128xf32>
    %478 = arith.index_cast %440 : i32 to index
    %c0_200 = arith.constant 0 : index
    %479 = vector.load %arg15[%478, %c0_200] : memref<64x128xf32, #tpu.memory_space<vmem>>, vector<8x128xf32>
    tpu.vector_store %arg15[%478, %c0_200], %477 {strides = array<i32>} : memref<64x128xf32, #tpu.memory_space<vmem>>, vector<8x128xf32>,
    %c3_i32_201 = arith.constant 3 : i32
    %c8_i32_202 = arith.constant 8 : i32
    %480 = arith.muli %c3_i32_201, %c8_i32_202 : i32
    %481 = tpu.assume_multiple %480, 8 : i32
    %482 = arith.index_cast %481 : i32 to index
    %c0_203 = arith.constant 0 : index
    %483 = vector.load %arg14[%482, %c0_203] : memref<64x512xf32, #tpu.memory_space<vmem>>, vector<8x512xf32>
    %484 = arith.truncf %477 : vector<8x128xf32> to vector<8x128xbf16>
    %c0_204 = arith.constant 0 : index
    %c0_205 = arith.constant 0 : index
    %485 = vector.load %arg5[%c0_204, %c0_205] : memref<128x512xbf16, #tpu.memory_space<vmem>>, vector<128x512xbf16>
    %cst_206 = arith.constant dense<0.000000e+00> : vector<8x512xf32>
    %486 = tpu.matmul %484, %485, %cst_206 {dimension_numbers = #tpu.dot_dimension_numbers<[1], [0], [0], [1], [0, 0, 1, 1], [], []>} : vector<8x128xbf16>, vector<128x512xbf16>, vector<8x512xf32> -> vector<8x512xf32>
    %487 = arith.addf %483, %486 : vector<8x512xf32>
    %488 = vector.extract_strided_slice %487 {offsets = [0, 0], sizes = [8, 128], strides = [1, 1]} : vector<8x512xf32> to vector<8x128xf32>
    %cst_207 = arith.constant 5.000000e-01 : f32
    %489 = vector.broadcast %cst_207 : f32 to vector<8x128xf32>
    %490 = arith.mulf %489, %488 : vector<8x128xf32>
    %491 = math.tanh %490 : vector<8x128xf32>
    %cst_208 = arith.constant 5.000000e-01 : f32
    %492 = vector.broadcast %cst_208 : f32 to vector<8x128xf32>
    %493 = arith.mulf %492, %491 : vector<8x128xf32>
    %cst_209 = arith.constant 5.000000e-01 : f32
    %494 = vector.broadcast %cst_209 : f32 to vector<8x128xf32>
    %495 = arith.addf %493, %494 : vector<8x128xf32>
    %496 = vector.extract_strided_slice %487 {offsets = [0, 128], sizes = [8, 128], strides = [1, 1]} : vector<8x512xf32> to vector<8x128xf32>
    %cst_210 = arith.constant 5.000000e-01 : f32
    %497 = vector.broadcast %cst_210 : f32 to vector<8x128xf32>
    %498 = arith.mulf %497, %496 : vector<8x128xf32>
    %499 = math.tanh %498 : vector<8x128xf32>
    %cst_211 = arith.constant 5.000000e-01 : f32
    %500 = vector.broadcast %cst_211 : f32 to vector<8x128xf32>
    %501 = arith.mulf %500, %499 : vector<8x128xf32>
    %cst_212 = arith.constant 5.000000e-01 : f32
    %502 = vector.broadcast %cst_212 : f32 to vector<8x128xf32>
    %503 = arith.addf %501, %502 : vector<8x128xf32>
    %504 = vector.extract_strided_slice %487 {offsets = [0, 256], sizes = [8, 128], strides = [1, 1]} : vector<8x512xf32> to vector<8x128xf32>
    %505 = math.tanh %504 : vector<8x128xf32>
    %506 = vector.extract_strided_slice %487 {offsets = [0, 384], sizes = [8, 128], strides = [1, 1]} : vector<8x512xf32> to vector<8x128xf32>
    %cst_213 = arith.constant 5.000000e-01 : f32
    %507 = vector.broadcast %cst_213 : f32 to vector<8x128xf32>
    %508 = arith.mulf %507, %506 : vector<8x128xf32>
    %509 = math.tanh %508 : vector<8x128xf32>
    %cst_214 = arith.constant 5.000000e-01 : f32
    %510 = vector.broadcast %cst_214 : f32 to vector<8x128xf32>
    %511 = arith.mulf %510, %509 : vector<8x128xf32>
    %cst_215 = arith.constant 5.000000e-01 : f32
    %512 = vector.broadcast %cst_215 : f32 to vector<8x128xf32>
    %513 = arith.addf %511, %512 : vector<8x128xf32>
    %514 = arith.mulf %503, %475 : vector<8x128xf32>
    %515 = arith.mulf %495, %505 : vector<8x128xf32>
    %516 = arith.addf %514, %515 : vector<8x128xf32>
    %517 = math.tanh %516 : vector<8x128xf32>
    %518 = arith.mulf %513, %517 : vector<8x128xf32>
    %519 = arith.index_cast %481 : i32 to index
    %c0_216 = arith.constant 0 : index
    %520 = vector.load %arg15[%519, %c0_216] : memref<64x128xf32, #tpu.memory_space<vmem>>, vector<8x128xf32>
    tpu.vector_store %arg15[%519, %c0_216], %518 {strides = array<i32>} : memref<64x128xf32, #tpu.memory_space<vmem>>, vector<8x128xf32>,
    %c4_i32_217 = arith.constant 4 : i32
    %c8_i32_218 = arith.constant 8 : i32
    %521 = arith.muli %c4_i32_217, %c8_i32_218 : i32
    %522 = tpu.assume_multiple %521, 8 : i32
    %523 = arith.index_cast %522 : i32 to index
    %c0_219 = arith.constant 0 : index
    %524 = vector.load %arg14[%523, %c0_219] : memref<64x512xf32, #tpu.memory_space<vmem>>, vector<8x512xf32>
    %525 = arith.truncf %518 : vector<8x128xf32> to vector<8x128xbf16>
    %c0_220 = arith.constant 0 : index
    %c0_221 = arith.constant 0 : index
    %526 = vector.load %arg5[%c0_220, %c0_221] : memref<128x512xbf16, #tpu.memory_space<vmem>>, vector<128x512xbf16>
    %cst_222 = arith.constant dense<0.000000e+00> : vector<8x512xf32>
    %527 = tpu.matmul %525, %526, %cst_222 {dimension_numbers = #tpu.dot_dimension_numbers<[1], [0], [0], [1], [0, 0, 1, 1], [], []>} : vector<8x128xbf16>, vector<128x512xbf16>, vector<8x512xf32> -> vector<8x512xf32>
    %528 = arith.addf %524, %527 : vector<8x512xf32>
    %529 = vector.extract_strided_slice %528 {offsets = [0, 0], sizes = [8, 128], strides = [1, 1]} : vector<8x512xf32> to vector<8x128xf32>
    %cst_223 = arith.constant 5.000000e-01 : f32
    %530 = vector.broadcast %cst_223 : f32 to vector<8x128xf32>
    %531 = arith.mulf %530, %529 : vector<8x128xf32>
    %532 = math.tanh %531 : vector<8x128xf32>
    %cst_224 = arith.constant 5.000000e-01 : f32
    %533 = vector.broadcast %cst_224 : f32 to vector<8x128xf32>
    %534 = arith.mulf %533, %532 : vector<8x128xf32>
    %cst_225 = arith.constant 5.000000e-01 : f32
    %535 = vector.broadcast %cst_225 : f32 to vector<8x128xf32>
    %536 = arith.addf %534, %535 : vector<8x128xf32>
    %537 = vector.extract_strided_slice %528 {offsets = [0, 128], sizes = [8, 128], strides = [1, 1]} : vector<8x512xf32> to vector<8x128xf32>
    %cst_226 = arith.constant 5.000000e-01 : f32
    %538 = vector.broadcast %cst_226 : f32 to vector<8x128xf32>
    %539 = arith.mulf %538, %537 : vector<8x128xf32>
    %540 = math.tanh %539 : vector<8x128xf32>
    %cst_227 = arith.constant 5.000000e-01 : f32
    %541 = vector.broadcast %cst_227 : f32 to vector<8x128xf32>
    %542 = arith.mulf %541, %540 : vector<8x128xf32>
    %cst_228 = arith.constant 5.000000e-01 : f32
    %543 = vector.broadcast %cst_228 : f32 to vector<8x128xf32>
    %544 = arith.addf %542, %543 : vector<8x128xf32>
    %545 = vector.extract_strided_slice %528 {offsets = [0, 256], sizes = [8, 128], strides = [1, 1]} : vector<8x512xf32> to vector<8x128xf32>
    %546 = math.tanh %545 : vector<8x128xf32>
    %547 = vector.extract_strided_slice %528 {offsets = [0, 384], sizes = [8, 128], strides = [1, 1]} : vector<8x512xf32> to vector<8x128xf32>
    %cst_229 = arith.constant 5.000000e-01 : f32
    %548 = vector.broadcast %cst_229 : f32 to vector<8x128xf32>
    %549 = arith.mulf %548, %547 : vector<8x128xf32>
    %550 = math.tanh %549 : vector<8x128xf32>
    %cst_230 = arith.constant 5.000000e-01 : f32
    %551 = vector.broadcast %cst_230 : f32 to vector<8x128xf32>
    %552 = arith.mulf %551, %550 : vector<8x128xf32>
    %cst_231 = arith.constant 5.000000e-01 : f32
    %553 = vector.broadcast %cst_231 : f32 to vector<8x128xf32>
    %554 = arith.addf %552, %553 : vector<8x128xf32>
    %555 = arith.mulf %544, %516 : vector<8x128xf32>
    %556 = arith.mulf %536, %546 : vector<8x128xf32>
    %557 = arith.addf %555, %556 : vector<8x128xf32>
    %558 = math.tanh %557 : vector<8x128xf32>
    %559 = arith.mulf %554, %558 : vector<8x128xf32>
    %560 = arith.index_cast %522 : i32 to index
    %c0_232 = arith.constant 0 : index
    %561 = vector.load %arg15[%560, %c0_232] : memref<64x128xf32, #tpu.memory_space<vmem>>, vector<8x128xf32>
    tpu.vector_store %arg15[%560, %c0_232], %559 {strides = array<i32>} : memref<64x128xf32, #tpu.memory_space<vmem>>, vector<8x128xf32>,
    %c5_i32_233 = arith.constant 5 : i32
    %c8_i32_234 = arith.constant 8 : i32
    %562 = arith.muli %c5_i32_233, %c8_i32_234 : i32
    %563 = tpu.assume_multiple %562, 8 : i32
    %564 = arith.index_cast %563 : i32 to index
    %c0_235 = arith.constant 0 : index
    %565 = vector.load %arg14[%564, %c0_235] : memref<64x512xf32, #tpu.memory_space<vmem>>, vector<8x512xf32>
    %566 = arith.truncf %559 : vector<8x128xf32> to vector<8x128xbf16>
    %c0_236 = arith.constant 0 : index
    %c0_237 = arith.constant 0 : index
    %567 = vector.load %arg5[%c0_236, %c0_237] : memref<128x512xbf16, #tpu.memory_space<vmem>>, vector<128x512xbf16>
    %cst_238 = arith.constant dense<0.000000e+00> : vector<8x512xf32>
    %568 = tpu.matmul %566, %567, %cst_238 {dimension_numbers = #tpu.dot_dimension_numbers<[1], [0], [0], [1], [0, 0, 1, 1], [], []>} : vector<8x128xbf16>, vector<128x512xbf16>, vector<8x512xf32> -> vector<8x512xf32>
    %569 = arith.addf %565, %568 : vector<8x512xf32>
    %570 = vector.extract_strided_slice %569 {offsets = [0, 0], sizes = [8, 128], strides = [1, 1]} : vector<8x512xf32> to vector<8x128xf32>
    %cst_239 = arith.constant 5.000000e-01 : f32
    %571 = vector.broadcast %cst_239 : f32 to vector<8x128xf32>
    %572 = arith.mulf %571, %570 : vector<8x128xf32>
    %573 = math.tanh %572 : vector<8x128xf32>
    %cst_240 = arith.constant 5.000000e-01 : f32
    %574 = vector.broadcast %cst_240 : f32 to vector<8x128xf32>
    %575 = arith.mulf %574, %573 : vector<8x128xf32>
    %cst_241 = arith.constant 5.000000e-01 : f32
    %576 = vector.broadcast %cst_241 : f32 to vector<8x128xf32>
    %577 = arith.addf %575, %576 : vector<8x128xf32>
    %578 = vector.extract_strided_slice %569 {offsets = [0, 128], sizes = [8, 128], strides = [1, 1]} : vector<8x512xf32> to vector<8x128xf32>
    %cst_242 = arith.constant 5.000000e-01 : f32
    %579 = vector.broadcast %cst_242 : f32 to vector<8x128xf32>
    %580 = arith.mulf %579, %578 : vector<8x128xf32>
    %581 = math.tanh %580 : vector<8x128xf32>
    %cst_243 = arith.constant 5.000000e-01 : f32
    %582 = vector.broadcast %cst_243 : f32 to vector<8x128xf32>
    %583 = arith.mulf %582, %581 : vector<8x128xf32>
    %cst_244 = arith.constant 5.000000e-01 : f32
    %584 = vector.broadcast %cst_244 : f32 to vector<8x128xf32>
    %585 = arith.addf %583, %584 : vector<8x128xf32>
    %586 = vector.extract_strided_slice %569 {offsets = [0, 256], sizes = [8, 128], strides = [1, 1]} : vector<8x512xf32> to vector<8x128xf32>
    %587 = math.tanh %586 : vector<8x128xf32>
    %588 = vector.extract_strided_slice %569 {offsets = [0, 384], sizes = [8, 128], strides = [1, 1]} : vector<8x512xf32> to vector<8x128xf32>
    %cst_245 = arith.constant 5.000000e-01 : f32
    %589 = vector.broadcast %cst_245 : f32 to vector<8x128xf32>
    %590 = arith.mulf %589, %588 : vector<8x128xf32>
    %591 = math.tanh %590 : vector<8x128xf32>
    %cst_246 = arith.constant 5.000000e-01 : f32
    %592 = vector.broadcast %cst_246 : f32 to vector<8x128xf32>
    %593 = arith.mulf %592, %591 : vector<8x128xf32>
    %cst_247 = arith.constant 5.000000e-01 : f32
    %594 = vector.broadcast %cst_247 : f32 to vector<8x128xf32>
    %595 = arith.addf %593, %594 : vector<8x128xf32>
    %596 = arith.mulf %585, %557 : vector<8x128xf32>
    %597 = arith.mulf %577, %587 : vector<8x128xf32>
    %598 = arith.addf %596, %597 : vector<8x128xf32>
    %599 = math.tanh %598 : vector<8x128xf32>
    %600 = arith.mulf %595, %599 : vector<8x128xf32>
    %601 = arith.index_cast %563 : i32 to index
    %c0_248 = arith.constant 0 : index
    %602 = vector.load %arg15[%601, %c0_248] : memref<64x128xf32, #tpu.memory_space<vmem>>, vector<8x128xf32>
    tpu.vector_store %arg15[%601, %c0_248], %600 {strides = array<i32>} : memref<64x128xf32, #tpu.memory_space<vmem>>, vector<8x128xf32>,
    %c6_i32_249 = arith.constant 6 : i32
    %c8_i32_250 = arith.constant 8 : i32
    %603 = arith.muli %c6_i32_249, %c8_i32_250 : i32
    %604 = tpu.assume_multiple %603, 8 : i32
    %605 = arith.index_cast %604 : i32 to index
    %c0_251 = arith.constant 0 : index
    %606 = vector.load %arg14[%605, %c0_251] : memref<64x512xf32, #tpu.memory_space<vmem>>, vector<8x512xf32>
    %607 = arith.truncf %600 : vector<8x128xf32> to vector<8x128xbf16>
    %c0_252 = arith.constant 0 : index
    %c0_253 = arith.constant 0 : index
    %608 = vector.load %arg5[%c0_252, %c0_253] : memref<128x512xbf16, #tpu.memory_space<vmem>>, vector<128x512xbf16>
    %cst_254 = arith.constant dense<0.000000e+00> : vector<8x512xf32>
    %609 = tpu.matmul %607, %608, %cst_254 {dimension_numbers = #tpu.dot_dimension_numbers<[1], [0], [0], [1], [0, 0, 1, 1], [], []>} : vector<8x128xbf16>, vector<128x512xbf16>, vector<8x512xf32> -> vector<8x512xf32>
    %610 = arith.addf %606, %609 : vector<8x512xf32>
    %611 = vector.extract_strided_slice %610 {offsets = [0, 0], sizes = [8, 128], strides = [1, 1]} : vector<8x512xf32> to vector<8x128xf32>
    %cst_255 = arith.constant 5.000000e-01 : f32
    %612 = vector.broadcast %cst_255 : f32 to vector<8x128xf32>
    %613 = arith.mulf %612, %611 : vector<8x128xf32>
    %614 = math.tanh %613 : vector<8x128xf32>
    %cst_256 = arith.constant 5.000000e-01 : f32
    %615 = vector.broadcast %cst_256 : f32 to vector<8x128xf32>
    %616 = arith.mulf %615, %614 : vector<8x128xf32>
    %cst_257 = arith.constant 5.000000e-01 : f32
    %617 = vector.broadcast %cst_257 : f32 to vector<8x128xf32>
    %618 = arith.addf %616, %617 : vector<8x128xf32>
    %619 = vector.extract_strided_slice %610 {offsets = [0, 128], sizes = [8, 128], strides = [1, 1]} : vector<8x512xf32> to vector<8x128xf32>
    %cst_258 = arith.constant 5.000000e-01 : f32
    %620 = vector.broadcast %cst_258 : f32 to vector<8x128xf32>
    %621 = arith.mulf %620, %619 : vector<8x128xf32>
    %622 = math.tanh %621 : vector<8x128xf32>
    %cst_259 = arith.constant 5.000000e-01 : f32
    %623 = vector.broadcast %cst_259 : f32 to vector<8x128xf32>
    %624 = arith.mulf %623, %622 : vector<8x128xf32>
    %cst_260 = arith.constant 5.000000e-01 : f32
    %625 = vector.broadcast %cst_260 : f32 to vector<8x128xf32>
    %626 = arith.addf %624, %625 : vector<8x128xf32>
    %627 = vector.extract_strided_slice %610 {offsets = [0, 256], sizes = [8, 128], strides = [1, 1]} : vector<8x512xf32> to vector<8x128xf32>
    %628 = math.tanh %627 : vector<8x128xf32>
    %629 = vector.extract_strided_slice %610 {offsets = [0, 384], sizes = [8, 128], strides = [1, 1]} : vector<8x512xf32> to vector<8x128xf32>
    %cst_261 = arith.constant 5.000000e-01 : f32
    %630 = vector.broadcast %cst_261 : f32 to vector<8x128xf32>
    %631 = arith.mulf %630, %629 : vector<8x128xf32>
    %632 = math.tanh %631 : vector<8x128xf32>
    %cst_262 = arith.constant 5.000000e-01 : f32
    %633 = vector.broadcast %cst_262 : f32 to vector<8x128xf32>
    %634 = arith.mulf %633, %632 : vector<8x128xf32>
    %cst_263 = arith.constant 5.000000e-01 : f32
    %635 = vector.broadcast %cst_263 : f32 to vector<8x128xf32>
    %636 = arith.addf %634, %635 : vector<8x128xf32>
    %637 = arith.mulf %626, %598 : vector<8x128xf32>
    %638 = arith.mulf %618, %628 : vector<8x128xf32>
    %639 = arith.addf %637, %638 : vector<8x128xf32>
    %640 = math.tanh %639 : vector<8x128xf32>
    %641 = arith.mulf %636, %640 : vector<8x128xf32>
    %642 = arith.index_cast %604 : i32 to index
    %c0_264 = arith.constant 0 : index
    %643 = vector.load %arg15[%642, %c0_264] : memref<64x128xf32, #tpu.memory_space<vmem>>, vector<8x128xf32>
    tpu.vector_store %arg15[%642, %c0_264], %641 {strides = array<i32>} : memref<64x128xf32, #tpu.memory_space<vmem>>, vector<8x128xf32>,
    %c7_i32_265 = arith.constant 7 : i32
    %c8_i32_266 = arith.constant 8 : i32
    %644 = arith.muli %c7_i32_265, %c8_i32_266 : i32
    %645 = tpu.assume_multiple %644, 8 : i32
    %646 = arith.index_cast %645 : i32 to index
    %c0_267 = arith.constant 0 : index
    %647 = vector.load %arg14[%646, %c0_267] : memref<64x512xf32, #tpu.memory_space<vmem>>, vector<8x512xf32>
    %648 = arith.truncf %641 : vector<8x128xf32> to vector<8x128xbf16>
    %c0_268 = arith.constant 0 : index
    %c0_269 = arith.constant 0 : index
    %649 = vector.load %arg5[%c0_268, %c0_269] : memref<128x512xbf16, #tpu.memory_space<vmem>>, vector<128x512xbf16>
    %cst_270 = arith.constant dense<0.000000e+00> : vector<8x512xf32>
    %650 = tpu.matmul %648, %649, %cst_270 {dimension_numbers = #tpu.dot_dimension_numbers<[1], [0], [0], [1], [0, 0, 1, 1], [], []>} : vector<8x128xbf16>, vector<128x512xbf16>, vector<8x512xf32> -> vector<8x512xf32>
    %651 = arith.addf %647, %650 : vector<8x512xf32>
    %652 = vector.extract_strided_slice %651 {offsets = [0, 0], sizes = [8, 128], strides = [1, 1]} : vector<8x512xf32> to vector<8x128xf32>
    %cst_271 = arith.constant 5.000000e-01 : f32
    %653 = vector.broadcast %cst_271 : f32 to vector<8x128xf32>
    %654 = arith.mulf %653, %652 : vector<8x128xf32>
    %655 = math.tanh %654 : vector<8x128xf32>
    %cst_272 = arith.constant 5.000000e-01 : f32
    %656 = vector.broadcast %cst_272 : f32 to vector<8x128xf32>
    %657 = arith.mulf %656, %655 : vector<8x128xf32>
    %cst_273 = arith.constant 5.000000e-01 : f32
    %658 = vector.broadcast %cst_273 : f32 to vector<8x128xf32>
    %659 = arith.addf %657, %658 : vector<8x128xf32>
    %660 = vector.extract_strided_slice %651 {offsets = [0, 128], sizes = [8, 128], strides = [1, 1]} : vector<8x512xf32> to vector<8x128xf32>
    %cst_274 = arith.constant 5.000000e-01 : f32
    %661 = vector.broadcast %cst_274 : f32 to vector<8x128xf32>
    %662 = arith.mulf %661, %660 : vector<8x128xf32>
    %663 = math.tanh %662 : vector<8x128xf32>
    %cst_275 = arith.constant 5.000000e-01 : f32
    %664 = vector.broadcast %cst_275 : f32 to vector<8x128xf32>
    %665 = arith.mulf %664, %663 : vector<8x128xf32>
    %cst_276 = arith.constant 5.000000e-01 : f32
    %666 = vector.broadcast %cst_276 : f32 to vector<8x128xf32>
    %667 = arith.addf %665, %666 : vector<8x128xf32>
    %668 = vector.extract_strided_slice %651 {offsets = [0, 256], sizes = [8, 128], strides = [1, 1]} : vector<8x512xf32> to vector<8x128xf32>
    %669 = math.tanh %668 : vector<8x128xf32>
    %670 = vector.extract_strided_slice %651 {offsets = [0, 384], sizes = [8, 128], strides = [1, 1]} : vector<8x512xf32> to vector<8x128xf32>
    %cst_277 = arith.constant 5.000000e-01 : f32
    %671 = vector.broadcast %cst_277 : f32 to vector<8x128xf32>
    %672 = arith.mulf %671, %670 : vector<8x128xf32>
    %673 = math.tanh %672 : vector<8x128xf32>
    %cst_278 = arith.constant 5.000000e-01 : f32
    %674 = vector.broadcast %cst_278 : f32 to vector<8x128xf32>
    %675 = arith.mulf %674, %673 : vector<8x128xf32>
    %cst_279 = arith.constant 5.000000e-01 : f32
    %676 = vector.broadcast %cst_279 : f32 to vector<8x128xf32>
    %677 = arith.addf %675, %676 : vector<8x128xf32>
    %678 = arith.mulf %667, %639 : vector<8x128xf32>
    %679 = arith.mulf %659, %669 : vector<8x128xf32>
    %680 = arith.addf %678, %679 : vector<8x128xf32>
    %681 = math.tanh %680 : vector<8x128xf32>
    %682 = arith.mulf %677, %681 : vector<8x128xf32>
    %683 = arith.index_cast %645 : i32 to index
    %c0_280 = arith.constant 0 : index
    %684 = vector.load %arg15[%683, %c0_280] : memref<64x128xf32, #tpu.memory_space<vmem>>, vector<8x128xf32>
    tpu.vector_store %arg15[%683, %c0_280], %682 {strides = array<i32>} : memref<64x128xf32, #tpu.memory_space<vmem>>, vector<8x128xf32>,
    %c8_i32_281 = arith.constant 8 : i32
    %c1_282 = arith.constant 1 : index
    %c0_283 = arith.constant 0 : index
    %c0_284 = arith.constant 0 : index
    %685 = vector.load %arg12[%c1_282, %c0_283, %c0_284] : memref<2x8x128xf32, #tpu.memory_space<vmem>>, vector<1x8x128xf32>
    %686 = vector.shape_cast %685 : vector<1x8x128xf32> to vector<8x128xf32>
    %687 = vector.shape_cast %682 : vector<8x128xf32> to vector<1x8x128xf32>
    tpu.vector_store %arg12[%c1_282, %c0_283, %c0_284], %687 {strides = array<i32>} : memref<2x8x128xf32, #tpu.memory_space<vmem>>, vector<1x8x128xf32>,
    %c1_285 = arith.constant 1 : index
    %c0_286 = arith.constant 0 : index
    %c0_287 = arith.constant 0 : index
    %688 = vector.load %arg13[%c1_285, %c0_286, %c0_287] : memref<2x8x128xf32, #tpu.memory_space<vmem>>, vector<1x8x128xf32>
    %689 = vector.shape_cast %688 : vector<1x8x128xf32> to vector<8x128xf32>
    %690 = vector.shape_cast %680 : vector<8x128xf32> to vector<1x8x128xf32>
    tpu.vector_store %arg13[%c1_285, %c0_286, %c0_287], %690 {strides = array<i32>} : memref<2x8x128xf32, #tpu.memory_space<vmem>>, vector<1x8x128xf32>,
    %c0_288 = arith.constant 0 : index
    %c0_289 = arith.constant 0 : index
    %691 = vector.load %arg15[%c0_288, %c0_289] : memref<64x128xf32, #tpu.memory_space<vmem>>, vector<64x128xf32>
    %692 = arith.truncf %691 : vector<64x128xf32> to vector<64x128xbf16>
    %c0_290 = arith.constant 0 : index
    %c0_291 = arith.constant 0 : index
    %693 = vector.load %arg7[%c0_290, %c0_291] : memref<128x128xbf16, #tpu.memory_space<vmem>>, vector<128x128xbf16>
    %cst_292 = arith.constant dense<0.000000e+00> : vector<64x128xf32>
    %694 = tpu.matmul %692, %693, %cst_292 {dimension_numbers = #tpu.dot_dimension_numbers<[1], [0], [0], [1], [0, 0, 1, 1], [], []>} : vector<64x128xbf16>, vector<128x128xbf16>, vector<64x128xf32> -> vector<64x128xf32>
    %c0_293 = arith.constant 0 : index
    %c0_294 = arith.constant 0 : index
    %695 = vector.load %arg8[%c0_293, %c0_294] : memref<1x128xf32, #tpu.memory_space<vmem>>, vector<1x128xf32>
    %696 = vector.broadcast %695 : vector<1x128xf32> to vector<64x128xf32>
    %697 = arith.addf %694, %696 : vector<64x128xf32>
    %c0_295 = arith.constant 0 : index
    %c0_296 = arith.constant 0 : index
    %698 = vector.load %arg11[%c0_295, %c0_296] : memref<64x128xf32, #tpu.memory_space<vmem>>, vector<64x128xf32>
    tpu.vector_store %arg11[%c0_295, %c0_296], %697 {strides = array<i32>} : memref<64x128xf32, #tpu.memory_space<vmem>>, vector<64x128xf32>,
    return
  }
}

</mosaic_0001>

<bundles_post_ra>
// kernel: recurrent_nn_forward.1
= control target key start
LH: loop header
LB: loop body
LE: loop exit
PB: predicated region body
PF: predicated region fallthrough
CT: control target
= control target key end

     0   :  { %s12475_s1 = inlined_call_operand.vmem [shape: bf16[128,512], index: 1, kind: input, shape index: {}]   ;;  %s12476_s2 = inlined_call_operand.vmem [shape: bf16[128,512], index: 2, kind: input, shape index: {}]   ;;  %s12477_s9 = inlined_call_operand.vmem [shape: f32[2,8,128], index: 9, kind: input, shape index: {}]   ;;  %s12478_s0 = inlined_call_operand.vmem [shape: bf16[64,128], index: 0, kind: input, shape index: {}]   ;;  %s12479_s3 = inlined_call_operand.vmem [shape: f32[1,512], index: 3, kind: input, shape index: {}]   ;;  %s12480_s10 = inlined_call_operand.vmem [shape: f32[2,8,128], index: 10, kind: input, shape index: {}]   ;;  %s12481_s4 = inlined_call_operand.vmem [shape: bf16[128,512], index: 4, kind: input, shape index: {}]   ;;  %s12482_s5 = inlined_call_operand.vmem [shape: bf16[128,512], index: 5, kind: input, shape index: {}]   ;;  %s12483_s13 = inlined_call_operand.vmem [shape: f32[2,8,128], index: 13, kind: output, shape index: {2}]   ;;  %s12484_s12 = inlined_call_operand.vmem [shape: f32[2,8,128], index: 12, kind: output, shape index: {1}]   ;;  %s12485_s6 = inlined_call_operand.vmem [shape: f32[1,512], index: 6, kind: input, shape index: {}]   ;;  %s12486_s7 = inlined_call_operand.vmem [shape: bf16[128,128], index: 7, kind: input, shape index: {}]   ;;  %s12487_s8 = inlined_call_operand.vmem [shape: f32[1,128], index: 8, kind: input, shape index: {}]   ;;  %s12488_s11 = inlined_call_operand.vmem [shape: f32[64,128], index: 11, kind: output, shape index: {0}]  }
   0x1   :  { %v5446_v0 = vld [vmem:[%s12475_s1 + $0xe0] sm:$0xf]  ;;  %v7706_v1 = vld [vmem:[%s12475_s1 + $0xec] sm:$0xf0]  ;;  %v7705_v2 = vld [vmem:[%s12475_s1 + $0xec] sm:$0xf] }
   0x2   :  { %v5447_v3 = vor.u32 %v7706_v1, %v5446_v0  ;;  %v5456_v4 = vld [vmem:[%s12475_s1 + $0xf8] sm:$0xf0]  ;;  %v5574_v5 = vld [vmem:[%s12476_s2 + $0xe0] sm:$0xf]  ;;  %v7738_v6 = vld [vmem:[%s12476_s2 + $0xec] sm:$0xf0] }
   0x3   :  { %v5459_v7 = vor.u32 %v7705_v2, %v5456_v4  ;;  %v5575_v8 = vor.u32 %v7738_v6, %v5574_v5  ;;  %v5430_v9 = vld [vmem:[%s12475_s1 + $0xc0] sm:$0xf]  ;;  %v7702_v10 = vld [vmem:[%s12475_s1 + $0xcc] sm:$0xf0]  ;;  %v7701_v11 = vld [vmem:[%s12475_s1 + $0xcc] sm:$0xf] }
   0x4   :  { %275 = vmatpush.bf16.msra.mxu1 %v5447_v3  ;;  %8260 = vmatpush.bf16.msra.mxu2 %v5447_v3  ;;  %v5431_v12 = vor.u32 %v7702_v10, %v5430_v9  ;;  %v5440_v13 = vld [vmem:[%s12475_s1 + $0xd8] sm:$0xf0]  ;;  %v5558_v14 = vld [vmem:[%s12476_s2 + $0xc0] sm:$0xf]  ;;  %v7734_v15 = vld [vmem:[%s12476_s2 + $0xcc] sm:$0xf0] }
   0x5   :  { %362 = vmatpush.bf16.msra.mxu3 %v5459_v7  ;;  %625 = vmatpush.bf16.msra.mxu0 %v5575_v8  ;;  %v5443_v16 = vor.u32 %v7701_v11, %v5440_v13  ;;  %v5559_v17 = vor.u32 %v7734_v15, %v5558_v14  ;;  %v5414_v18 = vld [vmem:[%s12475_s1 + $0xa0] sm:$0xf]  ;;  %v7698_v19 = vld [vmem:[%s12475_s1 + $0xac] sm:$0xf0]  ;;  %v7697_v20 = vld [vmem:[%s12475_s1 + $0xac] sm:$0xf] }
   0x6   :  { %v5424_v21 = vld [vmem:[%s12475_s1 + $0xb8] sm:$0xf0]  ;;  %v5542_v22 = vld [vmem:[%s12476_s2 + $0xa0] sm:$0xf]  ;;  %v7730_v23 = vld [vmem:[%s12476_s2 + $0xac] sm:$0xf0]  ;;  %v5415_v24 = vor.u32 %v7698_v19, %v5414_v18 }
   0x7   :  { %v5427_v25 = vor.u32 %v7697_v20, %v5424_v21  ;;  %v5543_v26 = vor.u32 %v7730_v23, %v5542_v22  ;;  %v5398_v27 = vld [vmem:[%s12475_s1 + $0x80] sm:$0xf]  ;;  %v7694_v28 = vld [vmem:[%s12475_s1 + $0x8c] sm:$0xf0]  ;;  %v7693_v29 = vld [vmem:[%s12475_s1 + $0x8c] sm:$0xf] }
   0x8   :  { %276 = vmatpush.bf16.msra.mxu1 %v5431_v12  ;;  %8261 = vmatpush.bf16.msra.mxu2 %v5431_v12  ;;  %v5408_v30 = vld [vmem:[%s12475_s1 + $0x98] sm:$0xf0]  ;;  %v5526_v31 = vld [vmem:[%s12476_s2 + $0x80] sm:$0xf]  ;;  %v7726_v32 = vld [vmem:[%s12476_s2 + $0x8c] sm:$0xf0]  ;;  %v5399_v33 = vor.u32 %v7694_v28, %v5398_v27 }
   0x9   :  { %363 = vmatpush.bf16.msra.mxu3 %v5443_v16  ;;  %626 = vmatpush.bf16.msra.mxu0 %v5559_v17  ;;  %v5411_v34 = vor.u32 %v7693_v29, %v5408_v30  ;;  %v5527_v35 = vor.u32 %v7726_v32, %v5526_v31  ;;  %v5382_v36 = vld [vmem:[%s12475_s1 + $0x60] sm:$0xf]  ;;  %v7690_v37 = vld [vmem:[%s12475_s1 + $0x6c] sm:$0xf0]  ;;  %v7689_v38 = vld [vmem:[%s12475_s1 + $0x6c] sm:$0xf] }
   0xa   :  { %v5392_v39 = vld [vmem:[%s12475_s1 + $0x78] sm:$0xf0]  ;;  %v5510_v40 = vld [vmem:[%s12476_s2 + $0x60] sm:$0xf]  ;;  %v7722_v41 = vld [vmem:[%s12476_s2 + $0x6c] sm:$0xf0]  ;;  %v5383_v42 = vor.u32 %v7690_v37, %v5382_v36 }
   0xb   :  { %v5395_v43 = vor.u32 %v7689_v38, %v5392_v39  ;;  %v5511_v44 = vor.u32 %v7722_v41, %v5510_v40  ;;  %v5366_v45 = vld [vmem:[%s12475_s1 + $0x40] sm:$0xf]  ;;  %v7686_v46 = vld [vmem:[%s12475_s1 + $0x4c] sm:$0xf0]  ;;  %v7685_v47 = vld [vmem:[%s12475_s1 + $0x4c] sm:$0xf] }
   0xc   :  { %277 = vmatpush.bf16.msra.mxu1 %v5415_v24  ;;  %8262 = vmatpush.bf16.msra.mxu2 %v5415_v24  ;;  %v5376_v48 = vld [vmem:[%s12475_s1 + $0x58] sm:$0xf0]  ;;  %v5494_v49 = vld [vmem:[%s12476_s2 + $0x40] sm:$0xf]  ;;  %v7718_v50 = vld [vmem:[%s12476_s2 + $0x4c] sm:$0xf0]  ;;  %v5367_v51 = vor.u32 %v7686_v46, %v5366_v45 }
   0xd   :  { %364 = vmatpush.bf16.msra.mxu3 %v5427_v25  ;;  %627 = vmatpush.bf16.msra.mxu0 %v5543_v26  ;;  %v5379_v52 = vor.u32 %v7685_v47, %v5376_v48  ;;  %v5495_v53 = vor.u32 %v7718_v50, %v5494_v49  ;;  %v5350_v54 = vld [vmem:[%s12475_s1 + $0x20] sm:$0xf]  ;;  %v7682_v55 = vld [vmem:[%s12475_s1 + $0x2c] sm:$0xf0]  ;;  %v7681_v56 = vld [vmem:[%s12475_s1 + $0x2c] sm:$0xf] }
   0xe   :  { %v5360_v57 = vld [vmem:[%s12475_s1 + $0x38] sm:$0xf0]  ;;  %v5478_v58 = vld [vmem:[%s12476_s2 + $0x20] sm:$0xf]  ;;  %v7714_v59 = vld [vmem:[%s12476_s2 + $0x2c] sm:$0xf0]  ;;  %v5351_v60 = vor.u32 %v7682_v55, %v5350_v54 }
   0xf   :  { %v5334_v61 = vld [vmem:[%s12475_s1] sm:$0xf]  ;;  %v5363_v62 = vor.u32 %v7681_v56, %v5360_v57  ;;  %v5479_v63 = vor.u32 %v7714_v59, %v5478_v58  ;;  %v7678_v0 = vld [vmem:[%s12475_s1 + $0xc] sm:$0xf0]  ;;  %v7677_v1 = vld [vmem:[%s12475_s1 + $0xc] sm:$0xf] }
  0x10   :  { %278 = vmatpush.bf16.msra.mxu1 %v5399_v33  ;;  %8263 = vmatpush.bf16.msra.mxu2 %v5399_v33  ;;  %v5344_v2 = vld [vmem:[%s12475_s1 + $0x18] sm:$0xf0]  ;;  %v5462_v3 = vld [vmem:[%s12476_s2] sm:$0xf]  ;;  %v7710_v4 = vld [vmem:[%s12476_s2 + $0xc] sm:$0xf0]  ;;  %v5335_v9 = vor.u32 %v7678_v0, %v5334_v61 }
  0x11   :  { %365 = vmatpush.bf16.msra.mxu3 %v5411_v34  ;;  %628 = vmatpush.bf16.msra.mxu0 %v5527_v35  ;;  %v7704_v5 = vld [vmem:[%s12475_s1 + $0xe4] sm:$0xf]  ;;  %v5448_v6 = vld [vmem:[%s12475_s1 + $0xf0] sm:$0xf0]  ;;  %v5454_v7 = vld [vmem:[%s12475_s1 + $0xe8] sm:$0xf]  ;;  %v5347_v10 = vor.u32 %v7677_v1, %v5344_v2  ;;  %v5463_v11 = vor.u32 %v7710_v4, %v5462_v3 }
  0x12   :  { %v7707_v8 = vld [vmem:[%s12475_s1 + $0xf4] sm:$0xf0]  ;;  %v423_v12 = vld [vmem:[%s12477_s9] sm:$0xff]  ;;  %v8666_v14 = vld [vmem:[%s12478_s0 + $0x10] sm:$0xff]  ;;  %v5451_v15 = vor.u32 %v7704_v5, %v5448_v6 }
  0x13   :  { %v8661_v13 = vld [vmem:[%s12478_s0] sm:$0xff]  ;;  %v5455_v16 = vor.u32 %v7707_v8, %v5454_v7  ;;  %v5432_v18 = vld [vmem:[%s12475_s1 + $0xd0] sm:$0xf0]  ;;  %v5438_v19 = vld [vmem:[%s12475_s1 + $0xc8] sm:$0xf]  ;;  %v8680_v21 = vpack.c.bf16 %v423_v12, %v423_v12 }
  0x14   :  { %279 = vmatpush.bf16.msra.mxu1 %v5383_v42  ;;  %8264 = vmatpush.bf16.msra.mxu2 %v5383_v42  ;;  %v7700_v17 = vld [vmem:[%s12475_s1 + $0xc4] sm:$0xf]  ;;  %v7703_v20 = vld [vmem:[%s12475_s1 + $0xd4] sm:$0xf0]  ;;  %v7737_v25 = vld [vmem:[%s12476_s2 + $0xec] sm:$0xf] }
  0x15   :  { %366 = vmatpush.bf16.msra.mxu3 %v5395_v43  ;;  %629 = vmatpush.bf16.msra.mxu0 %v5511_v44  ;;  %v5435_v22 = vor.u32 %v7700_v17, %v5432_v18  ;;  %v5439_v23 = vor.u32 %v7703_v20, %v5438_v19  ;;  %v7696_v24 = vld [vmem:[%s12475_s1 + $0xa4] sm:$0xf]  ;;  %v5584_v26 = vld [vmem:[%s12476_s2 + $0xf8] sm:$0xf0]  ;;  %v5416_v27 = vld [vmem:[%s12475_s1 + $0xb0] sm:$0xf0] }
  0x16   :  { %v5422_v28 = vld [vmem:[%s12475_s1 + $0xa8] sm:$0xf]  ;;  %v7699_v29 = vld [vmem:[%s12475_s1 + $0xb4] sm:$0xf0]  ;;  %v5587_v30 = vor.u32 %v7737_v25, %v5584_v26  ;;  %v7733_v31 = vld [vmem:[%s12476_s2 + $0xcc] sm:$0xf]  ;;  %v5419_v33 = vor.u32 %v7696_v24, %v5416_v27 }
  0x17   :  { %v5568_v32 = vld [vmem:[%s12476_s2 + $0xd8] sm:$0xf0]  ;;  %v5423_v34 = vor.u32 %v7699_v29, %v5422_v28  ;;  %v7692_v35 = vld [vmem:[%s12475_s1 + $0x84] sm:$0xf]  ;;  %v5400_v36 = vld [vmem:[%s12475_s1 + $0x90] sm:$0xf0] }
  0x18   :  { %280 = vmatpush.bf16.msra.mxu1 %v5367_v51  ;;  %8265 = vmatpush.bf16.msra.mxu2 %v5367_v51  ;;  %v5406_v37 = vld [vmem:[%s12475_s1 + $0x88] sm:$0xf]  ;;  %v5571_v38 = vor.u32 %v7733_v31, %v5568_v32  ;;  %v7695_v39 = vld [vmem:[%s12475_s1 + $0x94] sm:$0xf0]  ;;  %v7729_v40 = vld [vmem:[%s12476_s2 + $0xac] sm:$0xf]  ;;  %v5403_v43 = vor.u32 %v7692_v35, %v5400_v36 }
  0x19   :  { %367 = vmatpush.bf16.msra.mxu3 %v5379_v52  ;;  %630 = vmatpush.bf16.msra.mxu0 %v5495_v53  ;;  %v5552_v41 = vld [vmem:[%s12476_s2 + $0xb8] sm:$0xf0]  ;;  %v5407_v44 = vor.u32 %v7695_v39, %v5406_v37  ;;  %v7688_v45 = vld [vmem:[%s12475_s1 + $0x64] sm:$0xf]  ;;  %v7725_v46 = vld [vmem:[%s12476_s2 + $0x8c] sm:$0xf] }
  0x1a   :  { %v5555_v42 = vor.u32 %v7729_v40, %v5552_v41  ;;  %v5536_v47 = vld [vmem:[%s12476_s2 + $0x98] sm:$0xf0]  ;;  %v5384_v48 = vld [vmem:[%s12475_s1 + $0x70] sm:$0xf0]  ;;  %v5390_v49 = vld [vmem:[%s12475_s1 + $0x68] sm:$0xf] }
  0x1b   :  { %v7691_v50 = vld [vmem:[%s12475_s1 + $0x74] sm:$0xf0]  ;;  %v5539_v51 = vor.u32 %v7725_v46, %v5536_v47  ;;  %v8749_v52 = vld [vmem:[%s12478_s0 + $0x8] sm:$0xff]  ;;  %v5387_v54 = vor.u32 %v7688_v45, %v5384_v48  ;;  %v7684_v56 = vld [vmem:[%s12475_s1 + $0x44] sm:$0xf] }
  0x1c   :  { %281 = vmatpush.bf16.msra.mxu1 %v5351_v60  ;;  %8266 = vmatpush.bf16.msra.mxu2 %v5351_v60  ;;  %v8754_v53 = vld [vmem:[%s12478_s0 + $0x18] sm:$0xff]  ;;  %v5391_v55 = vor.u32 %v7691_v50, %v5390_v49  ;;  %v5368_v57 = vld [vmem:[%s12475_s1 + $0x50] sm:$0xf0]  ;;  %v5374_v58 = vld [vmem:[%s12475_s1 + $0x48] sm:$0xf] }
  0x1d   :  { %368 = vmatpush.bf16.msra.mxu3 %v5363_v62  ;;  %631 = vmatpush.bf16.msra.mxu0 %v5479_v63  ;;  %v7687_v59 = vld [vmem:[%s12475_s1 + $0x54] sm:$0xf0]  ;;  %v5371_v60 = vor.u32 %v7684_v56, %v5368_v57  ;;  %v7680_v62 = vld [vmem:[%s12475_s1 + $0x24] sm:$0xf]  ;;  %v7721_v63 = vld [vmem:[%s12476_s2 + $0x6c] sm:$0xf] }
  0x1e   :  { %v5375_v61 = vor.u32 %v7687_v59, %v5374_v58  ;;  %v5520_v0 = vld [vmem:[%s12476_s2 + $0x78] sm:$0xf0]  ;;  %v5352_v1 = vld [vmem:[%s12475_s1 + $0x30] sm:$0xf0]  ;;  %v5358_v2 = vld [vmem:[%s12475_s1 + $0x28] sm:$0xf] }
  0x1f   :  { %v7683_v3 = vld [vmem:[%s12475_s1 + $0x34] sm:$0xf0]  ;;  %v5523_v4 = vor.u32 %v7721_v63, %v5520_v0  ;;  %v7676_v5 = vld [vmem:[%s12475_s1 + $0x4] sm:$0xf]  ;;  %v7717_v6 = vld [vmem:[%s12476_s2 + $0x4c] sm:$0xf]  ;;  %v5355_v8 = vor.u32 %v7680_v62, %v5352_v1 }
  0x20   :  { %282 = vmatpush.bf16.msra.mxu1 %v5335_v9  ;;  %8267 = vmatpush.bf16.msra.mxu2 %v5335_v9  ;;  %v5504_v7 = vld [vmem:[%s12476_s2 + $0x58] sm:$0xf0]  ;;  %v5359_v9 = vor.u32 %v7683_v3, %v5358_v2  ;;  %v7679_v12 = vld [vmem:[%s12475_s1 + $0x14] sm:$0xf0]  ;;  %v7713_v17 = vld [vmem:[%s12476_s2 + $0x2c] sm:$0xf] }
  0x21   :  { %369 = vmatpush.bf16.msra.mxu3 %v5347_v10  ;;  %632 = vmatpush.bf16.msra.mxu0 %v5463_v11  ;;  %v5336_v10 = vld [vmem:[%s12475_s1 + $0x10] sm:$0xf0]  ;;  %v5342_v11 = vld [vmem:[%s12475_s1 + $0x8] sm:$0xf]  ;;  %v5488_v18 = vld [vmem:[%s12476_s2 + $0x38] sm:$0xf0] }
  0x22   :  { %v5576_v19 = vld [vmem:[%s12476_s2 + $0xf0] sm:$0xf0]  ;;  %v5582_v20 = vld [vmem:[%s12476_s2 + $0xe8] sm:$0xf]  ;;  %v5339_v24 = vor.u32 %v7676_v5, %v5336_v10  ;;  %v5343_v25 = vor.u32 %v7679_v12, %v5342_v11  ;;  %v7709_v26 = vld [vmem:[%s12476_s2 + $0xc] sm:$0xf] }
  0x23   :  { %283 = vmatmul.bf16.vlgmr.msra.gmra.mxu1 %v8661_v13  ;;  %293 = vmatmul.bf16.vlgmr.msra.gmra.mxu2 %v8666_v14  ;;  %v5472_v27 = vld [vmem:[%s12476_s2 + $0x18] sm:$0xf0]  ;;  %v5560_v31 = vld [vmem:[%s12476_s2 + $0xd0] sm:$0xf0]  ;;  %v7728_v37 = vld [vmem:[%s12476_s2 + $0xa4] sm:$0xf] }
  0x24   :  { %304 = vmatpush.bf16.msrb.mxu1 %v5451_v15  ;;  %333 = vmatpush.bf16.msrb.mxu2 %v5455_v16  ;;  %v5507_v15 = vor.u32 %v7717_v6, %v5504_v7  ;;  %v7736_v16 = vld [vmem:[%s12476_s2 + $0xe4] sm:$0xf]  ;;  %v5475_v32 = vor.u32 %v7709_v26, %v5472_v27  ;;  %v5550_v39 = vld [vmem:[%s12476_s2 + $0xa8] sm:$0xf]  ;;  %v7731_v40 = vld [vmem:[%s12476_s2 + $0xb4] sm:$0xf0] }
  0x25   :  { %370 = vmatmul.bf16.vlgmr.msra.gmra.mxu3 %v8661_v13  ;;  %633 = vmatmul.bf16.vlgmr.msra.gmra.mxu0 %v8680_v21  ;;  %v5579_v28 = vor.u32 %v7736_v16, %v5576_v19  ;;  %v5534_v45 = vld [vmem:[%s12476_s2 + $0x88] sm:$0xf]  ;;  %v7720_v48 = vld [vmem:[%s12476_s2 + $0x64] sm:$0xf]  ;;  %v5512_v49 = vld [vmem:[%s12476_s2 + $0x70] sm:$0xf0] }
  0x26   :  { %664 = vmatpush.bf16.msrb.mxu3 %v5587_v30  ;;  %v7732_v30 = vld [vmem:[%s12476_s2 + $0xc4] sm:$0xf]  ;;  %v5518_v50 = vld [vmem:[%s12476_s2 + $0x68] sm:$0xf]  ;;  %v5496_v57 = vld [vmem:[%s12476_s2 + $0x50] sm:$0xf0] }
  0x27   :  { %v5563_v35 = vor.u32 %v7732_v30, %v5560_v31  ;;  %v7716_v56 = vld [vmem:[%s12476_s2 + $0x44] sm:$0xf]  ;;  %v5502_v58 = vld [vmem:[%s12476_s2 + $0x48] sm:$0xf]  ;;  %v7719_v59 = vld [vmem:[%s12476_s2 + $0x54] sm:$0xf0] }
  0x28   :  { %305 = vmatpush.bf16.msrb.mxu1 %v5435_v22  ;;  %334 = vmatpush.bf16.msrb.mxu2 %v5439_v23  ;;  %v7739_v22 = vld [vmem:[%s12476_s2 + $0xf4] sm:$0xf0]  ;;  %v5491_v23 = vor.u32 %v7713_v17, %v5488_v18  ;;  %v7712_v62 = vld [vmem:[%s12476_s2 + $0x24] sm:$0xf]  ;;  %v5480_v63 = vld [vmem:[%s12476_s2 + $0x30] sm:$0xf0] }
  0x29   :  { %v5583_v29 = vor.u32 %v7739_v22, %v5582_v20  ;;  %v5486_v0 = vld [vmem:[%s12476_s2 + $0x28] sm:$0xf]  ;;  %v5483_v1 = vor.u32 %v7712_v62, %v5480_v63  ;;  %v7708_v3 = vld [vmem:[%s12476_s2 + $0x4] sm:$0xf]  ;;  %v7711_v6 = vld [vmem:[%s12476_s2 + $0x14] sm:$0xf0] }
  0x2a   :  { %665 = vmatpush.bf16.msrb.mxu3 %v5571_v38  ;;  %v5544_v38 = vld [vmem:[%s12476_s2 + $0xb0] sm:$0xf0]  ;;  %v5470_v5 = vld [vmem:[%s12476_s2 + $0x8] sm:$0xf] }
  0x2b   :  { %v5547_v41 = vor.u32 %v7728_v37, %v5544_v38 }
  0x2c   :  { %306 = vmatpush.bf16.msrb.mxu1 %v5419_v33  ;;  %335 = vmatpush.bf16.msrb.mxu2 %v5423_v34  ;;  %v5566_v33 = vld [vmem:[%s12476_s2 + $0xc8] sm:$0xf]  ;;  %v7735_v34 = vld [vmem:[%s12476_s2 + $0xd4] sm:$0xf0] }
  0x2d   :  { %v5567_v36 = vor.u32 %v7735_v34, %v5566_v33 }
  0x2e   :  { %666 = vmatpush.bf16.msrb.mxu3 %v5555_v42  ;;  %v5551_v42 = vor.u32 %v7731_v40, %v5550_v39 }
  0x30   :  { %307 = vmatpush.bf16.msrb.mxu1 %v5403_v43  ;;  %336 = vmatpush.bf16.msrb.mxu2 %v5407_v44  ;;  %v7724_v43 = vld [vmem:[%s12476_s2 + $0x84] sm:$0xf]  ;;  %v5528_v44 = vld [vmem:[%s12476_s2 + $0x90] sm:$0xf0] }
  0x31   :  { %v5531_v46 = vor.u32 %v7724_v43, %v5528_v44 }
  0x32   :  { %667 = vmatpush.bf16.msrb.mxu3 %v5539_v51  ;;  %v7723_v51 = vld [vmem:[%s12476_s2 + $0x74] sm:$0xf0] }
  0x33   :  { %288 = vmatmul.bf16.gmra.mxu1 %v8749_v52  ;;  %298 = vmatmul.bf16.gmra.mxu2 %v8754_v53 }
  0x34   :  { %308 = vmatpush.bf16.msrb.mxu1 %v5387_v54  ;;  %337 = vmatpush.bf16.msrb.mxu2 %v5391_v55  ;;  %v5515_v54 = vor.u32 %v7720_v48, %v5512_v49  ;;  %v5519_v55 = vor.u32 %v7723_v51, %v5518_v50  ;;  %v5702_v48 = vld [vmem:[%s12476_s2 + $0xe0] sm:$0xf]  ;;  %v7770_v49 = vld [vmem:[%s12476_s2 + $0xec] sm:$0xf0]  ;;  %v7768_v50 = vld [vmem:[%s12476_s2 + $0xe4] sm:$0xf] }
  0x35   :  { %375 = vmatmul.bf16.gmra.mxu3 %v8749_v52 }
  0x36   :  { %668 = vmatpush.bf16.msrb.mxu3 %v5523_v4  ;;  %v5464_v4 = vld [vmem:[%s12476_s2 + $0x10] sm:$0xf0] }
  0x37   :  { %v5467_v7 = vor.u32 %v7708_v3, %v5464_v4  ;;  %v5688_v4 = vld [vmem:[%s12476_s2 + $0xd0] sm:$0xf0] }
  0x38   :  { %309 = vmatpush.bf16.msrb.mxu1 %v5371_v60  ;;  %338 = vmatpush.bf16.msrb.mxu2 %v5375_v61  ;;  %v5499_v60 = vor.u32 %v7716_v56, %v5496_v57  ;;  %v5503_v61 = vor.u32 %v7719_v59, %v5502_v58  ;;  %v5710_v56 = vld [vmem:[%s12476_s2 + $0xe8] sm:$0xf]  ;;  %v7771_v59 = vld [vmem:[%s12476_s2 + $0xf4] sm:$0xf0] }
  0x39   :  { %v5711_v63 = vor.u32 %v7771_v59, %v5710_v56 }
  0x3a   :  { %669 = vmatpush.bf16.msrb.mxu3 %v5507_v15 }
  0x3c   :  { %310 = vmatpush.bf16.msrb.mxu1 %v5355_v8  ;;  %339 = vmatpush.bf16.msrb.mxu2 %v5359_v9  ;;  %v5471_v8 = vor.u32 %v7711_v6, %v5470_v5  ;;  %v81_v9 = vld [vmem:[%s12479_s3] sm:$0xf]  ;;  %v5694_v5 = vld [vmem:[%s12476_s2 + $0xc8] sm:$0xf]  ;;  %v7767_v6 = vld [vmem:[%s12476_s2 + $0xd4] sm:$0xf0] }
  0x3d   :  { %v8931_v10 = vperm.slane %v81_v9, 0  ;;  %v8975_v38 = vperm.slane %v81_v9, 1 }
  0x3e   :  { %670 = vmatpush.bf16.msrb.mxu3 %v5491_v23 }
  0x40   :  { %311 = vmatpush.bf16.msrb.mxu1 %v5339_v24  ;;  %340 = vmatpush.bf16.msrb.mxu2 %v5343_v25  ;;  %v8950_v24 = vperm.slane %v81_v9, 3 }
  0x42   :  { %671 = vmatpush.bf16.msrb.mxu3 %v5475_v32 }
  0x43   :  { %312 = vmatmul.bf16.vlgmr.msrb.gmra.mxu1 %v8661_v13  ;;  %341 = vmatmul.bf16.vlgmr.msrb.gmra.mxu2 %v8661_v13  ;;  %v7727_v13 = vld [vmem:[%s12476_s2 + $0x94] sm:$0xf0] }
  0x44   :  { %638 = vmatpush.bf16.msra.mxu1 %v5579_v28  ;;  %651 = vmatpush.bf16.msra.mxu2 %v5583_v29  ;;  %v5535_v47 = vor.u32 %v7727_v13, %v5534_v45 }
  0x45   :  { %380 = vmatmul.bf16.gmra.mxu3 %v8666_v14 }
  0x48   :  { %639 = vmatpush.bf16.msra.mxu1 %v5563_v35  ;;  %652 = vmatpush.bf16.msra.mxu2 %v5567_v36 }
  0x4c   :  { %640 = vmatpush.bf16.msra.mxu1 %v5547_v41  ;;  %653 = vmatpush.bf16.msra.mxu2 %v5551_v42  ;;  %v8982_v42 = vperm.slane %v81_v9, 2  ;;  %v7765_v9 = vld [vmem:[%s12476_s2 + $0xcc] sm:$0xf] }
  0x50   :  { %641 = vmatpush.bf16.msra.mxu1 %v5531_v46  ;;  %654 = vmatpush.bf16.msra.mxu2 %v5535_v47 }
  0x53   :  { %317 = vmatmul.bf16.gmra.mxu1 %v8749_v52  ;;  %346 = vmatmul.bf16.gmra.mxu2 %v8749_v52  ;;  %v7715_v52 = vld [vmem:[%s12476_s2 + $0x34] sm:$0xf0] }
  0x54   :  { %642 = vmatpush.bf16.msra.mxu1 %v5515_v54  ;;  %655 = vmatpush.bf16.msra.mxu2 %v5519_v55  ;;  %v5487_v2 = vor.u32 %v7715_v52, %v5486_v0  ;;  %v5703_v54 = vor.u32 %v7770_v49, %v5702_v48  ;;  %v5704_v55 = vld [vmem:[%s12476_s2 + $0xf0] sm:$0xf0]  ;;  %v7766_v52 = vld [vmem:[%s12476_s2 + $0xcc] sm:$0xf0] }
  0x55   :  { %385 = vmatmul.bf16.gmra.mxu3 %v8754_v53  ;;  %v5707_v58 = vor.u32 %v7768_v50, %v5704_v55  ;;  %v5680_v55 = vld [vmem:[%s12476_s2 + $0xb8] sm:$0xf0] }
  0x56   :  { %900 = vmatpush.bf16.msrb.mxu0 %v5703_v54  ;;  %v7761_v54 = vld [vmem:[%s12476_s2 + $0xac] sm:$0xf] }
  0x57   :  { %v5683_v56 = vor.u32 %v7761_v54, %v5680_v55  ;;  %v7750_v54 = vld [vmem:[%s12476_s2 + $0x4c] sm:$0xf0]  ;;  %v7748_v55 = vld [vmem:[%s12476_s2 + $0x44] sm:$0xf] }
  0x58   :  { %643 = vmatpush.bf16.msra.mxu1 %v5499_v60  ;;  %656 = vmatpush.bf16.msra.mxu2 %v5503_v61  ;;  %v7769_v60 = vld [vmem:[%s12476_s2 + $0xec] sm:$0xf]  ;;  %v5712_v61 = vld [vmem:[%s12476_s2 + $0xf8] sm:$0xf0] }
  0x59   :  { %v5715_v0 = vor.u32 %v7769_v60, %v5712_v61  ;;  %v7756_v60 = vld [vmem:[%s12476_s2 + $0x84] sm:$0xf]  ;;  %v5656_v61 = vld [vmem:[%s12476_s2 + $0x90] sm:$0xf0] }
  0x5b   :  { %939 = vmatpush.bf16.msra.mxu3 %v5715_v0  ;;  %v5659_v0 = vor.u32 %v7756_v60, %v5656_v61  ;;  %v7751_v60 = vld [vmem:[%s12476_s2 + $0x54] sm:$0xf0]  ;;  %v7749_v61 = vld [vmem:[%s12476_s2 + $0x4c] sm:$0xf] }
  0x5c   :  { %644 = vmatpush.bf16.msra.mxu1 %v5483_v1  ;;  %657 = vmatpush.bf16.msra.mxu2 %v5487_v2  ;;  %v5686_v1 = vld [vmem:[%s12476_s2 + $0xc0] sm:$0xf]  ;;  %v7764_v2 = vld [vmem:[%s12476_s2 + $0xc4] sm:$0xf] }
  0x5d   :  { %v5687_v3 = vor.u32 %v7766_v52, %v5686_v1  ;;  %v7759_v1 = vld [vmem:[%s12476_s2 + $0x94] sm:$0xf0]  ;;  %v7757_v52 = vld [vmem:[%s12476_s2 + $0x8c] sm:$0xf] }
  0x5f   :  { %901 = vmatpush.bf16.msrb.mxu0 %v5687_v3 }
  0x60   :  { %645 = vmatpush.bf16.msra.mxu1 %v5467_v7  ;;  %658 = vmatpush.bf16.msra.mxu2 %v5471_v8  ;;  %v5691_v7 = vor.u32 %v7764_v2, %v5688_v4  ;;  %v5695_v8 = vor.u32 %v7767_v6, %v5694_v5  ;;  %v5664_v2 = vld [vmem:[%s12476_s2 + $0x98] sm:$0xf0]  ;;  %v5638_v6 = vld [vmem:[%s12476_s2 + $0x60] sm:$0xf] }
  0x61   :  { %v5667_v4 = vor.u32 %v7757_v52, %v5664_v2  ;;  %v5606_v52 = vld [vmem:[%s12476_s2 + $0x20] sm:$0xf]  ;;  %v7746_v2 = vld [vmem:[%s12476_s2 + $0x2c] sm:$0xf0] }
  0x63   :  { %322 = vmatmul.bf16.gmra.mxu1 %v8666_v14  ;;  %351 = vmatmul.bf16.gmra.mxu2 %v8666_v14 }
  0x64   :  { %913 = vmatpush.bf16.msrb.mxu1 %v5707_v58  ;;  %926 = vmatpush.bf16.msrb.mxu2 %v5711_v63  ;;  %v7758_v58 = vld [vmem:[%s12476_s2 + $0x8c] sm:$0xf0]  ;;  %v5662_v63 = vld [vmem:[%s12476_s2 + $0x88] sm:$0xf] }
  0x65   :  { %672 = vmatmul.bf16.vlgmr.msrb.gmra.mxu3 %v8680_v21  ;;  %v5663_v3 = vor.u32 %v7759_v1, %v5662_v63  ;;  %v5632_v63 = vld [vmem:[%s12476_s2 + $0x58] sm:$0xf0] }
  0x66   :  { %v5635_v1 = vor.u32 %v7749_v61, %v5632_v63 }
  0x68   :  { %914 = vmatpush.bf16.msrb.mxu1 %v5691_v7  ;;  %927 = vmatpush.bf16.msrb.mxu2 %v5695_v8  ;;  %v7754_v7 = vld [vmem:[%s12476_s2 + $0x6c] sm:$0xf0]  ;;  %v7752_v8 = vld [vmem:[%s12476_s2 + $0x64] sm:$0xf] }
  0x73   :  { %327 = vmatmul.bf16.gmra.mxu1 %v8754_v53  ;;  %356 = vmatmul.bf16.gmra.mxu2 %v8754_v53 }
  0x83   :  { %646 = vmatmul.bf16.vlgmr.msra.gmra.mxu1 %v8680_v21  ;;  %659 = vmatmul.bf16.vlgmr.msra.gmra.mxu2 %v8680_v21 }
  0xa0   :  { %v284_v11 = vpop.f32.mrf.mxu1 }
  0xa1   :  { %v285_v12 = vadd.f32 %v284_v11, %v8931_v10  ;;  %v5696_v11 = vld [vmem:[%s12476_s2 + $0xd8] sm:$0xf0] }
  0xa2   :  { %v634_v14 = vpop.f32.mrf.mxu0 }
  0xa3   :  { %v8934_v15 = vadd.f32 %v634_v14, %v285_v12  ;;  %v5699_v12 = vor.u32 %v7765_v9, %v5696_v11  ;;  %v5639_v11 = vor.u32 %v7754_v7, %v5638_v6  ;;  %v7744_v6 = vld [vmem:[%s12476_s2 + $0x24] sm:$0xf]  ;;  %v5608_v7 = vld [vmem:[%s12476_s2 + $0x30] sm:$0xf0] }
  0xa5   :  { %940 = vmatpush.bf16.msra.mxu3 %v5699_v12  ;;  %v5640_v12 = vld [vmem:[%s12476_s2 + $0x70] sm:$0xf0]  ;;  %v681_v63 = vmul.f32 0.5, %v8934_v15 }
  0xa6   :  { %v294_v16 = vpop.f32.mrf.mxu2 }
  0xa7   :  { %v8937_v17 = vadd.f32 %v294_v16, %v8931_v10  ;;  %v5670_v16 = vld [vmem:[%s12476_s2 + $0xa0] sm:$0xf]  ;;  %8269 = vtanh.f32 %v681_v63  ;;  %v7800_v63 = vld [vmem:[%s12476_s2 + $0xe4] sm:$0xf] }
  0xa8   :  { %v8939_v53 = vpop.f32.mrf.mxu3  ;;  %v8941_v18 = vpop.f32.mrf.mxu1 }
  0xa9   :  { %941 = vmatpush.bf16.msra.mxu3 %v5683_v56 }
  0xaa   :  { %v636_v21 = vpop.f32.mrf.mxu0 }
  0xab   :  { %v7762_v21 = vld [vmem:[%s12476_s2 + $0xac] sm:$0xf0] }
  0xad   :  { %942 = vmatpush.bf16.msra.mxu3 %v5667_v4  ;;  %v5607_v4 = vor.u32 %v7746_v2, %v5606_v52 }
  0xae   :  { %v8943_v19 = vpop.f32.mrf.mxu2 }
  0xb0   :  { %v8945_v20 = vpop.f32.mrf.mxu3  ;;  %v289_v22 = vpop.f32.mrf.mxu1 }
  0xb1   :  { %v8948_v23 = vadd.f32 %v289_v22, %v8931_v10  ;;  %v7760_v22 = vld [vmem:[%s12476_s2 + $0xa4] sm:$0xf] }
  0xb6   :  { %v299_v25 = vpop.f32.mrf.mxu2 }
  0xb7   :  { %v8953_v26 = vadd.f32 %v299_v25, %v8931_v10 }
  0xb8   :  { %v376_v27 = vpop.f32.mrf.mxu3  ;;  %v8958_v29 = vpop.f32.mrf.mxu1 }
  0xb9   :  { %v8956_v28 = vadd.f32 %v376_v27, %v8950_v24 }
  0xbe   :  { %v8960_v30 = vpop.f32.mrf.mxu2 }
  0xc0   :  { %v8962_v31 = vpop.f32.mrf.mxu3  ;;  %v8964_v32 = vpop.f32.mrf.mxu1 }
  0xc6   :  { %v8966_v33 = vpop.f32.mrf.mxu2 }
  0xc7   :  { %v343_v15 = vadd.f32 %v8966_v33, %v8982_v42 }
  0xc8   :  { %v381_v34 = vpop.f32.mrf.mxu3  ;;  %v8971_v36 = vpop.f32.mrf.mxu1 }
  0xc9   :  { %v8969_v35 = vadd.f32 %v381_v34, %v8950_v24  ;;  %v5671_v34 = vor.u32 %v7762_v21, %v5670_v16  ;;  %v7755_v16 = vld [vmem:[%s12476_s2 + $0x74] sm:$0xf0] }
  0xcb   :  { %902 = vmatpush.bf16.msrb.mxu0 %v5671_v34 }
  0xce   :  { %v8973_v37 = vpop.f32.mrf.mxu2 }
  0xd0   :  { %v8977_v39 = vpop.f32.mrf.mxu3  ;;  %v318_v40 = vpop.f32.mrf.mxu1 }
  0xd1   :  { %v8980_v41 = vadd.f32 %v318_v40, %v8975_v38  ;;  %v5672_v40 = vld [vmem:[%s12476_s2 + $0xb0] sm:$0xf0] }
  0xd2   :  { %v5675_v49 = vor.u32 %v7760_v22, %v5672_v40  ;;  %v5643_v22 = vor.u32 %v7752_v8, %v5640_v12  ;;  %v7753_v40 = vld [vmem:[%s12476_s2 + $0x6c] sm:$0xf]  ;;  %v5614_v8 = vld [vmem:[%s12476_s2 + $0x28] sm:$0xf]  ;;  %v7747_v12 = vld [vmem:[%s12476_s2 + $0x34] sm:$0xf0] }
  0xd4   :  { %915 = vmatpush.bf16.msrb.mxu1 %v5675_v49 }
  0xd6   :  { %v347_v43 = vpop.f32.mrf.mxu2 }
  0xd7   :  { %v8985_v44 = vadd.f32 %v347_v43, %v8982_v42  ;;  %v5678_v43 = vld [vmem:[%s12476_s2 + $0xa8] sm:$0xf] }
  0xd8   :  { %v386_v45 = vpop.f32.mrf.mxu3  ;;  %v8990_v46 = vpop.f32.mrf.mxu1  ;;  %916 = vmatpush.bf16.msrb.mxu1 %v5659_v0 }
  0xd9   :  { %v8988_v13 = vadd.f32 %v386_v45, %v8950_v24  ;;  %v7763_v45 = vld [vmem:[%s12476_s2 + $0xb4] sm:$0xf0] }
  0xda   :  { %v5679_v50 = vor.u32 %v7763_v45, %v5678_v43  ;;  %v5648_v43 = vld [vmem:[%s12476_s2 + $0x78] sm:$0xf0] }
  0xdb   :  { %v5651_v49 = vor.u32 %v7753_v40, %v5648_v43  ;;  %v5590_v40 = vld [vmem:[%s12476_s2] sm:$0xf]  ;;  %v7742_v43 = vld [vmem:[%s12476_s2 + $0xc] sm:$0xf0] }
  0xdc   :  { %928 = vmatpush.bf16.msrb.mxu2 %v5679_v50  ;;  %917 = vmatpush.bf16.msrb.mxu1 %v5643_v22  ;;  %v5622_v50 = vld [vmem:[%s12476_s2 + $0x40] sm:$0xf]  ;;  %v5615_v22 = vor.u32 %v7747_v12, %v5614_v8  ;;  %v8270_v8 = vpop.eup %8269 }
  0xdd   :  { %943 = vmatpush.bf16.msra.mxu3 %v5651_v49  ;;  %v5623_v56 = vor.u32 %v7750_v54, %v5622_v50  ;;  %v7740_v49 = vld [vmem:[%s12476_s2 + $0x4] sm:$0xf]  ;;  %v5591_v50 = vor.u32 %v7742_v43, %v5590_v40  ;;  %v5592_v54 = vld [vmem:[%s12476_s2 + $0x10] sm:$0xf0] }
  0xde   :  { %v8992_v47 = vpop.f32.mrf.mxu2 }
  0xe0   :  { %v9003_v51 = vpop.f32.mrf.mxu3  ;;  %v323_v57 = vpop.f32.mrf.mxu1  ;;  %929 = vmatpush.bf16.msrb.mxu2 %v5663_v3 }
  0xe1   :  { %v9021_v62 = vadd.f32 %v323_v57, %v8975_v38  ;;  %v5654_v57 = vld [vmem:[%s12476_s2 + $0x80] sm:$0xf]  ;;  %944 = vmatpush.bf16.msra.mxu3 %v5635_v1  ;;  %v314_v1 = vadd.f32 %v8964_v32, %v8975_v38 }
  0xe2   :  { %v5655_v59 = vor.u32 %v7758_v58, %v5654_v57  ;;  %v5624_v57 = vld [vmem:[%s12476_s2 + $0x50] sm:$0xf0]  ;;  %v5630_v58 = vld [vmem:[%s12476_s2 + $0x48] sm:$0xf] }
  0xe3   :  { %v5631_v0 = vor.u32 %v7751_v60, %v5630_v58  ;;  %v7741_v58 = vld [vmem:[%s12476_s2 + $0xc] sm:$0xf] }
  0xe4   :  { %903 = vmatpush.bf16.msrb.mxu0 %v5655_v59  ;;  %v5627_v59 = vor.u32 %v7748_v55, %v5624_v57  ;;  %v5598_v55 = vld [vmem:[%s12476_s2 + $0x8] sm:$0xf]  ;;  %v5595_v57 = vor.u32 %v7740_v49, %v5592_v54 }
  0xe6   :  { %v352_v14 = vpop.f32.mrf.mxu2  ;;  %918 = vmatpush.bf16.msrb.mxu1 %v5627_v59  ;;  %v5600_v59 = vld [vmem:[%s12476_s2 + $0x18] sm:$0xf0] }
  0xe7   :  { %v9057_v25 = vadd.f32 %v352_v14, %v8982_v42  ;;  %v5646_v14 = vld [vmem:[%s12476_s2 + $0x68] sm:$0xf]  ;;  %v5603_v61 = vor.u32 %v7741_v58, %v5600_v59 }
  0xe8   :  { %v9059_v27 = vpop.f32.mrf.mxu3  ;;  %v9070_v48 = vpop.f32.mrf.mxu1  ;;  %v5647_v34 = vor.u32 %v7755_v16, %v5646_v14  ;;  %904 = vmatpush.bf16.msrb.mxu0 %v5639_v11  ;;  %v5611_v11 = vor.u32 %v7744_v6, %v5608_v7  ;;  %v7745_v14 = vld [vmem:[%s12476_s2 + $0x2c] sm:$0xf]  ;;  %v5616_v16 = vld [vmem:[%s12476_s2 + $0x38] sm:$0xf0] }
  0xea   :  { %930 = vmatpush.bf16.msrb.mxu2 %v5647_v34  ;;  %v5619_v34 = vor.u32 %v7745_v14, %v5616_v16  ;;  %919 = vmatpush.bf16.msrb.mxu1 %v5611_v11  ;;  %v683_v14 = vmul.f32 0.5, %v8270_v8 }
  0xec   :  { %905 = vmatpush.bf16.msrb.mxu0 %v5623_v56  ;;  %v7743_v56 = vld [vmem:[%s12476_s2 + $0x14] sm:$0xf0]  ;;  %945 = vmatpush.bf16.msra.mxu3 %v5619_v34  ;;  %v684_v34 = vadd.f32 0.5, %v683_v14 }
  0xed   :  { %v5599_v60 = vor.u32 %v7743_v56, %v5598_v55 }
  0xee   :  { %v9102_v5 = vpop.f32.mrf.mxu2  ;;  %931 = vmatpush.bf16.msrb.mxu2 %v5631_v0  ;;  %920 = vmatpush.bf16.msrb.mxu1 %v5595_v57 }
  0xf0   :  { %v675_v9 = vpop.f32.mrf.mxu3  ;;  %v328_v21 = vpop.f32.mrf.mxu1  ;;  %906 = vmatpush.bf16.msrb.mxu0 %v5607_v4  ;;  %946 = vmatpush.bf16.msra.mxu3 %v5603_v61  ;;  %v7802_v61 = vld [vmem:[%s12476_s2 + $0xec] sm:$0xf0] }
  0xf1   :  { %v9129_v45 = vadd.f32 %v328_v21, %v8975_v38 }
  0xf2   :  { %932 = vmatpush.bf16.msrb.mxu2 %v5615_v22 }
  0xf4   :  { %907 = vmatpush.bf16.msrb.mxu0 %v5591_v50 }
  0xf6   :  { %v357_v3 = vpop.f32.mrf.mxu2  ;;  %933 = vmatpush.bf16.msrb.mxu2 %v5599_v60  ;;  %v5830_v60 = vld [vmem:[%s12476_s2 + $0xe0] sm:$0xf] }
  0xf7   :  { %v9171_v9 = vadd.f32 %v357_v3, %v8982_v42  ;;  %v372_v3 = vadd.f32 %v8939_v53, %v8950_v24  ;;  %v424_v53 = vld [vmem:[%s12480_s10] sm:$0xff] }
  0xf8   :  { %v9182_v21 = vpop.f32.mrf.mxu1 }
  0xf9   :  { %v680_v6 = vadd.f32 %v9059_v27, %v372_v3  ;;  %v7803_v3 = vld [vmem:[%s12476_s2 + $0xf4] sm:$0xf0] }
  0xfb   :  { %v690_v12 = vmul.f32 0.5, %v680_v6 }
  0xfe   :  { %v9209_v0 = vpop.f32.mrf.mxu2 }
 0x100   :  { %v647_v52 = vpop.f32.mrf.mxu1 }
 0x101   :  { %v678_v2 = vadd.f32 %v647_v52, %v314_v1  ;;  %v5831_v1 = vor.u32 %v7802_v61, %v5830_v60  ;;  %v5832_v52 = vld [vmem:[%s12476_s2 + $0xf0] sm:$0xf0]  ;;  %v7795_v60 = vld [vmem:[%s12476_s2 + $0xb4] sm:$0xf0] }
 0x103   :  { %v685_v4 = vmul.f32 0.5, %v678_v2  ;;  %v5838_v2 = vld [vmem:[%s12476_s2 + $0xe8] sm:$0xf]  ;;  %1176 = vmatpush.bf16.msra.mxu0 %v5831_v1  ;;  %v7793_v1 = vld [vmem:[%s12476_s2 + $0xac] sm:$0xf] }
 0x104   :  { %v5839_v6 = vor.u32 %v7803_v3, %v5838_v2  ;;  %v5782_v3 = vld [vmem:[%s12476_s2 + $0x80] sm:$0xf] }
 0x105   :  { %8271 = vtanh.f32 %v685_v4  ;;  %v5835_v4 = vor.u32 %v7800_v63, %v5832_v52  ;;  %v5808_v52 = vld [vmem:[%s12476_s2 + $0xb8] sm:$0xf0] }
 0x106   :  { %v660_v7 = vpop.f32.mrf.mxu2  ;;  %1202 = vmatpush.bf16.msra.mxu2 %v5839_v6  ;;  %v5811_v2 = vor.u32 %v7793_v1, %v5808_v52  ;;  %v7788_v6 = vld [vmem:[%s12476_s2 + $0x84] sm:$0xf]  ;;  %v5752_v52 = vld [vmem:[%s12476_s2 + $0x50] sm:$0xf0] }
 0x107   :  { %v679_v11 = vadd.f32 %v660_v7, %v343_v15  ;;  %v7801_v15 = vld [vmem:[%s12476_s2 + $0xec] sm:$0xf]  ;;  %v5840_v7 = vld [vmem:[%s12476_s2 + $0xf8] sm:$0xf0]  ;;  %1189 = vmatpush.bf16.msra.mxu1 %v5835_v4  ;;  %v7790_v4 = vld [vmem:[%s12476_s2 + $0x8c] sm:$0xf0] }
 0x108   :  { %v649_v32 = vpop.f32.mrf.mxu1  ;;  %v5843_v8 = vor.u32 %v7801_v15, %v5840_v7  ;;  %v5783_v15 = vor.u32 %v7790_v4, %v5782_v3  ;;  %v5784_v7 = vld [vmem:[%s12476_s2 + $0x90] sm:$0xf0]  ;;  %v7783_v3 = vld [vmem:[%s12476_s2 + $0x54] sm:$0xf0] }
 0x109   :  { %8273 = vtanh.f32 %v679_v11  ;;  %v5814_v11 = vld [vmem:[%s12476_s2 + $0xc0] sm:$0xf]  ;;  %v7796_v32 = vld [vmem:[%s12476_s2 + $0xc4] sm:$0xf] }
 0x10a   :  { %8275 = vtanh.f32 %v690_v12  ;;  %v7798_v12 = vld [vmem:[%s12476_s2 + $0xcc] sm:$0xf0]  ;;  %1215 = vmatpush.bf16.msrb.mxu3 %v5843_v8  ;;  %v5790_v8 = vld [vmem:[%s12476_s2 + $0x88] sm:$0xf] }
 0x10b   :  { %v8272_v16 = vpop.eup %8271  ;;  %v5815_v14 = vor.u32 %v7798_v12, %v5814_v11  ;;  %v7791_v11 = vld [vmem:[%s12476_s2 + $0x94] sm:$0xf0]  ;;  %v5787_v12 = vor.u32 %v7788_v6, %v5784_v7  ;;  %v5760_v7 = vld [vmem:[%s12476_s2 + $0x58] sm:$0xf0] }
 0x10c   :  { %v687_v22 = vmul.f32 0.5, %v8272_v16  ;;  %v5816_v16 = vld [vmem:[%s12476_s2 + $0xd0] sm:$0xf0] }
 0x10d   :  { %1177 = vmatpush.bf16.msra.mxu0 %v5815_v14  ;;  %v7789_v14 = vld [vmem:[%s12476_s2 + $0x8c] sm:$0xf] }
 0x10e   :  { %v688_v27 = vadd.f32 0.5, %v687_v22  ;;  %v662_v40 = vpop.f32.mrf.mxu2  ;;  %v5822_v22 = vld [vmem:[%s12476_s2 + $0xc8] sm:$0xf] }
 0x10f   :  { %v8274_v43 = vpop.eup %8273  ;;  %v7797_v40 = vld [vmem:[%s12476_s2 + $0xcc] sm:$0xf] }
 0x110   :  { %v694_v33 = vmul.f32 %v688_v27, %v424_v53  ;;  %v695_v49 = vmul.f32 %v8274_v43, %v684_v34  ;;  %v8276_v50 = vpop.eup %8275  ;;  %v7799_v53 = vld [vmem:[%s12476_s2 + $0xd4] sm:$0xf0]  ;;  %v5819_v34 = vor.u32 %v7796_v32, %v5816_v16  ;;  %v5824_v43 = vld [vmem:[%s12476_s2 + $0xd8] sm:$0xf0]  ;;  %v5791_v32 = vor.u32 %v7791_v11, %v5790_v8  ;;  %v5734_v11 = vld [vmem:[%s12476_s2 + $0x20] sm:$0xf] }
 0x111   :  { %v692_v55 = vmul.f32 0.5, %v8276_v50  ;;  %v5823_v27 = vor.u32 %v7799_v53, %v5822_v22  ;;  %v7794_v50 = vld [vmem:[%s12476_s2 + $0xac] sm:$0xf0]  ;;  %v5792_v16 = vld [vmem:[%s12476_s2 + $0x98] sm:$0xf0] }
 0x112   :  { %v9221_v54 = vadd.f32 %v695_v49, %v694_v33  ;;  %v5827_v33 = vor.u32 %v7797_v40, %v5824_v43  ;;  %1190 = vmatpush.bf16.msra.mxu1 %v5819_v34  ;;  %v5798_v49 = vld [vmem:[%s12476_s2 + $0xa0] sm:$0xf]  ;;  %v5795_v22 = vor.u32 %v7789_v14, %v5792_v16  ;;  %v7786_v34 = vld [vmem:[%s12476_s2 + $0x6c] sm:$0xf0]  ;;  %v5768_v43 = vld [vmem:[%s12476_s2 + $0x70] sm:$0xf0] }
 0x113   :  { %v693_v56 = vadd.f32 0.5, %v692_v55  ;;  %1203 = vmatpush.bf16.msra.mxu2 %v5823_v27  ;;  %v7792_v55 = vld [vmem:[%s12476_s2 + $0xa4] sm:$0xf]  ;;  %v5766_v53 = vld [vmem:[%s12476_s2 + $0x60] sm:$0xf] }
 0x114   :  { %8277 = vtanh.f32 %v9221_v54  ;;  %1216 = vmatpush.bf16.msrb.mxu3 %v5827_v33  ;;  %v7784_v27 = vld [vmem:[%s12476_s2 + $0x64] sm:$0xf]  ;;  %v5767_v40 = vor.u32 %v7786_v34, %v5766_v53  ;;  %v5774_v33 = vld [vmem:[%s12476_s2 + $0x68] sm:$0xf]  ;;  %v5736_v16 = vld [vmem:[%s12476_s2 + $0x30] sm:$0xf0] }
 0x115   :  { %v7779_v53 = vld [vmem:[%s12476_s2 + $0x34] sm:$0xf0] }
 0x118   :  { %1217 = vmatpush.bf16.msrb.mxu3 %v5811_v2  ;;  %v5758_v2 = vld [vmem:[%s12476_s2 + $0x48] sm:$0xf] }
 0x119   :  { %v5759_v6 = vor.u32 %v7783_v3, %v5758_v2  ;;  %v287_v3 = vadd.f32 %v8941_v18, %v8931_v10 }
 0x11a   :  { %v8278_v57 = vpop.eup %8277 }
 0x11b   :  { %v9224_v58 = vmul.f32 %v8278_v57, %v693_v56  ;;  %v5799_v56 = vor.u32 %v7794_v50, %v5798_v49  ;;  %v5800_v57 = vld [vmem:[%s12476_s2 + $0xb0] sm:$0xf0]  ;;  %v7787_v49 = vld [vmem:[%s12476_s2 + $0x74] sm:$0xf0]  ;;  %v5771_v50 = vor.u32 %v7784_v27, %v5768_v43  ;;  %v5744_v43 = vld [vmem:[%s12476_s2 + $0x38] sm:$0xf0] }
 0x11c   :  { %v5803_v61 = vor.u32 %v7792_v55, %v5800_v57  ;;  %1218 = vmatpush.bf16.msrb.mxu3 %v5795_v22  ;;  %v5775_v55 = vor.u32 %v7787_v49, %v5774_v33  ;;  %v5776_v57 = vld [vmem:[%s12476_s2 + $0x78] sm:$0xf0]  ;;  %v5742_v22 = vld [vmem:[%s12476_s2 + $0x28] sm:$0xf]  ;;  %v5718_v49 = vld [vmem:[%s12476_s2] sm:$0xf] }
 0x11d   :  { %v707_v59 = vpack.c.bf16 %v9224_v58, %v9224_v58  ;;  %1178 = vmatpush.bf16.msra.mxu0 %v5799_v56  ;;  %v7785_v56 = vld [vmem:[%s12476_s2 + $0x6c] sm:$0xf]  ;;  %v5743_v27 = vor.u32 %v7779_v53, %v5742_v22 }
 0x11e   :  { %1191 = vmatpush.bf16.msra.mxu1 %v5803_v61  ;;  %v7782_v61 = vld [vmem:[%s12476_s2 + $0x4c] sm:$0xf0] }
 0x11f   :  { %908 = vmatmul.bf16.vlgmr.msrb.gmra.mxu0 %v707_v59  ;;  %921 = vmatmul.bf16.vlgmr.msrb.gmra.mxu1 %v707_v59 }
 0x120   :  { %934 = vmatmul.bf16.vlgmr.msrb.gmra.mxu2 %v707_v59  ;;  %947 = vmatmul.bf16.vlgmr.msra.gmra.mxu3 %v707_v59  ;;  %v5806_v59 = vld [vmem:[%s12476_s2 + $0xa8] sm:$0xf] }
 0x121   :  { %v5807_v63 = vor.u32 %v7795_v60, %v5806_v59  ;;  %1179 = vmatpush.bf16.msra.mxu0 %v5783_v15  ;;  %v5779_v59 = vor.u32 %v7785_v56, %v5776_v57  ;;  %v5750_v60 = vld [vmem:[%s12476_s2 + $0x40] sm:$0xf]  ;;  %v7781_v15 = vld [vmem:[%s12476_s2 + $0x4c] sm:$0xf]  ;;  %v5720_v57 = vld [vmem:[%s12476_s2 + $0x10] sm:$0xf0] }
 0x122   :  { %1192 = vmatpush.bf16.msra.mxu1 %v5787_v12  ;;  %v5751_v1 = vor.u32 %v7782_v61, %v5750_v60  ;;  %v5763_v8 = vor.u32 %v7781_v15, %v5760_v7  ;;  %v7778_v12 = vld [vmem:[%s12476_s2 + $0x2c] sm:$0xf0]  ;;  %v7775_v60 = vld [vmem:[%s12476_s2 + $0x14] sm:$0xf0] }
 0x123   :  { %1204 = vmatpush.bf16.msra.mxu2 %v5807_v63  ;;  %v7780_v63 = vld [vmem:[%s12476_s2 + $0x44] sm:$0xf]  ;;  %1219 = vmatpush.bf16.msrb.mxu3 %v5779_v59  ;;  %v5735_v14 = vor.u32 %v7778_v12, %v5734_v11  ;;  %v5726_v59 = vld [vmem:[%s12476_s2 + $0x8] sm:$0xf] }
 0x124   :  { %v5755_v4 = vor.u32 %v7780_v63, %v5752_v52  ;;  %v5727_v63 = vor.u32 %v7775_v60, %v5726_v59  ;;  %v5728_v52 = vld [vmem:[%s12476_s2 + $0x18] sm:$0xf0] }
 0x125   :  { %1180 = vmatpush.bf16.msra.mxu0 %v5767_v40  ;;  %v7777_v40 = vld [vmem:[%s12476_s2 + $0x2c] sm:$0xf] }
 0x126   :  { %1193 = vmatpush.bf16.msra.mxu1 %v5771_v50  ;;  %v5747_v33 = vor.u32 %v7777_v40, %v5744_v43  ;;  %v7774_v50 = vld [vmem:[%s12476_s2 + $0xc] sm:$0xf0] }
 0x127   :  { %1205 = vmatpush.bf16.msra.mxu2 %v5791_v32  ;;  %v7776_v32 = vld [vmem:[%s12476_s2 + $0x24] sm:$0xf]  ;;  %1220 = vmatpush.bf16.msrb.mxu3 %v5763_v8  ;;  %v5719_v56 = vor.u32 %v7774_v50, %v5718_v49 }
 0x128   :  { %v5739_v34 = vor.u32 %v7776_v32, %v5736_v16  ;;  %v374_v32 = vadd.f32 %v8945_v20, %v8950_v24 }
 0x129   :  { %1181 = vmatpush.bf16.msra.mxu0 %v5751_v1  ;;  %v7773_v1 = vld [vmem:[%s12476_s2 + $0xc] sm:$0xf] }
 0x12a   :  { %1194 = vmatpush.bf16.msra.mxu1 %v5755_v4  ;;  %v5731_v2 = vor.u32 %v7773_v1, %v5728_v52  ;;  %v316_v4 = vadd.f32 %v8971_v36, %v8975_v38 }
 0x12b   :  { %1206 = vmatpush.bf16.msra.mxu2 %v5775_v55  ;;  %v7772_v55 = vld [vmem:[%s12476_s2 + $0x4] sm:$0xf]  ;;  %1221 = vmatpush.bf16.msrb.mxu3 %v5747_v33 }
 0x12c   :  { %v5723_v61 = vor.u32 %v7772_v55, %v5720_v57 }
 0x12d   :  { %1182 = vmatpush.bf16.msra.mxu0 %v5735_v14  ;;  %v345_v14 = vadd.f32 %v8973_v37, %v8982_v42 }
 0x12e   :  { %1195 = vmatpush.bf16.msra.mxu1 %v5739_v34 }
 0x12f   :  { %1207 = vmatpush.bf16.msra.mxu2 %v5759_v6  ;;  %1222 = vmatpush.bf16.msrb.mxu3 %v5731_v2 }
 0x131   :  { %1183 = vmatpush.bf16.msra.mxu0 %v5719_v56 }
 0x132   :  { %1196 = vmatpush.bf16.msra.mxu1 %v5723_v61 }
 0x133   :  { %1208 = vmatpush.bf16.msra.mxu2 %v5743_v27 }
 0x137   :  { %1209 = vmatpush.bf16.msra.mxu2 %v5727_v63 }
 0x19c   :  { %v909_v6 = vpop.f32.mrf.mxu0  ;;  %v922_v15 = vpop.f32.mrf.mxu1 }
 0x19d   :  { %v952_v7 = vadd.f32 %v909_v6, %v287_v3  ;;  %v953_v8 = vadd.f32 %v922_v15, %v316_v4  ;;  %v7834_v4 = vld [vmem:[%s12476_s2 + $0xec] sm:$0xf0]  ;;  %v7832_v6 = vld [vmem:[%s12476_s2 + $0xe4] sm:$0xf] }
 0x19f   :  { %v956_v11 = vmul.f32 0.5, %v952_v7  ;;  %v960_v12 = vmul.f32 0.5, %v953_v8  ;;  %v5960_v7 = vld [vmem:[%s12476_s2 + $0xf0] sm:$0xf0]  ;;  %v5966_v8 = vld [vmem:[%s12476_s2 + $0xe8] sm:$0xf] }
 0x1a1   :  { %8279 = vtanh.f32 %v956_v11  ;;  %v7835_v11 = vld [vmem:[%s12476_s2 + $0xf4] sm:$0xf0] }
 0x1a2   :  { %8281 = vtanh.f32 %v960_v12  ;;  %v5963_v12 = vor.u32 %v7832_v6, %v5960_v7  ;;  %v7822_v7 = vld [vmem:[%s12476_s2 + $0x8c] sm:$0xf0] }
 0x1a3   :  { %v935_v16 = vpop.f32.mrf.mxu2  ;;  %v948_v18 = vpop.f32.mrf.mxu3 }
 0x1a4   :  { %v954_v22 = vadd.f32 %v935_v16, %v345_v14  ;;  %v955_v53 = vadd.f32 %v948_v18, %v374_v32  ;;  %v911_v36 = vpop.f32.mrf.mxu0  ;;  %v924_v34 = vpop.f32.mrf.mxu1  ;;  %v5967_v32 = vor.u32 %v7835_v11, %v5966_v8  ;;  %v7833_v14 = vld [vmem:[%s12476_s2 + $0xec] sm:$0xf]  ;;  %v5968_v16 = vld [vmem:[%s12476_s2 + $0xf8] sm:$0xf0]  ;;  %1465 = vmatpush.bf16.msrb.mxu1 %v5963_v12  ;;  %v7820_v8 = vld [vmem:[%s12476_s2 + $0x84] sm:$0xf] }
 0x1a5   :  { %v5971_v18 = vor.u32 %v7833_v14, %v5968_v16  ;;  %v7828_v36 = vld [vmem:[%s12476_s2 + $0xc4] sm:$0xf]  ;;  %v5912_v12 = vld [vmem:[%s12476_s2 + $0x90] sm:$0xf0]  ;;  %v7823_v14 = vld [vmem:[%s12476_s2 + $0x94] sm:$0xf0] }
 0x1a6   :  { %8283 = vtanh.f32 %v954_v22  ;;  %v965_v27 = vmul.f32 0.5, %v955_v53  ;;  %1478 = vmatpush.bf16.msrb.mxu2 %v5967_v32  ;;  %v5942_v22 = vld [vmem:[%s12476_s2 + $0xc0] sm:$0xf]  ;;  %v7830_v53 = vld [vmem:[%s12476_s2 + $0xcc] sm:$0xf0]  ;;  %v5915_v16 = vor.u32 %v7820_v8, %v5912_v12 }
 0x1a7   :  { %v8280_v40 = vpop.eup %8279  ;;  %1491 = vmatpush.bf16.msra.mxu3 %v5971_v18  ;;  %v5943_v34 = vor.u32 %v7830_v53, %v5942_v22  ;;  %v5918_v32 = vld [vmem:[%s12476_s2 + $0x88] sm:$0xf]  ;;  %v7821_v22 = vld [vmem:[%s12476_s2 + $0x8c] sm:$0xf]  ;;  %v5920_v53 = vld [vmem:[%s12476_s2 + $0x98] sm:$0xf0] }
 0x1a8   :  { %v8282_v43 = vpop.eup %8281  ;;  %v958_v33 = vmul.f32 0.5, %v8280_v40  ;;  %8285 = vtanh.f32 %v965_v27  ;;  %v5944_v27 = vld [vmem:[%s12476_s2 + $0xd0] sm:$0xf0]  ;;  %v5950_v40 = vld [vmem:[%s12476_s2 + $0xc8] sm:$0xf]  ;;  %v5919_v18 = vor.u32 %v7823_v14, %v5918_v32 }
 0x1a9   :  { %v962_v49 = vmul.f32 0.5, %v8282_v43  ;;  %v7831_v43 = vld [vmem:[%s12476_s2 + $0xd4] sm:$0xf0]  ;;  %v7810_v12 = vld [vmem:[%s12476_s2 + $0x2c] sm:$0xf0] }
 0x1aa   :  { %v959_v50 = vadd.f32 0.5, %v958_v33  ;;  %v5947_v33 = vor.u32 %v7828_v36, %v5944_v27  ;;  %v5923_v36 = vor.u32 %v7821_v22, %v5920_v53  ;;  %v7818_v27 = vld [vmem:[%s12476_s2 + $0x6c] sm:$0xf0]  ;;  %v7808_v32 = vld [vmem:[%s12476_s2 + $0x24] sm:$0xf] }
 0x1ab   :  { %v963_v55 = vadd.f32 0.5, %v962_v49  ;;  %v937_v20 = vpop.f32.mrf.mxu2  ;;  %v950_v56 = vpop.f32.mrf.mxu3  ;;  %v5951_v49 = vor.u32 %v7831_v43, %v5950_v40  ;;  %v7816_v40 = vld [vmem:[%s12476_s2 + $0x64] sm:$0xf]  ;;  %v7811_v22 = vld [vmem:[%s12476_s2 + $0x34] sm:$0xf0] }
 0x1ac   :  { %v8284_v57 = vpop.eup %8283  ;;  %1466 = vmatpush.bf16.msrb.mxu1 %v5947_v33  ;;  %v5926_v56 = vld [vmem:[%s12476_s2 + $0xa0] sm:$0xf]  ;;  %v5896_v33 = vld [vmem:[%s12476_s2 + $0x70] sm:$0xf0] }
 0x1ad   :  { %v969_v37 = vmul.f32 %v963_v55, %v9221_v54  ;;  %v970_v59 = vmul.f32 %v8284_v57, %v959_v50  ;;  %v5958_v54 = vld [vmem:[%s12476_s2 + $0xe0] sm:$0xf]  ;;  %v7829_v50 = vld [vmem:[%s12476_s2 + $0xcc] sm:$0xf]  ;;  %v5952_v55 = vld [vmem:[%s12476_s2 + $0xd8] sm:$0xf0]  ;;  %1479 = vmatpush.bf16.msrb.mxu2 %v5951_v49 }
 0x1ae   :  { %v8286_v60 = vpop.eup %8285  ;;  %v5959_v15 = vor.u32 %v7834_v4, %v5958_v54  ;;  %v5955_v20 = vor.u32 %v7829_v50, %v5952_v55  ;;  %v7826_v57 = vld [vmem:[%s12476_s2 + $0xac] sm:$0xf0]  ;;  %v7825_v54 = vld [vmem:[%s12476_s2 + $0xac] sm:$0xf]  ;;  %v5936_v4 = vld [vmem:[%s12476_s2 + $0xb8] sm:$0xf0]  ;;  %v5899_v55 = vor.u32 %v7816_v40, %v5896_v33 }
 0x1af   :  { %v9429_v61 = vadd.f32 %v970_v59, %v969_v37  ;;  %v967_v63 = vmul.f32 0.5, %v8286_v60  ;;  %v7824_v37 = vld [vmem:[%s12476_s2 + $0xa4] sm:$0xf]  ;;  %v5927_v59 = vor.u32 %v7826_v57, %v5926_v56  ;;  %v5928_v60 = vld [vmem:[%s12476_s2 + $0xb0] sm:$0xf0]  ;;  %v5939_v6 = vor.u32 %v7825_v54, %v5936_v4 }
 0x1b0   :  { %1452 = vmatpush.bf16.msrb.mxu0 %v5959_v15  ;;  %1492 = vmatpush.bf16.msra.mxu3 %v5955_v20  ;;  %v5910_v15 = vld [vmem:[%s12476_s2 + $0x80] sm:$0xf]  ;;  %v5902_v49 = vld [vmem:[%s12476_s2 + $0x68] sm:$0xf]  ;;  %v7819_v50 = vld [vmem:[%s12476_s2 + $0x74] sm:$0xf0] }
 0x1b1   :  { %8287 = vtanh.f32 %v9429_v61  ;;  %v968_v1 = vadd.f32 0.5, %v967_v63  ;;  %v5934_v63 = vld [vmem:[%s12476_s2 + $0xa8] sm:$0xf]  ;;  %v5911_v11 = vor.u32 %v7822_v7, %v5910_v15  ;;  %v5903_v20 = vor.u32 %v7819_v50, %v5902_v49  ;;  %v7817_v56 = vld [vmem:[%s12476_s2 + $0x6c] sm:$0xf] }
 0x1b2   :  { %v5904_v57 = vld [vmem:[%s12476_s2 + $0x78] sm:$0xf0]  ;;  %v7815_v54 = vld [vmem:[%s12476_s2 + $0x54] sm:$0xf0]  ;;  %v7813_v15 = vld [vmem:[%s12476_s2 + $0x4c] sm:$0xf] }
 0x1b3   :  { %v5888_v7 = vld [vmem:[%s12476_s2 + $0x58] sm:$0xf0]  ;;  %v7806_v33 = vld [vmem:[%s12476_s2 + $0xc] sm:$0xf0]  ;;  %v7804_v49 = vld [vmem:[%s12476_s2 + $0x4] sm:$0xf] }
 0x1b4   :  { %1453 = vmatpush.bf16.msrb.mxu0 %v5943_v34  ;;  %1493 = vmatpush.bf16.msra.mxu3 %v5939_v6  ;;  %v5894_v34 = vld [vmem:[%s12476_s2 + $0x60] sm:$0xf]  ;;  %v5891_v8 = vor.u32 %v7813_v15, %v5888_v7 }
 0x1b5   :  { %v5895_v43 = vor.u32 %v7818_v27, %v5894_v34  ;;  %v7809_v34 = vld [vmem:[%s12476_s2 + $0x2c] sm:$0xf]  ;;  %v5872_v27 = vld [vmem:[%s12476_s2 + $0x38] sm:$0xf0] }
 0x1b6   :  { %v5875_v40 = vor.u32 %v7809_v34, %v5872_v27 }
 0x1b7   :  { %v8288_v52 = vpop.eup %8287 }
 0x1b8   :  { %v9432_v2 = vmul.f32 %v8288_v52, %v968_v1  ;;  %v7827_v1 = vld [vmem:[%s12476_s2 + $0xb4] sm:$0xf0]  ;;  %v5931_v52 = vor.u32 %v7824_v37, %v5928_v60  ;;  %1454 = vmatpush.bf16.msrb.mxu0 %v5927_v59  ;;  %1494 = vmatpush.bf16.msra.mxu3 %v5923_v36  ;;  %v5907_v37 = vor.u32 %v7817_v56, %v5904_v57  ;;  %v5878_v59 = vld [vmem:[%s12476_s2 + $0x40] sm:$0xf]  ;;  %v7814_v60 = vld [vmem:[%s12476_s2 + $0x4c] sm:$0xf0] }
 0x1b9   :  { %v7807_v56 = vld [vmem:[%s12476_s2 + $0x14] sm:$0xf0] }
 0x1ba   :  { %v983_v3 = vpack.c.bf16 %v9432_v2, %v9432_v2  ;;  %1467 = vmatpush.bf16.msrb.mxu1 %v5931_v52  ;;  %v5880_v52 = vld [vmem:[%s12476_s2 + $0x50] sm:$0xf0] }
 0x1bc   :  { %1184 = vmatmul.bf16.vlgmr.msra.gmra.mxu0 %v983_v3  ;;  %1197 = vmatmul.bf16.vlgmr.msra.gmra.mxu1 %v983_v3 }
 0x1bd   :  { %1210 = vmatmul.bf16.vlgmr.msra.gmra.mxu2 %v983_v3  ;;  %1223 = vmatmul.bf16.vlgmr.msrb.gmra.mxu3 %v983_v3  ;;  %v5935_v3 = vor.u32 %v7827_v1, %v5934_v63  ;;  %v7812_v63 = vld [vmem:[%s12476_s2 + $0x44] sm:$0xf]  ;;  %v5879_v1 = vor.u32 %v7814_v60, %v5878_v59  ;;  %v7805_v59 = vld [vmem:[%s12476_s2 + $0xc] sm:$0xf]  ;;  %v5856_v60 = vld [vmem:[%s12476_s2 + $0x18] sm:$0xf0] }
 0x1be   :  { %1455 = vmatpush.bf16.msrb.mxu0 %v5911_v11  ;;  %1468 = vmatpush.bf16.msrb.mxu1 %v5915_v16  ;;  %v5883_v4 = vor.u32 %v7812_v63, %v5880_v52  ;;  %v5862_v11 = vld [vmem:[%s12476_s2 + $0x20] sm:$0xf]  ;;  %v5864_v16 = vld [vmem:[%s12476_s2 + $0x30] sm:$0xf0]  ;;  %v5859_v63 = vor.u32 %v7805_v59, %v5856_v60  ;;  %v6094_v60 = vld [vmem:[%s12476_s2 + $0xe8] sm:$0xf] }
 0x1bf   :  { %1480 = vmatpush.bf16.msrb.mxu2 %v5935_v3  ;;  %1495 = vmatpush.bf16.msra.mxu3 %v5907_v37  ;;  %v5886_v3 = vld [vmem:[%s12476_s2 + $0x48] sm:$0xf]  ;;  %v5863_v14 = vor.u32 %v7810_v12, %v5862_v11  ;;  %v5867_v53 = vor.u32 %v7808_v32, %v5864_v16  ;;  %v6088_v59 = vld [vmem:[%s12476_s2 + $0xf0] sm:$0xf0] }
 0x1c0   :  { %v5887_v6 = vor.u32 %v7815_v54, %v5886_v3 }
 0x1c2   :  { %1456 = vmatpush.bf16.msrb.mxu0 %v5895_v43  ;;  %1469 = vmatpush.bf16.msrb.mxu1 %v5899_v55  ;;  %v5846_v43 = vld [vmem:[%s12476_s2] sm:$0xf]  ;;  %v5848_v55 = vld [vmem:[%s12476_s2 + $0x10] sm:$0xf0] }
 0x1c3   :  { %1481 = vmatpush.bf16.msrb.mxu2 %v5919_v18  ;;  %1496 = vmatpush.bf16.msra.mxu3 %v5891_v8  ;;  %v5870_v18 = vld [vmem:[%s12476_s2 + $0x28] sm:$0xf]  ;;  %v5847_v50 = vor.u32 %v7806_v33, %v5846_v43  ;;  %v5851_v57 = vor.u32 %v7804_v49, %v5848_v55 }
 0x1c4   :  { %v5871_v36 = vor.u32 %v7811_v22, %v5870_v18 }
 0x1c6   :  { %1457 = vmatpush.bf16.msrb.mxu0 %v5879_v1  ;;  %1470 = vmatpush.bf16.msrb.mxu1 %v5883_v4 }
 0x1c7   :  { %1482 = vmatpush.bf16.msrb.mxu2 %v5903_v20  ;;  %1497 = vmatpush.bf16.msra.mxu3 %v5875_v40  ;;  %v5854_v20 = vld [vmem:[%s12476_s2 + $0x8] sm:$0xf] }
 0x1c8   :  { %v5855_v37 = vor.u32 %v7807_v56, %v5854_v20  ;;  %v7866_v56 = vld [vmem:[%s12476_s2 + $0xec] sm:$0xf0] }
 0x1ca   :  { %1458 = vmatpush.bf16.msrb.mxu0 %v5863_v14  ;;  %1471 = vmatpush.bf16.msrb.mxu1 %v5867_v53 }
 0x1cb   :  { %1483 = vmatpush.bf16.msrb.mxu2 %v5887_v6  ;;  %1498 = vmatpush.bf16.msra.mxu3 %v5859_v63  ;;  %v7867_v63 = vld [vmem:[%s12476_s2 + $0xf4] sm:$0xf0] }
 0x1ce   :  { %1459 = vmatpush.bf16.msrb.mxu0 %v5847_v50  ;;  %1472 = vmatpush.bf16.msrb.mxu1 %v5851_v57  ;;  %v7864_v57 = vld [vmem:[%s12476_s2 + $0xe4] sm:$0xf] }
 0x1cf   :  { %1484 = vmatpush.bf16.msrb.mxu2 %v5871_v36 }
 0x1d3   :  { %1485 = vmatpush.bf16.msrb.mxu2 %v5855_v37 }
 0x239   :  { %v1185_v1 = vpop.f32.mrf.mxu0  ;;  %v1198_v52 = vpop.f32.mrf.mxu1 }
 0x23a   :  { %v1228_v3 = vadd.f32 %v1185_v1, %v8948_v23  ;;  %v1229_v54 = vadd.f32 %v1198_v52, %v8980_v41  ;;  %v6091_v1 = vor.u32 %v7864_v57, %v6088_v59  ;;  %v6095_v52 = vor.u32 %v7867_v63, %v6094_v60  ;;  %v7852_v57 = vld [vmem:[%s12476_s2 + $0x84] sm:$0xf]  ;;  %v6040_v59 = vld [vmem:[%s12476_s2 + $0x90] sm:$0xf0]  ;;  %v6046_v60 = vld [vmem:[%s12476_s2 + $0x88] sm:$0xf] }
 0x23b   :  { %v7855_v63 = vld [vmem:[%s12476_s2 + $0x94] sm:$0xf0] }
 0x23c   :  { %v1232_v4 = vmul.f32 0.5, %v1228_v3  ;;  %v1236_v6 = vmul.f32 0.5, %v1229_v54  ;;  %v7865_v3 = vld [vmem:[%s12476_s2 + $0xec] sm:$0xf]  ;;  %v6096_v54 = vld [vmem:[%s12476_s2 + $0xf8] sm:$0xf0]  ;;  %1741 = vmatpush.bf16.msra.mxu1 %v6091_v1  ;;  %1754 = vmatpush.bf16.msra.mxu2 %v6095_v52  ;;  %v6043_v1 = vor.u32 %v7852_v57, %v6040_v59  ;;  %v6047_v52 = vor.u32 %v7855_v63, %v6046_v60 }
 0x23d   :  { %v7840_v57 = vld [vmem:[%s12476_s2 + $0x24] sm:$0xf]  ;;  %v5992_v59 = vld [vmem:[%s12476_s2 + $0x30] sm:$0xf0]  ;;  %v5998_v60 = vld [vmem:[%s12476_s2 + $0x28] sm:$0xf] }
 0x23e   :  { %8289 = vtanh.f32 %v1232_v4  ;;  %v6099_v4 = vor.u32 %v7865_v3, %v6096_v54  ;;  %v7853_v3 = vld [vmem:[%s12476_s2 + $0x8c] sm:$0xf]  ;;  %v6048_v54 = vld [vmem:[%s12476_s2 + $0x98] sm:$0xf0]  ;;  %v7843_v63 = vld [vmem:[%s12476_s2 + $0x34] sm:$0xf0] }
 0x23f   :  { %8291 = vtanh.f32 %v1236_v6  ;;  %v6070_v6 = vld [vmem:[%s12476_s2 + $0xc0] sm:$0xf] }
 0x240   :  { %v1211_v15 = vpop.f32.mrf.mxu2  ;;  %v1224_v7 = vpop.f32.mrf.mxu3  ;;  %1767 = vmatpush.bf16.msrb.mxu3 %v6099_v4  ;;  %v6051_v4 = vor.u32 %v7853_v3, %v6048_v54  ;;  %v7841_v3 = vld [vmem:[%s12476_s2 + $0x2c] sm:$0xf]  ;;  %v6000_v54 = vld [vmem:[%s12476_s2 + $0x38] sm:$0xf0] }
 0x241   :  { %v1230_v8 = vadd.f32 %v1211_v15, %v8985_v44  ;;  %v1231_v11 = vadd.f32 %v1224_v7, %v8956_v28  ;;  %v1187_v12 = vpop.f32.mrf.mxu0  ;;  %v1200_v32 = vpop.f32.mrf.mxu1  ;;  %v7862_v15 = vld [vmem:[%s12476_s2 + $0xcc] sm:$0xf0]  ;;  %v7860_v7 = vld [vmem:[%s12476_s2 + $0xc4] sm:$0xf] }
 0x242   :  { %v6078_v12 = vld [vmem:[%s12476_s2 + $0xc8] sm:$0xf]  ;;  %v7863_v32 = vld [vmem:[%s12476_s2 + $0xd4] sm:$0xf0] }
 0x243   :  { %8293 = vtanh.f32 %v1230_v8  ;;  %v1241_v14 = vmul.f32 0.5, %v1231_v11  ;;  %v6071_v8 = vor.u32 %v7862_v15, %v6070_v6  ;;  %v6072_v11 = vld [vmem:[%s12476_s2 + $0xd0] sm:$0xf0]  ;;  %v6022_v6 = vld [vmem:[%s12476_s2 + $0x60] sm:$0xf] }
 0x244   :  { %v8290_v16 = vpop.eup %8289  ;;  %v7850_v15 = vld [vmem:[%s12476_s2 + $0x6c] sm:$0xf0] }
 0x245   :  { %v8292_v18 = vpop.eup %8291  ;;  %v1234_v22 = vmul.f32 0.5, %v8290_v16  ;;  %8295 = vtanh.f32 %v1241_v14  ;;  %v6075_v14 = vor.u32 %v7860_v7, %v6072_v11  ;;  %v6079_v16 = vor.u32 %v7863_v32, %v6078_v12  ;;  %v7848_v7 = vld [vmem:[%s12476_s2 + $0x64] sm:$0xf]  ;;  %v6024_v11 = vld [vmem:[%s12476_s2 + $0x70] sm:$0xf0] }
 0x246   :  { %v1238_v23 = vmul.f32 0.5, %v8292_v18  ;;  %v7861_v18 = vld [vmem:[%s12476_s2 + $0xcc] sm:$0xf]  ;;  %v6030_v12 = vld [vmem:[%s12476_s2 + $0x68] sm:$0xf] }
 0x247   :  { %v1235_v41 = vadd.f32 0.5, %v1234_v22  ;;  %v6080_v22 = vld [vmem:[%s12476_s2 + $0xd8] sm:$0xf0]  ;;  %1742 = vmatpush.bf16.msra.mxu1 %v6075_v14  ;;  %1755 = vmatpush.bf16.msra.mxu2 %v6079_v16  ;;  %v7851_v32 = vld [vmem:[%s12476_s2 + $0x74] sm:$0xf0]  ;;  %v6027_v14 = vor.u32 %v7848_v7, %v6024_v11 }
 0x248   :  { %v1239_v53 = vadd.f32 0.5, %v1238_v23  ;;  %v1213_v36 = vpop.f32.mrf.mxu2  ;;  %v1226_v34 = vpop.f32.mrf.mxu3  ;;  %v6083_v23 = vor.u32 %v7861_v18, %v6080_v22  ;;  %v6031_v16 = vor.u32 %v7851_v32, %v6030_v12  ;;  %v7849_v18 = vld [vmem:[%s12476_s2 + $0x6c] sm:$0xf]  ;;  %v6032_v22 = vld [vmem:[%s12476_s2 + $0x78] sm:$0xf0] }
 0x249   :  { %v8294_v27 = vpop.eup %8293  ;;  %v7856_v36 = vld [vmem:[%s12476_s2 + $0xa4] sm:$0xf]  ;;  %v5976_v11 = vld [vmem:[%s12476_s2 + $0x10] sm:$0xf0]  ;;  %v5982_v12 = vld [vmem:[%s12476_s2 + $0x8] sm:$0xf] }
 0x24a   :  { %v1245_v40 = vmul.f32 %v1239_v53, %v9429_v61  ;;  %v1246_v43 = vmul.f32 %v8294_v27, %v1235_v41  ;;  %v6086_v61 = vld [vmem:[%s12476_s2 + $0xe0] sm:$0xf]  ;;  %v7858_v53 = vld [vmem:[%s12476_s2 + $0xac] sm:$0xf0]  ;;  %1768 = vmatpush.bf16.msrb.mxu3 %v6083_v23  ;;  %v6056_v27 = vld [vmem:[%s12476_s2 + $0xb0] sm:$0xf0]  ;;  %v6035_v23 = vor.u32 %v7849_v18, %v6032_v22 }
 0x24b   :  { %v8296_v44 = vpop.eup %8295  ;;  %v6087_v37 = vor.u32 %v7866_v56, %v6086_v61  ;;  %v6054_v41 = vld [vmem:[%s12476_s2 + $0xa0] sm:$0xf]  ;;  %v7854_v56 = vld [vmem:[%s12476_s2 + $0x8c] sm:$0xf0]  ;;  %v7836_v7 = vld [vmem:[%s12476_s2 + $0x4] sm:$0xf] }
 0x24c   :  { %v9633_v33 = vadd.f32 %v1246_v43, %v1245_v40  ;;  %v1243_v28 = vmul.f32 0.5, %v8296_v44  ;;  %v6055_v34 = vor.u32 %v7858_v53, %v6054_v41  ;;  %v6062_v40 = vld [vmem:[%s12476_s2 + $0xa8] sm:$0xf]  ;;  %v7859_v43 = vld [vmem:[%s12476_s2 + $0xb4] sm:$0xf0]  ;;  %v6059_v44 = vor.u32 %v7856_v36, %v6056_v27 }
 0x24d   :  { %1728 = vmatpush.bf16.msra.mxu0 %v6087_v37  ;;  %v6038_v61 = vld [vmem:[%s12476_s2 + $0x80] sm:$0xf]  ;;  %v7846_v53 = vld [vmem:[%s12476_s2 + $0x4c] sm:$0xf0]  ;;  %v7844_v36 = vld [vmem:[%s12476_s2 + $0x44] sm:$0xf] }
 0x24e   :  { %8297 = vtanh.f32 %v9633_v33  ;;  %v1244_v49 = vadd.f32 0.5, %v1243_v28  ;;  %v6063_v28 = vor.u32 %v7859_v43, %v6062_v40  ;;  %1743 = vmatpush.bf16.msra.mxu1 %v6059_v44  ;;  %v6039_v37 = vor.u32 %v7854_v56, %v6038_v61  ;;  %v6006_v41 = vld [vmem:[%s12476_s2 + $0x40] sm:$0xf]  ;;  %v6008_v27 = vld [vmem:[%s12476_s2 + $0x50] sm:$0xf0] }
 0x24f   :  { %v6014_v40 = vld [vmem:[%s12476_s2 + $0x48] sm:$0xf]  ;;  %v7847_v43 = vld [vmem:[%s12476_s2 + $0x54] sm:$0xf0]  ;;  %v6011_v44 = vor.u32 %v7844_v36, %v6008_v27  ;;  %v5990_v61 = vld [vmem:[%s12476_s2 + $0x20] sm:$0xf] }
 0x250   :  { %1756 = vmatpush.bf16.msra.mxu2 %v6063_v28  ;;  %v6015_v28 = vor.u32 %v7847_v43, %v6014_v40  ;;  %v7842_v56 = vld [vmem:[%s12476_s2 + $0x2c] sm:$0xf0]  ;;  %v7839_v32 = vld [vmem:[%s12476_s2 + $0x14] sm:$0xf0]  ;;  %v7837_v18 = vld [vmem:[%s12476_s2 + $0xc] sm:$0xf] }
 0x251   :  { %1729 = vmatpush.bf16.msra.mxu0 %v6071_v8  ;;  %v6023_v8 = vor.u32 %v7850_v15, %v6022_v6  ;;  %v5974_v6 = vld [vmem:[%s12476_s2] sm:$0xf]  ;;  %v7838_v15 = vld [vmem:[%s12476_s2 + $0xc] sm:$0xf0]  ;;  %v5984_v22 = vld [vmem:[%s12476_s2 + $0x18] sm:$0xf0] }
 0x252   :  { %1744 = vmatpush.bf16.msra.mxu1 %v6043_v1  ;;  %v5995_v1 = vor.u32 %v7840_v57, %v5992_v59 }
 0x254   :  { %v8298_v50 = vpop.eup %8297  ;;  %1757 = vmatpush.bf16.msra.mxu2 %v6047_v52  ;;  %v5999_v52 = vor.u32 %v7843_v63, %v5998_v60 }
 0x255   :  { %v9636_v55 = vmul.f32 %v8298_v50, %v1244_v49  ;;  %v7857_v49 = vld [vmem:[%s12476_s2 + $0xac] sm:$0xf]  ;;  %v6064_v50 = vld [vmem:[%s12476_s2 + $0xb8] sm:$0xf0]  ;;  %1730 = vmatpush.bf16.msra.mxu0 %v6055_v34  ;;  %v6007_v34 = vor.u32 %v7846_v53, %v6006_v41  ;;  %v292_v41 = vadd.f32 %v8958_v29, %v8931_v10  ;;  %v321_v53 = vadd.f32 %v8990_v46, %v8975_v38 }
 0x256   :  { %1745 = vmatpush.bf16.msra.mxu1 %v6027_v14  ;;  %v5979_v14 = vor.u32 %v7836_v7, %v5976_v11 }
 0x257   :  { %v1259_v20 = vpack.c.bf16 %v9636_v55, %v9636_v55 }
 0x258   :  { %1758 = vmatpush.bf16.msra.mxu2 %v6031_v16  ;;  %v5983_v16 = vor.u32 %v7839_v32, %v5982_v12 }
 0x259   :  { %1460 = vmatmul.bf16.vlgmr.msrb.gmra.mxu0 %v1259_v20  ;;  %1473 = vmatmul.bf16.vlgmr.msrb.gmra.mxu1 %v1259_v20 }
 0x25a   :  { %1486 = vmatmul.bf16.vlgmr.msrb.gmra.mxu2 %v1259_v20  ;;  %1499 = vmatmul.bf16.vlgmr.msra.gmra.mxu3 %v1259_v20  ;;  %v6067_v20 = vor.u32 %v7857_v49, %v6064_v50  ;;  %v7845_v49 = vld [vmem:[%s12476_s2 + $0x4c] sm:$0xf]  ;;  %v6016_v50 = vld [vmem:[%s12476_s2 + $0x58] sm:$0xf0] }
 0x25b   :  { %1731 = vmatpush.bf16.msra.mxu0 %v6039_v37  ;;  %1746 = vmatpush.bf16.msra.mxu1 %v6011_v44  ;;  %v5991_v37 = vor.u32 %v7842_v56, %v5990_v61 }
 0x25c   :  { %1769 = vmatpush.bf16.msrb.mxu3 %v6067_v20  ;;  %v6019_v20 = vor.u32 %v7845_v49, %v6016_v50  ;;  %1759 = vmatpush.bf16.msra.mxu2 %v6015_v28  ;;  %v379_v28 = vadd.f32 %v8962_v31, %v8950_v24  ;;  %v350_v49 = vadd.f32 %v8992_v47, %v8982_v42 }
 0x25f   :  { %1732 = vmatpush.bf16.msra.mxu0 %v6023_v8  ;;  %1747 = vmatpush.bf16.msra.mxu1 %v5995_v1  ;;  %v5975_v8 = vor.u32 %v7838_v15, %v5974_v6 }
 0x260   :  { %1770 = vmatpush.bf16.msrb.mxu3 %v6051_v4  ;;  %v6003_v4 = vor.u32 %v7841_v3, %v6000_v54  ;;  %1760 = vmatpush.bf16.msra.mxu2 %v5999_v52 }
 0x263   :  { %1733 = vmatpush.bf16.msra.mxu0 %v6007_v34  ;;  %1748 = vmatpush.bf16.msra.mxu1 %v5979_v14  ;;  %v7898_v14 = vld [vmem:[%s12476_s2 + $0xec] sm:$0xf0] }
 0x264   :  { %1771 = vmatpush.bf16.msrb.mxu3 %v6035_v23  ;;  %v5987_v23 = vor.u32 %v7837_v18, %v5984_v22  ;;  %1761 = vmatpush.bf16.msra.mxu2 %v5983_v16  ;;  %v7896_v16 = vld [vmem:[%s12476_s2 + $0xe4] sm:$0xf]  ;;  %v6216_v22 = vld [vmem:[%s12476_s2 + $0xf0] sm:$0xf0] }
 0x267   :  { %1734 = vmatpush.bf16.msra.mxu0 %v5991_v37 }
 0x268   :  { %1772 = vmatpush.bf16.msrb.mxu3 %v6019_v20 }
 0x26b   :  { %1735 = vmatpush.bf16.msra.mxu0 %v5975_v8 }
 0x26c   :  { %1773 = vmatpush.bf16.msrb.mxu3 %v6003_v4 }
 0x270   :  { %1774 = vmatpush.bf16.msrb.mxu3 %v5987_v23  ;;  %v6222_v23 = vld [vmem:[%s12476_s2 + $0xe8] sm:$0xf] }
 0x2d6   :  { %v1461_v36 = vpop.f32.mrf.mxu0  ;;  %v1474_v34 = vpop.f32.mrf.mxu1 }
 0x2d7   :  { %v1504_v27 = vadd.f32 %v1461_v36, %v292_v41  ;;  %v1505_v40 = vadd.f32 %v1474_v34, %v321_v53  ;;  %v7899_v41 = vld [vmem:[%s12476_s2 + $0xf4] sm:$0xf0]  ;;  %v6219_v53 = vor.u32 %v7896_v16, %v6216_v22  ;;  %v7897_v34 = vld [vmem:[%s12476_s2 + $0xec] sm:$0xf]  ;;  %v6174_v16 = vld [vmem:[%s12476_s2 + $0x88] sm:$0xf] }
 0x2d8   :  { %v6223_v36 = vor.u32 %v7899_v41, %v6222_v23  ;;  %v7885_v41 = vld [vmem:[%s12476_s2 + $0x8c] sm:$0xf] }
 0x2d9   :  { %v1508_v43 = vmul.f32 0.5, %v1504_v27  ;;  %v1512_v44 = vmul.f32 0.5, %v1505_v40  ;;  %v6224_v27 = vld [vmem:[%s12476_s2 + $0xf8] sm:$0xf0]  ;;  %2017 = vmatpush.bf16.msrb.mxu1 %v6219_v53 }
 0x2da   :  { %v6227_v40 = vor.u32 %v7897_v34, %v6224_v27  ;;  %2030 = vmatpush.bf16.msrb.mxu2 %v6223_v36  ;;  %v6176_v53 = vld [vmem:[%s12476_s2 + $0x98] sm:$0xf0]  ;;  %v6150_v34 = vld [vmem:[%s12476_s2 + $0x60] sm:$0xf]  ;;  %v7882_v27 = vld [vmem:[%s12476_s2 + $0x6c] sm:$0xf0] }
 0x2db   :  { %8299 = vtanh.f32 %v1508_v43  ;;  %v6198_v43 = vld [vmem:[%s12476_s2 + $0xc0] sm:$0xf]  ;;  %v6179_v36 = vor.u32 %v7885_v41, %v6176_v53  ;;  %v7870_v53 = vld [vmem:[%s12476_s2 + $0xc] sm:$0xf0] }
 0x2dc   :  { %8301 = vtanh.f32 %v1512_v44  ;;  %v7894_v44 = vld [vmem:[%s12476_s2 + $0xcc] sm:$0xf0]  ;;  %2043 = vmatpush.bf16.msra.mxu3 %v6227_v40  ;;  %v7880_v40 = vld [vmem:[%s12476_s2 + $0x64] sm:$0xf]  ;;  %v6102_v41 = vld [vmem:[%s12476_s2] sm:$0xf] }
 0x2dd   :  { %v1487_v50 = vpop.f32.mrf.mxu2  ;;  %v1500_v29 = vpop.f32.mrf.mxu3 }
 0x2de   :  { %v1506_v20 = vadd.f32 %v1487_v50, %v350_v49  ;;  %v1507_v61 = vadd.f32 %v1500_v29, %v379_v28  ;;  %v1463_v46 = vpop.f32.mrf.mxu0  ;;  %v1476_v56 = vpop.f32.mrf.mxu1  ;;  %v7892_v28 = vld [vmem:[%s12476_s2 + $0xc4] sm:$0xf]  ;;  %v6199_v49 = vor.u32 %v7894_v44, %v6198_v43  ;;  %v6200_v50 = vld [vmem:[%s12476_s2 + $0xd0] sm:$0xf0]  ;;  %v6206_v29 = vld [vmem:[%s12476_s2 + $0xc8] sm:$0xf]  ;;  %v6151_v43 = vor.u32 %v7882_v27, %v6150_v34 }
 0x2df   :  { %v7893_v56 = vld [vmem:[%s12476_s2 + $0xcc] sm:$0xf]  ;;  %v6152_v44 = vld [vmem:[%s12476_s2 + $0x70] sm:$0xf0]  ;;  %v6103_v34 = vor.u32 %v7870_v53, %v6102_v41  ;;  %v7930_v41 = vld [vmem:[%s12476_s2 + $0xec] sm:$0xf0] }
 0x2e0   :  { %8303 = vtanh.f32 %v1506_v20  ;;  %v1517_v57 = vmul.f32 0.5, %v1507_v61  ;;  %v7895_v20 = vld [vmem:[%s12476_s2 + $0xd4] sm:$0xf0]  ;;  %v6203_v61 = vor.u32 %v7892_v28, %v6200_v50  ;;  %v6158_v28 = vld [vmem:[%s12476_s2 + $0x68] sm:$0xf]  ;;  %v6155_v50 = vor.u32 %v7880_v40, %v6152_v44 }
 0x2e1   :  { %v8300_v37 = vpop.eup %8299  ;;  %v6207_v46 = vor.u32 %v7895_v20, %v6206_v29  ;;  %v7881_v20 = vld [vmem:[%s12476_s2 + $0x6c] sm:$0xf]  ;;  %v6104_v27 = vld [vmem:[%s12476_s2 + $0x10] sm:$0xf0]  ;;  %v6110_v40 = vld [vmem:[%s12476_s2 + $0x8] sm:$0xf] }
 0x2e2   :  { %v8302_v59 = vpop.eup %8301  ;;  %v1510_v60 = vmul.f32 0.5, %v8300_v37  ;;  %8305 = vtanh.f32 %v1517_v57  ;;  %v6208_v57 = vld [vmem:[%s12476_s2 + $0xd8] sm:$0xf0]  ;;  %2018 = vmatpush.bf16.msrb.mxu1 %v6203_v61  ;;  %v7928_v53 = vld [vmem:[%s12476_s2 + $0xe4] sm:$0xf] }
 0x2e3   :  { %v1514_v63 = vmul.f32 0.5, %v8302_v59  ;;  %v6211_v37 = vor.u32 %v7893_v56, %v6208_v57  ;;  %2031 = vmatpush.bf16.msrb.mxu2 %v6207_v46  ;;  %v6182_v59 = vld [vmem:[%s12476_s2 + $0xa0] sm:$0xf]  ;;  %v6160_v61 = vld [vmem:[%s12476_s2 + $0x78] sm:$0xf0] }
 0x2e4   :  { %v1511_v1 = vadd.f32 0.5, %v1510_v60  ;;  %v7890_v60 = vld [vmem:[%s12476_s2 + $0xac] sm:$0xf0]  ;;  %v6163_v46 = vor.u32 %v7881_v20, %v6160_v61  ;;  %v6134_v56 = vld [vmem:[%s12476_s2 + $0x40] sm:$0xf] }
 0x2e5   :  { %v1515_v52 = vadd.f32 0.5, %v1514_v63  ;;  %v1489_v31 = vpop.f32.mrf.mxu2  ;;  %v1502_v3 = vpop.f32.mrf.mxu3  ;;  %v7888_v63 = vld [vmem:[%s12476_s2 + $0xa4] sm:$0xf]  ;;  %2044 = vmatpush.bf16.msra.mxu3 %v6211_v37  ;;  %v7878_v57 = vld [vmem:[%s12476_s2 + $0x4c] sm:$0xf0] }
 0x2e6   :  { %v8304_v54 = vpop.eup %8303  ;;  %v6190_v31 = vld [vmem:[%s12476_s2 + $0xa8] sm:$0xf]  ;;  %v7891_v3 = vld [vmem:[%s12476_s2 + $0xb4] sm:$0xf0]  ;;  %v7876_v37 = vld [vmem:[%s12476_s2 + $0x44] sm:$0xf] }
 0x2e7   :  { %v1521_v47 = vmul.f32 %v1515_v52, %v9633_v33  ;;  %v1522_v4 = vmul.f32 %v8304_v54, %v1511_v1  ;;  %v6214_v33 = vld [vmem:[%s12476_s2 + $0xe0] sm:$0xf]  ;;  %v6183_v1 = vor.u32 %v7890_v60, %v6182_v59  ;;  %v6184_v52 = vld [vmem:[%s12476_s2 + $0xb0] sm:$0xf0]  ;;  %v6135_v59 = vor.u32 %v7878_v57, %v6134_v56 }
 0x2e8   :  { %v8306_v6 = vpop.eup %8305  ;;  %v6215_v18 = vor.u32 %v7898_v14, %v6214_v33  ;;  %v6187_v54 = vor.u32 %v7888_v63, %v6184_v52  ;;  %v6168_v14 = vld [vmem:[%s12476_s2 + $0x90] sm:$0xf0]  ;;  %v6142_v63 = vld [vmem:[%s12476_s2 + $0x48] sm:$0xf] }
 0x2e9   :  { %v9841_v15 = vadd.f32 %v1522_v4, %v1521_v47  ;;  %v1519_v7 = vmul.f32 0.5, %v8306_v6  ;;  %v6191_v47 = vor.u32 %v7891_v3, %v6190_v31  ;;  %v7889_v4 = vld [vmem:[%s12476_s2 + $0xac] sm:$0xf]  ;;  %v6192_v6 = vld [vmem:[%s12476_s2 + $0xb8] sm:$0xf0] }
 0x2ea   :  { %2004 = vmatpush.bf16.msrb.mxu0 %v6215_v18  ;;  %2019 = vmatpush.bf16.msrb.mxu1 %v6187_v54  ;;  %v7887_v18 = vld [vmem:[%s12476_s2 + $0x94] sm:$0xf0]  ;;  %v6136_v60 = vld [vmem:[%s12476_s2 + $0x50] sm:$0xf0]  ;;  %v7877_v3 = vld [vmem:[%s12476_s2 + $0x4c] sm:$0xf] }
 0x2eb   :  { %8307 = vtanh.f32 %v9841_v15  ;;  %v1520_v8 = vadd.f32 0.5, %v1519_v7  ;;  %v6195_v7 = vor.u32 %v7889_v4, %v6192_v6  ;;  %2032 = vmatpush.bf16.msrb.mxu2 %v6191_v47  ;;  %v6175_v23 = vor.u32 %v7887_v18, %v6174_v16  ;;  %v6144_v54 = vld [vmem:[%s12476_s2 + $0x58] sm:$0xf0]  ;;  %v6118_v4 = vld [vmem:[%s12476_s2 + $0x20] sm:$0xf] }
 0x2ec   :  { %v6139_v52 = vor.u32 %v7876_v37, %v6136_v60  ;;  %v6147_v47 = vor.u32 %v7877_v3, %v6144_v54  ;;  %v7874_v6 = vld [vmem:[%s12476_s2 + $0x2c] sm:$0xf0]  ;;  %v7873_v18 = vld [vmem:[%s12476_s2 + $0x2c] sm:$0xf] }
 0x2ed   :  { %2045 = vmatpush.bf16.msra.mxu3 %v6195_v7  ;;  %v7872_v7 = vld [vmem:[%s12476_s2 + $0x24] sm:$0xf] }
 0x2ee   :  { %2005 = vmatpush.bf16.msrb.mxu0 %v6199_v49  ;;  %v7883_v49 = vld [vmem:[%s12476_s2 + $0x74] sm:$0xf0] }
 0x2ef   :  { %2033 = vmatpush.bf16.msrb.mxu2 %v6175_v23  ;;  %v6159_v29 = vor.u32 %v7883_v49, %v6158_v28  ;;  %v7869_v49 = vld [vmem:[%s12476_s2 + $0xc] sm:$0xf] }
 0x2f1   :  { %v8308_v11 = vpop.eup %8307  ;;  %2046 = vmatpush.bf16.msra.mxu3 %v6179_v36  ;;  %v7868_v36 = vld [vmem:[%s12476_s2 + $0x4] sm:$0xf] }
 0x2f2   :  { %v9844_v12 = vmul.f32 %v8308_v11, %v1520_v8  ;;  %2006 = vmatpush.bf16.msrb.mxu0 %v6183_v1  ;;  %v6166_v8 = vld [vmem:[%s12476_s2 + $0x80] sm:$0xf]  ;;  %v7886_v11 = vld [vmem:[%s12476_s2 + $0x8c] sm:$0xf0]  ;;  %v7879_v1 = vld [vmem:[%s12476_s2 + $0x54] sm:$0xf0]  ;;  %v6107_v44 = vor.u32 %v7868_v36, %v6104_v27 }
 0x2f3   :  { %v6167_v33 = vor.u32 %v7886_v11, %v6166_v8  ;;  %2034 = vmatpush.bf16.msrb.mxu2 %v6159_v29  ;;  %v6143_v31 = vor.u32 %v7879_v1, %v6142_v63  ;;  %v6119_v8 = vor.u32 %v7874_v6, %v6118_v4  ;;  %v6120_v11 = vld [vmem:[%s12476_s2 + $0x30] sm:$0xf0]  ;;  %v6350_v27 = vld [vmem:[%s12476_s2 + $0xe8] sm:$0xf] }
 0x2f4   :  { %v1535_v32 = vpack.c.bf16 %v9844_v12, %v9844_v12 }
 0x2f5   :  { %2047 = vmatpush.bf16.msra.mxu3 %v6163_v46 }
 0x2f6   :  { %1736 = vmatmul.bf16.vlgmr.msra.gmra.mxu0 %v1535_v32  ;;  %1749 = vmatmul.bf16.vlgmr.msra.gmra.mxu1 %v1535_v32 }
 0x2f7   :  { %1762 = vmatmul.bf16.vlgmr.msra.gmra.mxu2 %v1535_v32  ;;  %1775 = vmatmul.bf16.vlgmr.msrb.gmra.mxu3 %v1535_v32  ;;  %v7884_v32 = vld [vmem:[%s12476_s2 + $0x84] sm:$0xf] }
 0x2f8   :  { %v6171_v22 = vor.u32 %v7884_v32, %v6168_v14  ;;  %2007 = vmatpush.bf16.msrb.mxu0 %v6167_v33  ;;  %2035 = vmatpush.bf16.msrb.mxu2 %v6143_v31  ;;  %v6126_v32 = vld [vmem:[%s12476_s2 + $0x28] sm:$0xf]  ;;  %v7875_v33 = vld [vmem:[%s12476_s2 + $0x34] sm:$0xf0]  ;;  %v6123_v14 = vor.u32 %v7872_v7, %v6120_v11 }
 0x2f9   :  { %2048 = vmatpush.bf16.msra.mxu3 %v6147_v47  ;;  %v6127_v16 = vor.u32 %v7875_v33, %v6126_v32 }
 0x2fa   :  { %2020 = vmatpush.bf16.msrb.mxu1 %v6171_v22  ;;  %v6128_v22 = vld [vmem:[%s12476_s2 + $0x38] sm:$0xf0] }
 0x2fb   :  { %v6131_v23 = vor.u32 %v7873_v18, %v6128_v22 }
 0x2fc   :  { %2008 = vmatpush.bf16.msrb.mxu0 %v6151_v43  ;;  %2036 = vmatpush.bf16.msrb.mxu2 %v6127_v16  ;;  %v7871_v43 = vld [vmem:[%s12476_s2 + $0x14] sm:$0xf0] }
 0x2fd   :  { %2049 = vmatpush.bf16.msra.mxu3 %v6131_v23  ;;  %v6111_v28 = vor.u32 %v7871_v43, %v6110_v40  ;;  %v7931_v40 = vld [vmem:[%s12476_s2 + $0xf4] sm:$0xf0] }
 0x2fe   :  { %2021 = vmatpush.bf16.msrb.mxu1 %v6155_v50  ;;  %v6112_v50 = vld [vmem:[%s12476_s2 + $0x18] sm:$0xf0] }
 0x2ff   :  { %v6115_v29 = vor.u32 %v7869_v49, %v6112_v50  ;;  %v6352_v49 = vld [vmem:[%s12476_s2 + $0xf8] sm:$0xf0] }
 0x300   :  { %2009 = vmatpush.bf16.msrb.mxu0 %v6135_v59  ;;  %2037 = vmatpush.bf16.msrb.mxu2 %v6111_v28  ;;  %v7929_v28 = vld [vmem:[%s12476_s2 + $0xec] sm:$0xf] }
 0x301   :  { %2050 = vmatpush.bf16.msra.mxu3 %v6115_v29  ;;  %v6355_v50 = vor.u32 %v7929_v28, %v6352_v49  ;;  %v6326_v29 = vld [vmem:[%s12476_s2 + $0xc0] sm:$0xf]  ;;  %v6280_v49 = vld [vmem:[%s12476_s2 + $0x70] sm:$0xf0] }
 0x302   :  { %2022 = vmatpush.bf16.msrb.mxu1 %v6139_v52 }
 0x304   :  { %2010 = vmatpush.bf16.msrb.mxu0 %v6119_v8 }
 0x305   :  { %2319 = vmatpush.bf16.msrb.mxu3 %v6355_v50  ;;  %v6286_v50 = vld [vmem:[%s12476_s2 + $0x68] sm:$0xf] }
 0x306   :  { %2023 = vmatpush.bf16.msrb.mxu1 %v6123_v14 }
 0x308   :  { %2011 = vmatpush.bf16.msrb.mxu0 %v6103_v34  ;;  %v6344_v34 = vld [vmem:[%s12476_s2 + $0xf0] sm:$0xf0] }
 0x309   :  { %v6347_v43 = vor.u32 %v7928_v53, %v6344_v34  ;;  %v6304_v34 = vld [vmem:[%s12476_s2 + $0x98] sm:$0xf0] }
 0x30a   :  { %2024 = vmatpush.bf16.msrb.mxu1 %v6107_v44  ;;  %v6351_v44 = vor.u32 %v7931_v40, %v6350_v27  ;;  %v6278_v40 = vld [vmem:[%s12476_s2 + $0x60] sm:$0xf] }
 0x30c   :  { %2306 = vmatpush.bf16.msra.mxu2 %v6351_v44  ;;  %v7912_v44 = vld [vmem:[%s12476_s2 + $0x64] sm:$0xf] }
 0x30e   :  { %2293 = vmatpush.bf16.msra.mxu1 %v6347_v43  ;;  %v7914_v43 = vld [vmem:[%s12476_s2 + $0x6c] sm:$0xf0] }
 0x30f   :  { %v6279_v28 = vor.u32 %v7914_v43, %v6278_v40  ;;  %v7903_v40 = vld [vmem:[%s12476_s2 + $0x14] sm:$0xf0] }
 0x373   :  { %v1737_v20 = vpop.f32.mrf.mxu0  ;;  %v1750_v61 = vpop.f32.mrf.mxu1 }
 0x374   :  { %v1780_v46 = vadd.f32 %v1737_v20, %v8937_v17  ;;  %v1781_v56 = vadd.f32 %v1750_v61, %v9021_v62  ;;  %v7926_v20 = vld [vmem:[%s12476_s2 + $0xcc] sm:$0xf0]  ;;  %v7924_v61 = vld [vmem:[%s12476_s2 + $0xc4] sm:$0xf] }
 0x376   :  { %v1784_v57 = vmul.f32 0.5, %v1780_v46  ;;  %v1788_v37 = vmul.f32 0.5, %v1781_v56  ;;  %v6327_v46 = vor.u32 %v7926_v20, %v6326_v29  ;;  %v6328_v56 = vld [vmem:[%s12476_s2 + $0xd0] sm:$0xf0]  ;;  %v7915_v29 = vld [vmem:[%s12476_s2 + $0x74] sm:$0xf0]  ;;  %v6283_v20 = vor.u32 %v7912_v44, %v6280_v49 }
 0x377   :  { %v6240_v49 = vld [vmem:[%s12476_s2 + $0x18] sm:$0xf0] }
 0x378   :  { %8309 = vtanh.f32 %v1784_v57  ;;  %v6334_v57 = vld [vmem:[%s12476_s2 + $0xc8] sm:$0xf] }
 0x379   :  { %8311 = vtanh.f32 %v1788_v37  ;;  %v7927_v37 = vld [vmem:[%s12476_s2 + $0xd4] sm:$0xf0] }
 0x37a   :  { %v1763_v59 = vpop.f32.mrf.mxu2  ;;  %v1776_v60 = vpop.f32.mrf.mxu3 }
 0x37b   :  { %v1782_v63 = vadd.f32 %v1763_v59, %v9057_v25  ;;  %v1783_v1 = vadd.f32 %v1776_v60, %v8969_v35  ;;  %v1739_v52 = vpop.f32.mrf.mxu0  ;;  %v1752_v31 = vpop.f32.mrf.mxu1  ;;  %v6331_v59 = vor.u32 %v7924_v61, %v6328_v56  ;;  %v6335_v60 = vor.u32 %v7927_v37, %v6334_v57  ;;  %v6288_v56 = vld [vmem:[%s12476_s2 + $0x78] sm:$0xf0]  ;;  %v6262_v37 = vld [vmem:[%s12476_s2 + $0x40] sm:$0xf] }
 0x37c   :  { %v6310_v31 = vld [vmem:[%s12476_s2 + $0xa0] sm:$0xf]  ;;  %v6287_v61 = vor.u32 %v7915_v29, %v6286_v50  ;;  %v297_v29 = vadd.f32 %v8943_v19, %v8931_v10  ;;  %v7960_v19 = vld [vmem:[%s12476_s2 + $0xe4] sm:$0xf] }
 0x37d   :  { %8313 = vtanh.f32 %v1782_v63  ;;  %v1793_v3 = vmul.f32 0.5, %v1783_v1  ;;  %v7925_v63 = vld [vmem:[%s12476_s2 + $0xcc] sm:$0xf]  ;;  %v6336_v1 = vld [vmem:[%s12476_s2 + $0xd8] sm:$0xf0]  ;;  %2294 = vmatpush.bf16.msra.mxu1 %v6331_v59  ;;  %2307 = vmatpush.bf16.msra.mxu2 %v6335_v60 }
 0x37e   :  { %v8310_v54 = vpop.eup %8309  ;;  %v6339_v52 = vor.u32 %v7925_v63, %v6336_v1  ;;  %v7910_v59 = vld [vmem:[%s12476_s2 + $0x4c] sm:$0xf0]  ;;  %v7908_v60 = vld [vmem:[%s12476_s2 + $0x44] sm:$0xf]  ;;  %v6264_v1 = vld [vmem:[%s12476_s2 + $0x50] sm:$0xf0] }
 0x37f   :  { %v8312_v47 = vpop.eup %8311  ;;  %v1786_v4 = vmul.f32 0.5, %v8310_v54  ;;  %8315 = vtanh.f32 %v1793_v3  ;;  %v7922_v3 = vld [vmem:[%s12476_s2 + $0xac] sm:$0xf0]  ;;  %v7920_v54 = vld [vmem:[%s12476_s2 + $0xa4] sm:$0xf]  ;;  %v6263_v63 = vor.u32 %v7910_v59, %v6262_v37 }
 0x380   :  { %v1790_v17 = vmul.f32 0.5, %v8312_v47  ;;  %2320 = vmatpush.bf16.msrb.mxu3 %v6339_v52  ;;  %v6311_v47 = vor.u32 %v7922_v3, %v6310_v31  ;;  %v6270_v52 = vld [vmem:[%s12476_s2 + $0x48] sm:$0xf]  ;;  %v7911_v31 = vld [vmem:[%s12476_s2 + $0x54] sm:$0xf0]  ;;  %v6267_v3 = vor.u32 %v7908_v60, %v6264_v1 }
 0x381   :  { %v1787_v62 = vadd.f32 0.5, %v1786_v4  ;;  %v6312_v4 = vld [vmem:[%s12476_s2 + $0xb0] sm:$0xf0]  ;;  %v6470_v37 = vld [vmem:[%s12476_s2 + $0xe0] sm:$0xf] }
 0x382   :  { %v1791_v6 = vadd.f32 0.5, %v1790_v17  ;;  %v1765_v7 = vpop.f32.mrf.mxu2  ;;  %v1778_v8 = vpop.f32.mrf.mxu3  ;;  %v6318_v17 = vld [vmem:[%s12476_s2 + $0xa8] sm:$0xf]  ;;  %v7962_v59 = vld [vmem:[%s12476_s2 + $0xec] sm:$0xf0] }
 0x383   :  { %v8314_v11 = vpop.eup %8313  ;;  %v7921_v8 = vld [vmem:[%s12476_s2 + $0xac] sm:$0xf]  ;;  %v6471_v60 = vor.u32 %v7962_v59, %v6470_v37  ;;  %v7963_v1 = vld [vmem:[%s12476_s2 + $0xf4] sm:$0xf0]  ;;  %v7950_v37 = vld [vmem:[%s12476_s2 + $0x8c] sm:$0xf0] }
 0x384   :  { %v1797_v32 = vmul.f32 %v1791_v6, %v9841_v15  ;;  %v1798_v33 = vmul.f32 %v8314_v11, %v1787_v62  ;;  %v6342_v15 = vld [vmem:[%s12476_s2 + $0xe0] sm:$0xf]  ;;  %v7923_v62 = vld [vmem:[%s12476_s2 + $0xb4] sm:$0xf0]  ;;  %v6315_v6 = vor.u32 %v7920_v54, %v6312_v4  ;;  %v6320_v11 = vld [vmem:[%s12476_s2 + $0xb8] sm:$0xf0]  ;;  %v6271_v54 = vor.u32 %v7911_v31, %v6270_v52 }
 0x385   :  { %v8316_v25 = vpop.eup %8315  ;;  %v6343_v36 = vor.u32 %v7930_v41, %v6342_v15  ;;  %v6319_v7 = vor.u32 %v7923_v62, %v6318_v17  ;;  %v7919_v15 = vld [vmem:[%s12476_s2 + $0x94] sm:$0xf0]  ;;  %v6272_v4 = vld [vmem:[%s12476_s2 + $0x58] sm:$0xf0]  ;;  %v6246_v62 = vld [vmem:[%s12476_s2 + $0x20] sm:$0xf] }
 0x386   :  { %v10045_v14 = vadd.f32 %v1798_v33, %v1797_v32  ;;  %v1795_v35 = vmul.f32 0.5, %v8316_v25  ;;  %v6323_v32 = vor.u32 %v7921_v8, %v6320_v11  ;;  %2295 = vmatpush.bf16.msra.mxu1 %v6315_v6  ;;  %v6294_v33 = vld [vmem:[%s12476_s2 + $0x80] sm:$0xf]  ;;  %v7918_v25 = vld [vmem:[%s12476_s2 + $0x8c] sm:$0xf0] }
 0x387   :  { %2280 = vmatpush.bf16.msra.mxu0 %v6343_v36  ;;  %2308 = vmatpush.bf16.msra.mxu2 %v6319_v7  ;;  %v7917_v36 = vld [vmem:[%s12476_s2 + $0x8c] sm:$0xf]  ;;  %v7906_v6 = vld [vmem:[%s12476_s2 + $0x2c] sm:$0xf0]  ;;  %v7904_v7 = vld [vmem:[%s12476_s2 + $0x24] sm:$0xf] }
 0x388   :  { %8317 = vtanh.f32 %v10045_v14  ;;  %v1796_v16 = vadd.f32 0.5, %v1795_v35  ;;  %v7916_v35 = vld [vmem:[%s12476_s2 + $0x84] sm:$0xf]  ;;  %2321 = vmatpush.bf16.msrb.mxu3 %v6323_v32  ;;  %v6307_v27 = vor.u32 %v7917_v36, %v6304_v34  ;;  %v6247_v8 = vor.u32 %v7906_v6, %v6246_v62  ;;  %v6248_v11 = vld [vmem:[%s12476_s2 + $0x30] sm:$0xf0] }
 0x389   :  { %v6254_v32 = vld [vmem:[%s12476_s2 + $0x28] sm:$0xf]  ;;  %v6232_v34 = vld [vmem:[%s12476_s2 + $0x10] sm:$0xf0]  ;;  %v6454_v62 = vld [vmem:[%s12476_s2 + $0xc0] sm:$0xf] }
 0x38a   :  { %v7958_v6 = vld [vmem:[%s12476_s2 + $0xcc] sm:$0xf0] }
 0x38b   :  { %2281 = vmatpush.bf16.msra.mxu0 %v6327_v46  ;;  %v7913_v46 = vld [vmem:[%s12476_s2 + $0x6c] sm:$0xf] }
 0x38c   :  { %2322 = vmatpush.bf16.msrb.mxu3 %v6307_v27  ;;  %v6291_v57 = vor.u32 %v7913_v46, %v6288_v56  ;;  %v6238_v27 = vld [vmem:[%s12476_s2 + $0x8] sm:$0xf] }
 0x38d   :  { %v6239_v44 = vor.u32 %v7903_v40, %v6238_v27  ;;  %v6440_v27 = vld [vmem:[%s12476_s2 + $0xb0] sm:$0xf0] }
 0x38e   :  { %v8318_v18 = vpop.eup %8317 }
 0x38f   :  { %v10048_v22 = vmul.f32 %v8318_v18, %v1796_v16  ;;  %2282 = vmatpush.bf16.msra.mxu0 %v6311_v47  ;;  %v6295_v16 = vor.u32 %v7918_v25, %v6294_v33  ;;  %v6296_v18 = vld [vmem:[%s12476_s2 + $0x90] sm:$0xf0]  ;;  %v7909_v47 = vld [vmem:[%s12476_s2 + $0x4c] sm:$0xf]  ;;  %v7907_v33 = vld [vmem:[%s12476_s2 + $0x34] sm:$0xf0]  ;;  %v6251_v25 = vor.u32 %v7904_v7, %v6248_v11  ;;  %v6455_v11 = vor.u32 %v7958_v6, %v6454_v62 }
 0x390   :  { %v6299_v41 = vor.u32 %v7916_v35, %v6296_v18  ;;  %2323 = vmatpush.bf16.msrb.mxu3 %v6291_v57  ;;  %v6275_v17 = vor.u32 %v7909_v47, %v6272_v4  ;;  %v6255_v35 = vor.u32 %v7907_v33, %v6254_v32  ;;  %v6256_v18 = vld [vmem:[%s12476_s2 + $0x38] sm:$0xf0]  ;;  %v7961_v47 = vld [vmem:[%s12476_s2 + $0xec] sm:$0xf]  ;;  %v7956_v7 = vld [vmem:[%s12476_s2 + $0xc4] sm:$0xf] }
 0x391   :  { %v1811_v23 = vpack.c.bf16 %v10048_v22, %v10048_v22  ;;  %v6480_v4 = vld [vmem:[%s12476_s2 + $0xf8] sm:$0xf0]  ;;  %v6456_v32 = vld [vmem:[%s12476_s2 + $0xd0] sm:$0xf0]  ;;  %v6462_v33 = vld [vmem:[%s12476_s2 + $0xc8] sm:$0xf] }
 0x392   :  { %2296 = vmatpush.bf16.msra.mxu1 %v6299_v41  ;;  %v7902_v41 = vld [vmem:[%s12476_s2 + $0xc] sm:$0xf0] }
 0x393   :  { %2012 = vmatmul.bf16.vlgmr.msrb.gmra.mxu0 %v1811_v23  ;;  %2025 = vmatmul.bf16.vlgmr.msrb.gmra.mxu1 %v1811_v23 }
 0x394   :  { %2038 = vmatmul.bf16.vlgmr.msrb.gmra.mxu2 %v1811_v23  ;;  %2051 = vmatmul.bf16.vlgmr.msra.gmra.mxu3 %v1811_v23  ;;  %v6302_v23 = vld [vmem:[%s12476_s2 + $0x88] sm:$0xf] }
 0x395   :  { %v6303_v53 = vor.u32 %v7919_v15, %v6302_v23  ;;  %2283 = vmatpush.bf16.msra.mxu0 %v6295_v16  ;;  %2324 = vmatpush.bf16.msrb.mxu3 %v6275_v17  ;;  %v7905_v16 = vld [vmem:[%s12476_s2 + $0x2c] sm:$0xf]  ;;  %v6230_v15 = vld [vmem:[%s12476_s2] sm:$0xf]  ;;  %v6483_v17 = vor.u32 %v7961_v47, %v6480_v4  ;;  %v6432_v4 = vld [vmem:[%s12476_s2 + $0x98] sm:$0xf0] }
 0x396   :  { %2297 = vmatpush.bf16.msra.mxu1 %v6283_v20  ;;  %v6259_v23 = vor.u32 %v7905_v16, %v6256_v18  ;;  %v6231_v36 = vor.u32 %v7902_v41, %v6230_v15  ;;  %v326_v20 = vadd.f32 %v9070_v48, %v8975_v38  ;;  %v6472_v48 = vld [vmem:[%s12476_s2 + $0xf0] sm:$0xf0]  ;;  %v7957_v18 = vld [vmem:[%s12476_s2 + $0xcc] sm:$0xf]  ;;  %v6438_v15 = vld [vmem:[%s12476_s2 + $0xa0] sm:$0xf] }
 0x397   :  { %2309 = vmatpush.bf16.msra.mxu2 %v6303_v53  ;;  %v7900_v53 = vld [vmem:[%s12476_s2 + $0x4] sm:$0xf] }
 0x398   :  { %v6235_v43 = vor.u32 %v7900_v53, %v6232_v34  ;;  %v7952_v34 = vld [vmem:[%s12476_s2 + $0xa4] sm:$0xf] }
 0x399   :  { %2284 = vmatpush.bf16.msra.mxu0 %v6279_v28  ;;  %2325 = vmatpush.bf16.msrb.mxu3 %v6259_v23  ;;  %v7901_v28 = vld [vmem:[%s12476_s2 + $0xc] sm:$0xf]  ;;  %v6464_v23 = vld [vmem:[%s12476_s2 + $0xd8] sm:$0xf0] }
 0x39a   :  { %2298 = vmatpush.bf16.msra.mxu1 %v6267_v3  ;;  %v6243_v50 = vor.u32 %v7901_v28, %v6240_v49  ;;  %v6475_v3 = vor.u32 %v7960_v19, %v6472_v48  ;;  %v6424_v48 = vld [vmem:[%s12476_s2 + $0x90] sm:$0xf0] }
 0x39b   :  { %2310 = vmatpush.bf16.msra.mxu2 %v6287_v61 }
 0x39d   :  { %2285 = vmatpush.bf16.msra.mxu0 %v6263_v63  ;;  %2326 = vmatpush.bf16.msrb.mxu3 %v6243_v50  ;;  %v6478_v63 = vld [vmem:[%s12476_s2 + $0xe8] sm:$0xf] }
 0x39e   :  { %2299 = vmatpush.bf16.msra.mxu1 %v6251_v25  ;;  %v7959_v25 = vld [vmem:[%s12476_s2 + $0xd4] sm:$0xf0]  ;;  %v6446_v50 = vld [vmem:[%s12476_s2 + $0xa8] sm:$0xf] }
 0x39f   :  { %2311 = vmatpush.bf16.msra.mxu2 %v6271_v54  ;;  %v6479_v54 = vor.u32 %v7963_v1, %v6478_v63  ;;  %v6463_v16 = vor.u32 %v7959_v25, %v6462_v33  ;;  %v6430_v1 = vld [vmem:[%s12476_s2 + $0x88] sm:$0xf] }
 0x3a1   :  { %2286 = vmatpush.bf16.msra.mxu0 %v6247_v8  ;;  %v384_v8 = vadd.f32 %v8977_v39, %v8950_v24  ;;  %2595 = vmatpush.bf16.msra.mxu3 %v6483_v17  ;;  %v6459_v39 = vor.u32 %v7956_v7, %v6456_v32 }
 0x3a2   :  { %2300 = vmatpush.bf16.msra.mxu1 %v6235_v43 }
 0x3a3   :  { %2312 = vmatpush.bf16.msra.mxu2 %v6255_v35  ;;  %v355_v35 = vadd.f32 %v9102_v5, %v8982_v42  ;;  %v7954_v5 = vld [vmem:[%s12476_s2 + $0xac] sm:$0xf0] }
 0x3a4   :  { %v6439_v49 = vor.u32 %v7954_v5, %v6438_v15  ;;  %v7946_v5 = vld [vmem:[%s12476_s2 + $0x6c] sm:$0xf0] }
 0x3a5   :  { %2287 = vmatpush.bf16.msra.mxu0 %v6231_v36  ;;  %v6467_v36 = vor.u32 %v7957_v18, %v6464_v23 }
 0x3a6   :  { %2569 = vmatpush.bf16.msrb.mxu1 %v6475_v3 }
 0x3a7   :  { %2313 = vmatpush.bf16.msra.mxu2 %v6239_v44  ;;  %2596 = vmatpush.bf16.msra.mxu3 %v6467_v36 }
 0x3a9   :  { %2556 = vmatpush.bf16.msrb.mxu0 %v6471_v60  ;;  %v7948_v60 = vld [vmem:[%s12476_s2 + $0x84] sm:$0xf] }
 0x3aa   :  { %2570 = vmatpush.bf16.msrb.mxu1 %v6459_v39  ;;  %v6427_v62 = vor.u32 %v7948_v60, %v6424_v48 }
 0x3ab   :  { %2582 = vmatpush.bf16.msrb.mxu2 %v6479_v54 }
 0x3ad   :  { %2557 = vmatpush.bf16.msrb.mxu0 %v6455_v11 }
 0x3af   :  { %2583 = vmatpush.bf16.msrb.mxu2 %v6463_v16 }
 0x3b1   :  { %2558 = vmatpush.bf16.msrb.mxu0 %v6439_v49 }
 0x410   :  { %v2013_v61 = vpop.f32.mrf.mxu0  ;;  %v2026_v46 = vpop.f32.mrf.mxu1 }
 0x411   :  { %v2056_v56 = vadd.f32 %v2013_v61, %v297_v29  ;;  %v2057_v57 = vadd.f32 %v2026_v46, %v326_v20  ;;  %v7955_v29 = vld [vmem:[%s12476_s2 + $0xb4] sm:$0xf0]  ;;  %v7953_v20 = vld [vmem:[%s12476_s2 + $0xac] sm:$0xf]  ;;  %v6443_v61 = vor.u32 %v7952_v34, %v6440_v27  ;;  %v7944_v34 = vld [vmem:[%s12476_s2 + $0x64] sm:$0xf] }
 0x412   :  { %v6447_v46 = vor.u32 %v7955_v29, %v6446_v50  ;;  %v7945_v50 = vld [vmem:[%s12476_s2 + $0x6c] sm:$0xf]  ;;  %v6416_v29 = vld [vmem:[%s12476_s2 + $0x78] sm:$0xf0] }
 0x413   :  { %v2060_v52 = vmul.f32 0.5, %v2056_v56  ;;  %v2064_v31 = vmul.f32 0.5, %v2057_v57  ;;  %v6448_v56 = vld [vmem:[%s12476_s2 + $0xb8] sm:$0xf0]  ;;  %v6422_v57 = vld [vmem:[%s12476_s2 + $0x80] sm:$0xf]  ;;  %2571 = vmatpush.bf16.msrb.mxu1 %v6443_v61 }
 0x414   :  { %v6451_v19 = vor.u32 %v7953_v20, %v6448_v56  ;;  %v6423_v47 = vor.u32 %v7950_v37, %v6422_v57  ;;  %2584 = vmatpush.bf16.msrb.mxu2 %v6447_v46  ;;  %v6419_v20 = vor.u32 %v7945_v50, %v6416_v29  ;;  %v6390_v61 = vld [vmem:[%s12476_s2 + $0x40] sm:$0xf]  ;;  %v7942_v46 = vld [vmem:[%s12476_s2 + $0x4c] sm:$0xf0]  ;;  %v7940_v56 = vld [vmem:[%s12476_s2 + $0x44] sm:$0xf] }
 0x415   :  { %8319 = vtanh.f32 %v2060_v52  ;;  %v7951_v52 = vld [vmem:[%s12476_s2 + $0x94] sm:$0xf0]  ;;  %v6391_v57 = vor.u32 %v7942_v46, %v6390_v61  ;;  %v6392_v37 = vld [vmem:[%s12476_s2 + $0x50] sm:$0xf0]  ;;  %v6606_v50 = vld [vmem:[%s12481_s4 + $0xe8] sm:$0xf] }
 0x416   :  { %8321 = vtanh.f32 %v2064_v31  ;;  %v7949_v31 = vld [vmem:[%s12476_s2 + $0x8c] sm:$0xf]  ;;  %v6431_v6 = vor.u32 %v7951_v52, %v6430_v1  ;;  %2597 = vmatpush.bf16.msra.mxu3 %v6451_v19  ;;  %2559 = vmatpush.bf16.msrb.mxu0 %v6423_v47  ;;  %v7943_v19 = vld [vmem:[%s12476_s2 + $0x54] sm:$0xf0]  ;;  %v6395_v60 = vor.u32 %v7940_v56, %v6392_v37  ;;  %v6400_v1 = vld [vmem:[%s12476_s2 + $0x58] sm:$0xf0] }
 0x417   :  { %v2039_v41 = vpop.f32.mrf.mxu2  ;;  %v2052_v53 = vpop.f32.mrf.mxu3  ;;  %2572 = vmatpush.bf16.msrb.mxu1 %v6427_v62  ;;  %v7939_v62 = vld [vmem:[%s12476_s2 + $0x34] sm:$0xf0]  ;;  %v6608_v46 = vld [vmem:[%s12481_s4 + $0xf8] sm:$0xf0]  ;;  %v6582_v56 = vld [vmem:[%s12481_s4 + $0xc0] sm:$0xf] }
 0x418   :  { %v2058_v40 = vadd.f32 %v2039_v41, %v355_v35  ;;  %v2059_v43 = vadd.f32 %v2052_v53, %v384_v8  ;;  %v2015_v44 = vpop.f32.mrf.mxu0  ;;  %v2028_v28 = vpop.f32.mrf.mxu1  ;;  %v6435_v8 = vor.u32 %v7949_v31, %v6432_v4  ;;  %2585 = vmatpush.bf16.msrb.mxu2 %v6431_v6  ;;  %v6374_v31 = vld [vmem:[%s12476_s2 + $0x20] sm:$0xf]  ;;  %v6376_v4 = vld [vmem:[%s12476_s2 + $0x30] sm:$0xf0]  ;;  %v7995_v29 = vld [vmem:[%s12481_s4 + $0xf4] sm:$0xf0] }
 0x419   :  { %v7947_v44 = vld [vmem:[%s12476_s2 + $0x74] sm:$0xf0]  ;;  %v6607_v61 = vor.u32 %v7995_v29, %v6606_v50 }
 0x41a   :  { %8323 = vtanh.f32 %v2058_v40  ;;  %v2069_v59 = vmul.f32 0.5, %v2059_v43  ;;  %2598 = vmatpush.bf16.msra.mxu3 %v6435_v8  ;;  %v6408_v40 = vld [vmem:[%s12476_s2 + $0x70] sm:$0xf0]  ;;  %v6414_v43 = vld [vmem:[%s12476_s2 + $0x68] sm:$0xf] }
 0x41b   :  { %v8320_v63 = vpop.eup %8319  ;;  %v6411_v28 = vor.u32 %v7944_v34, %v6408_v40  ;;  %v6415_v49 = vor.u32 %v7947_v44, %v6414_v43  ;;  %v7937_v8 = vld [vmem:[%s12476_s2 + $0x2c] sm:$0xf]  ;;  %v6598_v34 = vld [vmem:[%s12481_s4 + $0xe0] sm:$0xf]  ;;  %v7994_v40 = vld [vmem:[%s12481_s4 + $0xec] sm:$0xf0] }
 0x41c   :  { %v8322_v3 = vpop.eup %8321  ;;  %v2062_v54 = vmul.f32 0.5, %v8320_v63  ;;  %8325 = vtanh.f32 %v2069_v59  ;;  %v6398_v59 = vld [vmem:[%s12476_s2 + $0x48] sm:$0xf]  ;;  %v7941_v63 = vld [vmem:[%s12476_s2 + $0x4c] sm:$0xf] }
 0x41d   :  { %v2066_v17 = vmul.f32 0.5, %v8322_v3  ;;  %2573 = vmatpush.bf16.msrb.mxu1 %v6411_v28  ;;  %2586 = vmatpush.bf16.msrb.mxu2 %v6415_v49  ;;  %v6399_v48 = vor.u32 %v7943_v19, %v6398_v59  ;;  %v6403_v52 = vor.u32 %v7941_v63, %v6400_v1  ;;  %v7938_v3 = vld [vmem:[%s12476_s2 + $0x2c] sm:$0xf0]  ;;  %v7992_v43 = vld [vmem:[%s12481_s4 + $0xe4] sm:$0xf]  ;;  %v6599_v28 = vor.u32 %v7994_v40, %v6598_v34 }
 0x41e   :  { %v2063_v7 = vadd.f32 0.5, %v2062_v54  ;;  %2599 = vmatpush.bf16.msra.mxu3 %v6419_v20  ;;  %v7936_v54 = vld [vmem:[%s12476_s2 + $0x24] sm:$0xf]  ;;  %v6375_v47 = vor.u32 %v7938_v3, %v6374_v31  ;;  %v6600_v44 = vld [vmem:[%s12481_s4 + $0xf0] sm:$0xf0] }
 0x41f   :  { %v2067_v11 = vadd.f32 0.5, %v2066_v17  ;;  %v2041_v32 = vpop.f32.mrf.mxu2  ;;  %v2054_v33 = vpop.f32.mrf.mxu3  ;;  %v6382_v17 = vld [vmem:[%s12476_s2 + $0x28] sm:$0xf]  ;;  %v6379_v6 = vor.u32 %v7936_v54, %v6376_v4  ;;  %v6603_v49 = vor.u32 %v7992_v43, %v6600_v44  ;;  %v7993_v20 = vld [vmem:[%s12481_s4 + $0xec] sm:$0xf] }
 0x420   :  { %v8324_v25 = vpop.eup %8323  ;;  %v6358_v33 = vld [vmem:[%s12476_s2] sm:$0xf]  ;;  %v6611_v37 = vor.u32 %v7993_v20, %v6608_v46  ;;  %v7988_v19 = vld [vmem:[%s12481_s4 + $0xc4] sm:$0xf]  ;;  %v7991_v1 = vld [vmem:[%s12481_s4 + $0xd4] sm:$0xf0] }
 0x421   :  { %v2073_v35 = vmul.f32 %v2067_v11, %v10045_v14  ;;  %v2074_v39 = vmul.f32 %v8324_v25, %v2063_v7  ;;  %v6406_v14 = vld [vmem:[%s12476_s2 + $0x60] sm:$0xf]  ;;  %2574 = vmatpush.bf16.msrb.mxu1 %v6395_v60  ;;  %2587 = vmatpush.bf16.msrb.mxu2 %v6399_v48  ;;  %v6383_v7 = vor.u32 %v7939_v62, %v6382_v17  ;;  %v6384_v11 = vld [vmem:[%s12476_s2 + $0x38] sm:$0xf0]  ;;  %v7934_v25 = vld [vmem:[%s12476_s2 + $0xc] sm:$0xf0] }
 0x422   :  { %v8326_v16 = vpop.eup %8325  ;;  %v6407_v27 = vor.u32 %v7946_v5, %v6406_v14  ;;  %2600 = vmatpush.bf16.msra.mxu3 %v6403_v52  ;;  %v6387_v32 = vor.u32 %v7937_v8, %v6384_v11  ;;  %v7933_v14 = vld [vmem:[%s12476_s2 + $0xc] sm:$0xf]  ;;  %v6368_v5 = vld [vmem:[%s12476_s2 + $0x18] sm:$0xf0]  ;;  %v6584_v60 = vld [vmem:[%s12481_s4 + $0xd0] sm:$0xf0] }
 0x423   :  { %v10349_v18 = vadd.f32 %v2074_v39, %v2073_v35  ;;  %v2071_v23 = vmul.f32 0.5, %v8326_v16  ;;  %v7932_v35 = vld [vmem:[%s12476_s2 + $0x4] sm:$0xf]  ;;  %v6359_v39 = vor.u32 %v7934_v25, %v6358_v33  ;;  %v6360_v16 = vld [vmem:[%s12476_s2 + $0x10] sm:$0xf0]  ;;  %v6587_v63 = vor.u32 %v7988_v19, %v6584_v60 }
 0x424   :  { %2560 = vmatpush.bf16.msrb.mxu0 %v6407_v27  ;;  %v6371_v27 = vor.u32 %v7933_v14, %v6368_v5  ;;  %v6590_v48 = vld [vmem:[%s12481_s4 + $0xc8] sm:$0xf]  ;;  %v7989_v52 = vld [vmem:[%s12481_s4 + $0xcc] sm:$0xf]  ;;  %v6592_v31 = vld [vmem:[%s12481_s4 + $0xd8] sm:$0xf0] }
 0x425   :  { %8327 = vtanh.f32 %v10349_v18  ;;  %v2072_v15 = vadd.f32 0.5, %v2071_v23  ;;  %2575 = vmatpush.bf16.msrb.mxu1 %v6379_v6  ;;  %2588 = vmatpush.bf16.msrb.mxu2 %v6383_v7  ;;  %v6366_v23 = vld [vmem:[%s12476_s2 + $0x8] sm:$0xf]  ;;  %v6591_v3 = vor.u32 %v7991_v1, %v6590_v48  ;;  %v6595_v54 = vor.u32 %v7989_v52, %v6592_v31  ;;  %v7986_v4 = vld [vmem:[%s12481_s4 + $0xac] sm:$0xf0] }
 0x426   :  { %2601 = vmatpush.bf16.msra.mxu3 %v6387_v32  ;;  %v7984_v17 = vld [vmem:[%s12481_s4 + $0xa4] sm:$0xf]  ;;  %v6568_v6 = vld [vmem:[%s12481_s4 + $0xb0] sm:$0xf0]  ;;  %v6574_v7 = vld [vmem:[%s12481_s4 + $0xa8] sm:$0xf] }
 0x427   :  { %v7987_v8 = vld [vmem:[%s12481_s4 + $0xb4] sm:$0xf0]  ;;  %v6571_v11 = vor.u32 %v7984_v17, %v6568_v6  ;;  %v7985_v33 = vld [vmem:[%s12481_s4 + $0xac] sm:$0xf]  ;;  %v6576_v25 = vld [vmem:[%s12481_s4 + $0xb8] sm:$0xf0] }
 0x428   :  { %2561 = vmatpush.bf16.msrb.mxu0 %v6391_v57  ;;  %v7990_v57 = vld [vmem:[%s12481_s4 + $0xcc] sm:$0xf0]  ;;  %v6575_v32 = vor.u32 %v7987_v8, %v6574_v7  ;;  %v7983_v14 = vld [vmem:[%s12481_s4 + $0x94] sm:$0xf0]  ;;  %v6560_v40 = vld [vmem:[%s12481_s4 + $0x98] sm:$0xf0] }
 0x429   :  { %v6583_v59 = vor.u32 %v7990_v57, %v6582_v56  ;;  %v6534_v44 = vld [vmem:[%s12481_s4 + $0x60] sm:$0xf]  ;;  %v6542_v46 = vld [vmem:[%s12481_s4 + $0x68] sm:$0xf]  ;;  %v7979_v56 = vld [vmem:[%s12481_s4 + $0x74] sm:$0xf0] }
 0x42a   :  { %2602 = vmatpush.bf16.msra.mxu3 %v6371_v27  ;;  %v7981_v27 = vld [vmem:[%s12481_s4 + $0x8c] sm:$0xf]  ;;  %v6543_v19 = vor.u32 %v7979_v56, %v6542_v46  ;;  %v6544_v48 = vld [vmem:[%s12481_s4 + $0x78] sm:$0xf0]  ;;  %v6520_v52 = vld [vmem:[%s12481_s4 + $0x50] sm:$0xf0] }
 0x42b   :  { %v8328_v41 = vpop.eup %8327  ;;  %v6563_v43 = vor.u32 %v7981_v27, %v6560_v40  ;;  %v7977_v60 = vld [vmem:[%s12481_s4 + $0x6c] sm:$0xf]  ;;  %v7975_v17 = vld [vmem:[%s12481_s4 + $0x54] sm:$0xf0]  ;;  %v6528_v7 = vld [vmem:[%s12481_s4 + $0x58] sm:$0xf0] }
 0x42c   :  { %v10352_v53 = vmul.f32 %v8328_v41, %v2072_v15  ;;  %2562 = vmatpush.bf16.msrb.mxu0 %v6375_v47  ;;  %v7935_v15 = vld [vmem:[%s12476_s2 + $0x14] sm:$0xf0]  ;;  %v6363_v41 = vor.u32 %v7932_v35, %v6360_v16  ;;  %v6566_v47 = vld [vmem:[%s12481_s4 + $0xa0] sm:$0xf]  ;;  %v6579_v35 = vor.u32 %v7985_v33, %v6576_v25  ;;  %v7982_v16 = vld [vmem:[%s12481_s4 + $0x8c] sm:$0xf0]  ;;  %v6547_v1 = vor.u32 %v7977_v60, %v6544_v48 }
 0x42d   :  { %v6567_v62 = vor.u32 %v7986_v4, %v6566_v47  ;;  %v6526_v4 = vld [vmem:[%s12481_s4 + $0x48] sm:$0xf]  ;;  %v7973_v6 = vld [vmem:[%s12481_s4 + $0x4c] sm:$0xf]  ;;  %v6502_v8 = vld [vmem:[%s12481_s4 + $0x20] sm:$0xf] }
 0x42e   :  { %v2087_v36 = vpack.c.bf16 %v10352_v53, %v10352_v53  ;;  %2576 = vmatpush.bf16.msrb.mxu1 %v6363_v41  ;;  %v6552_v41 = vld [vmem:[%s12481_s4 + $0x90] sm:$0xf0]  ;;  %v7968_v33 = vld [vmem:[%s12481_s4 + $0x24] sm:$0xf]  ;;  %v6496_v46 = vld [vmem:[%s12481_s4 + $0x18] sm:$0xf0] }
 0x42f   :  { %v6504_v25 = vld [vmem:[%s12481_s4 + $0x30] sm:$0xf0] }
 0x430   :  { %2288 = vmatmul.bf16.vlgmr.msra.gmra.mxu0 %v2087_v36  ;;  %2301 = vmatmul.bf16.vlgmr.msra.gmra.mxu1 %v2087_v36 }
 0x431   :  { %2314 = vmatmul.bf16.vlgmr.msra.gmra.mxu2 %v2087_v36  ;;  %2327 = vmatmul.bf16.vlgmr.msrb.gmra.mxu3 %v2087_v36  ;;  %v6367_v36 = vor.u32 %v7935_v15, %v6366_v23  ;;  %v7980_v23 = vld [vmem:[%s12481_s4 + $0x84] sm:$0xf] }
 0x432   :  { %2563 = vmatpush.bf16.msrb.mxu0 %v6359_v39  ;;  %2877 = vmatpush.bf16.msra.mxu1 %v6603_v49  ;;  %v6550_v39 = vld [vmem:[%s12481_s4 + $0x80] sm:$0xf]  ;;  %v6555_v5 = vor.u32 %v7980_v23, %v6552_v41  ;;  %v7976_v49 = vld [vmem:[%s12481_s4 + $0x64] sm:$0xf] }
 0x433   :  { %2589 = vmatpush.bf16.msrb.mxu2 %v6367_v36  ;;  %2935 = vmatpush.bf16.msrb.mxu3 %v6611_v37  ;;  %v6551_v15 = vor.u32 %v7982_v16, %v6550_v39  ;;  %v6558_v36 = vld [vmem:[%s12481_s4 + $0x88] sm:$0xf]  ;;  %v7971_v39 = vld [vmem:[%s12481_s4 + $0x34] sm:$0xf0]  ;;  %v7969_v16 = vld [vmem:[%s12481_s4 + $0x2c] sm:$0xf] }
 0x434   :  { %v6559_v34 = vor.u32 %v7983_v14, %v6558_v36  ;;  %v6507_v36 = vor.u32 %v7968_v33, %v6504_v25  ;;  %v6512_v14 = vld [vmem:[%s12481_s4 + $0x38] sm:$0xf0]  ;;  %v8024_v33 = vld [vmem:[%s12482_s5 + $0xe4] sm:$0xf] }
 0x436   :  { %2848 = vmatpush.bf16.msra.mxu0 %v6599_v28  ;;  %2878 = vmatpush.bf16.msra.mxu1 %v6587_v63  ;;  %v7978_v28 = vld [vmem:[%s12481_s4 + $0x6c] sm:$0xf0]  ;;  %v6518_v63 = vld [vmem:[%s12481_s4 + $0x40] sm:$0xf] }
 0x437   :  { %2906 = vmatpush.bf16.msra.mxu2 %v6607_v61  ;;  %2936 = vmatpush.bf16.msrb.mxu3 %v6595_v54  ;;  %v6535_v20 = vor.u32 %v7978_v28, %v6534_v44  ;;  %v6536_v61 = vld [vmem:[%s12481_s4 + $0x70] sm:$0xf0]  ;;  %v7966_v28 = vld [vmem:[%s12481_s4 + $0xc] sm:$0xf0] }
 0x43a   :  { %2849 = vmatpush.bf16.msra.mxu0 %v6583_v59  ;;  %2879 = vmatpush.bf16.msra.mxu1 %v6571_v11  ;;  %v6539_v59 = vor.u32 %v7976_v49, %v6536_v61  ;;  %v6531_v11 = vor.u32 %v7973_v6, %v6528_v7  ;;  %v7964_v49 = vld [vmem:[%s12481_s4 + $0x4] sm:$0xf]  ;;  %v7965_v61 = vld [vmem:[%s12481_s4 + $0xc] sm:$0xf] }
 0x43b   :  { %2907 = vmatpush.bf16.msra.mxu2 %v6591_v3  ;;  %2937 = vmatpush.bf16.msrb.mxu3 %v6579_v35  ;;  %v6510_v35 = vld [vmem:[%s12481_s4 + $0x28] sm:$0xf] }
 0x43c   :  { %v6511_v44 = vor.u32 %v7971_v39, %v6510_v35  ;;  %v8027_v35 = vld [vmem:[%s12482_s5 + $0xf4] sm:$0xf0] }
 0x43e   :  { %2850 = vmatpush.bf16.msra.mxu0 %v6567_v62  ;;  %2880 = vmatpush.bf16.msra.mxu1 %v6555_v5  ;;  %v6527_v62 = vor.u32 %v7975_v17, %v6526_v4  ;;  %v6486_v5 = vld [vmem:[%s12481_s4] sm:$0xf] }
 0x43f   :  { %2908 = vmatpush.bf16.msra.mxu2 %v6575_v32  ;;  %2938 = vmatpush.bf16.msrb.mxu3 %v6563_v43  ;;  %v7970_v32 = vld [vmem:[%s12481_s4 + $0x2c] sm:$0xf0] }
 0x440   :  { %v6503_v41 = vor.u32 %v7970_v32, %v6502_v8  ;;  %v8026_v32 = vld [vmem:[%s12482_s5 + $0xec] sm:$0xf0] }
 0x442   :  { %2851 = vmatpush.bf16.msra.mxu0 %v6551_v15  ;;  %2881 = vmatpush.bf16.msra.mxu1 %v6539_v59 }
 0x443   :  { %2909 = vmatpush.bf16.msra.mxu2 %v6559_v34  ;;  %2939 = vmatpush.bf16.msrb.mxu3 %v6547_v1 }
 0x446   :  { %2852 = vmatpush.bf16.msra.mxu0 %v6535_v20 }
 0x447   :  { %2910 = vmatpush.bf16.msra.mxu2 %v6543_v19  ;;  %2940 = vmatpush.bf16.msrb.mxu3 %v6531_v11  ;;  %v6728_v11 = vld [vmem:[%s12482_s5 + $0xe0] sm:$0xf] }
 0x448   :  { %v6729_v25 = vor.u32 %v8026_v32, %v6728_v11  ;;  %v331_v11 = vadd.f32 %v9182_v21, %v8975_v38  ;;  %v8009_v38 = vld [vmem:[%s12482_s5 + $0x6c] sm:$0xf]  ;;  %v6674_v21 = vld [vmem:[%s12482_s5 + $0x78] sm:$0xf0] }
 0x44b   :  { %2911 = vmatpush.bf16.msra.mxu2 %v6527_v62 }
 0x44f   :  { %2912 = vmatpush.bf16.msra.mxu2 %v6511_v44  ;;  %v8023_v44 = vld [vmem:[%s12482_s5 + $0xd4] sm:$0xf0] }
 0x4ad   :  { %v2289_v50 = vpop.f32.mrf.mxu0  ;;  %v2302_v29 = vpop.f32.mrf.mxu1 }
 0x4ae   :  { %v2332_v57 = vadd.f32 %v2289_v50, %v8953_v26  ;;  %v2333_v37 = vadd.f32 %v2302_v29, %v9129_v45  ;;  %v7974_v26 = vld [vmem:[%s12481_s4 + $0x4c] sm:$0xf0]  ;;  %v7972_v45 = vld [vmem:[%s12481_s4 + $0x44] sm:$0xf]  ;;  %v6488_v50 = vld [vmem:[%s12481_s4 + $0x10] sm:$0xf0] }
 0x4af   :  { %v6519_v54 = vor.u32 %v7974_v26, %v6518_v63  ;;  %v6523_v47 = vor.u32 %v7972_v45, %v6520_v52  ;;  %v7967_v29 = vld [vmem:[%s12481_s4 + $0x14] sm:$0xf0]  ;;  %v6499_v63 = vor.u32 %v7965_v61, %v6496_v46  ;;  %v6698_v61 = vld [vmem:[%s12482_s5 + $0xb0] sm:$0xf0]  ;;  %v6704_v46 = vld [vmem:[%s12482_s5 + $0xa8] sm:$0xf] }
 0x4b0   :  { %v2336_v31 = vmul.f32 0.5, %v2332_v57  ;;  %v2340_v3 = vmul.f32 0.5, %v2333_v37  ;;  %v6487_v57 = vor.u32 %v7966_v28, %v6486_v5  ;;  %v6491_v37 = vor.u32 %v7964_v49, %v6488_v50  ;;  %v8020_v5 = vld [vmem:[%s12482_s5 + $0xc4] sm:$0xf]  ;;  %v8021_v28 = vld [vmem:[%s12482_s5 + $0xcc] sm:$0xf] }
 0x4b1   :  { %2853 = vmatpush.bf16.msra.mxu0 %v6519_v54  ;;  %2882 = vmatpush.bf16.msra.mxu1 %v6523_v47  ;;  %v6722_v50 = vld [vmem:[%s12482_s5 + $0xd8] sm:$0xf0] }
 0x4b2   :  { %8329 = vtanh.f32 %v2336_v31 }
 0x4b3   :  { %8331 = vtanh.f32 %v2340_v3 }
 0x4b4   :  { %v2315_v23 = vpop.f32.mrf.mxu2  ;;  %v2328_v15 = vpop.f32.mrf.mxu3 }
 0x4b5   :  { %v2334_v34 = vadd.f32 %v2315_v23, %v9171_v9  ;;  %v2335_v27 = vadd.f32 %v2328_v15, %v8988_v13  ;;  %v2291_v40 = vpop.f32.mrf.mxu0  ;;  %v2304_v43 = vpop.f32.mrf.mxu1  ;;  %v6515_v9 = vor.u32 %v7969_v16, %v6512_v14  ;;  %v6494_v13 = vld [vmem:[%s12481_s4 + $0x8] sm:$0xf]  ;;  %2854 = vmatpush.bf16.msra.mxu0 %v6503_v41  ;;  %2883 = vmatpush.bf16.msra.mxu1 %v6507_v36  ;;  %v8025_v23 = vld [vmem:[%s12482_s5 + $0xec] sm:$0xf]  ;;  %v6738_v15 = vld [vmem:[%s12482_s5 + $0xf8] sm:$0xf0] }
 0x4b6   :  { %v6495_v60 = vor.u32 %v7967_v29, %v6494_v13  ;;  %v6712_v41 = vld [vmem:[%s12482_s5 + $0xc0] sm:$0xf]  ;;  %v6741_v36 = vor.u32 %v8025_v23, %v6738_v15  ;;  %v8022_v14 = vld [vmem:[%s12482_s5 + $0xcc] sm:$0xf0]  ;;  %v6720_v43 = vld [vmem:[%s12482_s5 + $0xc8] sm:$0xf]  ;;  %v6725_v29 = vor.u32 %v8021_v28, %v6722_v50  ;;  %v6677_v15 = vor.u32 %v8009_v38, %v6674_v21 }
 0x4b7   :  { %8333 = vtanh.f32 %v2334_v34  ;;  %v2345_v20 = vmul.f32 0.5, %v2335_v27  ;;  %2941 = vmatpush.bf16.msrb.mxu3 %v6515_v9  ;;  %v6714_v34 = vld [vmem:[%s12482_s5 + $0xd0] sm:$0xf0]  ;;  %v6713_v27 = vor.u32 %v8022_v14, %v6712_v41  ;;  %v6721_v49 = vor.u32 %v8023_v44, %v6720_v43  ;;  %v6696_v9 = vld [vmem:[%s12482_s5 + $0xa0] sm:$0xf] }
 0x4b8   :  { %v8330_v56 = vpop.eup %8329  ;;  %2913 = vmatpush.bf16.msra.mxu2 %v6495_v60  ;;  %v6717_v40 = vor.u32 %v8020_v5, %v6714_v34  ;;  %v8018_v13 = vld [vmem:[%s12482_s5 + $0xac] sm:$0xf0]  ;;  %v2644_v60 = vpack.c.bf16 %v10352_v53, %v10048_v22  ;;  %v8012_v53 = vld [vmem:[%s12482_s5 + $0x84] sm:$0xf]  ;;  %v6650_v14 = vld [vmem:[%s12482_s5 + $0x50] sm:$0xf0] }
 0x4b9   :  { %v8332_v59 = vpop.eup %8331  ;;  %v2338_v19 = vmul.f32 0.5, %v8330_v56  ;;  %8335 = vtanh.f32 %v2345_v20  ;;  %2855 = vmatpush.bf16.msra.mxu0 %v6487_v57  ;;  %2884 = vmatpush.bf16.msra.mxu1 %v6491_v37  ;;  %v8016_v20 = vld [vmem:[%s12482_s5 + $0xa4] sm:$0xf]  ;;  %v6697_v56 = vor.u32 %v8018_v13, %v6696_v9  ;;  %v8019_v57 = vld [vmem:[%s12482_s5 + $0xb4] sm:$0xf0] }
 0x4ba   :  { %v2342_v48 = vmul.f32 0.5, %v8332_v59  ;;  %v6701_v37 = vor.u32 %v8016_v20, %v6698_v61  ;;  %v6705_v59 = vor.u32 %v8019_v57, %v6704_v46  ;;  %v8014_v22 = vld [vmem:[%s12482_s5 + $0x8c] sm:$0xf0]  ;;  %v8005_v43 = vld [vmem:[%s12482_s5 + $0x4c] sm:$0xf]  ;;  %v389_v46 = vadd.f32 %v9003_v51, %v8950_v24 }
 0x4bb   :  { %v2339_v1 = vadd.f32 0.5, %v2338_v19  ;;  %2942 = vmatpush.bf16.msrb.mxu3 %v6499_v63  ;;  %v2643_v19 = vpack.c.bf16 %v9844_v12, %v9636_v55  ;;  %v6706_v63 = vld [vmem:[%s12482_s5 + $0xb8] sm:$0xf0]  ;;  %v6680_v12 = vld [vmem:[%s12482_s5 + $0x80] sm:$0xf] }
 0x4bc   :  { %v2343_v26 = vadd.f32 0.5, %v2342_v48  ;;  %v2317_v45 = vpop.f32.mrf.mxu2  ;;  %v2330_v52 = vpop.f32.mrf.mxu3  ;;  %v8017_v48 = vld [vmem:[%s12482_s5 + $0xac] sm:$0xf]  ;;  %v8006_v41 = vld [vmem:[%s12482_s5 + $0x4c] sm:$0xf0] }
 0x4bd   :  { %v8334_v31 = vpop.eup %8333  ;;  %v6709_v55 = vor.u32 %v8017_v48, %v6706_v63  ;;  %v6688_v45 = vld [vmem:[%s12482_s5 + $0x88] sm:$0xf]  ;;  %v8015_v52 = vld [vmem:[%s12482_s5 + $0x94] sm:$0xf0]  ;;  %v6658_v50 = vld [vmem:[%s12482_s5 + $0x58] sm:$0xf0] }
 0x4be   :  { %v2349_v3 = vmul.f32 %v2343_v26, %v10349_v18  ;;  %v2350_v54 = vmul.f32 %v8334_v31, %v2339_v1  ;;  %v2642_v18 = vpack.c.bf16 %v9432_v2, %v9224_v58  ;;  %v6730_v58 = vld [vmem:[%s12482_s5 + $0xf0] sm:$0xf0]  ;;  %v6736_v2 = vld [vmem:[%s12482_s5 + $0xe8] sm:$0xf]  ;;  %v6681_v1 = vor.u32 %v8014_v22, %v6680_v12  ;;  %v6632_v9 = vld [vmem:[%s12482_s5 + $0x20] sm:$0xf] }
 0x4bf   :  { %v8336_v47 = vpop.eup %8335  ;;  %v6733_v39 = vor.u32 %v8024_v33, %v6730_v58  ;;  %v6737_v16 = vor.u32 %v8027_v35, %v6736_v2  ;;  %v6682_v26 = vld [vmem:[%s12482_s5 + $0x90] sm:$0xf0]  ;;  %v8011_v58 = vld [vmem:[%s12482_s5 + $0x74] sm:$0xf0]  ;;  %v6661_v13 = vor.u32 %v8005_v43, %v6658_v50  ;;  %v8000_v20 = vld [vmem:[%s12482_s5 + $0x24] sm:$0xf] }
 0x4c0   :  { %v10649_v4 = vadd.f32 %v2350_v54, %v2349_v3  ;;  %v2347_v17 = vmul.f32 0.5, %v8336_v47  ;;  %v6685_v31 = vor.u32 %v8012_v53, %v6682_v26  ;;  %v6689_v3 = vor.u32 %v8015_v52, %v6688_v45  ;;  %v8013_v54 = vld [vmem:[%s12482_s5 + $0x8c] sm:$0xf]  ;;  %v6690_v47 = vld [vmem:[%s12482_s5 + $0x98] sm:$0xf0] }
 0x4c1   :  { %v6666_v33 = vld [vmem:[%s12482_s5 + $0x70] sm:$0xf0]  ;;  %v6640_v57 = vld [vmem:[%s12482_s5 + $0x28] sm:$0xf]  ;;  %v7996_v26 = vld [vmem:[%s12482_s5 + $0x4] sm:$0xf] }
 0x4c2   :  { %8337 = vtanh.f32 %v10649_v4  ;;  %v2348_v62 = vadd.f32 0.5, %v2347_v17  ;;  %v6693_v17 = vor.u32 %v8013_v54, %v6690_v47  ;;  %v6634_v61 = vld [vmem:[%s12482_s5 + $0x30] sm:$0xf0] }
 0x4c3   :  { %v6637_v24 = vor.u32 %v8000_v20, %v6634_v61  ;;  %v6618_v52 = vld [vmem:[%s12482_s5 + $0x10] sm:$0xf0] }
 0x4c4   :  { %v6621_v47 = vor.u32 %v7996_v26, %v6618_v52  ;;  %v6848_v52 = vld [vmem:[%s12482_s5 + $0xc8] sm:$0xf] }
 0x4c8   :  { %v8338_v6 = vpop.eup %8337 }
 0x4c9   :  { %v10652_v7 = vmul.f32 %v8338_v6, %v2348_v62  ;;  %v6664_v62 = vld [vmem:[%s12482_s5 + $0x60] sm:$0xf]  ;;  %v8010_v6 = vld [vmem:[%s12482_s5 + $0x6c] sm:$0xf0] }
 0x4ca   :  { %v6665_v32 = vor.u32 %v8010_v6, %v6664_v62  ;;  %v7997_v62 = vld [vmem:[%s12482_s5 + $0xc] sm:$0xf]  ;;  %v6626_v6 = vld [vmem:[%s12482_s5 + $0x18] sm:$0xf0] }
 0x4cb   :  { %v2363_v8 = vpack.c.bf16 %v10652_v7, %v10652_v7 }
 0x4cd   :  { %2564 = vmatmul.bf16.vlgmr.msrb.gmra.mxu0 %v2363_v8  ;;  %2577 = vmatmul.bf16.vlgmr.msrb.gmra.mxu1 %v2363_v8 }
 0x4ce   :  { %2590 = vmatmul.bf16.vlgmr.msrb.gmra.mxu2 %v2363_v8  ;;  %2603 = vmatmul.bf16.vlgmr.msra.gmra.mxu3 %v2363_v8  ;;  %v8008_v8 = vld [vmem:[%s12482_s5 + $0x64] sm:$0xf] }
 0x4cf   :  { %3197 = vmatpush.bf16.msrb.mxu0 %v6729_v25  ;;  %3210 = vmatpush.bf16.msrb.mxu1 %v6733_v39  ;;  %v6672_v25 = vld [vmem:[%s12482_s5 + $0x68] sm:$0xf]  ;;  %v6648_v39 = vld [vmem:[%s12482_s5 + $0x40] sm:$0xf] }
 0x4d0   :  { %3223 = vmatpush.bf16.msrb.mxu2 %v6737_v16  ;;  %3236 = vmatpush.bf16.msra.mxu3 %v6741_v36  ;;  %v8004_v36 = vld [vmem:[%s12482_s5 + $0x44] sm:$0xf]  ;;  %v6649_v5 = vor.u32 %v8006_v41, %v6648_v39 }
 0x4d1   :  { %v6653_v34 = vor.u32 %v8004_v36, %v6650_v14 }
 0x4d3   :  { %3198 = vmatpush.bf16.msrb.mxu0 %v6713_v27  ;;  %3211 = vmatpush.bf16.msrb.mxu1 %v6717_v40  ;;  %v6656_v27 = vld [vmem:[%s12482_s5 + $0x48] sm:$0xf]  ;;  %v8007_v40 = vld [vmem:[%s12482_s5 + $0x54] sm:$0xf0] }
 0x4d4   :  { %3224 = vmatpush.bf16.msrb.mxu2 %v6721_v49  ;;  %3237 = vmatpush.bf16.msra.mxu3 %v6725_v29  ;;  %v6657_v49 = vor.u32 %v8007_v40, %v6656_v27  ;;  %v8002_v29 = vld [vmem:[%s12482_s5 + $0x2c] sm:$0xf0] }
 0x4d7   :  { %3199 = vmatpush.bf16.msrb.mxu0 %v6697_v56  ;;  %3212 = vmatpush.bf16.msrb.mxu1 %v6701_v37  ;;  %v6633_v56 = vor.u32 %v8002_v29, %v6632_v9  ;;  %v8003_v37 = vld [vmem:[%s12482_s5 + $0x34] sm:$0xf0] }
 0x4d8   :  { %3225 = vmatpush.bf16.msrb.mxu2 %v6705_v59  ;;  %3238 = vmatpush.bf16.msra.mxu3 %v6709_v55  ;;  %v8001_v59 = vld [vmem:[%s12482_s5 + $0x2c] sm:$0xf]  ;;  %v6641_v51 = vor.u32 %v8003_v37, %v6640_v57  ;;  %v6856_v37 = vld [vmem:[%s12482_s5 + $0xe0] sm:$0xf] }
 0x4db   :  { %3200 = vmatpush.bf16.msrb.mxu0 %v6681_v1  ;;  %3213 = vmatpush.bf16.msrb.mxu1 %v6685_v31  ;;  %v6624_v31 = vld [vmem:[%s12482_s5 + $0x8] sm:$0xf] }
 0x4dc   :  { %3226 = vmatpush.bf16.msrb.mxu2 %v6689_v3  ;;  %3239 = vmatpush.bf16.msra.mxu3 %v6693_v17  ;;  %v7999_v3 = vld [vmem:[%s12482_s5 + $0x14] sm:$0xf0] }
 0x4dd   :  { %2856 = vmatmul.bf16.vlgmr.msra.gmra.mxu0 %v2642_v18  ;;  %2885 = vmatmul.bf16.vlgmr.msra.gmra.mxu1 %v2642_v18  ;;  %v6625_v17 = vor.u32 %v7999_v3, %v6624_v31  ;;  %v8055_v31 = vld [vmem:[%s12482_s5 + $0xd4] sm:$0xf0] }
 0x4de   :  { %2914 = vmatmul.bf16.vlgmr.msra.gmra.mxu2 %v2642_v18  ;;  %2943 = vmatmul.bf16.vlgmr.msrb.gmra.mxu3 %v2642_v18  ;;  %v302_v18 = vadd.f32 %v8960_v30, %v8931_v10  ;;  %v6669_v10 = vor.u32 %v8008_v8, %v6666_v33  ;;  %v6673_v30 = vor.u32 %v8011_v58, %v6672_v25 }
 0x4df   :  { %3201 = vmatpush.bf16.msrb.mxu0 %v6665_v32 }
 0x4e0   :  { %3214 = vmatpush.bf16.msrb.mxu1 %v6669_v10  ;;  %3227 = vmatpush.bf16.msrb.mxu2 %v6673_v30 }
 0x4e1   :  { %3240 = vmatpush.bf16.msra.mxu3 %v6677_v15 }
 0x4e3   :  { %3202 = vmatpush.bf16.msrb.mxu0 %v6649_v5 }
 0x4e4   :  { %3215 = vmatpush.bf16.msrb.mxu1 %v6653_v34  ;;  %3228 = vmatpush.bf16.msrb.mxu2 %v6657_v49 }
 0x4e5   :  { %3241 = vmatpush.bf16.msra.mxu3 %v6661_v13 }
 0x4e7   :  { %3203 = vmatpush.bf16.msrb.mxu0 %v6633_v56 }
 0x4e8   :  { %3216 = vmatpush.bf16.msrb.mxu1 %v6637_v24  ;;  %3229 = vmatpush.bf16.msrb.mxu2 %v6641_v51  ;;  %v6858_v51 = vld [vmem:[%s12482_s5 + $0xf0] sm:$0xf0] }
 0x4ec   :  { %3217 = vmatpush.bf16.msrb.mxu1 %v6621_v47  ;;  %3230 = vmatpush.bf16.msrb.mxu2 %v6625_v17  ;;  %v8053_v47 = vld [vmem:[%s12482_s5 + $0xcc] sm:$0xf]  ;;  %v6850_v17 = vld [vmem:[%s12482_s5 + $0xd8] sm:$0xf0] }
 0x4ed   :  { %2861 = vmatmul.bf16.gmra.mxu0 %v2643_v19  ;;  %2890 = vmatmul.bf16.gmra.mxu1 %v2643_v19 }
 0x4ee   :  { %2919 = vmatmul.bf16.gmra.mxu2 %v2643_v19  ;;  %2948 = vmatmul.bf16.gmra.mxu3 %v2643_v19  ;;  %v360_v19 = vadd.f32 %v9209_v0, %v8982_v42  ;;  %v6616_v42 = vld [vmem:[%s12482_s5] sm:$0xf]  ;;  %v7998_v0 = vld [vmem:[%s12482_s5 + $0xc] sm:$0xf0] }
 0x4ef   :  { %v6617_v45 = vor.u32 %v7998_v0, %v6616_v42  ;;  %v8054_v42 = vld [vmem:[%s12482_s5 + $0xcc] sm:$0xf0]  ;;  %v8052_v0 = vld [vmem:[%s12482_s5 + $0xc4] sm:$0xf] }
 0x4f1   :  { %3204 = vmatpush.bf16.msrb.mxu0 %v6617_v45  ;;  %v6842_v45 = vld [vmem:[%s12482_s5 + $0xd0] sm:$0xf0] }
 0x4f2   :  { %v6845_v3 = vor.u32 %v8052_v0, %v6842_v45 }
 0x4fd   :  { %2866 = vmatmul.bf16.gmra.mxu0 %v2644_v60  ;;  %2895 = vmatmul.bf16.gmra.mxu1 %v2644_v60 }
 0x4fe   :  { %2924 = vmatmul.bf16.gmra.mxu2 %v2644_v60  ;;  %2953 = vmatmul.bf16.gmra.mxu3 %v2644_v60  ;;  %v6642_v60 = vld [vmem:[%s12482_s5 + $0x38] sm:$0xf0] }
 0x4ff   :  { %v6645_v55 = vor.u32 %v8001_v59, %v6642_v60  ;;  %v8058_v59 = vld [vmem:[%s12482_s5 + $0xec] sm:$0xf0]  ;;  %v6864_v60 = vld [vmem:[%s12482_s5 + $0xe8] sm:$0xf] }
 0x500   :  { %v6857_v24 = vor.u32 %v8058_v59, %v6856_v37  ;;  %v8047_v37 = vld [vmem:[%s12482_s5 + $0x94] sm:$0xf0] }
 0x501   :  { %3242 = vmatpush.bf16.msra.mxu3 %v6645_v55 }
 0x502   :  { %3469 = vmatpush.bf16.msra.mxu0 %v6857_v24  ;;  %v8045_v24 = vld [vmem:[%s12482_s5 + $0x8c] sm:$0xf] }
 0x54a   :  { %v2565_v2 = vpop.f32.mrf.mxu0  ;;  %v2578_v35 = vpop.f32.mrf.mxu1 }
 0x54b   :  { %v2608_v16 = vadd.f32 %v2565_v2, %v302_v18  ;;  %v2609_v23 = vadd.f32 %v2578_v35, %v331_v11  ;;  %v6629_v18 = vor.u32 %v7997_v62, %v6626_v6 }
 0x54d   :  { %v2612_v44 = vmul.f32 0.5, %v2608_v16  ;;  %v2616_v28 = vmul.f32 0.5, %v2609_v23  ;;  %3243 = vmatpush.bf16.msra.mxu3 %v6629_v18  ;;  %v6824_v18 = vld [vmem:[%s12482_s5 + $0xa0] sm:$0xf] }
 0x54f   :  { %8339 = vtanh.f32 %v2612_v44 }
 0x550   :  { %8341 = vtanh.f32 %v2616_v28 }
 0x551   :  { %v2591_v48 = vpop.f32.mrf.mxu2  ;;  %v2604_v63 = vpop.f32.mrf.mxu3 }
 0x552   :  { %v2610_v12 = vadd.f32 %v2591_v48, %v360_v19  ;;  %v2611_v22 = vadd.f32 %v2604_v63, %v389_v46  ;;  %v2567_v53 = vpop.f32.mrf.mxu0  ;;  %v2580_v1 = vpop.f32.mrf.mxu1  ;;  %v8056_v19 = vld [vmem:[%s12482_s5 + $0xe4] sm:$0xf]  ;;  %v8059_v48 = vld [vmem:[%s12482_s5 + $0xf4] sm:$0xf0] }
 0x553   :  { %v6861_v63 = vor.u32 %v8056_v19, %v6858_v51  ;;  %v6865_v55 = vor.u32 %v8059_v48, %v6864_v60  ;;  %v6840_v1 = vld [vmem:[%s12482_s5 + $0xc0] sm:$0xf]  ;;  %v6818_v51 = vld [vmem:[%s12482_s5 + $0x98] sm:$0xf0] }
 0x554   :  { %8343 = vtanh.f32 %v2610_v12  ;;  %v2621_v54 = vmul.f32 0.5, %v2611_v22  ;;  %v8057_v12 = vld [vmem:[%s12482_s5 + $0xec] sm:$0xf]  ;;  %v6866_v22 = vld [vmem:[%s12482_s5 + $0xf8] sm:$0xf0]  ;;  %v6841_v26 = vor.u32 %v8054_v42, %v6840_v1  ;;  %v6821_v60 = vor.u32 %v8045_v24, %v6818_v51 }
 0x555   :  { %v8340_v8 = vpop.eup %8339  ;;  %v6869_v53 = vor.u32 %v8057_v12, %v6866_v22  ;;  %3482 = vmatpush.bf16.msra.mxu1 %v6861_v63  ;;  %3495 = vmatpush.bf16.msra.mxu2 %v6865_v55  ;;  %v6792_v48 = vld [vmem:[%s12482_s5 + $0x60] sm:$0xf]  ;;  %v8042_v63 = vld [vmem:[%s12482_s5 + $0x6c] sm:$0xf0]  ;;  %v6794_v1 = vld [vmem:[%s12482_s5 + $0x70] sm:$0xf0] }
 0x556   :  { %v8342_v11 = vpop.eup %8341  ;;  %v2614_v32 = vmul.f32 0.5, %v8340_v8  ;;  %8345 = vtanh.f32 %v2621_v54  ;;  %v6849_v54 = vor.u32 %v8055_v31, %v6848_v52  ;;  %3470 = vmatpush.bf16.msra.mxu0 %v6841_v26  ;;  %v6853_v8 = vor.u32 %v8053_v47, %v6850_v17  ;;  %v6800_v42 = vld [vmem:[%s12482_s5 + $0x68] sm:$0xf]  ;;  %v8043_v52 = vld [vmem:[%s12482_s5 + $0x74] sm:$0xf0] }
 0x557   :  { %v2618_v33 = vmul.f32 0.5, %v8342_v11  ;;  %3508 = vmatpush.bf16.msrb.mxu3 %v6869_v53  ;;  %v8050_v11 = vld [vmem:[%s12482_s5 + $0xac] sm:$0xf0]  ;;  %v6793_v22 = vor.u32 %v8042_v63, %v6792_v48  ;;  %v8040_v53 = vld [vmem:[%s12482_s5 + $0x64] sm:$0xf] }
 0x558   :  { %v2615_v25 = vadd.f32 0.5, %v2614_v32  ;;  %v8048_v32 = vld [vmem:[%s12482_s5 + $0xa4] sm:$0xf]  ;;  %v6797_v45 = vor.u32 %v8040_v53, %v6794_v1  ;;  %v8041_v31 = vld [vmem:[%s12482_s5 + $0x6c] sm:$0xf] }
 0x559   :  { %v2619_v58 = vadd.f32 0.5, %v2618_v33  ;;  %v2593_v2 = vpop.f32.mrf.mxu2  ;;  %v2606_v35 = vpop.f32.mrf.mxu3  ;;  %3483 = vmatpush.bf16.msra.mxu1 %v6845_v3  ;;  %3496 = vmatpush.bf16.msra.mxu2 %v6849_v54  ;;  %v6825_v33 = vor.u32 %v8050_v11, %v6824_v18  ;;  %v6802_v3 = vld [vmem:[%s12482_s5 + $0x78] sm:$0xf0]  ;;  %v6801_v54 = vor.u32 %v8043_v52, %v6800_v42  ;;  %v6776_v17 = vld [vmem:[%s12482_s5 + $0x40] sm:$0xf] }
 0x55a   :  { %v8344_v10 = vpop.eup %8343  ;;  %v10873_v5 = vpop.f32.mrf.mxu0  ;;  %v8051_v2 = vld [vmem:[%s12482_s5 + $0xb4] sm:$0xf0]  ;;  %v6805_v47 = vor.u32 %v8041_v31, %v6802_v3  ;;  %v8036_v18 = vld [vmem:[%s12482_s5 + $0x44] sm:$0xf]  ;;  %v8033_v48 = vld [vmem:[%s12482_s5 + $0x2c] sm:$0xf] }
 0x55b   :  { %v2625_v30 = vmul.f32 %v2619_v58, %v10649_v4  ;;  %v2626_v38 = vmul.f32 %v8344_v10, %v2615_v25  ;;  %v6612_v4 = vld [vmem:[%s12477_s9 + $0x8] sm:$0xff]  ;;  %v10875_v34 = vpop.f32.mrf.mxu1  ;;  %3509 = vmatpush.bf16.msrb.mxu3 %v6853_v8  ;;  %v6826_v25 = vld [vmem:[%s12482_s5 + $0xb0] sm:$0xf0]  ;;  %3471 = vmatpush.bf16.msra.mxu0 %v6825_v33  ;;  %v8038_v8 = vld [vmem:[%s12482_s5 + $0x4c] sm:$0xf0] }
 0x55c   :  { %v8346_v21 = vpop.eup %8345  ;;  %v3004_v14 = vpack.c.bf16 %v6612_v4, %v6612_v4  ;;  %v6832_v58 = vld [vmem:[%s12482_s5 + $0xa8] sm:$0xf]  ;;  %v6810_v4 = vld [vmem:[%s12482_s5 + $0x90] sm:$0xf0]  ;;  %v6777_v11 = vor.u32 %v8038_v8, %v6776_v17  ;;  %v6770_v63 = vld [vmem:[%s12482_s5 + $0x38] sm:$0xf0] }
 0x55d   :  { %v2627_v39 = vadd.f32 %v2626_v38, %v2625_v30  ;;  %v2623_v16 = vmul.f32 0.5, %v8346_v21  ;;  %v6829_v30 = vor.u32 %v8048_v32, %v6826_v25  ;;  %v6833_v38 = vor.u32 %v8051_v2, %v6832_v58  ;;  %v8049_v21 = vld [vmem:[%s12482_s5 + $0xac] sm:$0xf]  ;;  %v6778_v32 = vld [vmem:[%s12482_s5 + $0x50] sm:$0xf0] }
 0x55e   :  { %v6784_v33 = vld [vmem:[%s12482_s5 + $0x48] sm:$0xf]  ;;  %v8039_v25 = vld [vmem:[%s12482_s5 + $0x54] sm:$0xf0]  ;;  %v6781_v58 = vor.u32 %v8036_v18, %v6778_v32  ;;  %v6773_v1 = vor.u32 %v8033_v48, %v6770_v63  ;;  %v6744_v42 = vld [vmem:[%s12482_s5] sm:$0xf] }
 0x55f   :  { %8347 = vtanh.f32 %v2627_v39  ;;  %2633 = vst [vmem:[%s12483_s13] sm:$0xff] %v2627_v39  ;;  %v2624_v23 = vadd.f32 0.5, %v2623_v16  ;;  %v6834_v39 = vld [vmem:[%s12482_s5 + $0xb8] sm:$0xf0]  ;;  %3484 = vmatpush.bf16.msra.mxu1 %v6829_v30  ;;  %3497 = vmatpush.bf16.msra.mxu2 %v6833_v38  ;;  %v6785_v2 = vor.u32 %v8039_v25, %v6784_v33  ;;  %v8037_v30 = vld [vmem:[%s12482_s5 + $0x4c] sm:$0xf] }
 0x560   :  { %v6837_v16 = vor.u32 %v8049_v21, %v6834_v39  ;;  %v6786_v38 = vld [vmem:[%s12482_s5 + $0x58] sm:$0xf0]  ;;  %v2678_v21 = vld [vmem:[%s12485_s6] sm:$0xf]  ;;  %v8028_v52 = vld [vmem:[%s12482_s5 + $0x4] sm:$0xf] }
 0x561   :  { %v10877_v27 = vpop.f32.mrf.mxu2  ;;  %v6789_v39 = vor.u32 %v8037_v30, %v6786_v38  ;;  %v11106_v53 = vperm.slane %v2678_v21, 1  ;;  %v6746_v3 = vld [vmem:[%s12482_s5 + $0x10] sm:$0xf0]  ;;  %v8029_v18 = vld [vmem:[%s12482_s5 + $0xc] sm:$0xf] }
 0x562   :  { %v10881_v40 = vpop.f32.mrf.mxu0  ;;  %3510 = vmatpush.bf16.msrb.mxu3 %v6837_v16  ;;  %v6760_v16 = vld [vmem:[%s12482_s5 + $0x20] sm:$0xf]  ;;  %v6749_v17 = vor.u32 %v8028_v52, %v6746_v3 }
 0x563   :  { %v10883_v43 = vpop.f32.mrf.mxu1  ;;  %v2887_v25 = vadd.f32 %v10875_v34, %v11106_v53 }
 0x565   :  { %v8348_v15 = vpop.eup %8347 }
 0x566   :  { %v2629_v41 = vmul.f32 %v8348_v15, %v2624_v23  ;;  %v6808_v23 = vld [vmem:[%s12482_s5 + $0x80] sm:$0xf]  ;;  %v8046_v15 = vld [vmem:[%s12482_s5 + $0x8c] sm:$0xf0]  ;;  %3511 = vmatpush.bf16.msrb.mxu3 %v6821_v60 }
 0x568   :  { %2632 = vst [vmem:[%s12484_s12] sm:$0xff] %v2629_v41  ;;  %v2645_v36 = vpack.c.bf16 %v2629_v41, %v10652_v7  ;;  %v10879_v7 = vpop.f32.mrf.mxu3  ;;  %v8044_v41 = vld [vmem:[%s12482_s5 + $0x84] sm:$0xf] }
 0x569   :  { %v10885_v44 = vpop.f32.mrf.mxu2  ;;  %v6813_v59 = vor.u32 %v8044_v41, %v6810_v4 }
 0x56a   :  { %2871 = vmatmul.bf16.gmra.mxu0 %v2645_v36  ;;  %2900 = vmatmul.bf16.gmra.mxu1 %v2645_v36  ;;  %v10889_v49 = vpop.f32.mrf.mxu0 }
 0x56b   :  { %2929 = vmatmul.bf16.gmra.mxu2 %v2645_v36  ;;  %2958 = vmatmul.bf16.gmra.mxu3 %v2645_v36  ;;  %v10891_v50 = vpop.f32.mrf.mxu1  ;;  %v6809_v36 = vor.u32 %v8046_v15, %v6808_v23  ;;  %v8034_v23 = vld [vmem:[%s12482_s5 + $0x2c] sm:$0xf0]  ;;  %v8032_v15 = vld [vmem:[%s12482_s5 + $0x24] sm:$0xf] }
 0x56c   :  { %3485 = vmatpush.bf16.msra.mxu1 %v6813_v59  ;;  %3512 = vmatpush.bf16.msrb.mxu3 %v6805_v47  ;;  %v6761_v4 = vor.u32 %v8034_v23, %v6760_v16  ;;  %v8035_v59 = vld [vmem:[%s12482_s5 + $0x34] sm:$0xf0]  ;;  %v11140_v23 = vperm.slane %v2678_v21, 2 }
 0x56d   :  { %3472 = vmatpush.bf16.msra.mxu0 %v6809_v36  ;;  %v8031_v47 = vld [vmem:[%s12482_s5 + $0x14] sm:$0xf0] }
 0x570   :  { %v10887_v28 = vpop.f32.mrf.mxu3  ;;  %3486 = vmatpush.bf16.msra.mxu1 %v6797_v45  ;;  %3513 = vmatpush.bf16.msrb.mxu3 %v6789_v39  ;;  %v8030_v45 = vld [vmem:[%s12482_s5 + $0xc] sm:$0xf0] }
 0x571   :  { %v10893_v9 = vpop.f32.mrf.mxu2  ;;  %3473 = vmatpush.bf16.msra.mxu0 %v6793_v22  ;;  %v11104_v22 = vperm.slane %v2678_v21, 0  ;;  %v6745_v31 = vor.u32 %v8030_v45, %v6744_v42 }
 0x572   :  { %v10897_v29 = vpop.f32.mrf.mxu0 }
 0x573   :  { %v10899_v20 = vpop.f32.mrf.mxu1  ;;  %v2858_v33 = vadd.f32 %v10873_v5, %v11104_v22  ;;  %v2916_v5 = vadd.f32 %v10877_v27, %v11140_v23  ;;  %v6613_v27 = vld [vmem:[%s12480_s10 + $0x8] sm:$0xff] }
 0x574   :  { %3487 = vmatpush.bf16.msra.mxu1 %v6781_v58  ;;  %3514 = vmatpush.bf16.msrb.mxu3 %v6773_v1 }
 0x575   :  { %3474 = vmatpush.bf16.msra.mxu0 %v6777_v11  ;;  %v6754_v11 = vld [vmem:[%s12482_s5 + $0x18] sm:$0xf0] }
 0x576   :  { %v6757_v32 = vor.u32 %v8029_v18, %v6754_v11 }
 0x578   :  { %v10895_v13 = vpop.f32.mrf.mxu3  ;;  %3515 = vmatpush.bf16.msrb.mxu3 %v6757_v32 }
 0x579   :  { %v10901_v61 = vpop.f32.mrf.mxu2  ;;  %3475 = vmatpush.bf16.msra.mxu0 %v6761_v4 }
 0x57a   :  { %3205 = vmatmul.bf16.vlgmr.msrb.gmra.mxu0 %v3004_v14  ;;  %3218 = vmatmul.bf16.vlgmr.msrb.gmra.mxu1 %v3004_v14  ;;  %v10905_v56 = vpop.f32.mrf.mxu0 }
 0x57b   :  { %3231 = vmatmul.bf16.vlgmr.msrb.gmra.mxu2 %v3004_v14  ;;  %3244 = vmatmul.bf16.vlgmr.msra.gmra.mxu3 %v3004_v14  ;;  %v10907_v57 = vpop.f32.mrf.mxu1  ;;  %v6816_v14 = vld [vmem:[%s12482_s5 + $0x88] sm:$0xf] }
 0x57c   :  { %v6817_v19 = vor.u32 %v8047_v37, %v6816_v14  ;;  %v6762_v14 = vld [vmem:[%s12482_s5 + $0x30] sm:$0xf0]  ;;  %v6768_v37 = vld [vmem:[%s12482_s5 + $0x28] sm:$0xf] }
 0x57d   :  { %v6765_v51 = vor.u32 %v8032_v15, %v6762_v14  ;;  %v6769_v60 = vor.u32 %v8035_v59, %v6768_v37  ;;  %3476 = vmatpush.bf16.msra.mxu0 %v6745_v31  ;;  %v11142_v15 = vperm.slane %v2678_v21, 3 }
 0x57e   :  { %3498 = vmatpush.bf16.msra.mxu2 %v6817_v19 }
 0x57f   :  { %3488 = vmatpush.bf16.msra.mxu1 %v6765_v51  ;;  %v2945_v34 = vadd.f32 %v10879_v7, %v11142_v15 }
 0x580   :  { %v10903_v46 = vpop.f32.mrf.mxu3 }
 0x581   :  { %v10957_v62 = vpop.f32.mrf.mxu2 }
 0x582   :  { %v10979_v35 = vpop.f32.mrf.mxu0  ;;  %3499 = vmatpush.bf16.msra.mxu2 %v6801_v54  ;;  %v6752_v54 = vld [vmem:[%s12482_s5 + $0x8] sm:$0xf] }
 0x583   :  { %v10981_v10 = vpop.f32.mrf.mxu1  ;;  %v6753_v8 = vor.u32 %v8031_v47, %v6752_v54  ;;  %3489 = vmatpush.bf16.msra.mxu1 %v6749_v17 }
 0x586   :  { %3500 = vmatpush.bf16.msra.mxu2 %v6785_v2 }
 0x588   :  { %v10959_v6 = vpop.f32.mrf.mxu3 }
 0x589   :  { %v11019_v55 = vpop.f32.mrf.mxu2 }
 0x58a   :  { %3501 = vmatpush.bf16.msra.mxu2 %v6769_v60 }
 0x58e   :  { %3502 = vmatpush.bf16.msra.mxu2 %v6753_v8 }
 0x590   :  { %v11021_v12 = vpop.f32.mrf.mxu3 }
 0x5e7   :  { %v11032_v0 = vpop.f32.mrf.mxu0  ;;  %v11034_v26 = vpop.f32.mrf.mxu1 }
 0x5ee   :  { %v11081_v41 = vpop.f32.mrf.mxu2  ;;  %v11083_v36 = vpop.f32.mrf.mxu3 }
 0x5ef   :  { %v11094_v19 = vpop.f32.mrf.mxu0  ;;  %v11096_v24 = vpop.f32.mrf.mxu1 }
 0x5f6   :  { %v11136_v58 = vpop.f32.mrf.mxu2  ;;  %v11138_v2 = vpop.f32.mrf.mxu3 }
 0x5f7   :  { %v3206_v30 = vpop.f32.mrf.mxu0  ;;  %v3219_v38 = vpop.f32.mrf.mxu1 }
 0x5f8   :  { %v3249_v39 = vadd.f32 %v3206_v30, %v2858_v33  ;;  %v3250_v16 = vadd.f32 %v3219_v38, %v2887_v25 }
 0x5fa   :  { %v3253_v4 = vmul.f32 0.5, %v3249_v39  ;;  %v3257_v14 = vmul.f32 0.5, %v3250_v16  ;;  %v6984_v39 = vld [vmem:[%s12482_s5 + $0xe0] sm:$0xf]  ;;  %v8090_v16 = vld [vmem:[%s12482_s5 + $0xec] sm:$0xf0] }
 0x5fc   :  { %8349 = vtanh.f32 %v3253_v4  ;;  %v8088_v4 = vld [vmem:[%s12482_s5 + $0xe4] sm:$0xf] }
 0x5fd   :  { %8351 = vtanh.f32 %v3257_v14  ;;  %v6985_v14 = vor.u32 %v8090_v16, %v6984_v39  ;;  %v8083_v39 = vld [vmem:[%s12482_s5 + $0xb4] sm:$0xf0] }
 0x5fe   :  { %v3232_v37 = vpop.f32.mrf.mxu2  ;;  %v3245_v59 = vpop.f32.mrf.mxu3 }
 0x5ff   :  { %v3251_v51 = vadd.f32 %v3232_v37, %v2916_v5  ;;  %v3252_v60 = vadd.f32 %v3245_v59, %v2945_v34  ;;  %v3208_v48 = vpop.f32.mrf.mxu0  ;;  %v3221_v63 = vpop.f32.mrf.mxu1  ;;  %v6986_v5 = vld [vmem:[%s12482_s5 + $0xf0] sm:$0xf0]  ;;  %v6992_v34 = vld [vmem:[%s12482_s5 + $0xe8] sm:$0xf]  ;;  %v8091_v37 = vld [vmem:[%s12482_s5 + $0xf4] sm:$0xf0]  ;;  %3741 = vmatpush.bf16.msrb.mxu0 %v6985_v14 }
 0x600   :  { %v6989_v59 = vor.u32 %v8088_v4, %v6986_v5  ;;  %v6994_v48 = vld [vmem:[%s12482_s5 + $0xf8] sm:$0xf0]  ;;  %v8081_v14 = vld [vmem:[%s12482_s5 + $0xac] sm:$0xf] }
 0x601   :  { %8353 = vtanh.f32 %v3251_v51  ;;  %v3262_v1 = vmul.f32 0.5, %v3252_v60  ;;  %v6993_v51 = vor.u32 %v8091_v37, %v6992_v34  ;;  %v8089_v60 = vld [vmem:[%s12482_s5 + $0xec] sm:$0xf]  ;;  %v6962_v5 = vld [vmem:[%s12482_s5 + $0xb8] sm:$0xf0] }
 0x602   :  { %v8350_v21 = vpop.eup %8349  ;;  %v6997_v63 = vor.u32 %v8089_v60, %v6994_v48  ;;  %3754 = vmatpush.bf16.msrb.mxu1 %v6989_v59  ;;  %v6965_v34 = vor.u32 %v8081_v14, %v6962_v5  ;;  %v6936_v37 = vld [vmem:[%s12482_s5 + $0x80] sm:$0xf]  ;;  %v8078_v59 = vld [vmem:[%s12482_s5 + $0x8c] sm:$0xf0]  ;;  %v6938_v48 = vld [vmem:[%s12482_s5 + $0x90] sm:$0xf0] }
 0x603   :  { %v8352_v42 = vpop.eup %8351  ;;  %v3255_v45 = vmul.f32 0.5, %v8350_v21  ;;  %8355 = vtanh.f32 %v3262_v1  ;;  %3767 = vmatpush.bf16.msrb.mxu2 %v6993_v51  ;;  %v6968_v1 = vld [vmem:[%s12482_s5 + $0xc0] sm:$0xf]  ;;  %v8086_v21 = vld [vmem:[%s12482_s5 + $0xcc] sm:$0xf0]  ;;  %v6937_v60 = vor.u32 %v8078_v59, %v6936_v37 }
 0x604   :  { %v3259_v52 = vmul.f32 0.5, %v8352_v42  ;;  %v8084_v42 = vld [vmem:[%s12482_s5 + $0xc4] sm:$0xf]  ;;  %3780 = vmatpush.bf16.msra.mxu3 %v6997_v63  ;;  %v6944_v63 = vld [vmem:[%s12482_s5 + $0x88] sm:$0xf] }
 0x605   :  { %v3256_v31 = vadd.f32 0.5, %v3255_v45  ;;  %v6969_v45 = vor.u32 %v8086_v21, %v6968_v1  ;;  %v8076_v51 = vld [vmem:[%s12482_s5 + $0x84] sm:$0xf]  ;;  %v8079_v1 = vld [vmem:[%s12482_s5 + $0x94] sm:$0xf0] }
 0x606   :  { %v3260_v7 = vadd.f32 0.5, %v3259_v52  ;;  %v3234_v3 = vpop.f32.mrf.mxu2  ;;  %v3247_v54 = vpop.f32.mrf.mxu3  ;;  %v6970_v52 = vld [vmem:[%s12482_s5 + $0xd0] sm:$0xf0]  ;;  %v6941_v21 = vor.u32 %v8076_v51, %v6938_v48  ;;  %v8071_v37 = vld [vmem:[%s12482_s5 + $0x54] sm:$0xf0] }
 0x607   :  { %v8354_v47 = vpop.eup %8353  ;;  %v8085_v54 = vld [vmem:[%s12482_s5 + $0xcc] sm:$0xf]  ;;  %3742 = vmatpush.bf16.msrb.mxu0 %v6969_v45  ;;  %v6906_v5 = vld [vmem:[%s12482_s5 + $0x50] sm:$0xf0]  ;;  %v6914_v48 = vld [vmem:[%s12482_s5 + $0x58] sm:$0xf0] }
 0x608   :  { %v3266_v17 = vmul.f32 %v6613_v27, %v3260_v7  ;;  %v3267_v8 = vmul.f32 %v8354_v47, %v3256_v31  ;;  %v6976_v31 = vld [vmem:[%s12482_s5 + $0xc8] sm:$0xf]  ;;  %v8087_v27 = vld [vmem:[%s12482_s5 + $0xd4] sm:$0xf0]  ;;  %v6973_v7 = vor.u32 %v8084_v42, %v6970_v52  ;;  %v6978_v47 = vld [vmem:[%s12482_s5 + $0xd8] sm:$0xf0]  ;;  %v6945_v42 = vor.u32 %v8079_v1, %v6944_v63 }
 0x609   :  { %v8356_v18 = vpop.eup %8355  ;;  %v6977_v3 = vor.u32 %v8087_v27, %v6976_v31  ;;  %v8077_v45 = vld [vmem:[%s12482_s5 + $0x8c] sm:$0xf]  ;;  %v6946_v52 = vld [vmem:[%s12482_s5 + $0x98] sm:$0xf0]  ;;  %v6920_v27 = vld [vmem:[%s12482_s5 + $0x60] sm:$0xf] }
 0x60a   :  { %v11151_v11 = vadd.f32 %v3267_v8, %v3266_v17  ;;  %v3264_v32 = vmul.f32 0.5, %v8356_v18  ;;  %v6981_v17 = vor.u32 %v8085_v54, %v6978_v47  ;;  %3755 = vmatpush.bf16.msrb.mxu1 %v6973_v7  ;;  %v6952_v8 = vld [vmem:[%s12482_s5 + $0xa0] sm:$0xf]  ;;  %v8082_v18 = vld [vmem:[%s12482_s5 + $0xac] sm:$0xf0]  ;;  %v6949_v31 = vor.u32 %v8077_v45, %v6946_v52 }
 0x60b   :  { %3768 = vmatpush.bf16.msrb.mxu2 %v6977_v3  ;;  %v8074_v7 = vld [vmem:[%s12482_s5 + $0x6c] sm:$0xf0]  ;;  %v8072_v3 = vld [vmem:[%s12482_s5 + $0x64] sm:$0xf]  ;;  %v6922_v47 = vld [vmem:[%s12482_s5 + $0x70] sm:$0xf0] }
 0x60c   :  { %8357 = vtanh.f32 %v11151_v11  ;;  %v3265_v33 = vadd.f32 0.5, %v3264_v32  ;;  %v8080_v32 = vld [vmem:[%s12482_s5 + $0xa4] sm:$0xf]  ;;  %3781 = vmatpush.bf16.msra.mxu3 %v6981_v17  ;;  %v6921_v54 = vor.u32 %v8074_v7, %v6920_v27  ;;  %v6928_v17 = vld [vmem:[%s12482_s5 + $0x68] sm:$0xf] }
 0x60d   :  { %v6888_v1 = vld [vmem:[%s12482_s5 + $0x20] sm:$0xf]  ;;  %v6890_v52 = vld [vmem:[%s12482_s5 + $0x30] sm:$0xf0]  ;;  %v8067_v27 = vld [vmem:[%s12482_s5 + $0x34] sm:$0xf0] }
 0x610   :  { %3782 = vmatpush.bf16.msra.mxu3 %v6965_v34  ;;  %v6912_v34 = vld [vmem:[%s12482_s5 + $0x48] sm:$0xf] }
 0x611   :  { %v6913_v51 = vor.u32 %v8071_v37, %v6912_v34  ;;  %v2860_v37 = vadd.f32 %v10881_v40, %v11104_v22 }
 0x612   :  { %v8358_v25 = vpop.eup %8357 }
 0x613   :  { %v11154_v30 = vmul.f32 %v8358_v25, %v3265_v33  ;;  %v6953_v33 = vor.u32 %v8082_v18, %v6952_v8  ;;  %v6954_v25 = vld [vmem:[%s12482_s5 + $0xb0] sm:$0xf0]  ;;  %v8075_v8 = vld [vmem:[%s12482_s5 + $0x74] sm:$0xf0]  ;;  %v6925_v18 = vor.u32 %v8072_v3, %v6922_v47  ;;  %v6898_v47 = vld [vmem:[%s12482_s5 + $0x38] sm:$0xf0] }
 0x614   :  { %v6957_v16 = vor.u32 %v8080_v32, %v6954_v25  ;;  %3783 = vmatpush.bf16.msra.mxu3 %v6949_v31  ;;  %v6929_v32 = vor.u32 %v8075_v8, %v6928_v17  ;;  %v6930_v25 = vld [vmem:[%s12482_s5 + $0x78] sm:$0xf0]  ;;  %v6896_v31 = vld [vmem:[%s12482_s5 + $0x28] sm:$0xf]  ;;  %v6872_v8 = vld [vmem:[%s12482_s5] sm:$0xf] }
 0x615   :  { %v3276_v38 = vpack.c.bf16 %v11154_v30, %v11154_v30  ;;  %3743 = vmatpush.bf16.msrb.mxu0 %v6953_v33  ;;  %v8073_v33 = vld [vmem:[%s12482_s5 + $0x6c] sm:$0xf]  ;;  %v6897_v3 = vor.u32 %v8067_v27, %v6896_v31 }
 0x616   :  { %3756 = vmatpush.bf16.msrb.mxu1 %v6957_v16  ;;  %v8070_v16 = vld [vmem:[%s12482_s5 + $0x4c] sm:$0xf0] }
 0x617   :  { %3477 = vmatmul.bf16.vlgmr.msra.gmra.mxu0 %v3276_v38  ;;  %3490 = vmatmul.bf16.vlgmr.msra.gmra.mxu1 %v3276_v38 }
 0x618   :  { %3503 = vmatmul.bf16.vlgmr.msra.gmra.mxu2 %v3276_v38  ;;  %3516 = vmatmul.bf16.vlgmr.msrb.gmra.mxu3 %v3276_v38  ;;  %v6960_v38 = vld [vmem:[%s12482_s5 + $0xa8] sm:$0xf] }
 0x619   :  { %v6961_v4 = vor.u32 %v8083_v39, %v6960_v38  ;;  %3744 = vmatpush.bf16.msrb.mxu0 %v6937_v60  ;;  %v6933_v38 = vor.u32 %v8073_v33, %v6930_v25  ;;  %v6904_v39 = vld [vmem:[%s12482_s5 + $0x40] sm:$0xf]  ;;  %v8069_v60 = vld [vmem:[%s12482_s5 + $0x4c] sm:$0xf]  ;;  %v6874_v25 = vld [vmem:[%s12482_s5 + $0x10] sm:$0xf0] }
 0x61a   :  { %3757 = vmatpush.bf16.msrb.mxu1 %v6941_v21  ;;  %v6905_v14 = vor.u32 %v8070_v16, %v6904_v39  ;;  %v6917_v63 = vor.u32 %v8069_v60, %v6914_v48  ;;  %v8066_v21 = vld [vmem:[%s12482_s5 + $0x2c] sm:$0xf0]  ;;  %v8063_v39 = vld [vmem:[%s12482_s5 + $0x14] sm:$0xf0] }
 0x61b   :  { %3769 = vmatpush.bf16.msrb.mxu2 %v6961_v4  ;;  %v8068_v4 = vld [vmem:[%s12482_s5 + $0x44] sm:$0xf]  ;;  %3784 = vmatpush.bf16.msra.mxu3 %v6933_v38  ;;  %v6889_v45 = vor.u32 %v8066_v21, %v6888_v1  ;;  %v6880_v38 = vld [vmem:[%s12482_s5 + $0x8] sm:$0xf] }
 0x61c   :  { %v6909_v59 = vor.u32 %v8068_v4, %v6906_v5  ;;  %v6881_v4 = vor.u32 %v8063_v39, %v6880_v38  ;;  %v6882_v5 = vld [vmem:[%s12482_s5 + $0x18] sm:$0xf0] }
 0x61d   :  { %3745 = vmatpush.bf16.msrb.mxu0 %v6921_v54  ;;  %v8065_v54 = vld [vmem:[%s12482_s5 + $0x2c] sm:$0xf] }
 0x61e   :  { %3758 = vmatpush.bf16.msrb.mxu1 %v6925_v18  ;;  %v6901_v17 = vor.u32 %v8065_v54, %v6898_v47  ;;  %v8062_v18 = vld [vmem:[%s12482_s5 + $0xc] sm:$0xf0] }
 0x61f   :  { %3770 = vmatpush.bf16.msrb.mxu2 %v6945_v42  ;;  %v8064_v42 = vld [vmem:[%s12482_s5 + $0x24] sm:$0xf]  ;;  %3785 = vmatpush.bf16.msra.mxu3 %v6917_v63  ;;  %v6873_v33 = vor.u32 %v8062_v18, %v6872_v8 }
 0x620   :  { %v6893_v7 = vor.u32 %v8064_v42, %v6890_v52  ;;  %v2918_v42 = vadd.f32 %v10885_v44, %v11140_v23 }
 0x621   :  { %3746 = vmatpush.bf16.msrb.mxu0 %v6905_v14  ;;  %v8061_v14 = vld [vmem:[%s12482_s5 + $0xc] sm:$0xf] }
 0x622   :  { %3759 = vmatpush.bf16.msrb.mxu1 %v6909_v59  ;;  %v6885_v34 = vor.u32 %v8061_v14, %v6882_v5  ;;  %v2889_v59 = vadd.f32 %v10883_v43, %v11106_v53 }
 0x623   :  { %3771 = vmatpush.bf16.msrb.mxu2 %v6929_v32  ;;  %v8060_v32 = vld [vmem:[%s12482_s5 + $0x4] sm:$0xf]  ;;  %3786 = vmatpush.bf16.msra.mxu3 %v6901_v17 }
 0x624   :  { %v6877_v16 = vor.u32 %v8060_v32, %v6874_v25 }
 0x625   :  { %3747 = vmatpush.bf16.msrb.mxu0 %v6889_v45  ;;  %v2947_v45 = vadd.f32 %v10887_v28, %v11142_v15 }
 0x626   :  { %3760 = vmatpush.bf16.msrb.mxu1 %v6893_v7 }
 0x627   :  { %3772 = vmatpush.bf16.msrb.mxu2 %v6913_v51  ;;  %3787 = vmatpush.bf16.msra.mxu3 %v6885_v34 }
 0x629   :  { %3748 = vmatpush.bf16.msrb.mxu0 %v6873_v33 }
 0x62a   :  { %3761 = vmatpush.bf16.msrb.mxu1 %v6877_v16 }
 0x62b   :  { %3773 = vmatpush.bf16.msrb.mxu2 %v6897_v3 }
 0x62f   :  { %3774 = vmatpush.bf16.msrb.mxu2 %v6881_v4 }
 0x694   :  { %v3478_v51 = vpop.f32.mrf.mxu0  ;;  %v3491_v60 = vpop.f32.mrf.mxu1 }
 0x695   :  { %v3521_v48 = vadd.f32 %v3478_v51, %v2860_v37  ;;  %v3522_v63 = vadd.f32 %v3491_v60, %v2889_v59  ;;  %v8122_v59 = vld [vmem:[%s12482_s5 + $0xec] sm:$0xf0]  ;;  %v8120_v51 = vld [vmem:[%s12482_s5 + $0xe4] sm:$0xf] }
 0x697   :  { %v3525_v1 = vmul.f32 0.5, %v3521_v48  ;;  %v3529_v21 = vmul.f32 0.5, %v3522_v63  ;;  %v7114_v48 = vld [vmem:[%s12482_s5 + $0xf0] sm:$0xf0]  ;;  %v7120_v63 = vld [vmem:[%s12482_s5 + $0xe8] sm:$0xf] }
 0x699   :  { %8359 = vtanh.f32 %v3525_v1  ;;  %v8123_v1 = vld [vmem:[%s12482_s5 + $0xf4] sm:$0xf0] }
 0x69a   :  { %8361 = vtanh.f32 %v3529_v21  ;;  %v7117_v21 = vor.u32 %v8120_v51, %v7114_v48  ;;  %v8110_v48 = vld [vmem:[%s12482_s5 + $0x8c] sm:$0xf0] }
 0x69b   :  { %v3504_v52 = vpop.f32.mrf.mxu2  ;;  %v3517_v40 = vpop.f32.mrf.mxu3 }
 0x69c   :  { %v3523_v31 = vadd.f32 %v3504_v52, %v2918_v42  ;;  %v3524_v27 = vadd.f32 %v3517_v40, %v2947_v45  ;;  %v3480_v43 = vpop.f32.mrf.mxu0  ;;  %v3493_v7 = vpop.f32.mrf.mxu1  ;;  %v7121_v42 = vor.u32 %v8123_v1, %v7120_v63  ;;  %v8121_v45 = vld [vmem:[%s12482_s5 + $0xec] sm:$0xf]  ;;  %v7122_v52 = vld [vmem:[%s12482_s5 + $0xf8] sm:$0xf0]  ;;  %4026 = vmatpush.bf16.msra.mxu1 %v7117_v21  ;;  %v8108_v63 = vld [vmem:[%s12482_s5 + $0x84] sm:$0xf] }
 0x69d   :  { %v7125_v40 = vor.u32 %v8121_v45, %v7122_v52  ;;  %v8116_v43 = vld [vmem:[%s12482_s5 + $0xc4] sm:$0xf]  ;;  %v7066_v21 = vld [vmem:[%s12482_s5 + $0x90] sm:$0xf0]  ;;  %v8111_v45 = vld [vmem:[%s12482_s5 + $0x94] sm:$0xf0] }
 0x69e   :  { %8363 = vtanh.f32 %v3523_v31  ;;  %v3534_v3 = vmul.f32 0.5, %v3524_v27  ;;  %4039 = vmatpush.bf16.msra.mxu2 %v7121_v42  ;;  %v7096_v31 = vld [vmem:[%s12482_s5 + $0xc0] sm:$0xf]  ;;  %v8118_v27 = vld [vmem:[%s12482_s5 + $0xcc] sm:$0xf0]  ;;  %v7069_v52 = vor.u32 %v8108_v63, %v7066_v21 }
 0x69f   :  { %v8360_v54 = vpop.eup %8359  ;;  %4052 = vmatpush.bf16.msrb.mxu3 %v7125_v40  ;;  %v7097_v7 = vor.u32 %v8118_v27, %v7096_v31  ;;  %v7072_v42 = vld [vmem:[%s12482_s5 + $0x88] sm:$0xf]  ;;  %v8109_v31 = vld [vmem:[%s12482_s5 + $0x8c] sm:$0xf]  ;;  %v7074_v27 = vld [vmem:[%s12482_s5 + $0x98] sm:$0xf0] }
 0x6a0   :  { %v8362_v47 = vpop.eup %8361  ;;  %v3527_v17 = vmul.f32 0.5, %v8360_v54  ;;  %8365 = vtanh.f32 %v3534_v3  ;;  %v7098_v3 = vld [vmem:[%s12482_s5 + $0xd0] sm:$0xf0]  ;;  %v7104_v54 = vld [vmem:[%s12482_s5 + $0xc8] sm:$0xf]  ;;  %v7073_v40 = vor.u32 %v8111_v45, %v7072_v42 }
 0x6a1   :  { %v3531_v8 = vmul.f32 0.5, %v8362_v47  ;;  %v8119_v47 = vld [vmem:[%s12482_s5 + $0xd4] sm:$0xf0]  ;;  %v8098_v21 = vld [vmem:[%s12482_s5 + $0x2c] sm:$0xf0] }
 0x6a2   :  { %v3528_v18 = vadd.f32 0.5, %v3527_v17  ;;  %v7101_v17 = vor.u32 %v8116_v43, %v7098_v3  ;;  %v7077_v43 = vor.u32 %v8109_v31, %v7074_v27  ;;  %v8106_v3 = vld [vmem:[%s12482_s5 + $0x6c] sm:$0xf0]  ;;  %v8096_v42 = vld [vmem:[%s12482_s5 + $0x24] sm:$0xf] }
 0x6a3   :  { %v3532_v32 = vadd.f32 0.5, %v3531_v8  ;;  %v3506_v44 = vpop.f32.mrf.mxu2  ;;  %v3519_v33 = vpop.f32.mrf.mxu3  ;;  %v7105_v8 = vor.u32 %v8119_v47, %v7104_v54  ;;  %v8104_v54 = vld [vmem:[%s12482_s5 + $0x64] sm:$0xf]  ;;  %v8099_v31 = vld [vmem:[%s12482_s5 + $0x34] sm:$0xf0] }
 0x6a4   :  { %v8364_v25 = vpop.eup %8363  ;;  %4027 = vmatpush.bf16.msra.mxu1 %v7101_v17  ;;  %v7080_v33 = vld [vmem:[%s12482_s5 + $0xa0] sm:$0xf]  ;;  %v7050_v17 = vld [vmem:[%s12482_s5 + $0x70] sm:$0xf0] }
 0x6a5   :  { %v3538_v28 = vmul.f32 %v3532_v32, %v11151_v11  ;;  %v3539_v38 = vmul.f32 %v8364_v25, %v3528_v18  ;;  %v7112_v11 = vld [vmem:[%s12482_s5 + $0xe0] sm:$0xf]  ;;  %v8117_v18 = vld [vmem:[%s12482_s5 + $0xcc] sm:$0xf]  ;;  %v7106_v32 = vld [vmem:[%s12482_s5 + $0xd8] sm:$0xf0]  ;;  %4040 = vmatpush.bf16.msra.mxu2 %v7105_v8 }
 0x6a6   :  { %v8366_v39 = vpop.eup %8365  ;;  %v7113_v60 = vor.u32 %v8122_v59, %v7112_v11  ;;  %v7109_v44 = vor.u32 %v8117_v18, %v7106_v32  ;;  %v8114_v25 = vld [vmem:[%s12482_s5 + $0xac] sm:$0xf0]  ;;  %v8113_v11 = vld [vmem:[%s12482_s5 + $0xac] sm:$0xf]  ;;  %v7090_v59 = vld [vmem:[%s12482_s5 + $0xb8] sm:$0xf0]  ;;  %v7053_v32 = vor.u32 %v8104_v54, %v7050_v17 }
 0x6a7   :  { %v11359_v16 = vadd.f32 %v3539_v38, %v3538_v28  ;;  %v3536_v4 = vmul.f32 0.5, %v8366_v39  ;;  %v8112_v28 = vld [vmem:[%s12482_s5 + $0xa4] sm:$0xf]  ;;  %v7081_v38 = vor.u32 %v8114_v25, %v7080_v33  ;;  %v7082_v39 = vld [vmem:[%s12482_s5 + $0xb0] sm:$0xf0]  ;;  %v7093_v51 = vor.u32 %v8113_v11, %v7090_v59 }
 0x6a8   :  { %4013 = vmatpush.bf16.msra.mxu0 %v7113_v60  ;;  %4053 = vmatpush.bf16.msrb.mxu3 %v7109_v44  ;;  %v7064_v60 = vld [vmem:[%s12482_s5 + $0x80] sm:$0xf]  ;;  %v7056_v8 = vld [vmem:[%s12482_s5 + $0x68] sm:$0xf]  ;;  %v8107_v18 = vld [vmem:[%s12482_s5 + $0x74] sm:$0xf0] }
 0x6a9   :  { %8367 = vtanh.f32 %v11359_v16  ;;  %v3537_v14 = vadd.f32 0.5, %v3536_v4  ;;  %v7088_v4 = vld [vmem:[%s12482_s5 + $0xa8] sm:$0xf]  ;;  %v7065_v1 = vor.u32 %v8110_v48, %v7064_v60  ;;  %v7057_v44 = vor.u32 %v8107_v18, %v7056_v8  ;;  %v8105_v33 = vld [vmem:[%s12482_s5 + $0x6c] sm:$0xf] }
 0x6aa   :  { %v7058_v25 = vld [vmem:[%s12482_s5 + $0x78] sm:$0xf0]  ;;  %v8103_v11 = vld [vmem:[%s12482_s5 + $0x54] sm:$0xf0]  ;;  %v8101_v60 = vld [vmem:[%s12482_s5 + $0x4c] sm:$0xf] }
 0x6ab   :  { %v7042_v48 = vld [vmem:[%s12482_s5 + $0x58] sm:$0xf0]  ;;  %v8094_v17 = vld [vmem:[%s12482_s5 + $0xc] sm:$0xf0]  ;;  %v8092_v8 = vld [vmem:[%s12482_s5 + $0x4] sm:$0xf] }
 0x6ac   :  { %4014 = vmatpush.bf16.msra.mxu0 %v7097_v7  ;;  %4054 = vmatpush.bf16.msrb.mxu3 %v7093_v51  ;;  %v7048_v7 = vld [vmem:[%s12482_s5 + $0x60] sm:$0xf]  ;;  %v7045_v63 = vor.u32 %v8101_v60, %v7042_v48 }
 0x6ad   :  { %v7049_v47 = vor.u32 %v8106_v3, %v7048_v7  ;;  %v8097_v7 = vld [vmem:[%s12482_s5 + $0x2c] sm:$0xf]  ;;  %v7026_v3 = vld [vmem:[%s12482_s5 + $0x38] sm:$0xf0] }
 0x6ae   :  { %v7029_v54 = vor.u32 %v8097_v7, %v7026_v3 }
 0x6af   :  { %v8368_v5 = vpop.eup %8367 }
 0x6b0   :  { %v11362_v34 = vmul.f32 %v8368_v5, %v3537_v14  ;;  %v8115_v14 = vld [vmem:[%s12482_s5 + $0xb4] sm:$0xf0]  ;;  %v7085_v5 = vor.u32 %v8112_v28, %v7082_v39  ;;  %4015 = vmatpush.bf16.msra.mxu0 %v7081_v38  ;;  %4055 = vmatpush.bf16.msrb.mxu3 %v7077_v43  ;;  %v7061_v28 = vor.u32 %v8105_v33, %v7058_v25  ;;  %v7032_v38 = vld [vmem:[%s12482_s5 + $0x40] sm:$0xf]  ;;  %v8102_v39 = vld [vmem:[%s12482_s5 + $0x4c] sm:$0xf0] }
 0x6b1   :  { %v8095_v33 = vld [vmem:[%s12482_s5 + $0x14] sm:$0xf0] }
 0x6b2   :  { %v3548_v37 = vpack.c.bf16 %v11362_v34, %v11362_v34  ;;  %4028 = vmatpush.bf16.msra.mxu1 %v7085_v5  ;;  %v7034_v5 = vld [vmem:[%s12482_s5 + $0x50] sm:$0xf0] }
 0x6b4   :  { %3749 = vmatmul.bf16.vlgmr.msrb.gmra.mxu0 %v3548_v37  ;;  %3762 = vmatmul.bf16.vlgmr.msrb.gmra.mxu1 %v3548_v37 }
 0x6b5   :  { %3775 = vmatmul.bf16.vlgmr.msrb.gmra.mxu2 %v3548_v37  ;;  %3788 = vmatmul.bf16.vlgmr.msra.gmra.mxu3 %v3548_v37  ;;  %v7089_v37 = vor.u32 %v8115_v14, %v7088_v4  ;;  %v8100_v4 = vld [vmem:[%s12482_s5 + $0x44] sm:$0xf]  ;;  %v7033_v14 = vor.u32 %v8102_v39, %v7032_v38  ;;  %v8093_v38 = vld [vmem:[%s12482_s5 + $0xc] sm:$0xf]  ;;  %v7010_v39 = vld [vmem:[%s12482_s5 + $0x18] sm:$0xf0] }
 0x6b6   :  { %4016 = vmatpush.bf16.msra.mxu0 %v7065_v1  ;;  %4029 = vmatpush.bf16.msra.mxu1 %v7069_v52  ;;  %v7037_v59 = vor.u32 %v8100_v4, %v7034_v5  ;;  %v7016_v1 = vld [vmem:[%s12482_s5 + $0x20] sm:$0xf]  ;;  %v7018_v52 = vld [vmem:[%s12482_s5 + $0x30] sm:$0xf0]  ;;  %v7013_v4 = vor.u32 %v8093_v38, %v7010_v39  ;;  %v2892_v5 = vadd.f32 %v10891_v50, %v11106_v53  ;;  %v8154_v39 = vld [vmem:[%s12482_s5 + $0xec] sm:$0xf0] }
 0x6b7   :  { %4041 = vmatpush.bf16.msra.mxu2 %v7089_v37  ;;  %4056 = vmatpush.bf16.msrb.mxu3 %v7061_v28  ;;  %v7040_v37 = vld [vmem:[%s12482_s5 + $0x48] sm:$0xf]  ;;  %v7017_v45 = vor.u32 %v8098_v21, %v7016_v1  ;;  %v7021_v27 = vor.u32 %v8096_v42, %v7018_v52  ;;  %v2950_v1 = vadd.f32 %v10895_v13, %v11142_v15 }
 0x6b8   :  { %v7041_v51 = vor.u32 %v8103_v11, %v7040_v37 }
 0x6ba   :  { %4017 = vmatpush.bf16.msra.mxu0 %v7049_v47  ;;  %4030 = vmatpush.bf16.msra.mxu1 %v7053_v32  ;;  %v7000_v47 = vld [vmem:[%s12482_s5] sm:$0xf]  ;;  %v7002_v32 = vld [vmem:[%s12482_s5 + $0x10] sm:$0xf0] }
 0x6bb   :  { %4042 = vmatpush.bf16.msra.mxu2 %v7073_v40  ;;  %4057 = vmatpush.bf16.msrb.mxu3 %v7045_v63  ;;  %v7024_v40 = vld [vmem:[%s12482_s5 + $0x28] sm:$0xf]  ;;  %v7001_v18 = vor.u32 %v8094_v17, %v7000_v47  ;;  %v7005_v25 = vor.u32 %v8092_v8, %v7002_v32  ;;  %v2921_v63 = vadd.f32 %v10893_v9, %v11140_v23 }
 0x6bc   :  { %v7025_v43 = vor.u32 %v8099_v31, %v7024_v40 }
 0x6be   :  { %4018 = vmatpush.bf16.msra.mxu0 %v7033_v14  ;;  %4031 = vmatpush.bf16.msra.mxu1 %v7037_v59  ;;  %v2863_v14 = vadd.f32 %v10889_v49, %v11104_v22 }
 0x6bf   :  { %4043 = vmatpush.bf16.msra.mxu2 %v7057_v44  ;;  %4058 = vmatpush.bf16.msrb.mxu3 %v7029_v54  ;;  %v7008_v44 = vld [vmem:[%s12482_s5 + $0x8] sm:$0xf] }
 0x6c0   :  { %v7009_v28 = vor.u32 %v8095_v33, %v7008_v44 }
 0x6c2   :  { %4019 = vmatpush.bf16.msra.mxu0 %v7017_v45  ;;  %4032 = vmatpush.bf16.msra.mxu1 %v7021_v27 }
 0x6c3   :  { %4044 = vmatpush.bf16.msra.mxu2 %v7041_v51  ;;  %4059 = vmatpush.bf16.msrb.mxu3 %v7013_v4  ;;  %v8152_v4 = vld [vmem:[%s12482_s5 + $0xe4] sm:$0xf] }
 0x6c6   :  { %4020 = vmatpush.bf16.msra.mxu0 %v7001_v18  ;;  %4033 = vmatpush.bf16.msra.mxu1 %v7005_v25 }
 0x6c7   :  { %4045 = vmatpush.bf16.msra.mxu2 %v7025_v43 }
 0x6cb   :  { %4046 = vmatpush.bf16.msra.mxu2 %v7009_v28 }
 0x731   :  { %v3750_v37 = vpop.f32.mrf.mxu0  ;;  %v3763_v11 = vpop.f32.mrf.mxu1 }
 0x732   :  { %v3793_v59 = vadd.f32 %v3750_v37, %v2863_v14  ;;  %v3794_v51 = vadd.f32 %v3763_v11, %v2892_v5  ;;  %v7242_v5 = vld [vmem:[%s12482_s5 + $0xf0] sm:$0xf0]  ;;  %v7248_v37 = vld [vmem:[%s12482_s5 + $0xe8] sm:$0xf]  ;;  %v8155_v11 = vld [vmem:[%s12482_s5 + $0xf4] sm:$0xf0] }
 0x734   :  { %v3797_v60 = vmul.f32 0.5, %v3793_v59  ;;  %v3801_v48 = vmul.f32 0.5, %v3794_v51  ;;  %v7245_v59 = vor.u32 %v8152_v4, %v7242_v5  ;;  %v7249_v51 = vor.u32 %v8155_v11, %v7248_v37  ;;  %v8140_v4 = vld [vmem:[%s12482_s5 + $0x84] sm:$0xf]  ;;  %v7194_v5 = vld [vmem:[%s12482_s5 + $0x90] sm:$0xf0] }
 0x735   :  { %v7200_v37 = vld [vmem:[%s12482_s5 + $0x88] sm:$0xf]  ;;  %v8143_v11 = vld [vmem:[%s12482_s5 + $0x94] sm:$0xf0] }
 0x736   :  { %8369 = vtanh.f32 %v3797_v60  ;;  %v8153_v60 = vld [vmem:[%s12482_s5 + $0xec] sm:$0xf]  ;;  %4298 = vmatpush.bf16.msrb.mxu1 %v7245_v59  ;;  %4311 = vmatpush.bf16.msrb.mxu2 %v7249_v51  ;;  %v7197_v59 = vor.u32 %v8140_v4, %v7194_v5  ;;  %v7201_v51 = vor.u32 %v8143_v11, %v7200_v37  ;;  %v8128_v4 = vld [vmem:[%s12482_s5 + $0x24] sm:$0xf]  ;;  %v7146_v5 = vld [vmem:[%s12482_s5 + $0x30] sm:$0xf0] }
 0x737   :  { %8371 = vtanh.f32 %v3801_v48  ;;  %v7250_v48 = vld [vmem:[%s12482_s5 + $0xf8] sm:$0xf0]  ;;  %v7152_v37 = vld [vmem:[%s12482_s5 + $0x28] sm:$0xf]  ;;  %v8131_v11 = vld [vmem:[%s12482_s5 + $0x34] sm:$0xf0] }
 0x738   :  { %v3776_v21 = vpop.f32.mrf.mxu2  ;;  %v3789_v49 = vpop.f32.mrf.mxu3 }
 0x739   :  { %v3795_v42 = vadd.f32 %v3776_v21, %v2921_v63  ;;  %v3796_v45 = vadd.f32 %v3789_v49, %v2950_v1  ;;  %v3752_v50 = vpop.f32.mrf.mxu0  ;;  %v3765_v52 = vpop.f32.mrf.mxu1  ;;  %v7253_v63 = vor.u32 %v8153_v60, %v7250_v48  ;;  %v7224_v1 = vld [vmem:[%s12482_s5 + $0xc0] sm:$0xf]  ;;  %v8150_v21 = vld [vmem:[%s12482_s5 + $0xcc] sm:$0xf0]  ;;  %v8148_v49 = vld [vmem:[%s12482_s5 + $0xc4] sm:$0xf] }
 0x73a   :  { %v7232_v50 = vld [vmem:[%s12482_s5 + $0xc8] sm:$0xf]  ;;  %v8151_v52 = vld [vmem:[%s12482_s5 + $0xd4] sm:$0xf0]  ;;  %v8141_v60 = vld [vmem:[%s12482_s5 + $0x8c] sm:$0xf] }
 0x73b   :  { %8373 = vtanh.f32 %v3795_v42  ;;  %v3806_v40 = vmul.f32 0.5, %v3796_v45  ;;  %4324 = vmatpush.bf16.msra.mxu3 %v7253_v63  ;;  %v7225_v42 = vor.u32 %v8150_v21, %v7224_v1  ;;  %v7226_v45 = vld [vmem:[%s12482_s5 + $0xd0] sm:$0xf0]  ;;  %v7202_v48 = vld [vmem:[%s12482_s5 + $0x98] sm:$0xf0] }
 0x73c   :  { %v8370_v31 = vpop.eup %8369  ;;  %v7205_v63 = vor.u32 %v8141_v60, %v7202_v48  ;;  %v7176_v1 = vld [vmem:[%s12482_s5 + $0x60] sm:$0xf]  ;;  %v8138_v21 = vld [vmem:[%s12482_s5 + $0x6c] sm:$0xf0]  ;;  %v8129_v60 = vld [vmem:[%s12482_s5 + $0x2c] sm:$0xf] }
 0x73d   :  { %v8372_v27 = vpop.eup %8371  ;;  %v3799_v43 = vmul.f32 0.5, %v8370_v31  ;;  %8375 = vtanh.f32 %v3806_v40  ;;  %v7229_v40 = vor.u32 %v8148_v49, %v7226_v45  ;;  %v7233_v31 = vor.u32 %v8151_v52, %v7232_v50  ;;  %v8136_v49 = vld [vmem:[%s12482_s5 + $0x64] sm:$0xf]  ;;  %v7178_v45 = vld [vmem:[%s12482_s5 + $0x70] sm:$0xf0] }
 0x73e   :  { %v3803_v7 = vmul.f32 0.5, %v8372_v27  ;;  %v8149_v27 = vld [vmem:[%s12482_s5 + $0xcc] sm:$0xf]  ;;  %v7184_v50 = vld [vmem:[%s12482_s5 + $0x68] sm:$0xf] }
 0x73f   :  { %v3800_v3 = vadd.f32 0.5, %v3799_v43  ;;  %v7234_v43 = vld [vmem:[%s12482_s5 + $0xd8] sm:$0xf0]  ;;  %4299 = vmatpush.bf16.msrb.mxu1 %v7229_v40  ;;  %4312 = vmatpush.bf16.msrb.mxu2 %v7233_v31  ;;  %v8139_v52 = vld [vmem:[%s12482_s5 + $0x74] sm:$0xf0]  ;;  %v7181_v40 = vor.u32 %v8136_v49, %v7178_v45 }
 0x740   :  { %v3804_v54 = vadd.f32 0.5, %v3803_v7  ;;  %v3778_v9 = vpop.f32.mrf.mxu2  ;;  %v3791_v47 = vpop.f32.mrf.mxu3  ;;  %v7237_v7 = vor.u32 %v8149_v27, %v7234_v43  ;;  %v7185_v31 = vor.u32 %v8139_v52, %v7184_v50  ;;  %v8137_v27 = vld [vmem:[%s12482_s5 + $0x6c] sm:$0xf]  ;;  %v7186_v43 = vld [vmem:[%s12482_s5 + $0x78] sm:$0xf0] }
 0x741   :  { %v8374_v17 = vpop.eup %8373  ;;  %v8144_v9 = vld [vmem:[%s12482_s5 + $0xa4] sm:$0xf]  ;;  %v7154_v48 = vld [vmem:[%s12482_s5 + $0x38] sm:$0xf0]  ;;  %v7130_v45 = vld [vmem:[%s12482_s5 + $0x10] sm:$0xf0] }
 0x742   :  { %v3810_v13 = vmul.f32 %v3804_v54, %v11359_v16  ;;  %v3811_v8 = vmul.f32 %v8374_v17, %v3800_v3  ;;  %v7240_v16 = vld [vmem:[%s12482_s5 + $0xe0] sm:$0xf]  ;;  %v8146_v54 = vld [vmem:[%s12482_s5 + $0xac] sm:$0xf0]  ;;  %4325 = vmatpush.bf16.msra.mxu3 %v7237_v7  ;;  %v7210_v17 = vld [vmem:[%s12482_s5 + $0xb0] sm:$0xf0]  ;;  %v7189_v7 = vor.u32 %v8137_v27, %v7186_v43 }
 0x743   :  { %v8376_v18 = vpop.eup %8375  ;;  %v7241_v14 = vor.u32 %v8154_v39, %v7240_v16  ;;  %v7208_v3 = vld [vmem:[%s12482_s5 + $0xa0] sm:$0xf]  ;;  %v8142_v39 = vld [vmem:[%s12482_s5 + $0x8c] sm:$0xf0]  ;;  %v8124_v49 = vld [vmem:[%s12482_s5 + $0x4] sm:$0xf] }
 0x744   :  { %v11567_v32 = vadd.f32 %v3811_v8, %v3810_v13  ;;  %v3808_v44 = vmul.f32 0.5, %v8376_v18  ;;  %v7209_v47 = vor.u32 %v8146_v54, %v7208_v3  ;;  %v7216_v13 = vld [vmem:[%s12482_s5 + $0xa8] sm:$0xf]  ;;  %v8147_v8 = vld [vmem:[%s12482_s5 + $0xb4] sm:$0xf0]  ;;  %v7213_v18 = vor.u32 %v8144_v9, %v7210_v17 }
 0x745   :  { %4285 = vmatpush.bf16.msrb.mxu0 %v7241_v14  ;;  %v7192_v16 = vld [vmem:[%s12482_s5 + $0x80] sm:$0xf]  ;;  %v8134_v54 = vld [vmem:[%s12482_s5 + $0x4c] sm:$0xf0]  ;;  %v8132_v9 = vld [vmem:[%s12482_s5 + $0x44] sm:$0xf] }
 0x746   :  { %8377 = vtanh.f32 %v11567_v32  ;;  %v3809_v33 = vadd.f32 0.5, %v3808_v44  ;;  %v7217_v44 = vor.u32 %v8147_v8, %v7216_v13  ;;  %4300 = vmatpush.bf16.msrb.mxu1 %v7213_v18  ;;  %v7193_v14 = vor.u32 %v8142_v39, %v7192_v16  ;;  %v7160_v3 = vld [vmem:[%s12482_s5 + $0x40] sm:$0xf]  ;;  %v7162_v17 = vld [vmem:[%s12482_s5 + $0x50] sm:$0xf0] }
 0x747   :  { %v7168_v13 = vld [vmem:[%s12482_s5 + $0x48] sm:$0xf]  ;;  %v8135_v8 = vld [vmem:[%s12482_s5 + $0x54] sm:$0xf0]  ;;  %v7165_v18 = vor.u32 %v8132_v9, %v7162_v17  ;;  %v7144_v16 = vld [vmem:[%s12482_s5 + $0x20] sm:$0xf] }
 0x748   :  { %4313 = vmatpush.bf16.msrb.mxu2 %v7217_v44  ;;  %v7169_v44 = vor.u32 %v8135_v8, %v7168_v13  ;;  %v8130_v39 = vld [vmem:[%s12482_s5 + $0x2c] sm:$0xf0]  ;;  %v7136_v50 = vld [vmem:[%s12482_s5 + $0x8] sm:$0xf]  ;;  %v8127_v52 = vld [vmem:[%s12482_s5 + $0x14] sm:$0xf0] }
 0x749   :  { %4286 = vmatpush.bf16.msrb.mxu0 %v7225_v42  ;;  %v7177_v42 = vor.u32 %v8138_v21, %v7176_v1  ;;  %v7128_v1 = vld [vmem:[%s12482_s5] sm:$0xf]  ;;  %v8126_v21 = vld [vmem:[%s12482_s5 + $0xc] sm:$0xf0]  ;;  %v8125_v27 = vld [vmem:[%s12482_s5 + $0xc] sm:$0xf] }
 0x74a   :  { %4301 = vmatpush.bf16.msrb.mxu1 %v7197_v59  ;;  %v7149_v59 = vor.u32 %v8128_v4, %v7146_v5  ;;  %v7138_v43 = vld [vmem:[%s12482_s5 + $0x18] sm:$0xf0] }
 0x74c   :  { %v8378_v25 = vpop.eup %8377  ;;  %4314 = vmatpush.bf16.msrb.mxu2 %v7201_v51  ;;  %v7153_v51 = vor.u32 %v8131_v11, %v7152_v37 }
 0x74d   :  { %v11570_v28 = vmul.f32 %v8378_v25, %v3809_v33  ;;  %v8145_v33 = vld [vmem:[%s12482_s5 + $0xac] sm:$0xf]  ;;  %v7218_v25 = vld [vmem:[%s12482_s5 + $0xb8] sm:$0xf0]  ;;  %4287 = vmatpush.bf16.msrb.mxu0 %v7209_v47  ;;  %v7161_v47 = vor.u32 %v8134_v54, %v7160_v3  ;;  %v2865_v3 = vadd.f32 %v10897_v29, %v11104_v22  ;;  %v2894_v54 = vadd.f32 %v10899_v20, %v11106_v53 }
 0x74e   :  { %4302 = vmatpush.bf16.msrb.mxu1 %v7181_v40  ;;  %v7133_v40 = vor.u32 %v8124_v49, %v7130_v45 }
 0x74f   :  { %v3820_v38 = vpack.c.bf16 %v11570_v28, %v11570_v28 }
 0x750   :  { %4315 = vmatpush.bf16.msrb.mxu2 %v7185_v31  ;;  %v7137_v31 = vor.u32 %v8127_v52, %v7136_v50 }
 0x751   :  { %4021 = vmatmul.bf16.vlgmr.msra.gmra.mxu0 %v3820_v38  ;;  %4034 = vmatmul.bf16.vlgmr.msra.gmra.mxu1 %v3820_v38 }
 0x752   :  { %4047 = vmatmul.bf16.vlgmr.msra.gmra.mxu2 %v3820_v38  ;;  %4060 = vmatmul.bf16.vlgmr.msrb.gmra.mxu3 %v3820_v38  ;;  %v7221_v38 = vor.u32 %v8145_v33, %v7218_v25  ;;  %v8133_v33 = vld [vmem:[%s12482_s5 + $0x4c] sm:$0xf]  ;;  %v7170_v25 = vld [vmem:[%s12482_s5 + $0x58] sm:$0xf0] }
 0x753   :  { %4288 = vmatpush.bf16.msrb.mxu0 %v7193_v14  ;;  %4303 = vmatpush.bf16.msrb.mxu1 %v7165_v18  ;;  %v7145_v14 = vor.u32 %v8130_v39, %v7144_v16 }
 0x754   :  { %4326 = vmatpush.bf16.msra.mxu3 %v7221_v38  ;;  %v7173_v38 = vor.u32 %v8133_v33, %v7170_v25  ;;  %4316 = vmatpush.bf16.msrb.mxu2 %v7169_v44  ;;  %v2923_v44 = vadd.f32 %v10901_v61, %v11140_v23  ;;  %v2952_v33 = vadd.f32 %v10903_v46, %v11142_v15 }
 0x757   :  { %4289 = vmatpush.bf16.msrb.mxu0 %v7177_v42  ;;  %4304 = vmatpush.bf16.msrb.mxu1 %v7149_v59  ;;  %v7129_v42 = vor.u32 %v8126_v21, %v7128_v1 }
 0x758   :  { %4327 = vmatpush.bf16.msra.mxu3 %v7205_v63  ;;  %v7157_v63 = vor.u32 %v8129_v60, %v7154_v48  ;;  %4317 = vmatpush.bf16.msrb.mxu2 %v7153_v51 }
 0x75b   :  { %4290 = vmatpush.bf16.msrb.mxu0 %v7161_v47  ;;  %4305 = vmatpush.bf16.msrb.mxu1 %v7133_v40  ;;  %v8186_v40 = vld [vmem:[%s12482_s5 + $0xec] sm:$0xf0] }
 0x75c   :  { %4328 = vmatpush.bf16.msra.mxu3 %v7189_v7  ;;  %v7141_v7 = vor.u32 %v8125_v27, %v7138_v43  ;;  %4318 = vmatpush.bf16.msrb.mxu2 %v7137_v31  ;;  %v8184_v31 = vld [vmem:[%s12482_s5 + $0xe4] sm:$0xf]  ;;  %v7370_v43 = vld [vmem:[%s12482_s5 + $0xf0] sm:$0xf0] }
 0x75f   :  { %4291 = vmatpush.bf16.msrb.mxu0 %v7145_v14 }
 0x760   :  { %4329 = vmatpush.bf16.msra.mxu3 %v7173_v38 }
 0x763   :  { %4292 = vmatpush.bf16.msrb.mxu0 %v7129_v42 }
 0x764   :  { %4330 = vmatpush.bf16.msra.mxu3 %v7157_v63 }
 0x768   :  { %4331 = vmatpush.bf16.msra.mxu3 %v7141_v7  ;;  %v7376_v7 = vld [vmem:[%s12482_s5 + $0xe8] sm:$0xf] }
 0x7ce   :  { %v4022_v9 = vpop.f32.mrf.mxu0  ;;  %v4035_v47 = vpop.f32.mrf.mxu1 }
 0x7cf   :  { %v4065_v17 = vadd.f32 %v4022_v9, %v2865_v3  ;;  %v4066_v13 = vadd.f32 %v4035_v47, %v2894_v54  ;;  %v8187_v3 = vld [vmem:[%s12482_s5 + $0xf4] sm:$0xf0]  ;;  %v7373_v54 = vor.u32 %v8184_v31, %v7370_v43  ;;  %v8185_v47 = vld [vmem:[%s12482_s5 + $0xec] sm:$0xf]  ;;  %v7328_v31 = vld [vmem:[%s12482_s5 + $0x88] sm:$0xf] }
 0x7d0   :  { %v7377_v9 = vor.u32 %v8187_v3, %v7376_v7  ;;  %v8173_v3 = vld [vmem:[%s12482_s5 + $0x8c] sm:$0xf] }
 0x7d1   :  { %v4069_v8 = vmul.f32 0.5, %v4065_v17  ;;  %v4073_v18 = vmul.f32 0.5, %v4066_v13  ;;  %v7378_v17 = vld [vmem:[%s12482_s5 + $0xf8] sm:$0xf0]  ;;  %4570 = vmatpush.bf16.msra.mxu1 %v7373_v54 }
 0x7d2   :  { %v7381_v13 = vor.u32 %v8185_v47, %v7378_v17  ;;  %4583 = vmatpush.bf16.msra.mxu2 %v7377_v9  ;;  %v7330_v54 = vld [vmem:[%s12482_s5 + $0x98] sm:$0xf0]  ;;  %v7304_v47 = vld [vmem:[%s12482_s5 + $0x60] sm:$0xf]  ;;  %v8170_v17 = vld [vmem:[%s12482_s5 + $0x6c] sm:$0xf0] }
 0x7d3   :  { %8379 = vtanh.f32 %v4069_v8  ;;  %v7352_v8 = vld [vmem:[%s12482_s5 + $0xc0] sm:$0xf]  ;;  %v7333_v9 = vor.u32 %v8173_v3, %v7330_v54  ;;  %v8158_v54 = vld [vmem:[%s12482_s5 + $0xc] sm:$0xf0] }
 0x7d4   :  { %8381 = vtanh.f32 %v4073_v18  ;;  %v8182_v18 = vld [vmem:[%s12482_s5 + $0xcc] sm:$0xf0]  ;;  %4596 = vmatpush.bf16.msrb.mxu3 %v7381_v13  ;;  %v8168_v13 = vld [vmem:[%s12482_s5 + $0x64] sm:$0xf]  ;;  %v7256_v3 = vld [vmem:[%s12482_s5] sm:$0xf] }
 0x7d5   :  { %v4048_v25 = vpop.f32.mrf.mxu2  ;;  %v4061_v29 = vpop.f32.mrf.mxu3 }
 0x7d6   :  { %v4067_v38 = vadd.f32 %v4048_v25, %v2923_v44  ;;  %v4068_v16 = vadd.f32 %v4061_v29, %v2952_v33  ;;  %v4024_v20 = vpop.f32.mrf.mxu0  ;;  %v4037_v39 = vpop.f32.mrf.mxu1  ;;  %v8180_v44 = vld [vmem:[%s12482_s5 + $0xc4] sm:$0xf]  ;;  %v7353_v33 = vor.u32 %v8182_v18, %v7352_v8  ;;  %v7354_v25 = vld [vmem:[%s12482_s5 + $0xd0] sm:$0xf0]  ;;  %v7360_v29 = vld [vmem:[%s12482_s5 + $0xc8] sm:$0xf]  ;;  %v7305_v8 = vor.u32 %v8170_v17, %v7304_v47 }
 0x7d7   :  { %v8181_v39 = vld [vmem:[%s12482_s5 + $0xcc] sm:$0xf]  ;;  %v7306_v18 = vld [vmem:[%s12482_s5 + $0x70] sm:$0xf0]  ;;  %v7257_v47 = vor.u32 %v8158_v54, %v7256_v3 }
 0x7d8   :  { %8383 = vtanh.f32 %v4067_v38  ;;  %v4078_v4 = vmul.f32 0.5, %v4068_v16  ;;  %v8183_v38 = vld [vmem:[%s12482_s5 + $0xd4] sm:$0xf0]  ;;  %v7357_v16 = vor.u32 %v8180_v44, %v7354_v25  ;;  %v7312_v44 = vld [vmem:[%s12482_s5 + $0x68] sm:$0xf]  ;;  %v7309_v25 = vor.u32 %v8168_v13, %v7306_v18 }
 0x7d9   :  { %v8380_v14 = vpop.eup %8379  ;;  %v7361_v20 = vor.u32 %v8183_v38, %v7360_v29  ;;  %v8169_v38 = vld [vmem:[%s12482_s5 + $0x6c] sm:$0xf]  ;;  %v7258_v17 = vld [vmem:[%s12482_s5 + $0x10] sm:$0xf0]  ;;  %v7264_v13 = vld [vmem:[%s12482_s5 + $0x8] sm:$0xf] }
 0x7da   :  { %v8382_v5 = vpop.eup %8381  ;;  %v4071_v37 = vmul.f32 0.5, %v8380_v14  ;;  %8385 = vtanh.f32 %v4078_v4  ;;  %v7362_v4 = vld [vmem:[%s12482_s5 + $0xd8] sm:$0xf0]  ;;  %4571 = vmatpush.bf16.msra.mxu1 %v7357_v16 }
 0x7db   :  { %v4075_v11 = vmul.f32 0.5, %v8382_v5  ;;  %v7365_v14 = vor.u32 %v8181_v39, %v7362_v4  ;;  %4584 = vmatpush.bf16.msra.mxu2 %v7361_v20  ;;  %v7336_v5 = vld [vmem:[%s12482_s5 + $0xa0] sm:$0xf]  ;;  %v7314_v16 = vld [vmem:[%s12482_s5 + $0x78] sm:$0xf0] }
 0x7dc   :  { %v4072_v59 = vadd.f32 0.5, %v4071_v37  ;;  %v8178_v37 = vld [vmem:[%s12482_s5 + $0xac] sm:$0xf0]  ;;  %v7317_v20 = vor.u32 %v8169_v38, %v7314_v16  ;;  %v7288_v39 = vld [vmem:[%s12482_s5 + $0x40] sm:$0xf]  ;;  %v2868_v38 = vadd.f32 %v10905_v56, %v11104_v22  ;;  %v2897_v16 = vadd.f32 %v10907_v57, %v11106_v53 }
 0x7dd   :  { %v4076_v51 = vadd.f32 0.5, %v4075_v11  ;;  %v4050_v61 = vpop.f32.mrf.mxu2  ;;  %v4063_v60 = vpop.f32.mrf.mxu3  ;;  %v8176_v11 = vld [vmem:[%s12482_s5 + $0xa4] sm:$0xf]  ;;  %4597 = vmatpush.bf16.msrb.mxu3 %v7365_v14  ;;  %v8166_v4 = vld [vmem:[%s12482_s5 + $0x4c] sm:$0xf0] }
 0x7de   :  { %v8384_v48 = vpop.eup %8383  ;;  %v7344_v61 = vld [vmem:[%s12482_s5 + $0xa8] sm:$0xf]  ;;  %v8179_v60 = vld [vmem:[%s12482_s5 + $0xb4] sm:$0xf0]  ;;  %v8164_v14 = vld [vmem:[%s12482_s5 + $0x44] sm:$0xf] }
 0x7df   :  { %v4082_v46 = vmul.f32 %v4076_v51, %v11567_v32  ;;  %v4083_v63 = vmul.f32 %v8384_v48, %v4072_v59  ;;  %v7368_v32 = vld [vmem:[%s12482_s5 + $0xe0] sm:$0xf]  ;;  %v7337_v59 = vor.u32 %v8178_v37, %v7336_v5  ;;  %v7338_v51 = vld [vmem:[%s12482_s5 + $0xb0] sm:$0xf0]  ;;  %v7289_v5 = vor.u32 %v8166_v4, %v7288_v39 }
 0x7e0   :  { %v8386_v1 = vpop.eup %8385  ;;  %v7369_v27 = vor.u32 %v8186_v40, %v7368_v32  ;;  %v7341_v48 = vor.u32 %v8176_v11, %v7338_v51  ;;  %v7322_v40 = vld [vmem:[%s12482_s5 + $0x90] sm:$0xf0]  ;;  %v7296_v11 = vld [vmem:[%s12482_s5 + $0x48] sm:$0xf] }
 0x7e1   :  { %v11775_v21 = vadd.f32 %v4083_v63, %v4082_v46  ;;  %v4080_v49 = vmul.f32 0.5, %v8386_v1  ;;  %v7345_v46 = vor.u32 %v8179_v60, %v7344_v61  ;;  %v8177_v63 = vld [vmem:[%s12482_s5 + $0xac] sm:$0xf]  ;;  %v7346_v1 = vld [vmem:[%s12482_s5 + $0xb8] sm:$0xf0] }
 0x7e2   :  { %4557 = vmatpush.bf16.msra.mxu0 %v7369_v27  ;;  %4572 = vmatpush.bf16.msra.mxu1 %v7341_v48  ;;  %v8175_v27 = vld [vmem:[%s12482_s5 + $0x94] sm:$0xf0]  ;;  %v7290_v37 = vld [vmem:[%s12482_s5 + $0x50] sm:$0xf0]  ;;  %v8165_v60 = vld [vmem:[%s12482_s5 + $0x4c] sm:$0xf] }
 0x7e3   :  { %8387 = vtanh.f32 %v11775_v21  ;;  %v4081_v42 = vadd.f32 0.5, %v4080_v49  ;;  %v7349_v49 = vor.u32 %v8177_v63, %v7346_v1  ;;  %4585 = vmatpush.bf16.msra.mxu2 %v7345_v46  ;;  %v7329_v7 = vor.u32 %v8175_v27, %v7328_v31  ;;  %v7298_v48 = vld [vmem:[%s12482_s5 + $0x58] sm:$0xf0]  ;;  %v7272_v63 = vld [vmem:[%s12482_s5 + $0x20] sm:$0xf] }
 0x7e4   :  { %v7293_v51 = vor.u32 %v8164_v14, %v7290_v37  ;;  %v7301_v46 = vor.u32 %v8165_v60, %v7298_v48  ;;  %v8162_v1 = vld [vmem:[%s12482_s5 + $0x2c] sm:$0xf0]  ;;  %v8161_v27 = vld [vmem:[%s12482_s5 + $0x2c] sm:$0xf] }
 0x7e5   :  { %4598 = vmatpush.bf16.msrb.mxu3 %v7349_v49  ;;  %v8160_v49 = vld [vmem:[%s12482_s5 + $0x24] sm:$0xf] }
 0x7e6   :  { %4558 = vmatpush.bf16.msra.mxu0 %v7353_v33  ;;  %v8171_v33 = vld [vmem:[%s12482_s5 + $0x74] sm:$0xf0] }
 0x7e7   :  { %4586 = vmatpush.bf16.msra.mxu2 %v7329_v7  ;;  %v7313_v29 = vor.u32 %v8171_v33, %v7312_v44  ;;  %v8157_v33 = vld [vmem:[%s12482_s5 + $0xc] sm:$0xf] }
 0x7e9   :  { %v8388_v45 = vpop.eup %8387  ;;  %4599 = vmatpush.bf16.msrb.mxu3 %v7333_v9  ;;  %v8156_v9 = vld [vmem:[%s12482_s5 + $0x4] sm:$0xf] }
 0x7ea   :  { %v11778_v50 = vmul.f32 %v8388_v45, %v4081_v42  ;;  %4559 = vmatpush.bf16.msra.mxu0 %v7337_v59  ;;  %v7320_v42 = vld [vmem:[%s12482_s5 + $0x80] sm:$0xf]  ;;  %v8174_v45 = vld [vmem:[%s12482_s5 + $0x8c] sm:$0xf0]  ;;  %v8167_v59 = vld [vmem:[%s12482_s5 + $0x54] sm:$0xf0]  ;;  %v7261_v18 = vor.u32 %v8156_v9, %v7258_v17 }
 0x7eb   :  { %v7321_v32 = vor.u32 %v8174_v45, %v7320_v42  ;;  %4587 = vmatpush.bf16.msra.mxu2 %v7313_v29  ;;  %v7297_v61 = vor.u32 %v8167_v59, %v7296_v11  ;;  %v7273_v42 = vor.u32 %v8162_v1, %v7272_v63  ;;  %v7274_v45 = vld [vmem:[%s12482_s5 + $0x30] sm:$0xf0]  ;;  %v2926_v11 = vadd.f32 %v10957_v62, %v11140_v23  ;;  %v8218_v17 = vld [vmem:[%s12482_s5 + $0xec] sm:$0xf0] }
 0x7ec   :  { %v4092_v52 = vpack.c.bf16 %v11778_v50, %v11778_v50  ;;  %v2955_v59 = vadd.f32 %v10959_v6, %v11142_v15 }
 0x7ed   :  { %4600 = vmatpush.bf16.msrb.mxu3 %v7317_v20 }
 0x7ee   :  { %4293 = vmatmul.bf16.vlgmr.msrb.gmra.mxu0 %v4092_v52  ;;  %4306 = vmatmul.bf16.vlgmr.msrb.gmra.mxu1 %v4092_v52 }
 0x7ef   :  { %4319 = vmatmul.bf16.vlgmr.msrb.gmra.mxu2 %v4092_v52  ;;  %4332 = vmatmul.bf16.vlgmr.msra.gmra.mxu3 %v4092_v52  ;;  %v8172_v52 = vld [vmem:[%s12482_s5 + $0x84] sm:$0xf] }
 0x7f0   :  { %v7325_v43 = vor.u32 %v8172_v52, %v7322_v40  ;;  %4560 = vmatpush.bf16.msra.mxu0 %v7321_v32  ;;  %4588 = vmatpush.bf16.msra.mxu2 %v7297_v61  ;;  %v7280_v52 = vld [vmem:[%s12482_s5 + $0x28] sm:$0xf]  ;;  %v8163_v32 = vld [vmem:[%s12482_s5 + $0x34] sm:$0xf0]  ;;  %v7277_v40 = vor.u32 %v8160_v49, %v7274_v45 }
 0x7f1   :  { %4601 = vmatpush.bf16.msrb.mxu3 %v7301_v46  ;;  %v7281_v31 = vor.u32 %v8163_v32, %v7280_v52 }
 0x7f2   :  { %4573 = vmatpush.bf16.msra.mxu1 %v7325_v43  ;;  %v7282_v43 = vld [vmem:[%s12482_s5 + $0x38] sm:$0xf0] }
 0x7f3   :  { %v7285_v7 = vor.u32 %v8161_v27, %v7282_v43 }
 0x7f4   :  { %4561 = vmatpush.bf16.msra.mxu0 %v7305_v8  ;;  %4589 = vmatpush.bf16.msra.mxu2 %v7281_v31  ;;  %v8159_v8 = vld [vmem:[%s12482_s5 + $0x14] sm:$0xf0] }
 0x7f5   :  { %4602 = vmatpush.bf16.msrb.mxu3 %v7285_v7  ;;  %v7265_v44 = vor.u32 %v8159_v8, %v7264_v13  ;;  %v8216_v13 = vld [vmem:[%s12482_s5 + $0xe4] sm:$0xf] }
 0x7f6   :  { %4574 = vmatpush.bf16.msra.mxu1 %v7309_v25  ;;  %v7266_v25 = vld [vmem:[%s12482_s5 + $0x18] sm:$0xf0] }
 0x7f7   :  { %v7269_v29 = vor.u32 %v8157_v33, %v7266_v25  ;;  %v8219_v33 = vld [vmem:[%s12482_s5 + $0xf4] sm:$0xf0] }
 0x7f8   :  { %4562 = vmatpush.bf16.msra.mxu0 %v7289_v5  ;;  %4590 = vmatpush.bf16.msra.mxu2 %v7265_v44  ;;  %v7504_v44 = vld [vmem:[%s12482_s5 + $0xe8] sm:$0xf] }
 0x7f9   :  { %4603 = vmatpush.bf16.msrb.mxu3 %v7269_v29  ;;  %v7505_v29 = vor.u32 %v8219_v33, %v7504_v44  ;;  %v7432_v33 = vld [vmem:[%s12482_s5 + $0x60] sm:$0xf] }
 0x7fa   :  { %4575 = vmatpush.bf16.msra.mxu1 %v7293_v51 }
 0x7fc   :  { %4563 = vmatpush.bf16.msra.mxu0 %v7273_v42  ;;  %4855 = vmatpush.bf16.msrb.mxu2 %v7505_v29  ;;  %v8200_v29 = vld [vmem:[%s12482_s5 + $0x64] sm:$0xf] }
 0x7fe   :  { %4576 = vmatpush.bf16.msra.mxu1 %v7277_v40 }
 0x800   :  { %4564 = vmatpush.bf16.msra.mxu0 %v7257_v47 }
 0x802   :  { %4577 = vmatpush.bf16.msra.mxu1 %v7261_v18  ;;  %v7498_v18 = vld [vmem:[%s12482_s5 + $0xf0] sm:$0xf0] }
 0x803   :  { %v7501_v25 = vor.u32 %v8216_v13, %v7498_v18  ;;  %v7458_v18 = vld [vmem:[%s12482_s5 + $0x98] sm:$0xf0] }
 0x806   :  { %4842 = vmatpush.bf16.msrb.mxu1 %v7501_v25  ;;  %v8202_v25 = vld [vmem:[%s12482_s5 + $0x6c] sm:$0xf0] }
 0x86b   :  { %v4294_v20 = vpop.f32.mrf.mxu0  ;;  %v4307_v39 = vpop.f32.mrf.mxu1 }
 0x86c   :  { %v4337_v4 = vadd.f32 %v4294_v20, %v2868_v38  ;;  %v4338_v14 = vadd.f32 %v4307_v39, %v2897_v16  ;;  %v8217_v38 = vld [vmem:[%s12482_s5 + $0xec] sm:$0xf]  ;;  %v7506_v16 = vld [vmem:[%s12482_s5 + $0xf8] sm:$0xf0]  ;;  %v7480_v39 = vld [vmem:[%s12482_s5 + $0xc0] sm:$0xf] }
 0x86d   :  { %v7509_v20 = vor.u32 %v8217_v38, %v7506_v16  ;;  %v7433_v38 = vor.u32 %v8202_v25, %v7432_v33  ;;  %v7434_v16 = vld [vmem:[%s12482_s5 + $0x70] sm:$0xf0]  ;;  %v8191_v33 = vld [vmem:[%s12482_s5 + $0x14] sm:$0xf0] }
 0x86e   :  { %v4341_v5 = vmul.f32 0.5, %v4337_v4  ;;  %v4345_v37 = vmul.f32 0.5, %v4338_v14  ;;  %v8214_v4 = vld [vmem:[%s12482_s5 + $0xcc] sm:$0xf0]  ;;  %v8212_v14 = vld [vmem:[%s12482_s5 + $0xc4] sm:$0xf] }
 0x86f   :  { %4868 = vmatpush.bf16.msra.mxu3 %v7509_v20  ;;  %v7440_v20 = vld [vmem:[%s12482_s5 + $0x68] sm:$0xf] }
 0x870   :  { %8389 = vtanh.f32 %v4341_v5  ;;  %v7481_v5 = vor.u32 %v8214_v4, %v7480_v39  ;;  %v8203_v39 = vld [vmem:[%s12482_s5 + $0x74] sm:$0xf0]  ;;  %v7437_v4 = vor.u32 %v8200_v29, %v7434_v16  ;;  %v7394_v16 = vld [vmem:[%s12482_s5 + $0x18] sm:$0xf0] }
 0x871   :  { %8391 = vtanh.f32 %v4345_v37  ;;  %v7482_v37 = vld [vmem:[%s12482_s5 + $0xd0] sm:$0xf0] }
 0x872   :  { %v4320_v51 = vpop.f32.mrf.mxu2  ;;  %v4333_v56 = vpop.f32.mrf.mxu3 }
 0x873   :  { %v4339_v61 = vadd.f32 %v4320_v51, %v2926_v11  ;;  %v4340_v60 = vadd.f32 %v4333_v56, %v2955_v59  ;;  %v4296_v57 = vpop.f32.mrf.mxu0  ;;  %v4309_v48 = vpop.f32.mrf.mxu1  ;;  %v7488_v11 = vld [vmem:[%s12482_s5 + $0xc8] sm:$0xf]  ;;  %v8215_v59 = vld [vmem:[%s12482_s5 + $0xd4] sm:$0xf0]  ;;  %v7485_v51 = vor.u32 %v8212_v14, %v7482_v37  ;;  %v7441_v14 = vor.u32 %v8203_v39, %v7440_v20  ;;  %v7442_v37 = vld [vmem:[%s12482_s5 + $0x78] sm:$0xf0] }
 0x874   :  { %v7489_v56 = vor.u32 %v8215_v59, %v7488_v11  ;;  %v7464_v48 = vld [vmem:[%s12482_s5 + $0xa0] sm:$0xf]  ;;  %v2870_v39 = vadd.f32 %v10979_v35, %v11104_v22 }
 0x875   :  { %8393 = vtanh.f32 %v4339_v61  ;;  %v4350_v46 = vmul.f32 0.5, %v4340_v60  ;;  %v8213_v61 = vld [vmem:[%s12482_s5 + $0xcc] sm:$0xf]  ;;  %v7490_v60 = vld [vmem:[%s12482_s5 + $0xd8] sm:$0xf0]  ;;  %4843 = vmatpush.bf16.msrb.mxu1 %v7485_v51 }
 0x876   :  { %v8390_v63 = vpop.eup %8389  ;;  %v7493_v57 = vor.u32 %v8213_v61, %v7490_v60  ;;  %4856 = vmatpush.bf16.msrb.mxu2 %v7489_v56  ;;  %v7416_v59 = vld [vmem:[%s12482_s5 + $0x40] sm:$0xf]  ;;  %v8198_v51 = vld [vmem:[%s12482_s5 + $0x4c] sm:$0xf0]  ;;  %v8196_v56 = vld [vmem:[%s12482_s5 + $0x44] sm:$0xf] }
 0x877   :  { %v8392_v1 = vpop.eup %8391  ;;  %v4343_v49 = vmul.f32 0.5, %v8390_v63  ;;  %8395 = vtanh.f32 %v4350_v46  ;;  %v8210_v46 = vld [vmem:[%s12482_s5 + $0xac] sm:$0xf0]  ;;  %v8208_v63 = vld [vmem:[%s12482_s5 + $0xa4] sm:$0xf]  ;;  %v7417_v61 = vor.u32 %v8198_v51, %v7416_v59 }
 0x878   :  { %v4347_v42 = vmul.f32 0.5, %v8392_v1  ;;  %4869 = vmatpush.bf16.msra.mxu3 %v7493_v57  ;;  %v7465_v1 = vor.u32 %v8210_v46, %v7464_v48  ;;  %v7418_v60 = vld [vmem:[%s12482_s5 + $0x50] sm:$0xf0]  ;;  %v7424_v57 = vld [vmem:[%s12482_s5 + $0x48] sm:$0xf] }
 0x879   :  { %v4344_v45 = vadd.f32 0.5, %v4343_v49  ;;  %v7466_v49 = vld [vmem:[%s12482_s5 + $0xb0] sm:$0xf0]  ;;  %v8199_v48 = vld [vmem:[%s12482_s5 + $0x54] sm:$0xf0]  ;;  %v7421_v46 = vor.u32 %v8196_v56, %v7418_v60 }
 0x87a   :  { %v4348_v52 = vadd.f32 0.5, %v4347_v42  ;;  %v4322_v62 = vpop.f32.mrf.mxu2  ;;  %v4335_v32 = vpop.f32.mrf.mxu3  ;;  %v7472_v42 = vld [vmem:[%s12482_s5 + $0xa8] sm:$0xf]  ;;  %v7624_v59 = vld [vmem:[%s12482_s5 + $0xe0] sm:$0xf] }
 0x87b   :  { %v8394_v40 = vpop.eup %8393  ;;  %v8209_v32 = vld [vmem:[%s12482_s5 + $0xac] sm:$0xf]  ;;  %v8250_v51 = vld [vmem:[%s12482_s5 + $0xec] sm:$0xf0]  ;;  %v7608_v35 = vld [vmem:[%s12482_s5 + $0xc0] sm:$0xf] }
 0x87c   :  { %v4354_v6 = vmul.f32 %v4348_v52, %v11775_v21  ;;  %v4355_v31 = vmul.f32 %v8394_v40, %v4344_v45  ;;  %v7496_v21 = vld [vmem:[%s12482_s5 + $0xe0] sm:$0xf]  ;;  %v8211_v45 = vld [vmem:[%s12482_s5 + $0xb4] sm:$0xf0]  ;;  %v7469_v52 = vor.u32 %v8208_v63, %v7466_v49  ;;  %v7474_v40 = vld [vmem:[%s12482_s5 + $0xb8] sm:$0xf0]  ;;  %v7425_v63 = vor.u32 %v8199_v48, %v7424_v57 }
 0x87d   :  { %v8396_v27 = vpop.eup %8395  ;;  %v7497_v8 = vor.u32 %v8218_v17, %v7496_v21  ;;  %v7473_v62 = vor.u32 %v8211_v45, %v7472_v42  ;;  %v8207_v21 = vld [vmem:[%s12482_s5 + $0x94] sm:$0xf0]  ;;  %v7426_v49 = vld [vmem:[%s12482_s5 + $0x58] sm:$0xf0]  ;;  %v7400_v45 = vld [vmem:[%s12482_s5 + $0x20] sm:$0xf]  ;;  %v7625_v56 = vor.u32 %v8250_v51, %v7624_v59 }
 0x87e   :  { %v11983_v43 = vadd.f32 %v4355_v31, %v4354_v6  ;;  %v4352_v7 = vmul.f32 0.5, %v8396_v27  ;;  %v7477_v6 = vor.u32 %v8209_v32, %v7474_v40  ;;  %4844 = vmatpush.bf16.msrb.mxu1 %v7469_v52  ;;  %v7448_v31 = vld [vmem:[%s12482_s5 + $0x80] sm:$0xf]  ;;  %v8206_v27 = vld [vmem:[%s12482_s5 + $0x8c] sm:$0xf0] }
 0x87f   :  { %4829 = vmatpush.bf16.msrb.mxu0 %v7497_v8  ;;  %4857 = vmatpush.bf16.msrb.mxu2 %v7473_v62  ;;  %v8205_v8 = vld [vmem:[%s12482_s5 + $0x8c] sm:$0xf]  ;;  %v8194_v52 = vld [vmem:[%s12482_s5 + $0x2c] sm:$0xf0]  ;;  %v8192_v62 = vld [vmem:[%s12482_s5 + $0x24] sm:$0xf] }
 0x880   :  { %8397 = vtanh.f32 %v11983_v43  ;;  %v4353_v3 = vadd.f32 0.5, %v4352_v7  ;;  %v8204_v7 = vld [vmem:[%s12482_s5 + $0x84] sm:$0xf]  ;;  %4870 = vmatpush.bf16.msra.mxu3 %v7477_v6  ;;  %v7461_v44 = vor.u32 %v8205_v8, %v7458_v18  ;;  %v7401_v32 = vor.u32 %v8194_v52, %v7400_v45  ;;  %v7402_v40 = vld [vmem:[%s12482_s5 + $0x30] sm:$0xf0] }
 0x881   :  { %v7408_v6 = vld [vmem:[%s12482_s5 + $0x28] sm:$0xf]  ;;  %v7386_v18 = vld [vmem:[%s12482_s5 + $0x10] sm:$0xf0]  ;;  %v7592_v48 = vld [vmem:[%s12482_s5 + $0xa0] sm:$0xf] }
 0x882   :  { %v7634_v59 = vld [vmem:[%s12482_s5 + $0xf8] sm:$0xf0] }
 0x883   :  { %4830 = vmatpush.bf16.msrb.mxu0 %v7481_v5  ;;  %v8201_v5 = vld [vmem:[%s12482_s5 + $0x6c] sm:$0xf] }
 0x884   :  { %4871 = vmatpush.bf16.msra.mxu3 %v7461_v44  ;;  %v7445_v11 = vor.u32 %v8201_v5, %v7442_v37  ;;  %v7392_v44 = vld [vmem:[%s12482_s5 + $0x8] sm:$0xf] }
 0x885   :  { %v7393_v29 = vor.u32 %v8191_v33, %v7392_v44 }
 0x886   :  { %v8398_v54 = vpop.eup %8397 }
 0x887   :  { %v11986_v9 = vmul.f32 %v8398_v54, %v4353_v3  ;;  %4831 = vmatpush.bf16.msrb.mxu0 %v7465_v1  ;;  %v7449_v3 = vor.u32 %v8206_v27, %v7448_v31  ;;  %v7450_v54 = vld [vmem:[%s12482_s5 + $0x90] sm:$0xf0]  ;;  %v8197_v1 = vld [vmem:[%s12482_s5 + $0x4c] sm:$0xf]  ;;  %v8195_v31 = vld [vmem:[%s12482_s5 + $0x34] sm:$0xf0]  ;;  %v7405_v27 = vor.u32 %v8192_v62, %v7402_v40 }
 0x888   :  { %v7453_v17 = vor.u32 %v8204_v7, %v7450_v54  ;;  %4872 = vmatpush.bf16.msra.mxu3 %v7445_v11  ;;  %v7429_v42 = vor.u32 %v8197_v1, %v7426_v49  ;;  %v7409_v7 = vor.u32 %v8195_v31, %v7408_v6  ;;  %v7410_v54 = vld [vmem:[%s12482_s5 + $0x38] sm:$0xf0]  ;;  %v2957_v1 = vadd.f32 %v11021_v12, %v11142_v15  ;;  %v7576_v6 = vld [vmem:[%s12482_s5 + $0x80] sm:$0xf] }
 0x889   :  { %v4364_v47 = vpack.c.bf16 %v11986_v9, %v11986_v9 }
 0x88a   :  { %4845 = vmatpush.bf16.msrb.mxu1 %v7453_v17  ;;  %v8190_v17 = vld [vmem:[%s12482_s5 + $0xc] sm:$0xf0] }
 0x88b   :  { %4565 = vmatmul.bf16.vlgmr.msra.gmra.mxu0 %v4364_v47  ;;  %4578 = vmatmul.bf16.vlgmr.msra.gmra.mxu1 %v4364_v47 }
 0x88c   :  { %4591 = vmatmul.bf16.vlgmr.msra.gmra.mxu2 %v4364_v47  ;;  %4604 = vmatmul.bf16.vlgmr.msrb.gmra.mxu3 %v4364_v47  ;;  %v7456_v47 = vld [vmem:[%s12482_s5 + $0x88] sm:$0xf] }
 0x88d   :  { %v7457_v13 = vor.u32 %v8207_v21, %v7456_v47  ;;  %4832 = vmatpush.bf16.msrb.mxu0 %v7449_v3  ;;  %4873 = vmatpush.bf16.msra.mxu3 %v7429_v42  ;;  %v8193_v3 = vld [vmem:[%s12482_s5 + $0x2c] sm:$0xf]  ;;  %v7384_v21 = vld [vmem:[%s12482_s5] sm:$0xf] }
 0x88e   :  { %4846 = vmatpush.bf16.msrb.mxu1 %v7437_v4  ;;  %v7413_v47 = vor.u32 %v8193_v3, %v7410_v54  ;;  %v7385_v8 = vor.u32 %v8190_v17, %v7384_v21  ;;  %v2899_v4 = vadd.f32 %v10981_v10, %v11106_v53  ;;  %v8246_v10 = vld [vmem:[%s12482_s5 + $0xcc] sm:$0xf0] }
 0x88f   :  { %4858 = vmatpush.bf16.msrb.mxu2 %v7457_v13  ;;  %v8188_v13 = vld [vmem:[%s12482_s5 + $0x4] sm:$0xf]  ;;  %v7609_v57 = vor.u32 %v8246_v10, %v7608_v35  ;;  %v8234_v10 = vld [vmem:[%s12482_s5 + $0x6c] sm:$0xf0] }
 0x890   :  { %v7389_v25 = vor.u32 %v8188_v13, %v7386_v18 }
 0x891   :  { %4833 = vmatpush.bf16.msrb.mxu0 %v7433_v38  ;;  %4874 = vmatpush.bf16.msra.mxu3 %v7413_v47  ;;  %v8189_v38 = vld [vmem:[%s12482_s5 + $0xc] sm:$0xf] }
 0x892   :  { %4847 = vmatpush.bf16.msrb.mxu1 %v7421_v46  ;;  %v7397_v20 = vor.u32 %v8189_v38, %v7394_v16  ;;  %v8242_v46 = vld [vmem:[%s12482_s5 + $0xac] sm:$0xf0] }
 0x893   :  { %4859 = vmatpush.bf16.msrb.mxu2 %v7441_v14  ;;  %v7593_v40 = vor.u32 %v8242_v46, %v7592_v48  ;;  %v7616_v48 = vld [vmem:[%s12482_s5 + $0xc8] sm:$0xf] }
 0x895   :  { %4834 = vmatpush.bf16.msrb.mxu0 %v7417_v61  ;;  %4875 = vmatpush.bf16.msra.mxu3 %v7397_v20 }
 0x896   :  { %4848 = vmatpush.bf16.msrb.mxu1 %v7405_v27 }
 0x897   :  { %4860 = vmatpush.bf16.msrb.mxu2 %v7425_v63  ;;  %v2928_v63 = vadd.f32 %v11019_v55, %v11140_v23  ;;  %v8238_v55 = vld [vmem:[%s12482_s5 + $0x8c] sm:$0xf0] }
 0x898   :  { %v7577_v3 = vor.u32 %v8238_v55, %v7576_v6  ;;  %v7594_v6 = vld [vmem:[%s12482_s5 + $0xb0] sm:$0xf0]  ;;  %v7600_v55 = vld [vmem:[%s12482_s5 + $0xa8] sm:$0xf] }
 0x899   :  { %4835 = vmatpush.bf16.msrb.mxu0 %v7401_v32 }
 0x89a   :  { %4849 = vmatpush.bf16.msrb.mxu1 %v7389_v25 }
 0x89b   :  { %4861 = vmatpush.bf16.msrb.mxu2 %v7409_v7 }
 0x89d   :  { %4836 = vmatpush.bf16.msrb.mxu0 %v7385_v8 }
 0x89f   :  { %4862 = vmatpush.bf16.msrb.mxu2 %v7393_v29 }
 0x8a1   :  { %5101 = vmatpush.bf16.msra.mxu0 %v7625_v56  ;;  %v7560_v56 = vld [vmem:[%s12482_s5 + $0x60] sm:$0xf] }
 0x8a5   :  { %5102 = vmatpush.bf16.msra.mxu0 %v7609_v57  ;;  %v7610_v57 = vld [vmem:[%s12482_s5 + $0xd0] sm:$0xf0] }
 0x8a9   :  { %5103 = vmatpush.bf16.msra.mxu0 %v7593_v40  ;;  %v8240_v40 = vld [vmem:[%s12482_s5 + $0xa4] sm:$0xf] }
 0x8ad   :  { %5104 = vmatpush.bf16.msra.mxu0 %v7577_v3 }
 0x908   :  { %v4566_v14 = vpop.f32.mrf.mxu0  ;;  %v4579_v5 = vpop.f32.mrf.mxu1 }
 0x909   :  { %v4609_v37 = vadd.f32 %v4566_v14, %v2870_v39  ;;  %v4610_v11 = vadd.f32 %v4579_v5, %v2899_v4  ;;  %v7626_v4 = vld [vmem:[%s12482_s5 + $0xf0] sm:$0xf0]  ;;  %v7632_v14 = vld [vmem:[%s12482_s5 + $0xe8] sm:$0xf] }
 0x90b   :  { %v4613_v61 = vmul.f32 0.5, %v4609_v37  ;;  %v4617_v60 = vmul.f32 0.5, %v4610_v11  ;;  %v8251_v37 = vld [vmem:[%s12482_s5 + $0xf4] sm:$0xf0]  ;;  %v8249_v11 = vld [vmem:[%s12482_s5 + $0xec] sm:$0xf] }
 0x90c   :  { %v7633_v51 = vor.u32 %v8251_v37, %v7632_v14  ;;  %v7637_v35 = vor.u32 %v8249_v11, %v7634_v59  ;;  %v7562_v37 = vld [vmem:[%s12482_s5 + $0x70] sm:$0xf0]  ;;  %v7568_v11 = vld [vmem:[%s12482_s5 + $0x68] sm:$0xf] }
 0x90d   :  { %8399 = vtanh.f32 %v4613_v61  ;;  %v7561_v61 = vor.u32 %v8234_v10, %v7560_v56  ;;  %v7570_v56 = vld [vmem:[%s12482_s5 + $0x78] sm:$0xf0] }
 0x90e   :  { %8401 = vtanh.f32 %v4617_v60  ;;  %5127 = vmatpush.bf16.msra.mxu2 %v7633_v51  ;;  %5140 = vmatpush.bf16.msrb.mxu3 %v7637_v35  ;;  %v8244_v60 = vld [vmem:[%s12482_s5 + $0xc4] sm:$0xf]  ;;  %v8235_v51 = vld [vmem:[%s12482_s5 + $0x74] sm:$0xf0]  ;;  %v8233_v35 = vld [vmem:[%s12482_s5 + $0x6c] sm:$0xf] }
 0x90f   :  { %v4592_v49 = vpop.f32.mrf.mxu2  ;;  %v4605_v42 = vpop.f32.mrf.mxu3  ;;  %v7613_v46 = vor.u32 %v8244_v60, %v7610_v57  ;;  %5105 = vmatpush.bf16.msra.mxu0 %v7561_v61  ;;  %v7569_v10 = vor.u32 %v8235_v51, %v7568_v11  ;;  %v7573_v61 = vor.u32 %v8233_v35, %v7570_v56  ;;  %v8259_v60 = vld [vmem:[%s12486_s7 + $0x38] sm:$0xff]  ;;  %v8228_v57 = vld [vmem:[%s12482_s5 + $0x44] sm:$0xf]  ;;  %v8254_v51 = vld [vmem:[%s12486_s7 + $0x10] sm:$0xff] }
 0x910   :  { %v4611_v45 = vadd.f32 %v4592_v49, %v2928_v63  ;;  %v4612_v52 = vadd.f32 %v4605_v42, %v2957_v1  ;;  %v4568_v62 = vpop.f32.mrf.mxu0  ;;  %v4581_v32 = vpop.f32.mrf.mxu1  ;;  %v8247_v63 = vld [vmem:[%s12482_s5 + $0xd4] sm:$0xf0]  ;;  %v8245_v1 = vld [vmem:[%s12482_s5 + $0xcc] sm:$0xf]  ;;  %v7618_v49 = vld [vmem:[%s12482_s5 + $0xd8] sm:$0xf0] }
 0x911   :  { %v7617_v42 = vor.u32 %v8247_v63, %v7616_v48  ;;  %v8230_v62 = vld [vmem:[%s12482_s5 + $0x4c] sm:$0xf0]  ;;  %v7546_v48 = vld [vmem:[%s12482_s5 + $0x50] sm:$0xf0] }
 0x912   :  { %8403 = vtanh.f32 %v4611_v45  ;;  %v4622_v31 = vmul.f32 0.5, %v4612_v52  ;;  %v7621_v45 = vor.u32 %v8245_v1, %v7618_v49  ;;  %v7544_v52 = vld [vmem:[%s12482_s5 + $0x40] sm:$0xf]  ;;  %v7549_v63 = vor.u32 %v8228_v57, %v7546_v48  ;;  %v8231_v1 = vld [vmem:[%s12482_s5 + $0x54] sm:$0xf0] }
 0x913   :  { %v8400_v12 = vpop.eup %8399  ;;  %5128 = vmatpush.bf16.msra.mxu2 %v7617_v42  ;;  %v7545_v32 = vor.u32 %v8230_v62, %v7544_v52  ;;  %v8229_v49 = vld [vmem:[%s12482_s5 + $0x4c] sm:$0xf]  ;;  %v7554_v42 = vld [vmem:[%s12482_s5 + $0x58] sm:$0xf0]  ;;  %v8258_v62 = vld [vmem:[%s12486_s7 + $0x30] sm:$0xff] }
 0x914   :  { %v8402_v27 = vpop.eup %8401  ;;  %v4615_v7 = vmul.f32 0.5, %v8400_v12  ;;  %8405 = vtanh.f32 %v4622_v31  ;;  %5141 = vmatpush.bf16.msrb.mxu3 %v7621_v45  ;;  %v7597_v31 = vor.u32 %v8240_v40, %v7594_v6  ;;  %v8243_v12 = vld [vmem:[%s12482_s5 + $0xb4] sm:$0xf0]  ;;  %v7557_v52 = vor.u32 %v8229_v49, %v7554_v42  ;;  %v7530_v40 = vld [vmem:[%s12482_s5 + $0x30] sm:$0xf0] }
 0x915   :  { %v4619_v54 = vmul.f32 0.5, %v8402_v27  ;;  %v8241_v27 = vld [vmem:[%s12482_s5 + $0xac] sm:$0xf]  ;;  %5106 = vmatpush.bf16.msra.mxu0 %v7545_v32  ;;  %v7601_v3 = vor.u32 %v8243_v12, %v7600_v55  ;;  %v8224_v32 = vld [vmem:[%s12482_s5 + $0x24] sm:$0xf] }
 0x916   :  { %v4616_v47 = vadd.f32 0.5, %v4615_v7  ;;  %v7602_v7 = vld [vmem:[%s12482_s5 + $0xb8] sm:$0xf0]  ;;  %v7536_v6 = vld [vmem:[%s12482_s5 + $0x28] sm:$0xf]  ;;  %v7533_v55 = vor.u32 %v8224_v32, %v7530_v40 }
 0x917   :  { %v4620_v21 = vadd.f32 0.5, %v4619_v54  ;;  %v4594_v17 = vpop.f32.mrf.mxu2  ;;  %v4607_v13 = vpop.f32.mrf.mxu3  ;;  %v7605_v54 = vor.u32 %v8241_v27, %v7602_v7  ;;  %5129 = vmatpush.bf16.msra.mxu2 %v7601_v3  ;;  %v8225_v12 = vld [vmem:[%s12482_s5 + $0x2c] sm:$0xf]  ;;  %v7538_v27 = vld [vmem:[%s12482_s5 + $0x38] sm:$0xf0] }
 0x918   :  { %v8404_v8 = vpop.eup %8403  ;;  %v8236_v13 = vld [vmem:[%s12482_s5 + $0x84] sm:$0xf]  ;;  %v7541_v3 = vor.u32 %v8225_v12, %v7538_v27 }
 0x919   :  { %v4626_v18 = vmul.f32 %v4620_v21, %v11983_v43  ;;  %v4627_v44 = vmul.f32 %v8404_v8, %v4616_v47  ;;  %v8248_v43 = vld [vmem:[%s12482_s5 + $0xe4] sm:$0xf]  ;;  %v7528_v47 = vld [vmem:[%s12482_s5 + $0x20] sm:$0xf]  ;;  %v8226_v21 = vld [vmem:[%s12482_s5 + $0x2c] sm:$0xf0]  ;;  %5142 = vmatpush.bf16.msrb.mxu3 %v7605_v54 }
 0x91a   :  { %v8406_v33 = vpop.eup %8405  ;;  %v7629_v5 = vor.u32 %v8248_v43, %v7626_v4  ;;  %v7529_v17 = vor.u32 %v8226_v21, %v7528_v47  ;;  %v7578_v8 = vld [vmem:[%s12482_s5 + $0x90] sm:$0xf0]  ;;  %v7512_v43 = vld [vmem:[%s12482_s5] sm:$0xf]  ;;  %v8222_v4 = vld [vmem:[%s12482_s5 + $0xc] sm:$0xf0] }
 0x91b   :  { %v12215_v25 = vadd.f32 %v4627_v44, %v4626_v18  ;;  %v4624_v29 = vmul.f32 0.5, %v8406_v33  ;;  %v7584_v18 = vld [vmem:[%s12482_s5 + $0x88] sm:$0xf]  ;;  %v7581_v44 = vor.u32 %v8236_v13, %v7578_v8  ;;  %v8239_v33 = vld [vmem:[%s12482_s5 + $0x94] sm:$0xf0]  ;;  %v7513_v14 = vor.u32 %v8222_v4, %v7512_v43 }
 0x91c   :  { %5114 = vmatpush.bf16.msra.mxu1 %v7629_v5  ;;  %5107 = vmatpush.bf16.msra.mxu0 %v7529_v17  ;;  %v8232_v5 = vld [vmem:[%s12482_s5 + $0x64] sm:$0xf]  ;;  %v8257_v54 = vld [vmem:[%s12486_s7 + $0x28] sm:$0xff]  ;;  %v7514_v21 = vld [vmem:[%s12482_s5 + $0x10] sm:$0xf0] }
 0x91d   :  { %8407 = vtanh.f32 %v12215_v25  ;;  %v4625_v38 = vadd.f32 0.5, %v4624_v29  ;;  %v8237_v29 = vld [vmem:[%s12482_s5 + $0x8c] sm:$0xf]  ;;  %v7565_v59 = vor.u32 %v8232_v5, %v7562_v37  ;;  %v8220_v47 = vld [vmem:[%s12482_s5 + $0x4] sm:$0xf] }
 0x91e   :  { %v7520_v17 = vld [vmem:[%s12482_s5 + $0x8] sm:$0xf]  ;;  %v7517_v13 = vor.u32 %v8220_v47, %v7514_v21  ;;  %v8223_v8 = vld [vmem:[%s12482_s5 + $0x14] sm:$0xf0]  ;;  %v5188_v47 = vpack.c.bf16 %v11362_v34, %v11154_v30 }
 0x920   :  { %5115 = vmatpush.bf16.msra.mxu1 %v7613_v46  ;;  %5108 = vmatpush.bf16.msra.mxu0 %v7513_v14  ;;  %v7552_v46 = vld [vmem:[%s12482_s5 + $0x48] sm:$0xf]  ;;  %v8255_v14 = vld [vmem:[%s12486_s7 + $0x18] sm:$0xff] }
 0x921   :  { %v7553_v45 = vor.u32 %v8231_v1, %v7552_v46 }
 0x923   :  { %v8408_v16 = vpop.eup %8407 }
 0x924   :  { %v12218_v20 = vmul.f32 %v8408_v16, %v4625_v38  ;;  %5116 = vmatpush.bf16.msra.mxu1 %v7597_v31  ;;  %v7586_v38 = vld [vmem:[%s12482_s5 + $0x98] sm:$0xf0]  ;;  %v7585_v16 = vor.u32 %v8239_v33, %v7584_v18  ;;  %v8227_v31 = vld [vmem:[%s12482_s5 + $0x34] sm:$0xf0]  ;;  %v8221_v18 = vld [vmem:[%s12482_s5 + $0xc] sm:$0xf]  ;;  %v7521_v33 = vor.u32 %v8223_v8, %v7520_v17  ;;  %v2875_v17 = vadd.f32 %v11094_v19, %v11104_v22 }
 0x925   :  { %v7537_v7 = vor.u32 %v8227_v31, %v7536_v6 }
 0x926   :  { %v4636_v39 = vpack.c.bf16 %v12218_v20, %v12218_v20  ;;  %5130 = vmatpush.bf16.msra.mxu2 %v7585_v16  ;;  %v2873_v16 = vadd.f32 %v11032_v0, %v11104_v22  ;;  %v2931_v0 = vadd.f32 %v11081_v41, %v11140_v23  ;;  %v8252_v41 = vld [vmem:[%s12486_s7] sm:$0xff]  ;;  %v5190_v21 = vpack.c.bf16 %v12218_v20, %v11986_v9 }
 0x928   :  { %4837 = vmatmul.bf16.vlgmr.msrb.gmra.mxu0 %v4636_v39  ;;  %4850 = vmatmul.bf16.vlgmr.msrb.gmra.mxu1 %v4636_v39 }
 0x929   :  { %4863 = vmatmul.bf16.vlgmr.msrb.gmra.mxu2 %v4636_v39  ;;  %4876 = vmatmul.bf16.vlgmr.msra.gmra.mxu3 %v4636_v39  ;;  %v7589_v39 = vor.u32 %v8237_v29, %v7586_v38  ;;  %v8256_v38 = vld [vmem:[%s12486_s7 + $0x20] sm:$0xff] }
 0x92a   :  { %5117 = vmatpush.bf16.msra.mxu1 %v7581_v44  ;;  %5131 = vmatpush.bf16.msra.mxu2 %v7569_v10  ;;  %v7522_v44 = vld [vmem:[%s12482_s5 + $0x18] sm:$0xf0]  ;;  %v8253_v10 = vld [vmem:[%s12486_s7 + $0x8] sm:$0xff] }
 0x92b   :  { %5143 = vmatpush.bf16.msrb.mxu3 %v7589_v39  ;;  %5260 = vmatpush.bf16.msrb.mxu0 %v8259_v60  ;;  %v7525_v29 = vor.u32 %v8221_v18, %v7522_v44  ;;  %v2902_v39 = vadd.f32 %v11034_v26, %v11106_v53  ;;  %v2960_v26 = vadd.f32 %v11083_v36, %v11142_v15 }
 0x92e   :  { %5118 = vmatpush.bf16.msra.mxu1 %v7565_v59  ;;  %5132 = vmatpush.bf16.msra.mxu2 %v7553_v45 }
 0x92f   :  { %5144 = vmatpush.bf16.msrb.mxu3 %v7573_v61  ;;  %5261 = vmatpush.bf16.msrb.mxu0 %v8258_v62 }
 0x932   :  { %5119 = vmatpush.bf16.msra.mxu1 %v7549_v63  ;;  %5133 = vmatpush.bf16.msra.mxu2 %v7537_v7 }
 0x933   :  { %5145 = vmatpush.bf16.msrb.mxu3 %v7557_v52  ;;  %5262 = vmatpush.bf16.msrb.mxu0 %v8257_v54 }
 0x936   :  { %5120 = vmatpush.bf16.msra.mxu1 %v7533_v55  ;;  %5134 = vmatpush.bf16.msra.mxu2 %v7521_v33 }
 0x937   :  { %5146 = vmatpush.bf16.msrb.mxu3 %v7541_v3  ;;  %5263 = vmatpush.bf16.msrb.mxu0 %v8256_v38 }
 0x93a   :  { %5121 = vmatpush.bf16.msra.mxu1 %v7517_v13  ;;  %v2904_v13 = vadd.f32 %v11096_v24, %v11106_v53 }
 0x93b   :  { %5147 = vmatpush.bf16.msrb.mxu3 %v7525_v29  ;;  %5264 = vmatpush.bf16.msrb.mxu0 %v8255_v14 }
 0x93f   :  { %5265 = vmatpush.bf16.msrb.mxu0 %v8254_v51 }
 0x943   :  { %5266 = vmatpush.bf16.msrb.mxu0 %v8253_v10 }
 0x947   :  { %5267 = vmatpush.bf16.msrb.mxu0 %v8252_v41 }
 0x9a5   :  { %v4838_v43 = vpop.f32.mrf.mxu0  ;;  %v4851_v4 = vpop.f32.mrf.mxu1 }
 0x9a6   :  { %v4881_v5 = vadd.f32 %v4838_v43, %v2873_v16  ;;  %v4882_v37 = vadd.f32 %v4851_v4, %v2902_v39 }
 0x9a8   :  { %v4885_v11 = vmul.f32 0.5, %v4881_v5  ;;  %v4889_v59 = vmul.f32 0.5, %v4882_v37 }
 0x9aa   :  { %8409 = vtanh.f32 %v4885_v11 }
 0x9ab   :  { %8411 = vtanh.f32 %v4889_v59 }
 0x9ac   :  { %v4864_v35 = vpop.f32.mrf.mxu2  ;;  %v4877_v56 = vpop.f32.mrf.mxu3 }
 0x9ad   :  { %v4883_v61 = vadd.f32 %v4864_v35, %v2931_v0  ;;  %v4884_v60 = vadd.f32 %v4877_v56, %v2960_v26  ;;  %v4840_v57 = vpop.f32.mrf.mxu0  ;;  %v4853_v48 = vpop.f32.mrf.mxu1 }
 0x9af   :  { %8413 = vtanh.f32 %v4883_v61  ;;  %v4894_v46 = vmul.f32 0.5, %v4884_v60 }
 0x9b0   :  { %v8410_v63 = vpop.eup %8409 }
 0x9b1   :  { %v8412_v36 = vpop.eup %8411  ;;  %v4887_v1 = vmul.f32 0.5, %v8410_v63  ;;  %8415 = vtanh.f32 %v4894_v46 }
 0x9b2   :  { %v4891_v49 = vmul.f32 0.5, %v8412_v36 }
 0x9b3   :  { %v4888_v42 = vadd.f32 0.5, %v4887_v1 }
 0x9b4   :  { %v4892_v45 = vadd.f32 0.5, %v4891_v49  ;;  %v4866_v52 = vpop.f32.mrf.mxu2  ;;  %v4879_v62 = vpop.f32.mrf.mxu3 }
 0x9b5   :  { %v8414_v32 = vpop.eup %8413 }
 0x9b6   :  { %v4898_v40 = vmul.f32 %v4892_v45, %v12215_v25  ;;  %v4899_v6 = vmul.f32 %v8414_v32, %v4888_v42  ;;  %v5189_v25 = vpack.c.bf16 %v11778_v50, %v11570_v28  ;;  %v2933_v28 = vadd.f32 %v11136_v58, %v11140_v23  ;;  %v8268_v58 = vld [vmem:[%s12487_s8] ss:$0 sm:$0xff] }
 0x9b7   :  { %v8416_v55 = vpop.eup %8415  ;;  %v2962_v50 = vadd.f32 %v11138_v2, %v11142_v15 }
 0x9b8   :  { %v4900_v31 = vadd.f32 %v4899_v6, %v4898_v40  ;;  %v4896_v12 = vmul.f32 0.5, %v8416_v55 }
 0x9ba   :  { %8417 = vtanh.f32 %v4900_v31  ;;  %v4897_v27 = vadd.f32 0.5, %v4896_v12 }
 0x9c0   :  { %v8418_v7 = vpop.eup %8417 }
 0x9c1   :  { %v12423_v3 = vmul.f32 %v8418_v7, %v4897_v27 }
 0x9c3   :  { %v4908_v54 = vpack.c.bf16 %v12423_v3, %v12423_v3 }
 0x9c5   :  { %5109 = vmatmul.bf16.vlgmr.msra.gmra.mxu0 %v4908_v54  ;;  %5122 = vmatmul.bf16.vlgmr.msra.gmra.mxu1 %v4908_v54 }
 0x9c6   :  { %5135 = vmatmul.bf16.vlgmr.msra.gmra.mxu2 %v4908_v54  ;;  %5148 = vmatmul.bf16.vlgmr.msrb.gmra.mxu3 %v4908_v54 }
 0x9d5   :  { %5268 = vmatmul.bf16.vlgmr.msrb.gmra.mxu0 %v5188_v47 }
 0x9e5   :  { %5273 = vmatmul.bf16.gmra.mxu0 %v5189_v25 }
 0x9f5   :  { %5278 = vmatmul.bf16.gmra.mxu0 %v5190_v21 }
 0xa42   :  { %v5110_v8 = vpop.f32.mrf.mxu0  ;;  %v5123_v18 = vpop.f32.mrf.mxu1 }
 0xa43   :  { %v5153_v44 = vadd.f32 %v5110_v8, %v2875_v17  ;;  %v5154_v33 = vadd.f32 %v5123_v18, %v2904_v13 }
 0xa45   :  { %v5157_v30 = vmul.f32 0.5, %v5153_v44  ;;  %v5161_v34 = vmul.f32 0.5, %v5154_v33 }
 0xa47   :  { %8419 = vtanh.f32 %v5157_v30 }
 0xa48   :  { %8421 = vtanh.f32 %v5161_v34 }
 0xa49   :  { %v5136_v9 = vpop.f32.mrf.mxu2  ;;  %v5149_v20 = vpop.f32.mrf.mxu3 }
 0xa4a   :  { %v5155_v19 = vadd.f32 %v5136_v9, %v2933_v28  ;;  %v5156_v22 = vadd.f32 %v5149_v20, %v2962_v50  ;;  %v5112_v29 = vpop.f32.mrf.mxu0  ;;  %v5125_v24 = vpop.f32.mrf.mxu1 }
 0xa4c   :  { %8423 = vtanh.f32 %v5155_v19  ;;  %v5166_v53 = vmul.f32 0.5, %v5156_v22 }
 0xa4d   :  { %v8420_v38 = vpop.eup %8419 }
 0xa4e   :  { %v8422_v16 = vpop.eup %8421  ;;  %v5159_v39 = vmul.f32 0.5, %v8420_v38  ;;  %8425 = vtanh.f32 %v5166_v53 }
 0xa4f   :  { %v5163_v43 = vmul.f32 0.5, %v8422_v16 }
 0xa50   :  { %v5160_v23 = vadd.f32 0.5, %v5159_v39 }
 0xa51   :  { %v5164_v2 = vadd.f32 0.5, %v5163_v43  ;;  %v5138_v15 = vpop.f32.mrf.mxu2  ;;  %v5151_v4 = vpop.f32.mrf.mxu3 }
 0xa52   :  { %v8424_v14 = vpop.eup %8423  ;;  %v5269_v5 = vpop.f32.mrf.mxu0 }
 0xa53   :  { %v5170_v37 = vmul.f32 %v5164_v2, %v4900_v31  ;;  %v5171_v11 = vmul.f32 %v8424_v14, %v5160_v23  ;;  %v5270_v59 = vadd.f32 %v8268_v58, %v5269_v5 }
 0xa54   :  { %v8426_v51 = vpop.eup %8425 }
 0xa55   :  { %v5172_v0 = vadd.f32 %v5171_v11, %v5170_v37  ;;  %5289 = vst [vmem:[%s12488_s11] sm:$0xff] %v5270_v59  ;;  %v5168_v26 = vmul.f32 0.5, %v8426_v51 }
 0xa57   :  { %8427 = vtanh.f32 %v5172_v0  ;;  %7639 = vst [vmem:[%s12483_s13 + $0x8] sm:$0xff] %v5172_v0  ;;  %v5169_v10 = vadd.f32 0.5, %v5168_v26 }
 0xa5a   :  { %v5271_v35 = vpop.f32.mrf.mxu0 }
 0xa5b   :  { %v5272_v56 = vadd.f32 %v8268_v58, %v5271_v35 }
 0xa5d   :  { %v8428_v61 = vpop.eup %8427  ;;  %5290 = vst [vmem:[%s12488_s11 + $0x8] sm:$0xff] %v5272_v56 }
 0xa5e   :  { %v5174_v60 = vmul.f32 %v8428_v61, %v5169_v10 }
 0xa60   :  { %7638 = vst [vmem:[%s12484_s12 + $0x8] sm:$0xff] %v5174_v60  ;;  %v5191_v57 = vpack.c.bf16 %v5174_v60, %v12423_v3 }
 0xa62   :  { %5283 = vmatmul.bf16.gmra.mxu0 %v5191_v57  ;;  %v5274_v48 = vpop.f32.mrf.mxu0 }
 0xa63   :  { %v5275_v46 = vadd.f32 %v8268_v58, %v5274_v48 }
 0xa65   :  { %5291 = vst [vmem:[%s12488_s11 + $0x10] sm:$0xff] %v5275_v46 }
 0xa6a   :  { %v5276_v63 = vpop.f32.mrf.mxu0 }
 0xa6b   :  { %v5277_v41 = vadd.f32 %v8268_v58, %v5276_v63 }
 0xa6d   :  { %5292 = vst [vmem:[%s12488_s11 + $0x18] sm:$0xff] %v5277_v41 }
 0xa72   :  { %v5279_v36 = vpop.f32.mrf.mxu0 }
 0xa73   :  { %v5280_v1 = vadd.f32 %v8268_v58, %v5279_v36 }
 0xa75   :  { %5293 = vst [vmem:[%s12488_s11 + $0x20] sm:$0xff] %v5280_v1 }
 0xa7a   :  { %v5281_v49 = vpop.f32.mrf.mxu0 }
 0xa7b   :  { %v5282_v42 = vadd.f32 %v8268_v58, %v5281_v49 }
 0xa7d   :  { %5294 = vst [vmem:[%s12488_s11 + $0x28] sm:$0xff] %v5282_v42 }
 0xadf   :  { %v5284_v45 = vpop.f32.mrf.mxu0 }
 0xae0   :  { %v5285_v52 = vadd.f32 %v8268_v58, %v5284_v45 }
 0xae2   :  { %5295 = vst [vmem:[%s12488_s11 + $0x30] sm:$0xff] %v5285_v52 }
 0xae7   :  { %v5286_v62 = vpop.f32.mrf.mxu0 }
 0xae8   :  { %v5287_v32 = vadd.f32 %v8268_v58, %v5286_v62 }
 0xaea   :  { %5296 = vst [vmem:[%s12488_s11 + $0x38] sm:$0xff] %v5287_v32 }

</bundles_post_ra>
